<compile_context>
chip_gen: v7x
topology: tpu7x:2x2x1
jax: 0.10.0
libtpu: 0.0.40
codegen_flags: <defaults>
</compile_context>

<pallas_src>
import numpy as np
import jax
import jax.numpy as jnp
from jax import lax
from jax.experimental import pallas as pl
from jax.experimental.pallas import tpu as pltpu

EMB_DIM = 94               # chosen so D = emb_dim + 34 = 128 (lane friendly)
D_IN = EMB_DIM + 34        # 128
H_DIM = D_IN // 2          # 64  == self.h_dim = (emb_dim + 34) // 2
N_LABELS = 2
N_LAYERS = 2
PAD_LANES = 128            # padded output width of the fused final Linear
FEATURE_SIZES = [25, 26, 12, 6, 94, 32]    # feature:0 .. feature:5, emb dim 5 each
DOMAINS = ['OC', 'OY', 'OW', 'PB', 'PM', 'PN']


# ----------------------------- Pallas kernel --------------------------------

def _make_model_kernel(S, B, n_layers):
    """One grid step == one fused 4-unit bi-LSTM layer (+ Linear head at the end).

    Grid: (n_layers,), dimension_semantics=("arbitrary",).

    Refs (per grid step l):
      x_ref:      (S*B, 512) bf16      layer-0 rows [x(t) | x(S-1-t) | 0 | 0]
      wx_ref:     (1, 512, 1024) bf16  fused input-projection weights of layer l
      wh_ref:     (1, 256, 1024) bf16  fused block-diagonal recurrent weights
      b_ref:      (1, 1, 1024) f32     combined biases (b_ih + b_hh), g-block x2
      wl_ref:     (512, 128) bf16      final Linear weight (row-mapped, padded)
      bl_ref:     (1, 128) f32         final Linear bias (lane-padded)
      logits_ref: (S*B, 128) f32       padded logits (written on last layer only)
      act_ref:    (S*B, 512) f32 scratch; row t = [h_fwd(t) | h_bwd(S-1-t) |
                                                   h_fwd(S-1-t) | h_bwd(t)],
                  h_* = [common(64) | specific(64)]
      gx_ref:     (S*B, 1024) f32 scratch; hoisted input projection + bias
    """
    def kernel(x_ref, wx_ref, wh_ref, b_ref, wl_ref, bl_ref,
               logits_ref, act_ref, gx_ref):
        l = pl.program_id(0)
        W4 = wh_ref.shape[1]          # 256 : fused state width [cf sf cb sb]

        # Hoisted input projection (+ bias) for all time steps / all 4 units:
        # one (S*B, 512) x (512, 1024) bf16 MXU matmul off the serial chain.
        @pl.when(l == 0)
        def _():
            gx_ref[...] = (jnp.dot(x_ref[...], wx_ref[0],
                                   preferred_element_type=jnp.float32)
                           + b_ref[0])

        @pl.when(l > 0)
        def _():
            # act_ref still holds layer l-1's output; it is consumed entirely
            # here and only then overwritten by the time loop below.
            gx_ref[...] = (jnp.dot(act_ref[...].astype(jnp.bfloat16), wx_ref[0],
                                   preferred_element_type=jnp.float32)
                           + b_ref[0])

        wh = wh_ref[0]                                   # (256, 1024) bf16
        h = jnp.zeros((B, W4), jnp.float32)
        c = jnp.zeros((B, W4), jnp.float32)

        # Fully unrolled fused fwd+bwd recurrence: at step t the fwd half of
        # the state is at time t, the bwd half at time S-1-t.
        for t in range(S):
            r = slice(t * B, (t + 1) * B)
            rr = slice((S - 1 - t) * B, (S - t) * B)
            gates = gx_ref[r, :] + jnp.dot(h.astype(jnp.bfloat16), wh,
                                           preferred_element_type=jnp.float32)
            s = jax.nn.sigmoid(gates)                    # one EUP pass (B,1024)
            i = s[:, 0 * W4:1 * W4]
            f = s[:, 1 * W4:2 * W4]
            g = 2.0 * s[:, 2 * W4:3 * W4] - 1.0          # tanh == 2*sig(2x)-1
            o = s[:, 3 * W4:4 * W4]
            c = f * c + i * g
            h = o * jnp.tanh(c)
            # Two contiguous, unmasked (B, 256) stores of the fused state.
            act_ref[r, 0:W4] = h                  # row t:      [fwd(t) | bwd(S-1-t)]
            act_ref[rr, W4:2 * W4] = h            # row S-1-t:  [fwd | bwd] rev view

        # Fused final Linear on the last layer's activations (the reversed-time
        # rows of wl are zero), padded to 128 output lanes.
        @pl.when(l == n_layers - 1)
        def _():
            logits_ref[...] = (jnp.dot(act_ref[...].astype(jnp.bfloat16),
                                       wl_ref[...],
                                       preferred_element_type=jnp.float32)
                               + bl_ref[...])
    return kernel


def _run_fused_model(fused, x_bsd):
    """x_bsd: (B, S, D) LSTM input -> (B, S, N_LABELS) logits."""
    B0, S, D = x_bsd.shape
    Bp = max(8, ((B0 + 7) // 8) * 8)        # sublane-aligned padded batch

    x_pad = jnp.zeros((Bp, S, D), jnp.float32).at[:B0].set(
        x_bsd.astype(jnp.float32))
    x_sbd = jnp.transpose(x_pad, (1, 0, 2))                  # (S, Bp, D)
    x_rev = x_sbd[::-1]                                      # time-reversed
    # Layer-0 rows: [x(t) | x(S-1-t) | 0 | 0]; the zero half matches zero rows
    # in the fused layer-0 W_x (kept 512-wide so wx stacks uniformly per layer).
    xb0 = jnp.concatenate(
        [x_sbd, x_rev, jnp.zeros((S, Bp, 2 * D), jnp.float32)], axis=-1)
    xb0 = xb0.reshape(S * Bp, 4 * D).astype(jnp.bfloat16)    # (S*Bp, 512)

    n_layers = fused['wx'].shape[0]
    XR = fused['wx'].shape[1]            # 512
    GW = fused['wx'].shape[2]            # 1024
    W4 = fused['wh'].shape[1]            # 256

    logits_pad = pl.pallas_call(
        _make_model_kernel(S, Bp, n_layers),
        out_shape=jax.ShapeDtypeStruct((S * Bp, PAD_LANES), jnp.float32),
        grid_spec=pltpu.PrefetchScalarGridSpec(
            num_scalar_prefetch=0,
            grid=(n_layers,),
            in_specs=[
                pl.BlockSpec((S * Bp, XR), lambda l: (0, 0)),      # xb0
                pl.BlockSpec((1, XR, GW), lambda l: (l, 0, 0)),    # wx (per layer)
                pl.BlockSpec((1, W4, GW), lambda l: (l, 0, 0)),    # wh (per layer)
                pl.BlockSpec((1, 1, GW), lambda l: (l, 0, 0)),     # b  (per layer)
                pl.BlockSpec((XR, PAD_LANES), lambda l: (0, 0)),   # wl
                pl.BlockSpec((1, PAD_LANES), lambda l: (0, 0)),    # bl
            ],
            out_specs=pl.BlockSpec((S * Bp, PAD_LANES), lambda l: (0, 0)),
            scratch_shapes=[pltpu.VMEM((S * Bp, XR), jnp.float32),   # activations
                            pltpu.VMEM((S * Bp, GW), jnp.float32)],  # gx
        ),
        compiler_params=pltpu.CompilerParams(
            dimension_semantics=("arbitrary",)),
    )(xb0, fused['wx'], fused['wh'], fused['b'], fused['wl'], fused['bl'])

    logits = logits_pad[:, :N_LABELS].reshape(S, Bp, N_LABELS)
    return jnp.transpose(logits, (1, 0, 2))[:B0]             # (B, S, N_LABELS)


# ----------------------- fused-weight preparation ----------------------------

def prepare_fused_params(params, domain):
    """Build the fused/transposed weights ONCE (host-side, per domain).

    Fused state columns (width 256): [common-fwd | specific-fwd | common-bwd |
    specific-bwd], 64 each.  Gate columns (width 1024): [i | f | g | o] blocks
    of 256 in unit order; the g block carries an extra 2x so tanh can be
    computed as 2*sigmoid(.)-1 inside the kernel.

    Activation / layer-input row layout (width 512) at time-row t:
      slot0   0:128   fwd hidden at t       = [cf(t)     | sf(t)]
      slot1 128:256   bwd hidden at S-1-t   = [cb(S-1-t) | sb(S-1-t)]
      slot2 256:384   fwd hidden at S-1-t   = [cf(S-1-t) | sf(S-1-t)]
      slot3 384:512   bwd hidden at t       = [cb(t)     | sb(t)]
    Layer 0 uses slot0 = x(t), slot1 = x(S-1-t), slots 2/3 zero.
    """
    H = H_DIM
    W4 = 4 * H                 # 256
    GW = 4 * W4                # 1024
    XR = 2 * W4                # 512
    L = len(params['common_lstm'])
    units = [('common', 'f'), ('specific', 'f'), ('common', 'b'), ('specific', 'b')]

    wx = np.zeros((L, XR, GW), np.float32)
    wh = np.zeros((L, W4, GW), np.float32)
    bb = np.zeros((L, 1, GW), np.float32)
    for l in range(L):
        for u, (chain, d) in enumerate(units):
            p = (params['common_lstm'][l] if chain == 'common'
                 else params['specific_lstm'][domain][l])
            wih = np.asarray(p[f'w_ih_{d}'])                     # (256, 128)
            whh = np.asarray(p[f'w_hh_{d}'])                     # (256, 64)
            bias = np.asarray(p[f'b_ih_{d}']) + np.asarray(p[f'b_hh_{d}'])
            co = 0 if chain == 'common' else H
            for gi in range(4):            # PyTorch gate row order: i, f, g, o
                scale = 2.0 if gi == 2 else 1.0        # fold tanh->sigmoid 2x
                cols = slice(gi * W4 + u * H, gi * W4 + (u + 1) * H)
                wg_ih = wih[gi * H:(gi + 1) * H, :]              # (64, 128)
                wg_hh = whh[gi * H:(gi + 1) * H, :]              # (64, 64)
                if l == 0:
                    # layer-0 raw x lives in slot0 (fwd units) / slot1 (bwd).
                    base = 0 if d == 'f' else 2 * H
                    wx[l, base:base + 2 * H, cols] = scale * wg_ih.T
                else:
                    # prev-layer input of this unit = [fwd_prev | bwd_prev] of
                    # its own chain at its own time step.
                    fwd_slot = 0 if d == 'f' else 2
                    bwd_slot = 3 if d == 'f' else 1
                    rf = fwd_slot * 2 * H + co
                    rb = bwd_slot * 2 * H + co
                    wx[l, rf:rf + H, cols] = scale * wg_ih[:, :H].T
                    wx[l, rb:rb + H, cols] = scale * wg_ih[:, H:].T
                wh[l, u * H:(u + 1) * H, cols] = scale * wg_hh.T
                bb[l, 0, cols] = scale * bias[gi * H:(gi + 1) * H]

    # Final Linear: PyTorch input order per time t is [cf cb sf sb]; map onto
    # the natural-time slots of the activation row layout.
    wl1 = np.asarray(params['l1'][domain]['w'])                  # (2, 256)
    bl1 = np.asarray(params['l1'][domain]['b'])                  # (2,)
    wl = np.zeros((XR, PAD_LANES), np.float32)
    act_rows = {0: 0,        # cf(t) -> act cols   0:64
                1: 6 * H,    # cb(t) -> act cols 384:448
                2: H,        # sf(t) -> act cols  64:128
                3: 7 * H}    # sb(t) -> act cols 448:512
    for sblk, arow in act_rows.items():
        wl[arow:arow + H, :N_LABELS] = wl1[:, sblk * H:(sblk + 1) * H].T
    bl = np.zeros((1, PAD_LANES), np.float32)
    bl[0, :N_LABELS] = bl1

    return {'wx': jnp.asarray(wx, jnp.bfloat16),
            'wh': jnp.asarray(wh, jnp.bfloat16),
            'b': jnp.asarray(bb, jnp.float32),
            'wl': jnp.asarray(wl, jnp.bfloat16),
            'bl': jnp.asarray(bl, jnp.float32)}


# ------------------------------ parameters ----------------------------------

def _lstm_params(key):
    ks = jax.random.split(key, 8)
    bound = 1.0 / np.sqrt(H_DIM)

    def u(k, shape):
        return jax.random.uniform(k, shape, jnp.float32, -bound, bound)

    return {
        'w_ih_f': u(ks[0], (4 * H_DIM, D_IN)),
        'w_hh_f': u(ks[1], (4 * H_DIM, H_DIM)),
        'b_ih_f': u(ks[2], (4 * H_DIM,)),
        'b_hh_f': u(ks[3], (4 * H_DIM,)),
        'w_ih_b': u(ks[4], (4 * H_DIM, D_IN)),
        'w_hh_b': u(ks[5], (4 * H_DIM, H_DIM)),
        'b_ih_b': u(ks[6], (4 * H_DIM,)),
        'b_hh_b': u(ks[7], (4 * H_DIM,)),
    }


def init_params(key, v_size):
    keys = iter(jax.random.split(key, 64))
    params = {}
    # word_embed weight is copied from v_vec in the module; synth it here.
    params['word_embed'] = 0.1 * jax.random.normal(next(keys), (v_size, EMB_DIM),
                                                   jnp.float32)
    feat_embeds = []
    for sz in FEATURE_SIZES:
        w = 0.1 * jax.random.normal(next(keys), (sz, 5), jnp.float32)
        w = w.at[0].set(0.0)               # padding_idx row zeroed, as in __init__
        feat_embeds.append(w)
    params['feature_embeds'] = feat_embeds

    params['common_lstm'] = [_lstm_params(next(keys)) for _ in range(N_LAYERS)]
    params['specific_lstm'] = {d: [_lstm_params(next(keys)) for _ in range(N_LAYERS)]
                               for d in DOMAINS}

    params['l1'] = {}
    bound = 1.0 / np.sqrt(4 * H_DIM)
    for d in DOMAINS:
        kw, kb = jax.random.split(next(keys))
        params['l1'][d] = {
            'w': jax.random.uniform(kw, (N_LABELS, 4 * H_DIM), jnp.float32,
                                    -bound, bound),
            'b': jax.random.uniform(kb, (N_LABELS,), jnp.float32, -bound, bound),
        }
    return params


# ------------------------------ forward pass ---------------------------------

def feature_augmentation_forward(params, fused, x_words, x_feat_idx, x_float):
    # Embedding lookups + concat (glue, matches torch.cat(..., dim=2)).
    word_emb = jnp.take(params['word_embed'], x_words, axis=0)          # (B,S,emb)
    feat_embs = [jnp.take(params['feature_embeds'][i], x_feat_idx[i], axis=0)
                 for i in range(6)]                                      # (B,S,5) x6
    x = jnp.concatenate([word_emb] + feat_embs + [x_float.astype(jnp.float32)],
                        axis=2)                                          # (B,S,128)
    # self.drop_target: identity at inference time.
    return _run_fused_model(fused, x)                                    # (B,S,2)


# -------------------------- pure-JAX reference --------------------------------

def _ref_lstm_dir(x_sbd, wih, whh, bih, bhh, reverse):
    S, B, _ = x_sbd.shape
    H = whh.shape[1]

    def cell(carry, x_t):
        h, c = carry
        gates = x_t @ wih.T + h @ whh.T + bih + bhh
        i = jax.nn.sigmoid(gates[:, :H])
        f = jax.nn.sigmoid(gates[:, H:2 * H])
        g = jnp.tanh(gates[:, 2 * H:3 * H])
        o = jax.nn.sigmoid(gates[:, 3 * H:])
        c = f * c + i * g
        h = o * jnp.tanh(c)
        return (h, c), h

    h0 = jnp.zeros((B, H), jnp.float32)
    c0 = jnp.zeros((B, H), jnp.float32)
    xs = x_sbd[::-1] if reverse else x_sbd
    _, hs = lax.scan(cell, (h0, c0), xs)
    return hs[::-1] if reverse else hs


def _ref_bilstm(x_bsd, p):
    x_sbd = jnp.transpose(x_bsd, (1, 0, 2)).astype(jnp.float32)
    hf = _ref_lstm_dir(x_sbd, p['w_ih_f'], p['w_hh_f'], p['b_ih_f'], p['b_hh_f'], False)
    hb = _ref_lstm_dir(x_sbd, p['w_ih_b'], p['w_hh_b'], p['b_ih_b'], p['b_hh_b'], True)
    return jnp.transpose(jnp.concatenate([hf, hb], axis=-1), (1, 0, 2))


def reference_forward(params, x_words, x_feat_idx, x_float, domain):
    word_emb = jnp.take(params['word_embed'], x_words, axis=0)
    feat_embs = [jnp.take(params['feature_embeds'][i], x_feat_idx[i], axis=0)
                 for i in range(6)]
    x = jnp.concatenate([word_emb] + feat_embs + [x_float.astype(jnp.float32)], axis=2)
    out1 = x
    out2 = x
    for i in range(N_LAYERS):
        out1 = _ref_bilstm(out1, params['common_lstm'][i])
        out2 = _ref_bilstm(out2, params['specific_lstm'][domain][i])
    out = jnp.concatenate([out1, out2], axis=2)
    w = params['l1'][domain]['w']
    b = params['l1'][domain]['b']
    return out @ w.T + b


# ----------------------------------- main -------------------------------------

if __name__ == "__main__":
    key = jax.random.PRNGKey(0)
    k_params, k_w, k_feat, k_float = jax.random.split(key, 4)

    B, S = 2, 8
    V_SIZE = 50
    domain = 'OC'

    params = init_params(k_params, V_SIZE)
    fused = prepare_fused_params(params, domain)     # one-time weight prep

    # x[0]: word indices, x[1]: list of 6 feature index tensors, x[2]: float feats
    x_words = jax.random.randint(k_w, (B, S), 0, V_SIZE, dtype=jnp.int32)
    feat_keys = jax.random.split(k_feat, 6)
    x_feat_idx = [jax.random.randint(feat_keys[i], (B, S), 0, FEATURE_SIZES[i],
                                     dtype=jnp.int32) for i in range(6)]
    x_float = jax.random.normal(k_float, (B, S, 4), jnp.float32)

    fwd = jax.jit(feature_augmentation_forward)
    out = fwd(params, fused, x_words, x_feat_idx, x_float)
    out = jax.block_until_ready(out)
    assert out.shape == (B, S, N_LABELS)

    ref = jax.block_until_ready(
        reference_forward(params, x_words, x_feat_idx, x_float, domain))
    # bf16 weights / matmul inputs vs the pure-f32 reference.
    np.testing.assert_allclose(np.asarray(out), np.asarray(ref),
                               rtol=3e-2, atol=3e-2)

    print("KERNEL_OK")
</pallas_src>

<mosaic_0001>
module attributes {stable_mosaic.version = 11 : i64} {
  func.func @kernel(%arg0: i32, %arg1: memref<64x512xbf16, #tpu.memory_space<vmem>>, %arg2: memref<1x512x1024xbf16, #tpu.memory_space<vmem>>, %arg3: memref<1x256x1024xbf16, #tpu.memory_space<vmem>>, %arg4: memref<1x1x1024xf32, #tpu.memory_space<vmem>>, %arg5: memref<512x128xbf16, #tpu.memory_space<vmem>>, %arg6: memref<1x128xf32, #tpu.memory_space<vmem>>, %arg7: memref<64x128xf32, #tpu.memory_space<vmem>>, %arg8: memref<64x512xf32, #tpu.memory_space<vmem>>, %arg9: memref<64x1024xf32, #tpu.memory_space<vmem>>) attributes {dimension_semantics = [#tpu.dimension_semantics<arbitrary>], iteration_bounds = array<i64: 2>, scalar_prefetch = 0 : i64, scratch_operands = 2 : i64, tpu.core_type = #tpu.core_type<tc>, window_params = [{pipeline_mode = #tpu.pipeline_mode<synchronous>, transform_indices = @transform_0, window_bounds = array<i64: 64, 512>}, {transform_indices = @transform_1, window_bounds = array<i64: 1, 512, 1024>}, {transform_indices = @transform_2, window_bounds = array<i64: 1, 256, 1024>}, {transform_indices = @transform_3, window_bounds = array<i64: 1, 1, 1024>}, {pipeline_mode = #tpu.pipeline_mode<synchronous>, transform_indices = @transform_4, window_bounds = array<i64: 512, 128>}, {pipeline_mode = #tpu.pipeline_mode<synchronous>, transform_indices = @transform_5, window_bounds = array<i64: 1, 128>}, {pipeline_mode = #tpu.pipeline_mode<synchronous>, transform_indices = @transform_6, window_bounds = array<i64: 64, 128>}]} {
    %c0_i32 = arith.constant 0 : i32
    %0 = arith.cmpi eq, %arg0, %c0_i32 : i32
    %1 = arith.extui %0 : i1 to i32
    %c0_i32_0 = arith.constant 0 : i32
    %2 = arith.cmpi ne, %1, %c0_i32_0 : i32
    scf.if %2 {
      %c0_79 = arith.constant 0 : index
      %c0_80 = arith.constant 0 : index
      %205 = vector.load %arg1[%c0_79, %c0_80] : memref<64x512xbf16, #tpu.memory_space<vmem>>, vector<64x512xbf16>
      %c0_81 = arith.constant 0 : index
      %c0_82 = arith.constant 0 : index
      %c0_83 = arith.constant 0 : index
      %206 = vector.load %arg2[%c0_81, %c0_82, %c0_83] : memref<1x512x1024xbf16, #tpu.memory_space<vmem>>, vector<1x512x1024xbf16>
      %207 = vector.shape_cast %206 : vector<1x512x1024xbf16> to vector<512x1024xbf16>
      %cst_84 = arith.constant dense<0.000000e+00> : vector<64x1024xf32>
      %208 = tpu.matmul %205, %207, %cst_84 {dimension_numbers = #tpu.dot_dimension_numbers<[1], [0], [0], [1], [0, 0, 1, 1], [], []>} : vector<64x512xbf16>, vector<512x1024xbf16>, vector<64x1024xf32> -> vector<64x1024xf32>
      %c0_85 = arith.constant 0 : index
      %c0_86 = arith.constant 0 : index
      %c0_87 = arith.constant 0 : index
      %209 = vector.load %arg4[%c0_85, %c0_86, %c0_87] : memref<1x1x1024xf32, #tpu.memory_space<vmem>>, vector<1x1x1024xf32>
      %210 = vector.shape_cast %209 : vector<1x1x1024xf32> to vector<1x1024xf32>
      %211 = vector.broadcast %210 : vector<1x1024xf32> to vector<64x1024xf32>
      %212 = arith.addf %208, %211 : vector<64x1024xf32>
      %c0_88 = arith.constant 0 : index
      %c0_89 = arith.constant 0 : index
      %213 = vector.load %arg9[%c0_88, %c0_89] : memref<64x1024xf32, #tpu.memory_space<vmem>>, vector<64x1024xf32>
      tpu.vector_store %arg9[%c0_88, %c0_89], %212 {strides = array<i32>} : memref<64x1024xf32, #tpu.memory_space<vmem>>, vector<64x1024xf32>,
    } else {
    }
    %c0_i32_1 = arith.constant 0 : i32
    %3 = arith.cmpi sgt, %arg0, %c0_i32_1 : i32
    %4 = arith.extui %3 : i1 to i32
    %c0_i32_2 = arith.constant 0 : i32
    %5 = arith.cmpi ne, %4, %c0_i32_2 : i32
    scf.if %5 {
      %c0_79 = arith.constant 0 : index
      %c0_80 = arith.constant 0 : index
      %205 = vector.load %arg8[%c0_79, %c0_80] : memref<64x512xf32, #tpu.memory_space<vmem>>, vector<64x512xf32>
      %206 = arith.truncf %205 : vector<64x512xf32> to vector<64x512xbf16>
      %c0_81 = arith.constant 0 : index
      %c0_82 = arith.constant 0 : index
      %c0_83 = arith.constant 0 : index
      %207 = vector.load %arg2[%c0_81, %c0_82, %c0_83] : memref<1x512x1024xbf16, #tpu.memory_space<vmem>>, vector<1x512x1024xbf16>
      %208 = vector.shape_cast %207 : vector<1x512x1024xbf16> to vector<512x1024xbf16>
      %cst_84 = arith.constant dense<0.000000e+00> : vector<64x1024xf32>
      %209 = tpu.matmul %206, %208, %cst_84 {dimension_numbers = #tpu.dot_dimension_numbers<[1], [0], [0], [1], [0, 0, 1, 1], [], []>} : vector<64x512xbf16>, vector<512x1024xbf16>, vector<64x1024xf32> -> vector<64x1024xf32>
      %c0_85 = arith.constant 0 : index
      %c0_86 = arith.constant 0 : index
      %c0_87 = arith.constant 0 : index
      %210 = vector.load %arg4[%c0_85, %c0_86, %c0_87] : memref<1x1x1024xf32, #tpu.memory_space<vmem>>, vector<1x1x1024xf32>
      %211 = vector.shape_cast %210 : vector<1x1x1024xf32> to vector<1x1024xf32>
      %212 = vector.broadcast %211 : vector<1x1024xf32> to vector<64x1024xf32>
      %213 = arith.addf %209, %212 : vector<64x1024xf32>
      %c0_88 = arith.constant 0 : index
      %c0_89 = arith.constant 0 : index
      %214 = vector.load %arg9[%c0_88, %c0_89] : memref<64x1024xf32, #tpu.memory_space<vmem>>, vector<64x1024xf32>
      tpu.vector_store %arg9[%c0_88, %c0_89], %213 {strides = array<i32>} : memref<64x1024xf32, #tpu.memory_space<vmem>>, vector<64x1024xf32>,
    } else {
    }
    %c0 = arith.constant 0 : index
    %c0_3 = arith.constant 0 : index
    %c0_4 = arith.constant 0 : index
    %6 = vector.load %arg3[%c0, %c0_3, %c0_4] : memref<1x256x1024xbf16, #tpu.memory_space<vmem>>, vector<1x256x1024xbf16>
    %7 = vector.shape_cast %6 : vector<1x256x1024xbf16> to vector<256x1024xbf16>
    %cst = arith.constant 0.000000e+00 : f32
    %8 = vector.broadcast %cst : f32 to vector<8x256xf32>
    %cst_5 = arith.constant 0.000000e+00 : f32
    %9 = vector.broadcast %cst_5 : f32 to vector<8x256xf32>
    %c0_6 = arith.constant 0 : index
    %c0_7 = arith.constant 0 : index
    %10 = vector.load %arg9[%c0_6, %c0_7] : memref<64x1024xf32, #tpu.memory_space<vmem>>, vector<8x1024xf32>
    %11 = arith.truncf %8 : vector<8x256xf32> to vector<8x256xbf16>
    %cst_8 = arith.constant dense<0.000000e+00> : vector<8x1024xf32>
    %12 = tpu.matmul %11, %7, %cst_8 {dimension_numbers = #tpu.dot_dimension_numbers<[1], [0], [0], [1], [0, 0, 1, 1], [], []>} : vector<8x256xbf16>, vector<256x1024xbf16>, vector<8x1024xf32> -> vector<8x1024xf32>
    %13 = arith.addf %10, %12 : vector<8x1024xf32>
    %14 = arith.negf %13 : vector<8x1024xf32>
    %15 = math.exp %14 : vector<8x1024xf32>
    %cst_9 = arith.constant 1.000000e+00 : f32
    %16 = vector.broadcast %cst_9 : f32 to vector<8x1024xf32>
    %17 = arith.addf %16, %15 : vector<8x1024xf32>
    %18 = arith.divf %16, %17 : vector<8x1024xf32>
    %19 = vector.extract_strided_slice %18 {offsets = [0, 0], sizes = [8, 256], strides = [1, 1]} : vector<8x1024xf32> to vector<8x256xf32>
    %20 = vector.extract_strided_slice %18 {offsets = [0, 256], sizes = [8, 256], strides = [1, 1]} : vector<8x1024xf32> to vector<8x256xf32>
    %21 = vector.extract_strided_slice %18 {offsets = [0, 512], sizes = [8, 256], strides = [1, 1]} : vector<8x1024xf32> to vector<8x256xf32>
    %cst_10 = arith.constant 2.000000e+00 : f32
    %22 = vector.broadcast %cst_10 : f32 to vector<8x256xf32>
    %23 = arith.mulf %22, %21 : vector<8x256xf32>
    %cst_11 = arith.constant 1.000000e+00 : f32
    %24 = vector.broadcast %cst_11 : f32 to vector<8x256xf32>
    %25 = arith.subf %23, %24 : vector<8x256xf32>
    %26 = vector.extract_strided_slice %18 {offsets = [0, 768], sizes = [8, 256], strides = [1, 1]} : vector<8x1024xf32> to vector<8x256xf32>
    %27 = arith.mulf %20, %9 : vector<8x256xf32>
    %28 = arith.mulf %19, %25 : vector<8x256xf32>
    %29 = arith.addf %27, %28 : vector<8x256xf32>
    %30 = math.tanh %29 : vector<8x256xf32>
    %31 = arith.mulf %26, %30 : vector<8x256xf32>
    %c0_12 = arith.constant 0 : index
    %c0_13 = arith.constant 0 : index
    %32 = vector.load %arg8[%c0_12, %c0_13] : memref<64x512xf32, #tpu.memory_space<vmem>>, vector<8x256xf32>
    tpu.vector_store %arg8[%c0_12, %c0_13], %31 {strides = array<i32>} : memref<64x512xf32, #tpu.memory_space<vmem>>, vector<8x256xf32>,
    %c56 = arith.constant 56 : index
    %c256 = arith.constant 256 : index
    %33 = vector.load %arg8[%c56, %c256] : memref<64x512xf32, #tpu.memory_space<vmem>>, vector<8x256xf32>
    tpu.vector_store %arg8[%c56, %c256], %31 {strides = array<i32>} : memref<64x512xf32, #tpu.memory_space<vmem>>, vector<8x256xf32>,
    %c8 = arith.constant 8 : index
    %c0_14 = arith.constant 0 : index
    %34 = vector.load %arg9[%c8, %c0_14] : memref<64x1024xf32, #tpu.memory_space<vmem>>, vector<8x1024xf32>
    %35 = arith.truncf %31 : vector<8x256xf32> to vector<8x256xbf16>
    %cst_15 = arith.constant dense<0.000000e+00> : vector<8x1024xf32>
    %36 = tpu.matmul %35, %7, %cst_15 {dimension_numbers = #tpu.dot_dimension_numbers<[1], [0], [0], [1], [0, 0, 1, 1], [], []>} : vector<8x256xbf16>, vector<256x1024xbf16>, vector<8x1024xf32> -> vector<8x1024xf32>
    %37 = arith.addf %34, %36 : vector<8x1024xf32>
    %38 = arith.negf %37 : vector<8x1024xf32>
    %39 = math.exp %38 : vector<8x1024xf32>
    %cst_16 = arith.constant 1.000000e+00 : f32
    %40 = vector.broadcast %cst_16 : f32 to vector<8x1024xf32>
    %41 = arith.addf %40, %39 : vector<8x1024xf32>
    %42 = arith.divf %40, %41 : vector<8x1024xf32>
    %43 = vector.extract_strided_slice %42 {offsets = [0, 0], sizes = [8, 256], strides = [1, 1]} : vector<8x1024xf32> to vector<8x256xf32>
    %44 = vector.extract_strided_slice %42 {offsets = [0, 256], sizes = [8, 256], strides = [1, 1]} : vector<8x1024xf32> to vector<8x256xf32>
    %45 = vector.extract_strided_slice %42 {offsets = [0, 512], sizes = [8, 256], strides = [1, 1]} : vector<8x1024xf32> to vector<8x256xf32>
    %cst_17 = arith.constant 2.000000e+00 : f32
    %46 = vector.broadcast %cst_17 : f32 to vector<8x256xf32>
    %47 = arith.mulf %46, %45 : vector<8x256xf32>
    %cst_18 = arith.constant 1.000000e+00 : f32
    %48 = vector.broadcast %cst_18 : f32 to vector<8x256xf32>
    %49 = arith.subf %47, %48 : vector<8x256xf32>
    %50 = vector.extract_strided_slice %42 {offsets = [0, 768], sizes = [8, 256], strides = [1, 1]} : vector<8x1024xf32> to vector<8x256xf32>
    %51 = arith.mulf %44, %29 : vector<8x256xf32>
    %52 = arith.mulf %43, %49 : vector<8x256xf32>
    %53 = arith.addf %51, %52 : vector<8x256xf32>
    %54 = math.tanh %53 : vector<8x256xf32>
    %55 = arith.mulf %50, %54 : vector<8x256xf32>
    %c8_19 = arith.constant 8 : index
    %c0_20 = arith.constant 0 : index
    %56 = vector.load %arg8[%c8_19, %c0_20] : memref<64x512xf32, #tpu.memory_space<vmem>>, vector<8x256xf32>
    tpu.vector_store %arg8[%c8_19, %c0_20], %55 {strides = array<i32>} : memref<64x512xf32, #tpu.memory_space<vmem>>, vector<8x256xf32>,
    %c48 = arith.constant 48 : index
    %c256_21 = arith.constant 256 : index
    %57 = vector.load %arg8[%c48, %c256_21] : memref<64x512xf32, #tpu.memory_space<vmem>>, vector<8x256xf32>
    tpu.vector_store %arg8[%c48, %c256_21], %55 {strides = array<i32>} : memref<64x512xf32, #tpu.memory_space<vmem>>, vector<8x256xf32>,
    %c16 = arith.constant 16 : index
    %c0_22 = arith.constant 0 : index
    %58 = vector.load %arg9[%c16, %c0_22] : memref<64x1024xf32, #tpu.memory_space<vmem>>, vector<8x1024xf32>
    %59 = arith.truncf %55 : vector<8x256xf32> to vector<8x256xbf16>
    %cst_23 = arith.constant dense<0.000000e+00> : vector<8x1024xf32>
    %60 = tpu.matmul %59, %7, %cst_23 {dimension_numbers = #tpu.dot_dimension_numbers<[1], [0], [0], [1], [0, 0, 1, 1], [], []>} : vector<8x256xbf16>, vector<256x1024xbf16>, vector<8x1024xf32> -> vector<8x1024xf32>
    %61 = arith.addf %58, %60 : vector<8x1024xf32>
    %62 = arith.negf %61 : vector<8x1024xf32>
    %63 = math.exp %62 : vector<8x1024xf32>
    %cst_24 = arith.constant 1.000000e+00 : f32
    %64 = vector.broadcast %cst_24 : f32 to vector<8x1024xf32>
    %65 = arith.addf %64, %63 : vector<8x1024xf32>
    %66 = arith.divf %64, %65 : vector<8x1024xf32>
    %67 = vector.extract_strided_slice %66 {offsets = [0, 0], sizes = [8, 256], strides = [1, 1]} : vector<8x1024xf32> to vector<8x256xf32>
    %68 = vector.extract_strided_slice %66 {offsets = [0, 256], sizes = [8, 256], strides = [1, 1]} : vector<8x1024xf32> to vector<8x256xf32>
    %69 = vector.extract_strided_slice %66 {offsets = [0, 512], sizes = [8, 256], strides = [1, 1]} : vector<8x1024xf32> to vector<8x256xf32>
    %cst_25 = arith.constant 2.000000e+00 : f32
    %70 = vector.broadcast %cst_25 : f32 to vector<8x256xf32>
    %71 = arith.mulf %70, %69 : vector<8x256xf32>
    %cst_26 = arith.constant 1.000000e+00 : f32
    %72 = vector.broadcast %cst_26 : f32 to vector<8x256xf32>
    %73 = arith.subf %71, %72 : vector<8x256xf32>
    %74 = vector.extract_strided_slice %66 {offsets = [0, 768], sizes = [8, 256], strides = [1, 1]} : vector<8x1024xf32> to vector<8x256xf32>
    %75 = arith.mulf %68, %53 : vector<8x256xf32>
    %76 = arith.mulf %67, %73 : vector<8x256xf32>
    %77 = arith.addf %75, %76 : vector<8x256xf32>
    %78 = math.tanh %77 : vector<8x256xf32>
    %79 = arith.mulf %74, %78 : vector<8x256xf32>
    %c16_27 = arith.constant 16 : index
    %c0_28 = arith.constant 0 : index
    %80 = vector.load %arg8[%c16_27, %c0_28] : memref<64x512xf32, #tpu.memory_space<vmem>>, vector<8x256xf32>
    tpu.vector_store %arg8[%c16_27, %c0_28], %79 {strides = array<i32>} : memref<64x512xf32, #tpu.memory_space<vmem>>, vector<8x256xf32>,
    %c40 = arith.constant 40 : index
    %c256_29 = arith.constant 256 : index
    %81 = vector.load %arg8[%c40, %c256_29] : memref<64x512xf32, #tpu.memory_space<vmem>>, vector<8x256xf32>
    tpu.vector_store %arg8[%c40, %c256_29], %79 {strides = array<i32>} : memref<64x512xf32, #tpu.memory_space<vmem>>, vector<8x256xf32>,
    %c24 = arith.constant 24 : index
    %c0_30 = arith.constant 0 : index
    %82 = vector.load %arg9[%c24, %c0_30] : memref<64x1024xf32, #tpu.memory_space<vmem>>, vector<8x1024xf32>
    %83 = arith.truncf %79 : vector<8x256xf32> to vector<8x256xbf16>
    %cst_31 = arith.constant dense<0.000000e+00> : vector<8x1024xf32>
    %84 = tpu.matmul %83, %7, %cst_31 {dimension_numbers = #tpu.dot_dimension_numbers<[1], [0], [0], [1], [0, 0, 1, 1], [], []>} : vector<8x256xbf16>, vector<256x1024xbf16>, vector<8x1024xf32> -> vector<8x1024xf32>
    %85 = arith.addf %82, %84 : vector<8x1024xf32>
    %86 = arith.negf %85 : vector<8x1024xf32>
    %87 = math.exp %86 : vector<8x1024xf32>
    %cst_32 = arith.constant 1.000000e+00 : f32
    %88 = vector.broadcast %cst_32 : f32 to vector<8x1024xf32>
    %89 = arith.addf %88, %87 : vector<8x1024xf32>
    %90 = arith.divf %88, %89 : vector<8x1024xf32>
    %91 = vector.extract_strided_slice %90 {offsets = [0, 0], sizes = [8, 256], strides = [1, 1]} : vector<8x1024xf32> to vector<8x256xf32>
    %92 = vector.extract_strided_slice %90 {offsets = [0, 256], sizes = [8, 256], strides = [1, 1]} : vector<8x1024xf32> to vector<8x256xf32>
    %93 = vector.extract_strided_slice %90 {offsets = [0, 512], sizes = [8, 256], strides = [1, 1]} : vector<8x1024xf32> to vector<8x256xf32>
    %cst_33 = arith.constant 2.000000e+00 : f32
    %94 = vector.broadcast %cst_33 : f32 to vector<8x256xf32>
    %95 = arith.mulf %94, %93 : vector<8x256xf32>
    %cst_34 = arith.constant 1.000000e+00 : f32
    %96 = vector.broadcast %cst_34 : f32 to vector<8x256xf32>
    %97 = arith.subf %95, %96 : vector<8x256xf32>
    %98 = vector.extract_strided_slice %90 {offsets = [0, 768], sizes = [8, 256], strides = [1, 1]} : vector<8x1024xf32> to vector<8x256xf32>
    %99 = arith.mulf %92, %77 : vector<8x256xf32>
    %100 = arith.mulf %91, %97 : vector<8x256xf32>
    %101 = arith.addf %99, %100 : vector<8x256xf32>
    %102 = math.tanh %101 : vector<8x256xf32>
    %103 = arith.mulf %98, %102 : vector<8x256xf32>
    %c24_35 = arith.constant 24 : index
    %c0_36 = arith.constant 0 : index
    %104 = vector.load %arg8[%c24_35, %c0_36] : memref<64x512xf32, #tpu.memory_space<vmem>>, vector<8x256xf32>
    tpu.vector_store %arg8[%c24_35, %c0_36], %103 {strides = array<i32>} : memref<64x512xf32, #tpu.memory_space<vmem>>, vector<8x256xf32>,
    %c32 = arith.constant 32 : index
    %c256_37 = arith.constant 256 : index
    %105 = vector.load %arg8[%c32, %c256_37] : memref<64x512xf32, #tpu.memory_space<vmem>>, vector<8x256xf32>
    tpu.vector_store %arg8[%c32, %c256_37], %103 {strides = array<i32>} : memref<64x512xf32, #tpu.memory_space<vmem>>, vector<8x256xf32>,
    %c32_38 = arith.constant 32 : index
    %c0_39 = arith.constant 0 : index
    %106 = vector.load %arg9[%c32_38, %c0_39] : memref<64x1024xf32, #tpu.memory_space<vmem>>, vector<8x1024xf32>
    %107 = arith.truncf %103 : vector<8x256xf32> to vector<8x256xbf16>
    %cst_40 = arith.constant dense<0.000000e+00> : vector<8x1024xf32>
    %108 = tpu.matmul %107, %7, %cst_40 {dimension_numbers = #tpu.dot_dimension_numbers<[1], [0], [0], [1], [0, 0, 1, 1], [], []>} : vector<8x256xbf16>, vector<256x1024xbf16>, vector<8x1024xf32> -> vector<8x1024xf32>
    %109 = arith.addf %106, %108 : vector<8x1024xf32>
    %110 = arith.negf %109 : vector<8x1024xf32>
    %111 = math.exp %110 : vector<8x1024xf32>
    %cst_41 = arith.constant 1.000000e+00 : f32
    %112 = vector.broadcast %cst_41 : f32 to vector<8x1024xf32>
    %113 = arith.addf %112, %111 : vector<8x1024xf32>
    %114 = arith.divf %112, %113 : vector<8x1024xf32>
    %115 = vector.extract_strided_slice %114 {offsets = [0, 0], sizes = [8, 256], strides = [1, 1]} : vector<8x1024xf32> to vector<8x256xf32>
    %116 = vector.extract_strided_slice %114 {offsets = [0, 256], sizes = [8, 256], strides = [1, 1]} : vector<8x1024xf32> to vector<8x256xf32>
    %117 = vector.extract_strided_slice %114 {offsets = [0, 512], sizes = [8, 256], strides = [1, 1]} : vector<8x1024xf32> to vector<8x256xf32>
    %cst_42 = arith.constant 2.000000e+00 : f32
    %118 = vector.broadcast %cst_42 : f32 to vector<8x256xf32>
    %119 = arith.mulf %118, %117 : vector<8x256xf32>
    %cst_43 = arith.constant 1.000000e+00 : f32
    %120 = vector.broadcast %cst_43 : f32 to vector<8x256xf32>
    %121 = arith.subf %119, %120 : vector<8x256xf32>
    %122 = vector.extract_strided_slice %114 {offsets = [0, 768], sizes = [8, 256], strides = [1, 1]} : vector<8x1024xf32> to vector<8x256xf32>
    %123 = arith.mulf %116, %101 : vector<8x256xf32>
    %124 = arith.mulf %115, %121 : vector<8x256xf32>
    %125 = arith.addf %123, %124 : vector<8x256xf32>
    %126 = math.tanh %125 : vector<8x256xf32>
    %127 = arith.mulf %122, %126 : vector<8x256xf32>
    %c32_44 = arith.constant 32 : index
    %c0_45 = arith.constant 0 : index
    %128 = vector.load %arg8[%c32_44, %c0_45] : memref<64x512xf32, #tpu.memory_space<vmem>>, vector<8x256xf32>
    tpu.vector_store %arg8[%c32_44, %c0_45], %127 {strides = array<i32>} : memref<64x512xf32, #tpu.memory_space<vmem>>, vector<8x256xf32>,
    %c24_46 = arith.constant 24 : index
    %c256_47 = arith.constant 256 : index
    %129 = vector.load %arg8[%c24_46, %c256_47] : memref<64x512xf32, #tpu.memory_space<vmem>>, vector<8x256xf32>
    tpu.vector_store %arg8[%c24_46, %c256_47], %127 {strides = array<i32>} : memref<64x512xf32, #tpu.memory_space<vmem>>, vector<8x256xf32>,
    %c40_48 = arith.constant 40 : index
    %c0_49 = arith.constant 0 : index
    %130 = vector.load %arg9[%c40_48, %c0_49] : memref<64x1024xf32, #tpu.memory_space<vmem>>, vector<8x1024xf32>
    %131 = arith.truncf %127 : vector<8x256xf32> to vector<8x256xbf16>
    %cst_50 = arith.constant dense<0.000000e+00> : vector<8x1024xf32>
    %132 = tpu.matmul %131, %7, %cst_50 {dimension_numbers = #tpu.dot_dimension_numbers<[1], [0], [0], [1], [0, 0, 1, 1], [], []>} : vector<8x256xbf16>, vector<256x1024xbf16>, vector<8x1024xf32> -> vector<8x1024xf32>
    %133 = arith.addf %130, %132 : vector<8x1024xf32>
    %134 = arith.negf %133 : vector<8x1024xf32>
    %135 = math.exp %134 : vector<8x1024xf32>
    %cst_51 = arith.constant 1.000000e+00 : f32
    %136 = vector.broadcast %cst_51 : f32 to vector<8x1024xf32>
    %137 = arith.addf %136, %135 : vector<8x1024xf32>
    %138 = arith.divf %136, %137 : vector<8x1024xf32>
    %139 = vector.extract_strided_slice %138 {offsets = [0, 0], sizes = [8, 256], strides = [1, 1]} : vector<8x1024xf32> to vector<8x256xf32>
    %140 = vector.extract_strided_slice %138 {offsets = [0, 256], sizes = [8, 256], strides = [1, 1]} : vector<8x1024xf32> to vector<8x256xf32>
    %141 = vector.extract_strided_slice %138 {offsets = [0, 512], sizes = [8, 256], strides = [1, 1]} : vector<8x1024xf32> to vector<8x256xf32>
    %cst_52 = arith.constant 2.000000e+00 : f32
    %142 = vector.broadcast %cst_52 : f32 to vector<8x256xf32>
    %143 = arith.mulf %142, %141 : vector<8x256xf32>
    %cst_53 = arith.constant 1.000000e+00 : f32
    %144 = vector.broadcast %cst_53 : f32 to vector<8x256xf32>
    %145 = arith.subf %143, %144 : vector<8x256xf32>
    %146 = vector.extract_strided_slice %138 {offsets = [0, 768], sizes = [8, 256], strides = [1, 1]} : vector<8x1024xf32> to vector<8x256xf32>
    %147 = arith.mulf %140, %125 : vector<8x256xf32>
    %148 = arith.mulf %139, %145 : vector<8x256xf32>
    %149 = arith.addf %147, %148 : vector<8x256xf32>
    %150 = math.tanh %149 : vector<8x256xf32>
    %151 = arith.mulf %146, %150 : vector<8x256xf32>
    %c40_54 = arith.constant 40 : index
    %c0_55 = arith.constant 0 : index
    %152 = vector.load %arg8[%c40_54, %c0_55] : memref<64x512xf32, #tpu.memory_space<vmem>>, vector<8x256xf32>
    tpu.vector_store %arg8[%c40_54, %c0_55], %151 {strides = array<i32>} : memref<64x512xf32, #tpu.memory_space<vmem>>, vector<8x256xf32>,
    %c16_56 = arith.constant 16 : index
    %c256_57 = arith.constant 256 : index
    %153 = vector.load %arg8[%c16_56, %c256_57] : memref<64x512xf32, #tpu.memory_space<vmem>>, vector<8x256xf32>
    tpu.vector_store %arg8[%c16_56, %c256_57], %151 {strides = array<i32>} : memref<64x512xf32, #tpu.memory_space<vmem>>, vector<8x256xf32>,
    %c48_58 = arith.constant 48 : index
    %c0_59 = arith.constant 0 : index
    %154 = vector.load %arg9[%c48_58, %c0_59] : memref<64x1024xf32, #tpu.memory_space<vmem>>, vector<8x1024xf32>
    %155 = arith.truncf %151 : vector<8x256xf32> to vector<8x256xbf16>
    %cst_60 = arith.constant dense<0.000000e+00> : vector<8x1024xf32>
    %156 = tpu.matmul %155, %7, %cst_60 {dimension_numbers = #tpu.dot_dimension_numbers<[1], [0], [0], [1], [0, 0, 1, 1], [], []>} : vector<8x256xbf16>, vector<256x1024xbf16>, vector<8x1024xf32> -> vector<8x1024xf32>
    %157 = arith.addf %154, %156 : vector<8x1024xf32>
    %158 = arith.negf %157 : vector<8x1024xf32>
    %159 = math.exp %158 : vector<8x1024xf32>
    %cst_61 = arith.constant 1.000000e+00 : f32
    %160 = vector.broadcast %cst_61 : f32 to vector<8x1024xf32>
    %161 = arith.addf %160, %159 : vector<8x1024xf32>
    %162 = arith.divf %160, %161 : vector<8x1024xf32>
    %163 = vector.extract_strided_slice %162 {offsets = [0, 0], sizes = [8, 256], strides = [1, 1]} : vector<8x1024xf32> to vector<8x256xf32>
    %164 = vector.extract_strided_slice %162 {offsets = [0, 256], sizes = [8, 256], strides = [1, 1]} : vector<8x1024xf32> to vector<8x256xf32>
    %165 = vector.extract_strided_slice %162 {offsets = [0, 512], sizes = [8, 256], strides = [1, 1]} : vector<8x1024xf32> to vector<8x256xf32>
    %cst_62 = arith.constant 2.000000e+00 : f32
    %166 = vector.broadcast %cst_62 : f32 to vector<8x256xf32>
    %167 = arith.mulf %166, %165 : vector<8x256xf32>
    %cst_63 = arith.constant 1.000000e+00 : f32
    %168 = vector.broadcast %cst_63 : f32 to vector<8x256xf32>
    %169 = arith.subf %167, %168 : vector<8x256xf32>
    %170 = vector.extract_strided_slice %162 {offsets = [0, 768], sizes = [8, 256], strides = [1, 1]} : vector<8x1024xf32> to vector<8x256xf32>
    %171 = arith.mulf %164, %149 : vector<8x256xf32>
    %172 = arith.mulf %163, %169 : vector<8x256xf32>
    %173 = arith.addf %171, %172 : vector<8x256xf32>
    %174 = math.tanh %173 : vector<8x256xf32>
    %175 = arith.mulf %170, %174 : vector<8x256xf32>
    %c48_64 = arith.constant 48 : index
    %c0_65 = arith.constant 0 : index
    %176 = vector.load %arg8[%c48_64, %c0_65] : memref<64x512xf32, #tpu.memory_space<vmem>>, vector<8x256xf32>
    tpu.vector_store %arg8[%c48_64, %c0_65], %175 {strides = array<i32>} : memref<64x512xf32, #tpu.memory_space<vmem>>, vector<8x256xf32>,
    %c8_66 = arith.constant 8 : index
    %c256_67 = arith.constant 256 : index
    %177 = vector.load %arg8[%c8_66, %c256_67] : memref<64x512xf32, #tpu.memory_space<vmem>>, vector<8x256xf32>
    tpu.vector_store %arg8[%c8_66, %c256_67], %175 {strides = array<i32>} : memref<64x512xf32, #tpu.memory_space<vmem>>, vector<8x256xf32>,
    %c56_68 = arith.constant 56 : index
    %c0_69 = arith.constant 0 : index
    %178 = vector.load %arg9[%c56_68, %c0_69] : memref<64x1024xf32, #tpu.memory_space<vmem>>, vector<8x1024xf32>
    %179 = arith.truncf %175 : vector<8x256xf32> to vector<8x256xbf16>
    %cst_70 = arith.constant dense<0.000000e+00> : vector<8x1024xf32>
    %180 = tpu.matmul %179, %7, %cst_70 {dimension_numbers = #tpu.dot_dimension_numbers<[1], [0], [0], [1], [0, 0, 1, 1], [], []>} : vector<8x256xbf16>, vector<256x1024xbf16>, vector<8x1024xf32> -> vector<8x1024xf32>
    %181 = arith.addf %178, %180 : vector<8x1024xf32>
    %182 = arith.negf %181 : vector<8x1024xf32>
    %183 = math.exp %182 : vector<8x1024xf32>
    %cst_71 = arith.constant 1.000000e+00 : f32
    %184 = vector.broadcast %cst_71 : f32 to vector<8x1024xf32>
    %185 = arith.addf %184, %183 : vector<8x1024xf32>
    %186 = arith.divf %184, %185 : vector<8x1024xf32>
    %187 = vector.extract_strided_slice %186 {offsets = [0, 0], sizes = [8, 256], strides = [1, 1]} : vector<8x1024xf32> to vector<8x256xf32>
    %188 = vector.extract_strided_slice %186 {offsets = [0, 256], sizes = [8, 256], strides = [1, 1]} : vector<8x1024xf32> to vector<8x256xf32>
    %189 = vector.extract_strided_slice %186 {offsets = [0, 512], sizes = [8, 256], strides = [1, 1]} : vector<8x1024xf32> to vector<8x256xf32>
    %cst_72 = arith.constant 2.000000e+00 : f32
    %190 = vector.broadcast %cst_72 : f32 to vector<8x256xf32>
    %191 = arith.mulf %190, %189 : vector<8x256xf32>
    %cst_73 = arith.constant 1.000000e+00 : f32
    %192 = vector.broadcast %cst_73 : f32 to vector<8x256xf32>
    %193 = arith.subf %191, %192 : vector<8x256xf32>
    %194 = vector.extract_strided_slice %186 {offsets = [0, 768], sizes = [8, 256], strides = [1, 1]} : vector<8x1024xf32> to vector<8x256xf32>
    %195 = arith.mulf %188, %173 : vector<8x256xf32>
    %196 = arith.mulf %187, %193 : vector<8x256xf32>
    %197 = arith.addf %195, %196 : vector<8x256xf32>
    %198 = math.tanh %197 : vector<8x256xf32>
    %199 = arith.mulf %194, %198 : vector<8x256xf32>
    %c56_74 = arith.constant 56 : index
    %c0_75 = arith.constant 0 : index
    %200 = vector.load %arg8[%c56_74, %c0_75] : memref<64x512xf32, #tpu.memory_space<vmem>>, vector<8x256xf32>
    tpu.vector_store %arg8[%c56_74, %c0_75], %199 {strides = array<i32>} : memref<64x512xf32, #tpu.memory_space<vmem>>, vector<8x256xf32>,
    %c0_76 = arith.constant 0 : index
    %c256_77 = arith.constant 256 : index
    %201 = vector.load %arg8[%c0_76, %c256_77] : memref<64x512xf32, #tpu.memory_space<vmem>>, vector<8x256xf32>
    tpu.vector_store %arg8[%c0_76, %c256_77], %199 {strides = array<i32>} : memref<64x512xf32, #tpu.memory_space<vmem>>, vector<8x256xf32>,
    %c1_i32 = arith.constant 1 : i32
    %202 = arith.cmpi eq, %arg0, %c1_i32 : i32
    %203 = arith.extui %202 : i1 to i32
    %c0_i32_78 = arith.constant 0 : i32
    %204 = arith.cmpi ne, %203, %c0_i32_78 : i32
    scf.if %204 {
      %c0_79 = arith.constant 0 : index
      %c0_80 = arith.constant 0 : index
      %205 = vector.load %arg8[%c0_79, %c0_80] : memref<64x512xf32, #tpu.memory_space<vmem>>, vector<64x512xf32>
      %206 = arith.truncf %205 : vector<64x512xf32> to vector<64x512xbf16>
      %c0_81 = arith.constant 0 : index
      %c0_82 = arith.constant 0 : index
      %207 = vector.load %arg5[%c0_81, %c0_82] : memref<512x128xbf16, #tpu.memory_space<vmem>>, vector<512x128xbf16>
      %cst_83 = arith.constant dense<0.000000e+00> : vector<64x128xf32>
      %208 = tpu.matmul %206, %207, %cst_83 {dimension_numbers = #tpu.dot_dimension_numbers<[1], [0], [0], [1], [0, 0, 1, 1], [], []>} : vector<64x512xbf16>, vector<512x128xbf16>, vector<64x128xf32> -> vector<64x128xf32>
      %c0_84 = arith.constant 0 : index
      %c0_85 = arith.constant 0 : index
      %209 = vector.load %arg6[%c0_84, %c0_85] : memref<1x128xf32, #tpu.memory_space<vmem>>, vector<1x128xf32>
      %210 = vector.broadcast %209 : vector<1x128xf32> to vector<64x128xf32>
      %211 = arith.addf %208, %210 : vector<64x128xf32>
      %c0_86 = arith.constant 0 : index
      %c0_87 = arith.constant 0 : index
      %212 = vector.load %arg7[%c0_86, %c0_87] : memref<64x128xf32, #tpu.memory_space<vmem>>, vector<64x128xf32>
      tpu.vector_store %arg7[%c0_86, %c0_87], %211 {strides = array<i32>} : memref<64x128xf32, #tpu.memory_space<vmem>>, vector<64x128xf32>,
    } else {
    }
    return
  }
  func.func @transform_0(%arg0: i32) -> (i32, i32) {
    %c0_i32 = arith.constant 0 : i32
    %c0_i32_0 = arith.constant 0 : i32
    %c0_i32_1 = arith.constant 0 : i32
    return %c0_i32, %c0_i32_0 : i32, i32
  }
  func.func @transform_1(%arg0: i32) -> (i32, i32, i32) {
    %c0_i32 = arith.constant 0 : i32
    %c0_i32_0 = arith.constant 0 : i32
    %c0_i32_1 = arith.constant 0 : i32
    return %arg0, %c0_i32, %c0_i32_0 : i32, i32, i32
  }
  func.func @transform_2(%arg0: i32) -> (i32, i32, i32) {
    %c0_i32 = arith.constant 0 : i32
    %c0_i32_0 = arith.constant 0 : i32
    %c0_i32_1 = arith.constant 0 : i32
    return %arg0, %c0_i32, %c0_i32_0 : i32, i32, i32
  }
  func.func @transform_3(%arg0: i32) -> (i32, i32, i32) {
    %c0_i32 = arith.constant 0 : i32
    %c0_i32_0 = arith.constant 0 : i32
    %c0_i32_1 = arith.constant 0 : i32
    return %arg0, %c0_i32, %c0_i32_0 : i32, i32, i32
  }
  func.func @transform_4(%arg0: i32) -> (i32, i32) {
    %c0_i32 = arith.constant 0 : i32
    %c0_i32_0 = arith.constant 0 : i32
    %c0_i32_1 = arith.constant 0 : i32
    return %c0_i32, %c0_i32_0 : i32, i32
  }
  func.func @transform_5(%arg0: i32) -> (i32, i32) {
    %c0_i32 = arith.constant 0 : i32
    %c0_i32_0 = arith.constant 0 : i32
    %c0_i32_1 = arith.constant 0 : i32
    return %c0_i32, %c0_i32_0 : i32, i32
  }
  func.func @transform_6(%arg0: i32) -> (i32, i32) {
    %c0_i32 = arith.constant 0 : i32
    %c0_i32_0 = arith.constant 0 : i32
    %c0_i32_1 = arith.constant 0 : i32
    return %c0_i32, %c0_i32_0 : i32, i32
  }
}

</mosaic_0001>

<bundles_post_ra>
// kernel: feature_augmentation_forward.1
= control target key start
LH: loop header
LB: loop body
LE: loop exit
PB: predicated region body
PF: predicated region fallthrough
CT: control target
= control target key end

     0   :  { %s12812_s0 = inlined_call_operand.vmem [shape: bf16[64,512], index: 0, kind: input, shape index: {}]   ;;  %s12813_s1 = inlined_call_operand.hbm [shape: bf16[2,512,1024], index: 1, kind: input, shape index: {}]   ;;  %s12814_s2 = inlined_call_operand.hbm [shape: bf16[2,256,1024], index: 2, kind: input, shape index: {}]   ;;  %s12815_s3 = inlined_call_operand.hbm [shape: f32[2,1,1024], index: 3, kind: input, shape index: {}]   ;;  %s12816_s4 = inlined_call_operand.hbm [shape: bf16[512,128], index: 4, kind: input, shape index: {}]   ;;  %s12817_s5 = inlined_call_operand.hbm [shape: f32[1,128], index: 5, kind: input, shape index: {}]   ;;  %s12818_s6 = inlined_call_operand.vmem [shape: f32[64,128], index: 6, kind: output, shape index: {}]  }
   0x1   :  { %13099 = sst [smem:[#allocation144_spill]] %s12814_s2 }
   0x2   :  { %13100 = sst [smem:[#allocation145_spill]] %s12816_s4 }
   0x3   :  { %11 = vsyncpa [#allocation5], 0 }
   0x4   :  { %13 = vsyncpa [#allocation5 + $0x1], 0 }
   0x5   :  { %14 = vsyncpa [#allocation7], 0 }
   0x6   :  { %16 = vsyncpa [#allocation7 + $0x1], 0 }
   0x7   :  { %17 = vsyncpa [#allocation10], 0  ;;  %s10055_s21 = smov 0   ;;  %s10057_s22 = smov 0  }
   0x8   :  { %s10059_s23 = smov 0   ;;  %s10061_s24 = smov 0  }
   0x9 LB: > { %s10074_s25 = sadd.s32 4294967295, %s10008_s24   ;;  %s10077_s26 = sadd.s32 1, %s10008_s24   ;;  %s10008_s24 = sphi %s10061_s24, %s13839_s24   ;;  %s10004_s23 = sphi %s10059_s23, %s13838_s23   ;;  %s10000_s22 = sphi %s10057_s22, %s13837_s22   ;;  %s9996_s21 = sphi %s10055_s21, %s13836_s21  }
   0xa   : > { %s48_s27 = ssub.s32 %s10008_s24, %s10077_s26  ;;  %s51_s28 = sadd.s32 1, %s10004_s23 }
   0xb   : > { %p49_p0 = scmp.eq.s32.totalorder %s48_s27, 0  ;;  %p58_p1 = scmp.ne.s32.totalorder %s10004_s23, %s10000_s22 }
   0xc   : > { %p59_p2 = scmp.eq.s32.totalorder %s10008_s24, 0  ;;  %p64_p3 = scmp.ne.s32.totalorder %s10000_s22, %s9996_s21 }
   0xd   : > { %s10087_s29 = scalar_select %p49_p0, %s10004_s23, %s51_s28  }
   0xe   : > { %p10089_p4 = por %p59_p2, %p58_p1  ;;  %p12819_p5 = scmp.eq.s32.totalorder %s10074_s25, 0 }
   0xf   : > { %13101 = sst [smem:[#allocation15_spill]] %s10087_s29  ;;  %p8269_p6 = scmp.ge.s32.totalorder %s10008_s24, 1 }
  0x10   : > { %p190_p7 = scmp.lt.s32.totalorder %s10008_s24, 3  ;;  %p10098_p8 = por %p12819_p5, %p64_p3 }
  0x11   : > { %s10010_s9 = smov [#allocation9]   ;;  %p9434_p13 = scmp.lt.s32.totalorder %s10008_s24, 2 }
  0x12   : > { %s13103_s7 = scalar_select %p10098_p8, 1, 0 }
  0x13   : > { %p10103_p10 = pnand %p8269_p6, %p190_p7  ;;  %s205_s10 = sshll.u32 %s10010_s9, 4  ;;  %s206_s10 = int_to_ptr.vmem [resolvable:$true] %s205_s10 }
  0x14   : > { %s10117_s12 = sand.u32 1, %s10004_s23   ;;  %p10121_p0 = pnand %p9434_p13, %p10089_p4 }
  0x15   : > { %s13104_s8 = scalar_select %p10103_p10, 1, 0 }
  0x16   : > { %p9415_p11 = pneg %p10103_p10  ;;  %s13107_s4 = sld [smem:[#allocation145_spill]] }
  0x17   : > { %s13106_s13 = scalar_select %p10121_p0, 1, 0 }
  0x18   : > { %p10111_p12 = pnand %p9415_p11, %p12819_p5 }
  0x1a   : > { %s13105_s11 = scalar_select %p10111_p12, 1, 0 }
  0x1b   : > { %p12823_p2 = pneg %p10111_p12 }
  0x1c   : > { %s9820_s16 = scalar_lea.hbm %s13107_s4, 4096 }
  0x1d   : > { %p9821_p1 = scmp.ne.s32.totalorder %s13107_s4, %s9820_s16  ;;  %p9827_p4 = scmp.lt.u32.totalorder %s9820_s16, %s13107_s4 }
  0x1f   : > { %p9823_p3 = pnand %p12823_p2, %p9821_p1 }
  0x21   : > { %p9824_p6 = pneg %p9823_p3 }
  0x23   : > { %p9829_p7 = pnand %p9827_p4, %p9824_p6 }
  0x25   : > { %9832 = shalt.err (!%p9829_p7)
}
  0x26   : > { %s9833_s21 = scalar_lea.vmem %s206_s10, 4096  ;;  %p9841_p5 = scmp.lt.s32.totalorder %s206_s10, %s206_s10 }
  0x27   : > { %p9834_p11 = scmp.ne.s32.totalorder %s206_s10, %s9833_s21  ;;  %p9842_p8 = scmp.lt.s32.totalorder %s9833_s21, %s9833_s21 }
  0x29   : > { %p9836_p13 = pnand %p9834_p11, %p12823_p2  ;;  %p9843_p10 = por %p9842_p8, %p9841_p5 }
  0x2b   : > { %p9837_p9 = pneg %p9836_p13 }
  0x2d   : > { %p9844_p0 = pnand %p9843_p10, %p9837_p9 }
  0x2f   : > { %9847 = shalt.err (!%p9844_p0)
}
  0x30   : > { %s10011_s27 = smov 64   ;;  %s10012_s28 = smov 4  }
  0x31   : > { %9418 = dma.hbm_to_vmem [thread:$0]  (!%p10111_p12), %s13107_s4, 4096, %s206_s10, [#allocation10], %s10011_s27, %s10011_s27, %s10012_s28  }
  0x32   : > { %s251_s14 = sand.u32 1, %s10008_s24   ;;  %s8276_s15 = sshll.u32 %s10117_s12, 10 }
  0x33   : > { %s9063_s16 = sshll.u32 %s10008_s24, 14  ;;  %s255_s17 = scalar_lea.vmem [#allocation6], %s8276_s15 }
  0x34   : > { %s262_s18 = sshll.u32 %s255_s17, 4  ;;  %s13108_s2 = sld [smem:[#allocation144_spill]]  ;;  %s10155_s18 = int_to_ptr.vmem [resolvable:$true] %s262_s18 }
  0x35   : > { %s10157_s29 = scalar_lea.sflag [#allocation7], %s251_s14  ;;  %p13109_p8 = scmp.ne.s32.totalorder %s13106_s13, 0 }
  0x37   : > { %p10163_p9 = pneg %p13109_p8 }
  0x39   : > { %s13110_s10 = scalar_select %p10163_p9, 1, 0 }
  0x3a   : > { %s10153_s21 = scalar_lea.hbm %s13108_s2, %s9063_s16  ;;  %s9853_s9 = scalar_lea.hbm %s13108_s2, 32768 }
  0x3b   : > { %s9848_s30 = scalar_lea.hbm %s10153_s21, 16384  ;;  %p9854_p1 = scmp.lt.u32.totalorder %s10153_s21, %s13108_s2 }
  0x3c   : > { %p9849_p5 = scmp.ne.s32.totalorder %s10153_s21, %s9848_s30  ;;  %p9855_p3 = scmp.lt.u32.totalorder %s9853_s9, %s9848_s30 }
  0x3d   : > { %p9857_p4 = scmp.lt.u32.totalorder %s9848_s30, %s10153_s21 }
  0x3e   : > { %p9851_p10 = pnand %p10163_p9, %p9849_p5  ;;  %p9856_p6 = por %p9855_p3, %p9854_p1 }
  0x40   : > { %p9852_p0 = pneg %p9851_p10  ;;  %p9858_p7 = por %p9857_p4, %p9856_p6 }
  0x42   : > { %p9859_p11 = pnand %p9858_p7, %p9852_p0 }
  0x44   : > { %9862 = shalt.err (!%p9859_p11)
}
  0x45   : > { %s9863_s14 = scalar_lea.vmem %s10155_s18, 16384  ;;  %s10013_s17 = smov [#allocation6]  }
  0x46   : > { %p9864_p13 = scmp.ne.s32.totalorder %s10155_s18, %s9863_s14  ;;  %s9868_s19 = sshll.u32 %s10013_s17, 4  ;;  %s9869_s19 = int_to_ptr.vmem [resolvable:$false] %s9868_s19 }
  0x47   : > { %s9870_s20 = scalar_lea.vmem %s9869_s19, 32768  ;;  %p9871_p2 = scmp.lt.s32.totalorder %s10155_s18, %s9869_s19 }
  0x48   : > { %p9866_p5 = pnand %p9864_p13, %p10163_p9  ;;  %p9872_p12 = scmp.lt.s32.totalorder %s9870_s20, %s9863_s14 }
  0x4a   : > { %p9867_p10 = pneg %p9866_p5  ;;  %p9873_p1 = por %p9872_p12, %p9871_p2 }
  0x4c   : > { %p9874_p3 = pnand %p9873_p1, %p9867_p10 }
  0x4e   : > { %9877 = shalt.err (!%p9874_p3)
}
  0x4f   : > { %s10014_s30 = smov 512   ;;  %s10015_s27 = smov 32  }
  0x50   : > { %9428 = dma.hbm_to_vmem [thread:$0]  (!%p13109_p8), %s10153_s21, 16384, %s10155_s18, %s10157_s29, %s10014_s30, %s10014_s30, %s10015_s27  }
  0x51   : > { %s10016_s28 = smov [#allocation11]   ;;  %s8273_s15 = sshll.u32 %s10117_s12, 11 }
  0x52   : > { %s219_s9 = sshll.u32 %s10016_s28, 4  ;;  %s9878_s17 = scalar_lea.hbm %s12817_s5, 16  ;;  %s220_s9 = int_to_ptr.vmem [resolvable:$true] %s219_s9 }
  0x53   : > { %p9879_p12 = scmp.ne.s32.totalorder %s12817_s5, %s9878_s17  ;;  %p13111_p2 = scmp.ne.s32.totalorder %s13105_s11, 0 }
  0x54   : > { %p9885_p7 = scmp.lt.u32.totalorder %s9878_s17, %s12817_s5 }
  0x55   : > { %p13112_p0 = pneg %p13111_p2 }
  0x57   : > { %p9881_p6 = pnand %p9879_p12, %p13112_p0 }
  0x59   : > { %p9882_p4 = pneg %p9881_p6 }
  0x5b   : > { %p9887_p11 = pnand %p9885_p7, %p9882_p4 }
  0x5d   : > { %9890 = shalt.err (!%p9887_p11)
}
  0x5e   : > { %s9891_s18 = scalar_lea.vmem %s220_s9, 16  ;;  %p13113_p5 = pmov %p13112_p0 }
  0x5f   : > { %p9892_p13 = scmp.ne.s32.totalorder %s220_s9, %s9891_s18  ;;  %s9898_s21 = scalar_lea.vmem %s220_s9, 32 }
  0x60   : > { %p9899_p3 = scmp.lt.s32.totalorder %s220_s9, %s220_s9  ;;  %p9900_p8 = scmp.lt.s32.totalorder %s9898_s21, %s9891_s18 }
  0x61   : > { %p9894_p10 = pnand %p9892_p13, %p13113_p5 }
  0x62   : > { %p9901_p9 = por %p9900_p8, %p9899_p3 }
  0x63   : > { %p9895_p1 = pneg %p9894_p10 }
  0x65   : > { %p9902_p0 = pnand %p9901_p9, %p9895_p1 }
  0x67   : > { %9905 = shalt.err (!%p9902_p0)
}
  0x68   : > { %9421 = dma.hbm_to_vmem [thread:$0]  (!%p13111_p2), %s12817_s5, 16, %s220_s9, [#allocation10]  }
  0x69   : > { %s9062_s4 = sshll.u32 %s10008_s24, 15  ;;  %s234_s16 = scalar_lea.vmem [#allocation4], %s8273_s15 }
  0x6a   : > { %s241_s14 = sshll.u32 %s234_s16, 4  ;;  %s10215_s20 = scalar_lea.hbm %s12813_s1, %s9062_s4  ;;  %s10217_s14 = int_to_ptr.vmem [resolvable:$true] %s241_s14 }
  0x6b   : > { %s231_s11 = scalar_lea.sflag [#allocation5], %s10117_s12  ;;  %s9906_s18 = scalar_lea.hbm %s10215_s20, 32768 }
  0x6c   : > { %p9907_p8 = scmp.ne.s32.totalorder %s10215_s20, %s9906_s18  ;;  %p13114_p9 = scmp.ne.s32.totalorder %s13110_s10, 0 }
  0x6d   : > { %s9911_s21 = scalar_lea.hbm %s12813_s1, 65536  ;;  %p9912_p6 = scmp.lt.u32.totalorder %s10215_s20, %s12813_s1 }
  0x6e   : > { %p9909_p12 = pnand %p9907_p8, %p13114_p9  ;;  %p9913_p4 = scmp.lt.u32.totalorder %s9911_s21, %s9906_s18 }
  0x6f   : > { %p9915_p11 = scmp.lt.u32.totalorder %s9906_s18, %s10215_s20 }
  0x70   : > { %p9910_p2 = pneg %p9909_p12  ;;  %p9914_p7 = por %p9913_p4, %p9912_p6 }
  0x72   : > { %p9916_p13 = por %p9915_p11, %p9914_p7 }
  0x74   : > { %p9917_p5 = pnand %p9916_p13, %p9910_p2 }
  0x76   : > { %9920 = shalt.err (!%p9917_p5)
}
  0x77   : > { %s9921_s4 = scalar_lea.vmem %s10217_s14, 32768  ;;  %s10017_s16 = smov [#allocation4]  }
  0x78   : > { %p9922_p10 = scmp.ne.s32.totalorder %s10217_s14, %s9921_s4  ;;  %s9926_s17 = sshll.u32 %s10017_s16, 4  ;;  %s9927_s17 = int_to_ptr.vmem [resolvable:$false] %s9926_s17 }
  0x79   : > { %s9928_s19 = scalar_lea.vmem %s9927_s17, 65536  ;;  %p9929_p0 = scmp.lt.s32.totalorder %s10217_s14, %s9927_s17 }
  0x7a   : > { %p9924_p1 = pnand %p9922_p10, %p13114_p9  ;;  %p9930_p8 = scmp.lt.s32.totalorder %s9928_s19, %s9921_s4 }
  0x7c   : > { %p9925_p3 = pneg %p9924_p1  ;;  %p9931_p12 = por %p9930_p8, %p9929_p0 }
  0x7e   : > { %p9932_p6 = pnand %p9931_p12, %p9925_p3 }
  0x80   : > { %9935 = shalt.err (!%p9932_p6)
}
  0x81   : > { %p13115_p2 = scmp.ne.s32.totalorder %s13106_s13, 0  ;;  %s8279_s18 = sshll.u32 %s10117_s12, 3 }
  0x82   : > { %s9064_s9 = sshll.u32 %s10008_s24, 7  ;;  %s276_s2 = scalar_lea.vmem [#allocation8], %s8279_s18 }
  0x83   : > { %9425 = dma.hbm_to_vmem [thread:$0]  (!%p13115_p2), %s10215_s20, 32768, %s10217_s14, %s231_s11, %s10014_s30, %s10014_s30, %s10015_s27  }
  0x84   : > { %s10251_s28 = scalar_lea.hbm %s12815_s3, %s9064_s9  ;;  %s284_s4 = sshll.u32 %s276_s2, 4  ;;  %s285_s4 = int_to_ptr.vmem [resolvable:$true] %s284_s4 }
  0x85   : > { %s9936_s16 = scalar_lea.hbm %s10251_s28, 128  ;;  %s9941_s24 = scalar_lea.hbm %s12815_s3, 256 }
  0x86   : > { %p9937_p4 = scmp.ne.s32.totalorder %s10251_s28, %s9936_s16  ;;  %p9942_p13 = scmp.lt.u32.totalorder %s10251_s28, %s12815_s3 }
  0x87   : > { %p9943_p5 = scmp.lt.u32.totalorder %s9941_s24, %s9936_s16  ;;  %p9945_p1 = scmp.lt.u32.totalorder %s9936_s16, %s10251_s28 }
  0x88   : > { %p9939_p7 = pnand %p9937_p4, %p13114_p9 }
  0x89   : > { %p9944_p10 = por %p9943_p5, %p9942_p13 }
  0x8a   : > { %p9940_p11 = pneg %p9939_p7 }
  0x8b   : > { %p9946_p3 = por %p9945_p1, %p9944_p10 }
  0x8d   : > { %p9947_p0 = pnand %p9946_p3, %p9940_p11 }
  0x8f   : > { %9950 = shalt.err (!%p9947_p0)
}
  0x90   : > { %s9951_s20 = scalar_lea.vmem %s285_s4, 128  ;;  %s10018_s11 = smov [#allocation8]  }
  0x91   : > { %p9952_p8 = scmp.ne.s32.totalorder %s285_s4, %s9951_s20  ;;  %s9956_s17 = sshll.u32 %s10018_s11, 4  ;;  %s9957_s17 = int_to_ptr.vmem [resolvable:$false] %s9956_s17 }
  0x92   : > { %s9958_s19 = scalar_lea.vmem %s9957_s17, 256  ;;  %p9959_p4 = scmp.lt.s32.totalorder %s285_s4, %s9957_s17 }
  0x93   : > { %p9954_p12 = pnand %p9952_p8, %p13114_p9  ;;  %p9960_p7 = scmp.lt.s32.totalorder %s9958_s19, %s9951_s20 }
  0x95   : > { %p9955_p6 = pneg %p9954_p12  ;;  %p9961_p2 = por %p9960_p7, %p9959_p4 }
  0x97   : > { %p9962_p5 = pnand %p9961_p2, %p9955_p6 }
  0x99   : > { %9965 = shalt.err (!%p9962_p5)
}
  0x9a   : > { %p13116_p13 = scmp.ne.s32.totalorder %s13106_s13, 0  ;;  %p13117_p11 = scmp.ne.s32.totalorder %s13104_s8, 0 }
  0x9c   : > { %9431 = dma.hbm_to_vmem [thread:$0]  (!%p13116_p13), %s10251_s28, 128, %s285_s4, %s10157_s29  }
  0x9d   : > { %293 = sbr.rel (%p13117_p11) target bundleno = 4144 (0x1030), region = 44 }
  0xa4   : > { %s295_s10 = sand.u32 1, %s10000_s22   ;;  %p13118_p9 = scmp.ne.s32.totalorder %s13103_s7, 0 }
  0xa5   : > { %s8283_s18 = sshll.u32 %s295_s10, 11  ;;  %s296_s9 = scalar_lea.sflag [#allocation5], %s295_s10 }
  0xa6   : > { %s10274_s15 = scalar_lea.vmem [#allocation4], %s8283_s18 }
  0xa7   : > { %9983 = dma.done.wait (%p13118_p9), %s296_s9, 32768  }
  0xa8   : > { %9985 = vsyncadd (%p13118_p9), %s296_s9, 4294934528  ;;  %s304_s13 = sand.u32 1, %s10074_s25   ;;  %s8284_s21 = sshll.u32 %s295_s10, 10 }
  0xa9   : > { %s305_s29 = scalar_lea.sflag [#allocation7], %s304_s13  ;;  %s10281_s28 = scalar_lea.vmem [#allocation6], %s8284_s21 }
  0xaa   : > { %9987 = dma.done.wait (%p13118_p9), %s305_s29, 16512  }
  0xab   : > { %9989 = vsyncadd (%p13118_p9), %s305_s29, 4294950784  ;;  %s8285_s8 = sshll.u32 %s295_s10, 3  ;;  %p13119_p2 = scmp.eq.s32.totalorder %s10074_s25, 0 }
  0xac   : > { %s10287_s2 = scalar_lea.vmem [#allocation8], %s8285_s8 }
  0xad   : > { %9991 = dma.done.wait (%p13119_p2), [#allocation10], 4112   ;;  %p13120_p10 = pmov %p13119_p2 }
  0xae   : > { %p13121_p1 = scmp.ne.s32.totalorder %s10074_s25, 0 }
  0xaf   : > { %9993 = vsyncadd (%p13120_p10), [#allocation10], 4294963184  ;;  %v380_v0 = vld [vmem:[%s10274_s15] sm:$0xff] (!%p13121_p1)  ;;  %v381_v2 = vld [vmem:[%s10274_s15 + $0x8] sm:$0xff] (!%p13121_p1) }
  0xb0   : > { %363 = sbr.rel (%p13121_p1) target bundleno = 677 (0x2a5), region = 68  ;;  %v384_v1 = vld [vmem:[%s10274_s15 + $0x20] sm:$0xff] (!%p13121_p1)  ;;  %v385_v4 = vld [vmem:[%s10274_s15 + $0x28] sm:$0xff] (!%p13121_p1) }
  0xb1   : > { %v8306_v3 = vcombine.high (!%p13121_p1), %v380_v0, %v384_v1  ;;  %v8305_v5 = vcombine.low (!%p13121_p1), %v380_v0, %v384_v1  ;;  %v388_v6 = vld [vmem:[%s10274_s15 + $0x40] sm:$0xff] (!%p13121_p1)  ;;  %v8308_v8 = vcombine.high (!%p13121_p1), %v381_v2, %v385_v4  ;;  %v8307_v9 = vcombine.low (!%p13121_p1), %v381_v2, %v385_v4  ;;  %v389_v11 = vld [vmem:[%s10274_s15 + $0x48] sm:$0xff] (!%p13121_p1) }
  0xb2   : > { %v392_v7 = vld [vmem:[%s10274_s15 + $0x60] sm:$0xff] (!%p13121_p1)  ;;  %v393_v12 = vld [vmem:[%s10274_s15 + $0x68] sm:$0xff] (!%p13121_p1) }
  0xb3   : > { %v8314_v10 = vcombine.high (!%p13121_p1), %v388_v6, %v392_v7  ;;  %v396_v13 = vld [vmem:[%s10274_s15 + $0x80] sm:$0xff] (!%p13121_p1)  ;;  %2038 = vmatprep.subr.bf16.mxu0 (!%p13121_p1), %v8306_v3  ;;  %v8316_v14 = vcombine.high (!%p13121_p1), %v389_v11, %v393_v12  ;;  %v397_v16 = vld [vmem:[%s10274_s15 + $0x88] sm:$0xff] (!%p13121_p1)  ;;  %2184 = vmatprep.subr.bf16.mxu1 (!%p13121_p1), %v8308_v8  ;;  %v8313_v18 = vcombine.low (!%p13121_p1), %v388_v6, %v392_v7 }
  0xb4   : > { %v400_v15 = vld [vmem:[%s10274_s15 + $0xa0] sm:$0xff] (!%p13121_p1)  ;;  %v401_v17 = vld [vmem:[%s10274_s15 + $0xa8] sm:$0xff] (!%p13121_p1)  ;;  %2039 = vmatpush1.bf16.msra.mxu0 (!%p13121_p1), %v8305_v5  ;;  %2185 = vmatpush1.bf16.msra.mxu1 (!%p13121_p1), %v8307_v9  ;;  %v8315_v19 = vcombine.low (!%p13121_p1), %v389_v11, %v393_v12 }
  0xb5   : > { %2040 = vmatprep.subr.bf16.mxu0 (!%p13121_p1), %v8314_v10  ;;  %v8322_v20 = vcombine.high (!%p13121_p1), %v396_v13, %v400_v15  ;;  %2186 = vmatprep.subr.bf16.mxu1 (!%p13121_p1), %v8316_v14  ;;  %v8324_v21 = vcombine.high (!%p13121_p1), %v397_v16, %v401_v17  ;;  %v404_v22 = vld [vmem:[%s10274_s15 + $0xc0] sm:$0xff] (!%p13121_p1)  ;;  %v405_v24 = vld [vmem:[%s10274_s15 + $0xc8] sm:$0xff] (!%p13121_p1)  ;;  %v8321_v26 = vcombine.low (!%p13121_p1), %v396_v13, %v400_v15 }
  0xb6   : > { %v408_v23 = vld [vmem:[%s10274_s15 + $0xe0] sm:$0xff] (!%p13121_p1)  ;;  %v409_v25 = vld [vmem:[%s10274_s15 + $0xe8] sm:$0xff] (!%p13121_p1)  ;;  %v8323_v27 = vcombine.low (!%p13121_p1), %v397_v16, %v401_v17 }
  0xb7   : > { %v8330_v28 = vcombine.high %v404_v22, %v408_v23  ;;  %v8332_v29 = vcombine.high %v405_v24, %v409_v25  ;;  %v412_v30 = vld [vmem:[%s10274_s15 + $0x100] sm:$0xff]  ;;  %v413_v32 = vld [vmem:[%s10274_s15 + $0x108] sm:$0xff]  ;;  %v8329_v34 = vcombine.low %v404_v22, %v408_v23  ;;  %v8331_v35 = vcombine.low %v405_v24, %v409_v25 }
  0xb8   : > { %2041 = vmatpush1.bf16.msra.mxu0 %v8313_v18  ;;  %2187 = vmatpush1.bf16.msra.mxu1 %v8315_v19  ;;  %v416_v31 = vld [vmem:[%s10274_s15 + $0x120] sm:$0xff]  ;;  %v417_v33 = vld [vmem:[%s10274_s15 + $0x128] sm:$0xff] }
  0xb9   : > { %2042 = vmatprep.subr.bf16.mxu0 %v8322_v20  ;;  %2188 = vmatprep.subr.bf16.mxu1 %v8324_v21  ;;  %v8338_v36 = vcombine.high %v412_v30, %v416_v31  ;;  %v8340_v37 = vcombine.high %v413_v32, %v417_v33  ;;  %v420_v38 = vld [vmem:[%s10274_s15 + $0x140] sm:$0xff]  ;;  %v421_v40 = vld [vmem:[%s10274_s15 + $0x148] sm:$0xff]  ;;  %v8337_v42 = vcombine.low %v412_v30, %v416_v31 }
  0xba   : > { %v424_v39 = vld [vmem:[%s10274_s15 + $0x160] sm:$0xff]  ;;  %v425_v41 = vld [vmem:[%s10274_s15 + $0x168] sm:$0xff]  ;;  %v8339_v43 = vcombine.low %v413_v32, %v417_v33 }
  0xbb   : > { %v8346_v44 = vcombine.high %v420_v38, %v424_v39  ;;  %v8348_v45 = vcombine.high %v421_v40, %v425_v41  ;;  %v428_v46 = vld [vmem:[%s10274_s15 + $0x180] sm:$0xff]  ;;  %v429_v48 = vld [vmem:[%s10274_s15 + $0x188] sm:$0xff]  ;;  %v8345_v50 = vcombine.low %v420_v38, %v424_v39  ;;  %v8347_v51 = vcombine.low %v421_v40, %v425_v41 }
  0xbc   : > { %2043 = vmatpush1.bf16.msra.mxu0 %v8321_v26  ;;  %2189 = vmatpush1.bf16.msra.mxu1 %v8323_v27  ;;  %v432_v47 = vld [vmem:[%s10274_s15 + $0x1a0] sm:$0xff]  ;;  %v433_v49 = vld [vmem:[%s10274_s15 + $0x1a8] sm:$0xff] }
  0xbd   : > { %2044 = vmatprep.subr.bf16.mxu0 %v8330_v28  ;;  %2190 = vmatprep.subr.bf16.mxu1 %v8332_v29  ;;  %v8354_v52 = vcombine.high %v428_v46, %v432_v47  ;;  %v8356_v53 = vcombine.high %v429_v48, %v433_v49  ;;  %v436_v54 = vld [vmem:[%s10274_s15 + $0x1c0] sm:$0xff]  ;;  %v437_v57 = vld [vmem:[%s10274_s15 + $0x1c8] sm:$0xff]  ;;  %v8353_v59 = vcombine.low %v428_v46, %v432_v47 }
  0xbe   : > { %v440_v55 = vld [vmem:[%s10274_s15 + $0x1e0] sm:$0xff]  ;;  %v441_v58 = vld [vmem:[%s10274_s15 + $0x1e8] sm:$0xff]  ;;  %v8355_v60 = vcombine.low %v429_v48, %v433_v49 }
  0xbf   : > { %v10328_v56 = vld [vmem:[%s12812_s0 + $0x4] ss:$16 sps:$4 sm:$0xff]   ;;  %v8362_v61 = vcombine.high %v436_v54, %v440_v55  ;;  %v8364_v62 = vcombine.high %v437_v57, %v441_v58  ;;  %v445_v1 = vld [vmem:[%s10274_s15 + $0x208] sm:$0xff]  ;;  %v8361_v3 = vcombine.low %v436_v54, %v440_v55  ;;  %v8363_v4 = vcombine.low %v437_v57, %v441_v58 }
  0xc0   : > { %2045 = vmatpush1.bf16.msra.mxu0 %v8329_v34  ;;  %2191 = vmatpush1.bf16.msra.mxu1 %v8331_v35  ;;  %v444_v63 = vld [vmem:[%s10274_s15 + $0x200] sm:$0xff]  ;;  %v449_v2 = vld [vmem:[%s10274_s15 + $0x228] sm:$0xff] }
  0xc1   : > { %2046 = vmatprep.subr.bf16.mxu0 %v8338_v36  ;;  %2192 = vmatprep.subr.bf16.mxu1 %v8340_v37  ;;  %v448_v0 = vld [vmem:[%s10274_s15 + $0x220] sm:$0xff]  ;;  %v8372_v6 = vcombine.high %v445_v1, %v449_v2  ;;  %v453_v9 = vld [vmem:[%s10274_s15 + $0x248] sm:$0xff]  ;;  %v8371_v12 = vcombine.low %v445_v1, %v449_v2 }
  0xc2   : > { %2070 = vmatprep.mubr.bf16.mxu0 %v10328_v56  ;;  %2216 = vmatprep.mubr.bf16.mxu1 %v10328_v56  ;;  %v8370_v5 = vcombine.high %v444_v63, %v448_v0  ;;  %v452_v7 = vld [vmem:[%s10274_s15 + $0x240] sm:$0xff]  ;;  %v457_v10 = vld [vmem:[%s10274_s15 + $0x268] sm:$0xff]  ;;  %v8369_v11 = vcombine.low %v444_v63, %v448_v0 }
  0xc3   : > { %v456_v8 = vld [vmem:[%s10274_s15 + $0x260] sm:$0xff]  ;;  %v8380_v14 = vcombine.high %v453_v9, %v457_v10  ;;  %v461_v17 = vld [vmem:[%s10274_s15 + $0x288] sm:$0xff]  ;;  %v8379_v20 = vcombine.low %v453_v9, %v457_v10 }
  0xc4   : > { %2047 = vmatpush1.bf16.msra.mxu0 %v8337_v42  ;;  %2193 = vmatpush1.bf16.msra.mxu1 %v8339_v43  ;;  %v8378_v13 = vcombine.high %v452_v7, %v456_v8  ;;  %v460_v15 = vld [vmem:[%s10274_s15 + $0x280] sm:$0xff]  ;;  %v465_v18 = vld [vmem:[%s10274_s15 + $0x2a8] sm:$0xff]  ;;  %v8377_v19 = vcombine.low %v452_v7, %v456_v8 }
  0xc5   : > { %2048 = vmatprep.subr.bf16.mxu0 %v8346_v44  ;;  %2194 = vmatprep.subr.bf16.mxu1 %v8348_v45  ;;  %v464_v16 = vld [vmem:[%s10274_s15 + $0x2a0] sm:$0xff]  ;;  %v8388_v22 = vcombine.high %v461_v17, %v465_v18  ;;  %v469_v25 = vld [vmem:[%s10274_s15 + $0x2c8] sm:$0xff]  ;;  %v8387_v28 = vcombine.low %v461_v17, %v465_v18 }
  0xc6   : > { %v8386_v21 = vcombine.high %v460_v15, %v464_v16  ;;  %v468_v23 = vld [vmem:[%s10274_s15 + $0x2c0] sm:$0xff]  ;;  %v473_v26 = vld [vmem:[%s10274_s15 + $0x2e8] sm:$0xff]  ;;  %v8385_v27 = vcombine.low %v460_v15, %v464_v16 }
  0xc7   : > { %v472_v24 = vld [vmem:[%s10274_s15 + $0x2e0] sm:$0xff]  ;;  %v8396_v30 = vcombine.high %v469_v25, %v473_v26  ;;  %v477_v33 = vld [vmem:[%s10274_s15 + $0x308] sm:$0xff]  ;;  %v8395_v36 = vcombine.low %v469_v25, %v473_v26 }
  0xc8   : > { %2049 = vmatpush1.bf16.msra.mxu0 %v8345_v50  ;;  %2195 = vmatpush1.bf16.msra.mxu1 %v8347_v51  ;;  %v8394_v29 = vcombine.high %v468_v23, %v472_v24  ;;  %v476_v31 = vld [vmem:[%s10274_s15 + $0x300] sm:$0xff]  ;;  %v481_v34 = vld [vmem:[%s10274_s15 + $0x328] sm:$0xff]  ;;  %v8393_v35 = vcombine.low %v468_v23, %v472_v24 }
  0xc9   : > { %2050 = vmatprep.subr.bf16.mxu0 %v8354_v52  ;;  %2196 = vmatprep.subr.bf16.mxu1 %v8356_v53  ;;  %v480_v32 = vld [vmem:[%s10274_s15 + $0x320] sm:$0xff]  ;;  %v8404_v38 = vcombine.high %v477_v33, %v481_v34  ;;  %v485_v41 = vld [vmem:[%s10274_s15 + $0x348] sm:$0xff]  ;;  %v8403_v44 = vcombine.low %v477_v33, %v481_v34 }
  0xca   : > { %v8402_v37 = vcombine.high %v476_v31, %v480_v32  ;;  %v484_v39 = vld [vmem:[%s10274_s15 + $0x340] sm:$0xff]  ;;  %v489_v42 = vld [vmem:[%s10274_s15 + $0x368] sm:$0xff]  ;;  %v8401_v43 = vcombine.low %v476_v31, %v480_v32 }
  0xcb   : > { %v488_v40 = vld [vmem:[%s10274_s15 + $0x360] sm:$0xff]  ;;  %v8412_v46 = vcombine.high %v485_v41, %v489_v42  ;;  %v493_v49 = vld [vmem:[%s10274_s15 + $0x388] sm:$0xff]  ;;  %v8411_v52 = vcombine.low %v485_v41, %v489_v42 }
  0xcc   : > { %2051 = vmatpush1.bf16.msra.mxu0 %v8353_v59  ;;  %2197 = vmatpush1.bf16.msra.mxu1 %v8355_v60  ;;  %v8410_v45 = vcombine.high %v484_v39, %v488_v40  ;;  %v492_v47 = vld [vmem:[%s10274_s15 + $0x380] sm:$0xff]  ;;  %v497_v50 = vld [vmem:[%s10274_s15 + $0x3a8] sm:$0xff]  ;;  %v8409_v51 = vcombine.low %v484_v39, %v488_v40 }
  0xcd   : > { %2052 = vmatprep.subr.bf16.mxu0 %v8362_v61  ;;  %2198 = vmatprep.subr.bf16.mxu1 %v8364_v62  ;;  %v496_v48 = vld [vmem:[%s10274_s15 + $0x3a0] sm:$0xff]  ;;  %v8420_v54 = vcombine.high %v493_v49, %v497_v50  ;;  %v501_v58 = vld [vmem:[%s10274_s15 + $0x3c8] sm:$0xff]  ;;  %v8419_v61 = vcombine.low %v493_v49, %v497_v50 }
  0xce   : > { %v8418_v53 = vcombine.high %v492_v47, %v496_v48  ;;  %v500_v55 = vld [vmem:[%s10274_s15 + $0x3c0] sm:$0xff]  ;;  %v505_v59 = vld [vmem:[%s10274_s15 + $0x3e8] sm:$0xff]  ;;  %v8417_v60 = vcombine.low %v492_v47, %v496_v48 }
  0xcf   : > { %v504_v57 = vld [vmem:[%s10274_s15 + $0x3e0] sm:$0xff]  ;;  %v8428_v63 = vcombine.high %v501_v58, %v505_v59  ;;  %v509_v2 = vld [vmem:[%s10274_s15 + $0x408] sm:$0xff] }
  0xd0   : > { %2053 = vmatpush1.bf16.msra.mxu0 %v8361_v3  ;;  %2199 = vmatpush1.bf16.msra.mxu1 %v8363_v4  ;;  %v8426_v62 = vcombine.high %v500_v55, %v504_v57  ;;  %v508_v0 = vld [vmem:[%s10274_s15 + $0x400] sm:$0xff]  ;;  %v513_v3 = vld [vmem:[%s10274_s15 + $0x428] sm:$0xff]  ;;  %v8425_v4 = vcombine.low %v500_v55, %v504_v57 }
  0xd1   : > { %2054 = vmatprep.subr.bf16.mxu0 %v8370_v5  ;;  %2200 = vmatprep.subr.bf16.mxu1 %v8372_v6  ;;  %v512_v1 = vld [vmem:[%s10274_s15 + $0x420] sm:$0xff]  ;;  %v8427_v5 = vcombine.low %v501_v58, %v505_v59  ;;  %v8436_v7 = vcombine.high %v509_v2, %v513_v3  ;;  %v545_v39 = vld [vmem:[%s10274_s15 + $0x528] sm:$0xff] }
  0xd2   : > { %v8434_v6 = vcombine.high %v508_v0, %v512_v1  ;;  %v516_v8 = vld [vmem:[%s10274_s15 + $0x440] sm:$0xff]  ;;  %v553_v47 = vld [vmem:[%s10274_s15 + $0x568] sm:$0xff] }
  0xd3   : > { %v520_v9 = vld [vmem:[%s10274_s15 + $0x460] sm:$0xff]  ;;  %v557_v57 = vld [vmem:[%s10274_s15 + $0x588] sm:$0xff] }
  0xd4   : > { %2055 = vmatpush1.bf16.msra.mxu0 %v8369_v11  ;;  %2201 = vmatpush1.bf16.msra.mxu1 %v8371_v12  ;;  %v10375_v10 = vld [vmem:[%s12812_s0] ss:$16 sps:$4 sm:$0xff]   ;;  %v517_v11 = vld [vmem:[%s10274_s15 + $0x448] sm:$0xff]  ;;  %v8442_v15 = vcombine.high %v516_v8, %v520_v9  ;;  %v10428_v55 = vld [vmem:[%s12812_s0 + $0x64] ss:$16 sps:$4 sm:$0xff]  }
  0xd5   : > { %2056 = vmatprep.subr.bf16.mxu0 %v8378_v13  ;;  %2202 = vmatprep.subr.bf16.mxu1 %v8380_v14  ;;  %v521_v12 = vld [vmem:[%s10274_s15 + $0x468] sm:$0xff]  ;;  %v8433_v13 = vcombine.low %v508_v0, %v512_v1  ;;  %v8435_v14 = vcombine.low %v509_v2, %v513_v3  ;;  %v524_v17 = vld [vmem:[%s10274_s15 + $0x480] sm:$0xff] }
  0xd6   : > { %v8444_v16 = vcombine.high %v517_v11, %v521_v12  ;;  %v528_v18 = vld [vmem:[%s10274_s15 + $0x4a0] sm:$0xff]  ;;  %v8443_v23 = vcombine.low %v517_v11, %v521_v12  ;;  %v561_v58 = vld [vmem:[%s10274_s15 + $0x5a8] sm:$0xff] }
  0xd7   : > { %v8450_v24 = vcombine.high %v524_v17, %v528_v18  ;;  %v532_v26 = vld [vmem:[%s10274_s15 + $0x4c0] sm:$0xff]  ;;  %v8449_v31 = vcombine.low %v524_v17, %v528_v18  ;;  %v565_v1 = vld [vmem:[%s10274_s15 + $0x5c8] sm:$0xff] }
  0xd8   : > { %2057 = vmatpush1.bf16.msra.mxu0 %v8377_v19  ;;  %2203 = vmatpush1.bf16.msra.mxu1 %v8379_v20  ;;  %v10384_v19 = vld [vmem:[%s12812_s0 + $0x24] ss:$16 sps:$4 sm:$0xff]   ;;  %v525_v20 = vld [vmem:[%s10274_s15 + $0x488] sm:$0xff]  ;;  %v10421_v48 = vld [vmem:[%s12812_s0 + $0x40] ss:$16 sps:$4 sm:$0xff]  }
  0xd9   : > { %2058 = vmatprep.subr.bf16.mxu0 %v8386_v21  ;;  %2204 = vmatprep.subr.bf16.mxu1 %v8388_v22  ;;  %v529_v21 = vld [vmem:[%s10274_s15 + $0x4a8] sm:$0xff]  ;;  %v8441_v22 = vcombine.low %v516_v8, %v520_v9  ;;  %v568_v0 = vld [vmem:[%s10274_s15 + $0x5e0] sm:$0xff] }
  0xda   : > { %v8452_v25 = vcombine.high %v525_v20, %v529_v21  ;;  %v8451_v32 = vcombine.low %v525_v20, %v529_v21  ;;  %v569_v2 = vld [vmem:[%s10274_s15 + $0x5e8] sm:$0xff]  ;;  %v10443_v3 = vld [vmem:[%s12812_s0 + $0x60] ss:$16 sps:$4 sm:$0xff]  }
  0xdb   : > { %v572_v8 = vld [vmem:[%s10274_s15 + $0x600] sm:$0xff]  ;;  %v10450_v11 = vld [vmem:[%s12812_s0 + $0xc] ss:$16 sps:$4 sm:$0xff]  }
  0xdc   : > { %2059 = vmatpush1.bf16.msra.mxu0 %v8385_v27  ;;  %2205 = vmatpush1.bf16.msra.mxu1 %v8387_v28  ;;  %v536_v27 = vld [vmem:[%s10274_s15 + $0x4e0] sm:$0xff]  ;;  %v533_v28 = vld [vmem:[%s10274_s15 + $0x4c8] sm:$0xff] }
  0xdd   : > { %2060 = vmatprep.subr.bf16.mxu0 %v8394_v29  ;;  %2206 = vmatprep.subr.bf16.mxu1 %v8396_v30  ;;  %v537_v29 = vld [vmem:[%s10274_s15 + $0x4e8] sm:$0xff]  ;;  %v10399_v30 = vld [vmem:[%s12812_s0 + $0x20] ss:$16 sps:$4 sm:$0xff]   ;;  %v8458_v33 = vcombine.high %v532_v26, %v536_v27  ;;  %v8457_v40 = vcombine.low %v532_v26, %v536_v27 }
  0xde   : > { %v8460_v34 = vcombine.high %v533_v28, %v537_v29  ;;  %v8459_v41 = vcombine.low %v533_v28, %v537_v29  ;;  %v576_v9 = vld [vmem:[%s10274_s15 + $0x620] sm:$0xff]  ;;  %v573_v12 = vld [vmem:[%s10274_s15 + $0x608] sm:$0xff] }
  0xdf   : > { %v580_v18 = vld [vmem:[%s10274_s15 + $0x640] sm:$0xff]  ;;  %v581_v21 = vld [vmem:[%s10274_s15 + $0x648] sm:$0xff] }
  0xe0   : > { %2061 = vmatpush1.bf16.msra.mxu0 %v8393_v35  ;;  %2207 = vmatpush1.bf16.msra.mxu1 %v8395_v36  ;;  %v540_v35 = vld [vmem:[%s10274_s15 + $0x500] sm:$0xff]  ;;  %v589_v29 = vld [vmem:[%s10274_s15 + $0x688] sm:$0xff] }
  0xe1   : > { %2062 = vmatprep.subr.bf16.mxu0 %v8402_v37  ;;  %2208 = vmatprep.subr.bf16.mxu1 %v8404_v38  ;;  %v544_v36 = vld [vmem:[%s10274_s15 + $0x520] sm:$0xff]  ;;  %v541_v38 = vld [vmem:[%s10274_s15 + $0x508] sm:$0xff] }
  0xe2   : > { %v10406_v37 = vld [vmem:[%s12812_s0 + $0x44] ss:$16 sps:$4 sm:$0xff]   ;;  %v8466_v42 = vcombine.high %v540_v35, %v544_v36  ;;  %v8465_v49 = vcombine.low %v540_v35, %v544_v36  ;;  %v8467_v50 = vcombine.low %v541_v38, %v545_v39 }
  0xe3   : > { %v584_v20 = vld [vmem:[%s10274_s15 + $0x660] sm:$0xff] }
  0xe4   : > { %2063 = vmatpush1.bf16.msra.mxu0 %v8401_v43  ;;  %2209 = vmatpush1.bf16.msra.mxu1 %v8403_v44  ;;  %v8468_v43 = vcombine.high %v541_v38, %v545_v39  ;;  %v548_v44 = vld [vmem:[%s10274_s15 + $0x540] sm:$0xff]  ;;  %v597_v39 = vld [vmem:[%s10274_s15 + $0x6c8] sm:$0xff] }
  0xe5   : > { %2064 = vmatprep.subr.bf16.mxu0 %v8410_v45  ;;  %2210 = vmatprep.subr.bf16.mxu1 %v8412_v46  ;;  %v552_v45 = vld [vmem:[%s10274_s15 + $0x560] sm:$0xff]  ;;  %v549_v46 = vld [vmem:[%s10274_s15 + $0x548] sm:$0xff] }
  0xe6   : > { %v8473_v59 = vcombine.low %v548_v44, %v552_v45  ;;  %v588_v27 = vld [vmem:[%s10274_s15 + $0x680] sm:$0xff] }
  0xe7   : > { %v592_v28 = vld [vmem:[%s10274_s15 + $0x6a0] sm:$0xff] }
  0xe8   : > { %2065 = vmatpush1.bf16.msra.mxu0 %v8409_v51  ;;  %2211 = vmatpush1.bf16.msra.mxu1 %v8411_v52  ;;  %v8474_v51 = vcombine.high %v548_v44, %v552_v45  ;;  %v8476_v52 = vcombine.high %v549_v46, %v553_v47  ;;  %v596_v36 = vld [vmem:[%s10274_s15 + $0x6c0] sm:$0xff] }
  0xe9   : > { %2066 = vmatprep.subr.bf16.mxu0 %v8418_v53  ;;  %2212 = vmatprep.subr.bf16.mxu1 %v8420_v54  ;;  %v556_v53 = vld [vmem:[%s10274_s15 + $0x580] sm:$0xff] }
  0xea   : > { %v560_v54 = vld [vmem:[%s10274_s15 + $0x5a0] sm:$0xff] }
  0xeb   : > { %v600_v38 = vld [vmem:[%s10274_s15 + $0x6e0] sm:$0xff] }
  0xec   : > { %2067 = vmatpush1.bf16.msra.mxu0 %v8417_v60  ;;  %2213 = vmatpush1.bf16.msra.mxu1 %v8419_v61  ;;  %v8475_v60 = vcombine.low %v549_v46, %v553_v47  ;;  %v8482_v61 = vcombine.high %v556_v53, %v560_v54  ;;  %v604_v45 = vld [vmem:[%s10274_s15 + $0x700] sm:$0xff]  ;;  %v605_v47 = vld [vmem:[%s10274_s15 + $0x708] sm:$0xff] }
  0xed   : > { %2068 = vmatprep.subr.bf16.mxu0 %v8426_v62  ;;  %2214 = vmatprep.subr.bf16.mxu1 %v8428_v63  ;;  %v8484_v62 = vcombine.high %v557_v57, %v561_v58  ;;  %v564_v63 = vld [vmem:[%s10274_s15 + $0x5c0] sm:$0xff] }
  0xee   : > { %v608_v46 = vld [vmem:[%s10274_s15 + $0x720] sm:$0xff] }
  0xf0   : > { %2069 = vmatpush1.bf16.msra.mxu0 %v8425_v4  ;;  %2215 = vmatpush1.bf16.msra.mxu1 %v8427_v5  ;;  %v8481_v4 = vcombine.low %v556_v53, %v560_v54  ;;  %v8483_v5 = vcombine.low %v557_v57, %v561_v58  ;;  %v612_v54 = vld [vmem:[%s10274_s15 + $0x740] sm:$0xff]  ;;  %v613_v58 = vld [vmem:[%s10274_s15 + $0x748] sm:$0xff] }
  0xf1   : > { %2111 = vmatprep.subr.bf16.mxu0 %v8434_v6  ;;  %2257 = vmatprep.subr.bf16.mxu1 %v8436_v7  ;;  %v8490_v6 = vcombine.high %v564_v63, %v568_v0  ;;  %v8492_v7 = vcombine.high %v565_v1, %v569_v2  ;;  %v616_v57 = vld [vmem:[%s10274_s15 + $0x760] sm:$0xff] }
  0xf3   : > { %2071 = vmatmul.mubr.bf16.vlgmr.msra.gmra.mrb[0].mxu0 %v10375_v10  ;;  %2217 = vmatmul.mubr.bf16.vlgmr.msra.gmra.mrb[0].mxu1 %v10375_v10 }
  0xf4   : > { %2112 = vmatpush1.bf16.msra.mxu0 %v8433_v13  ;;  %2258 = vmatpush1.bf16.msra.mxu1 %v8435_v14  ;;  %v577_v13 = vld [vmem:[%s10274_s15 + $0x628] sm:$0xff]  ;;  %v8489_v14 = vcombine.low %v564_v63, %v568_v0  ;;  %v620_v0 = vld [vmem:[%s10274_s15 + $0x780] sm:$0xff] }
  0xf5   : > { %2113 = vmatprep.subr.bf16.mxu0 %v8442_v15  ;;  %2259 = vmatprep.subr.bf16.mxu1 %v8444_v16  ;;  %v8491_v15 = vcombine.low %v565_v1, %v569_v2  ;;  %v8498_v16 = vcombine.high %v572_v8, %v576_v9  ;;  %v8500_v17 = vcombine.high %v573_v12, %v577_v13  ;;  %v624_v1 = vld [vmem:[%s10274_s15 + $0x7a0] sm:$0xff]  ;;  %v621_v2 = vld [vmem:[%s10274_s15 + $0x788] sm:$0xff] }
  0xf6   : > { %2080 = vmatprep.mubr.bf16.mxu0 %v10384_v19  ;;  %2226 = vmatprep.mubr.bf16.mxu1 %v10384_v19 }
  0xf8   : > { %2114 = vmatpush1.bf16.msra.mxu0 %v8441_v22  ;;  %2260 = vmatpush1.bf16.msra.mxu1 %v8443_v23  ;;  %v585_v22 = vld [vmem:[%s10274_s15 + $0x668] sm:$0xff]  ;;  %v8497_v23 = vcombine.low %v572_v8, %v576_v9  ;;  %v628_v9 = vld [vmem:[%s10274_s15 + $0x7c0] sm:$0xff] }
  0xf9   : > { %2115 = vmatprep.subr.bf16.mxu0 %v8450_v24  ;;  %2261 = vmatprep.subr.bf16.mxu1 %v8452_v25  ;;  %v8499_v24 = vcombine.low %v573_v12, %v577_v13  ;;  %v8506_v25 = vcombine.high %v580_v18, %v584_v20  ;;  %v8508_v26 = vcombine.high %v581_v21, %v585_v22  ;;  %v632_v12 = vld [vmem:[%s10274_s15 + $0x7e0] sm:$0xff]  ;;  %v629_v13 = vld [vmem:[%s10274_s15 + $0x7c8] sm:$0xff] }
  0xfb   : > { %2081 = vmatmul.mubr.bf16.gmra.mrb[4].mxu0 %v10399_v30  ;;  %2227 = vmatmul.mubr.bf16.gmra.mrb[4].mxu1 %v10399_v30 }
  0xfc   : > { %2116 = vmatpush1.bf16.msra.mxu0 %v8449_v31  ;;  %2262 = vmatpush1.bf16.msra.mxu1 %v8451_v32  ;;  %v593_v31 = vld [vmem:[%s10274_s15 + $0x6a8] sm:$0xff]  ;;  %v8505_v32 = vcombine.low %v580_v18, %v584_v20  ;;  %v382_v20 = vld [vmem:[%s10274_s15 + $0x10] sm:$0xff] }
  0xfd   : > { %2117 = vmatprep.subr.bf16.mxu0 %v8458_v33  ;;  %2263 = vmatprep.subr.bf16.mxu1 %v8460_v34  ;;  %v8507_v33 = vcombine.low %v581_v21, %v585_v22  ;;  %v8514_v34 = vcombine.high %v588_v27, %v592_v28  ;;  %v8516_v35 = vcombine.high %v589_v29, %v593_v31  ;;  %v386_v21 = vld [vmem:[%s10274_s15 + $0x30] sm:$0xff]  ;;  %v383_v22 = vld [vmem:[%s10274_s15 + $0x18] sm:$0xff] }
  0xfe   : > { %2090 = vmatprep.mubr.bf16.mxu0 %v10406_v37  ;;  %2236 = vmatprep.mubr.bf16.mxu1 %v10406_v37 }
 0x100   : > { %2118 = vmatpush1.bf16.msra.mxu0 %v8457_v40  ;;  %2264 = vmatpush1.bf16.msra.mxu1 %v8459_v41  ;;  %v601_v40 = vld [vmem:[%s10274_s15 + $0x6e8] sm:$0xff]  ;;  %v8513_v41 = vcombine.low %v588_v27, %v592_v28  ;;  %v390_v28 = vld [vmem:[%s10274_s15 + $0x50] sm:$0xff] }
 0x101   : > { %2119 = vmatprep.subr.bf16.mxu0 %v8466_v42  ;;  %2265 = vmatprep.subr.bf16.mxu1 %v8468_v43  ;;  %v8515_v42 = vcombine.low %v589_v29, %v593_v31  ;;  %v8522_v43 = vcombine.high %v596_v36, %v600_v38  ;;  %v8524_v44 = vcombine.high %v597_v39, %v601_v40  ;;  %v394_v29 = vld [vmem:[%s10274_s15 + $0x70] sm:$0xff]  ;;  %v10495_v31 = vld [vmem:[%s12812_s0 + $0x8] ss:$16 sps:$4 sm:$0xff]  }
 0x103   : > { %2091 = vmatmul.mubr.bf16.gmra.mrb[8].mxu0 %v10421_v48  ;;  %2237 = vmatmul.mubr.bf16.gmra.mrb[8].mxu1 %v10421_v48 }
 0x104   : > { %2120 = vmatpush1.bf16.msra.mxu0 %v8465_v49  ;;  %2266 = vmatpush1.bf16.msra.mxu1 %v8467_v50  ;;  %v609_v49 = vld [vmem:[%s10274_s15 + $0x728] sm:$0xff]  ;;  %v8521_v50 = vcombine.low %v596_v36, %v600_v38  ;;  %v8318_v36 = vcombine.high %v390_v28, %v394_v29 }
 0x105   : > { %2121 = vmatprep.subr.bf16.mxu0 %v8474_v51  ;;  %2267 = vmatprep.subr.bf16.mxu1 %v8476_v52  ;;  %v8523_v51 = vcombine.low %v597_v39, %v601_v40  ;;  %v8530_v52 = vcombine.high %v604_v45, %v608_v46  ;;  %v8532_v53 = vcombine.high %v605_v47, %v609_v49  ;;  %v10502_v39 = vld [vmem:[%s12812_s0 + $0x2c] ss:$16 sps:$4 sm:$0xff]   ;;  %v398_v40 = vld [vmem:[%s10274_s15 + $0x90] sm:$0xff] }
 0x106   : > { %2100 = vmatprep.mubr.bf16.mxu0 %v10428_v55  ;;  %2246 = vmatprep.mubr.bf16.mxu1 %v10428_v55 }
 0x108   : > { %2122 = vmatpush1.bf16.msra.mxu0 %v8473_v59  ;;  %2268 = vmatpush1.bf16.msra.mxu1 %v8475_v60  ;;  %v617_v59 = vld [vmem:[%s10274_s15 + $0x768] sm:$0xff]  ;;  %v8529_v60 = vcombine.low %v604_v45, %v608_v46 }
 0x109   : > { %2123 = vmatprep.subr.bf16.mxu0 %v8482_v61  ;;  %2269 = vmatprep.subr.bf16.mxu1 %v8484_v62  ;;  %v8531_v61 = vcombine.low %v605_v47, %v609_v49  ;;  %v8538_v62 = vcombine.high %v612_v54, %v616_v57  ;;  %v8540_v63 = vcombine.high %v613_v58, %v617_v59  ;;  %v406_v49 = vld [vmem:[%s10274_s15 + $0xd0] sm:$0xff] }
 0x10b   : > { %2101 = vmatmul.mubr.bf16.gmra.mrb[12].mxu0 %v10443_v3  ;;  %2247 = vmatmul.mubr.bf16.gmra.mrb[12].mxu1 %v10443_v3 }
 0x10c   : > { %2124 = vmatpush1.bf16.msra.mxu0 %v8481_v4  ;;  %2270 = vmatpush1.bf16.msra.mxu1 %v8483_v5  ;;  %v625_v4 = vld [vmem:[%s10274_s15 + $0x7a8] sm:$0xff]  ;;  %v8537_v5 = vcombine.low %v612_v54, %v616_v57 }
 0x10d   : > { %2125 = vmatprep.subr.bf16.mxu0 %v8490_v6  ;;  %2271 = vmatprep.subr.bf16.mxu1 %v8492_v7  ;;  %v8539_v6 = vcombine.low %v613_v58, %v617_v59  ;;  %v8546_v7 = vcombine.high %v620_v0, %v624_v1  ;;  %v8548_v8 = vcombine.high %v621_v2, %v625_v4 }
 0x10e   : > { %2143 = vmatprep.mubr.bf16.mxu0 %v10450_v11  ;;  %2289 = vmatprep.mubr.bf16.mxu1 %v10450_v11 }
 0x110   : > { %2126 = vmatpush1.bf16.msra.mxu0 %v8489_v14  ;;  %2272 = vmatpush1.bf16.msra.mxu1 %v8491_v15  ;;  %v633_v14 = vld [vmem:[%s10274_s15 + $0x7e8] sm:$0xff]  ;;  %v8545_v15 = vcombine.low %v620_v0, %v624_v1  ;;  %v419_v0 = vld [vmem:[%s10274_s15 + $0x138] sm:$0xff] }
 0x111   : > { %2127 = vmatprep.subr.bf16.mxu0 %v8498_v16  ;;  %2273 = vmatprep.subr.bf16.mxu1 %v8500_v17  ;;  %v8547_v16 = vcombine.low %v621_v2, %v625_v4  ;;  %v8554_v17 = vcombine.high %v628_v9, %v632_v12  ;;  %v8556_v18 = vcombine.high %v629_v13, %v633_v14 }
 0x114   : > { %2128 = vmatpush1.bf16.msra.mxu0 %v8497_v23  ;;  %2274 = vmatpush1.bf16.msra.mxu1 %v8499_v24  ;;  %v387_v23 = vld [vmem:[%s10274_s15 + $0x38] sm:$0xff]  ;;  %v8553_v24 = vcombine.low %v628_v9, %v632_v12 }
 0x115   : > { %2129 = vmatprep.subr.bf16.mxu0 %v8506_v25  ;;  %2275 = vmatprep.subr.bf16.mxu1 %v8508_v26  ;;  %v8555_v25 = vcombine.low %v629_v13, %v633_v14  ;;  %v8310_v26 = vcombine.high %v382_v20, %v386_v21  ;;  %v8312_v27 = vcombine.high %v383_v22, %v387_v23  ;;  %v423_v9 = vld [vmem:[%s10274_s15 + $0x158] sm:$0xff] }
 0x116   : > { %v427_v12 = vld [vmem:[%s10274_s15 + $0x178] sm:$0xff] }
 0x118   : > { %2130 = vmatpush1.bf16.msra.mxu0 %v8505_v32  ;;  %2276 = vmatpush1.bf16.msra.mxu1 %v8507_v33  ;;  %v391_v32 = vld [vmem:[%s10274_s15 + $0x58] sm:$0xff] }
 0x119   : > { %2131 = vmatprep.subr.bf16.mxu0 %v8514_v34  ;;  %2277 = vmatprep.subr.bf16.mxu1 %v8516_v35  ;;  %v395_v33 = vld [vmem:[%s10274_s15 + $0x78] sm:$0xff]  ;;  %v8309_v34 = vcombine.low %v382_v20, %v386_v21  ;;  %v8311_v35 = vcombine.low %v383_v22, %v387_v23  ;;  %v434_v20 = vld [vmem:[%s10274_s15 + $0x1b0] sm:$0xff] }
 0x11a   : > { %v8320_v38 = vcombine.high %v391_v32, %v395_v33  ;;  %v8319_v45 = vcombine.low %v391_v32, %v395_v33  ;;  %v431_v21 = vld [vmem:[%s10274_s15 + $0x198] sm:$0xff] }
 0x11b   : > { %v435_v22 = vld [vmem:[%s10274_s15 + $0x1b8] sm:$0xff] }
 0x11c   : > { %2132 = vmatpush1.bf16.msra.mxu0 %v8513_v41  ;;  %2278 = vmatpush1.bf16.msra.mxu1 %v8515_v42  ;;  %v402_v41 = vld [vmem:[%s10274_s15 + $0xb0] sm:$0xff]  ;;  %v399_v42 = vld [vmem:[%s10274_s15 + $0x98] sm:$0xff] }
 0x11d   : > { %2133 = vmatprep.subr.bf16.mxu0 %v8522_v43  ;;  %2279 = vmatprep.subr.bf16.mxu1 %v8524_v44  ;;  %v403_v43 = vld [vmem:[%s10274_s15 + $0xb8] sm:$0xff]  ;;  %v8317_v44 = vcombine.low %v390_v28, %v394_v29  ;;  %v8326_v46 = vcombine.high %v398_v40, %v402_v41  ;;  %v8325_v54 = vcombine.low %v398_v40, %v402_v41  ;;  %v442_v28 = vld [vmem:[%s10274_s15 + $0x1f0] sm:$0xff] }
 0x11e   : > { %v8328_v47 = vcombine.high %v399_v42, %v403_v43  ;;  %v8327_v57 = vcombine.low %v399_v42, %v403_v43  ;;  %v10561_v29 = vld [vmem:[%s12812_s0 + $0x68] ss:$16 sps:$4 sm:$0xff]   ;;  %v446_v40 = vld [vmem:[%s10274_s15 + $0x210] sm:$0xff] }
 0x11f   : > { %v439_v32 = vld [vmem:[%s10274_s15 + $0x1d8] sm:$0xff]  ;;  %v450_v41 = vld [vmem:[%s10274_s15 + $0x230] sm:$0xff] }
 0x120   : > { %2134 = vmatpush1.bf16.msra.mxu0 %v8521_v50  ;;  %2280 = vmatpush1.bf16.msra.mxu1 %v8523_v51  ;;  %v410_v50 = vld [vmem:[%s10274_s15 + $0xf0] sm:$0xff]  ;;  %v10517_v51 = vld [vmem:[%s12812_s0 + $0x28] ss:$16 sps:$4 sm:$0xff]  }
 0x121   : > { %2135 = vmatprep.subr.bf16.mxu0 %v8530_v52  ;;  %2281 = vmatprep.subr.bf16.mxu1 %v8532_v53  ;;  %v407_v52 = vld [vmem:[%s10274_s15 + $0xd8] sm:$0xff]  ;;  %v8334_v58 = vcombine.high %v406_v49, %v410_v50  ;;  %v8333_v1 = vcombine.low %v406_v49, %v410_v50  ;;  %v454_v49 = vld [vmem:[%s10274_s15 + $0x250] sm:$0xff] }
 0x122   : > { %v411_v53 = vld [vmem:[%s10274_s15 + $0xf8] sm:$0xff]  ;;  %v458_v50 = vld [vmem:[%s10274_s15 + $0x270] sm:$0xff] }
 0x123   : > { %v8336_v59 = vcombine.high %v407_v52, %v411_v53  ;;  %v8335_v2 = vcombine.low %v407_v52, %v411_v53  ;;  %v443_v33 = vld [vmem:[%s10274_s15 + $0x1f8] sm:$0xff] }
 0x124   : > { %2136 = vmatpush1.bf16.msra.mxu0 %v8529_v60  ;;  %2282 = vmatpush1.bf16.msra.mxu1 %v8531_v61  ;;  %v10524_v60 = vld [vmem:[%s12812_s0 + $0x4c] ss:$16 sps:$4 sm:$0xff]   ;;  %v414_v61 = vld [vmem:[%s10274_s15 + $0x110] sm:$0xff] }
 0x125   : > { %2137 = vmatprep.subr.bf16.mxu0 %v8538_v62  ;;  %2283 = vmatprep.subr.bf16.mxu1 %v8540_v63  ;;  %v418_v62 = vld [vmem:[%s10274_s15 + $0x130] sm:$0xff]  ;;  %v415_v63 = vld [vmem:[%s10274_s15 + $0x118] sm:$0xff] }
 0x126   : > { %v8342_v4 = vcombine.high %v414_v61, %v418_v62  ;;  %v8341_v13 = vcombine.low %v414_v61, %v418_v62  ;;  %v8343_v14 = vcombine.low %v415_v63, %v419_v0  ;;  %v447_v42 = vld [vmem:[%s10274_s15 + $0x218] sm:$0xff]  ;;  %v462_v61 = vld [vmem:[%s10274_s15 + $0x290] sm:$0xff] }
 0x127   : > { %v451_v43 = vld [vmem:[%s10274_s15 + $0x238] sm:$0xff]  ;;  %v466_v62 = vld [vmem:[%s10274_s15 + $0x2b0] sm:$0xff] }
 0x128   : > { %2138 = vmatpush1.bf16.msra.mxu0 %v8537_v5  ;;  %2284 = vmatpush1.bf16.msra.mxu1 %v8539_v6  ;;  %v8344_v5 = vcombine.high %v415_v63, %v419_v0  ;;  %v422_v6 = vld [vmem:[%s10274_s15 + $0x150] sm:$0xff]  ;;  %v455_v52 = vld [vmem:[%s10274_s15 + $0x258] sm:$0xff] }
 0x129   : > { %2139 = vmatprep.subr.bf16.mxu0 %v8546_v7  ;;  %2285 = vmatprep.subr.bf16.mxu1 %v8548_v8  ;;  %v426_v7 = vld [vmem:[%s10274_s15 + $0x170] sm:$0xff]  ;;  %v10539_v8 = vld [vmem:[%s12812_s0 + $0x48] ss:$16 sps:$4 sm:$0xff]  }
 0x12a   : > { %v8349_v23 = vcombine.low %v422_v6, %v426_v7  ;;  %v459_v53 = vld [vmem:[%s10274_s15 + $0x278] sm:$0xff] }
 0x12b   : > { %v463_v63 = vld [vmem:[%s10274_s15 + $0x298] sm:$0xff] }
 0x12c   : > { %2140 = vmatpush1.bf16.msra.mxu0 %v8545_v15  ;;  %2286 = vmatpush1.bf16.msra.mxu1 %v8547_v16  ;;  %v8350_v15 = vcombine.high %v422_v6, %v426_v7  ;;  %v8352_v16 = vcombine.high %v423_v9, %v427_v12  ;;  %v467_v0 = vld [vmem:[%s10274_s15 + $0x2b8] sm:$0xff]  ;;  %v474_v6 = vld [vmem:[%s10274_s15 + $0x2f0] sm:$0xff] }
 0x12d   : > { %2141 = vmatprep.subr.bf16.mxu0 %v8554_v17  ;;  %2287 = vmatprep.subr.bf16.mxu1 %v8556_v18  ;;  %v10546_v17 = vld [vmem:[%s12812_s0 + $0x6c] ss:$16 sps:$4 sm:$0xff]   ;;  %v430_v18 = vld [vmem:[%s10274_s15 + $0x190] sm:$0xff] }
 0x12e   : > { %v471_v7 = vld [vmem:[%s10274_s15 + $0x2d8] sm:$0xff] }
 0x130   : > { %2142 = vmatpush1.bf16.msra.mxu0 %v8553_v24  ;;  %2288 = vmatpush1.bf16.msra.mxu1 %v8555_v25  ;;  %v8351_v24 = vcombine.low %v423_v9, %v427_v12  ;;  %v8358_v25 = vcombine.high %v430_v18, %v434_v20  ;;  %v475_v9 = vld [vmem:[%s10274_s15 + $0x2f8] sm:$0xff]  ;;  %v8389_v12 = vcombine.low %v462_v61, %v466_v62 }
 0x131   : > { %2330 = vmatprep.subr.bf16.mxu0 %v8310_v26  ;;  %2476 = vmatprep.subr.bf16.mxu1 %v8312_v27  ;;  %v8360_v26 = vcombine.high %v431_v21, %v435_v22  ;;  %v438_v27 = vld [vmem:[%s10274_s15 + $0x1d0] sm:$0xff] }
 0x133   : > { %2144 = vmatmul.mubr.bf16.vlgmr.msra.gmra.mrb[0].mxu0 %v10495_v31  ;;  %2290 = vmatmul.mubr.bf16.vlgmr.msra.gmra.mrb[0].mxu1 %v10495_v31 }
 0x134   : > { %2331 = vmatpush1.bf16.msra.mxu0 %v8309_v34  ;;  %2477 = vmatpush1.bf16.msra.mxu1 %v8311_v35  ;;  %v8357_v34 = vcombine.low %v430_v18, %v434_v20  ;;  %v8359_v35 = vcombine.low %v431_v21, %v435_v22  ;;  %v482_v18 = vld [vmem:[%s10274_s15 + $0x330] sm:$0xff]  ;;  %v479_v20 = vld [vmem:[%s10274_s15 + $0x318] sm:$0xff] }
 0x135   : > { %2332 = vmatprep.subr.bf16.mxu0 %v8318_v36  ;;  %2478 = vmatprep.subr.bf16.mxu1 %v8320_v38  ;;  %v8366_v36 = vcombine.high %v438_v27, %v442_v28  ;;  %v8368_v38 = vcombine.high %v439_v32, %v443_v33  ;;  %v483_v21 = vld [vmem:[%s10274_s15 + $0x338] sm:$0xff] }
 0x136   : > { %2153 = vmatprep.mubr.bf16.mxu0 %v10502_v39  ;;  %2299 = vmatprep.mubr.bf16.mxu1 %v10502_v39 }
 0x138   : > { %2333 = vmatpush1.bf16.msra.mxu0 %v8317_v44  ;;  %2479 = vmatpush1.bf16.msra.mxu1 %v8319_v45  ;;  %v8365_v44 = vcombine.low %v438_v27, %v442_v28  ;;  %v8367_v45 = vcombine.low %v439_v32, %v443_v33  ;;  %v490_v27 = vld [vmem:[%s10274_s15 + $0x370] sm:$0xff]  ;;  %v487_v28 = vld [vmem:[%s10274_s15 + $0x358] sm:$0xff] }
 0x139   : > { %2334 = vmatprep.subr.bf16.mxu0 %v8326_v46  ;;  %2480 = vmatprep.subr.bf16.mxu1 %v8328_v47  ;;  %v8374_v46 = vcombine.high %v446_v40, %v450_v41  ;;  %v8376_v47 = vcombine.high %v447_v42, %v451_v43  ;;  %v491_v32 = vld [vmem:[%s10274_s15 + $0x378] sm:$0xff] }
 0x13b   : > { %2154 = vmatmul.mubr.bf16.gmra.mrb[4].mxu0 %v10517_v51  ;;  %2300 = vmatmul.mubr.bf16.gmra.mrb[4].mxu1 %v10517_v51 }
 0x13c   : > { %2335 = vmatpush1.bf16.msra.mxu0 %v8325_v54  ;;  %2481 = vmatpush1.bf16.msra.mxu1 %v8327_v57  ;;  %v8373_v54 = vcombine.low %v446_v40, %v450_v41  ;;  %v8375_v57 = vcombine.low %v447_v42, %v451_v43  ;;  %v498_v40 = vld [vmem:[%s10274_s15 + $0x3b0] sm:$0xff]  ;;  %v495_v41 = vld [vmem:[%s10274_s15 + $0x398] sm:$0xff] }
 0x13d   : > { %2336 = vmatprep.subr.bf16.mxu0 %v8334_v58  ;;  %2482 = vmatprep.subr.bf16.mxu1 %v8336_v59  ;;  %v8382_v58 = vcombine.high %v454_v49, %v458_v50  ;;  %v8384_v59 = vcombine.high %v455_v52, %v459_v53  ;;  %v499_v42 = vld [vmem:[%s10274_s15 + $0x3b8] sm:$0xff] }
 0x13e   : > { %2163 = vmatprep.mubr.bf16.mxu0 %v10524_v60  ;;  %2309 = vmatprep.mubr.bf16.mxu1 %v10524_v60 }
 0x140   : > { %2337 = vmatpush1.bf16.msra.mxu0 %v8333_v1  ;;  %2483 = vmatpush1.bf16.msra.mxu1 %v8335_v2  ;;  %v8381_v1 = vcombine.low %v454_v49, %v458_v50  ;;  %v8390_v2 = vcombine.high %v462_v61, %v466_v62  ;;  %v506_v49 = vld [vmem:[%s10274_s15 + $0x3f0] sm:$0xff]  ;;  %v503_v50 = vld [vmem:[%s10274_s15 + $0x3d8] sm:$0xff] }
 0x141   : > { %2338 = vmatprep.subr.bf16.mxu0 %v8342_v4  ;;  %2484 = vmatprep.subr.bf16.mxu1 %v8344_v5  ;;  %v8392_v4 = vcombine.high %v463_v63, %v467_v0  ;;  %v470_v5 = vld [vmem:[%s10274_s15 + $0x2d0] sm:$0xff]  ;;  %v511_v62 = vld [vmem:[%s10274_s15 + $0x418] sm:$0xff] }
 0x142   : > { %v8397_v22 = vcombine.low %v470_v5, %v474_v6  ;;  %v514_v61 = vld [vmem:[%s10274_s15 + $0x430] sm:$0xff] }
 0x143   : > { %2164 = vmatmul.mubr.bf16.gmra.mrb[8].mxu0 %v10539_v8  ;;  %2310 = vmatmul.mubr.bf16.gmra.mrb[8].mxu1 %v10539_v8 }
 0x144   : > { %2339 = vmatpush1.bf16.msra.mxu0 %v8341_v13  ;;  %2485 = vmatpush1.bf16.msra.mxu1 %v8343_v14  ;;  %v8391_v13 = vcombine.low %v463_v63, %v467_v0  ;;  %v8398_v14 = vcombine.high %v470_v5, %v474_v6  ;;  %v515_v63 = vld [vmem:[%s10274_s15 + $0x438] sm:$0xff]  ;;  %v522_v5 = vld [vmem:[%s10274_s15 + $0x470] sm:$0xff] }
 0x145   : > { %2340 = vmatprep.subr.bf16.mxu0 %v8350_v15  ;;  %2486 = vmatprep.subr.bf16.mxu1 %v8352_v16  ;;  %v8400_v15 = vcombine.high %v471_v7, %v475_v9  ;;  %v478_v16 = vld [vmem:[%s10274_s15 + $0x310] sm:$0xff]  ;;  %v519_v6 = vld [vmem:[%s10274_s15 + $0x458] sm:$0xff] }
 0x146   : > { %2173 = vmatprep.mubr.bf16.mxu0 %v10546_v17  ;;  %2319 = vmatprep.mubr.bf16.mxu1 %v10546_v17  ;;  %v8405_v33 = vcombine.low %v478_v16, %v482_v18 }
 0x148   : > { %2341 = vmatpush1.bf16.msra.mxu0 %v8349_v23  ;;  %2487 = vmatpush1.bf16.msra.mxu1 %v8351_v24  ;;  %v8399_v23 = vcombine.low %v471_v7, %v475_v9  ;;  %v8406_v24 = vcombine.high %v478_v16, %v482_v18  ;;  %v523_v7 = vld [vmem:[%s10274_s15 + $0x478] sm:$0xff]  ;;  %v530_v16 = vld [vmem:[%s10274_s15 + $0x4b0] sm:$0xff] }
 0x149   : > { %2342 = vmatprep.subr.bf16.mxu0 %v8358_v25  ;;  %2488 = vmatprep.subr.bf16.mxu1 %v8360_v26  ;;  %v8408_v25 = vcombine.high %v479_v20, %v483_v21  ;;  %v486_v26 = vld [vmem:[%s10274_s15 + $0x350] sm:$0xff]  ;;  %v527_v18 = vld [vmem:[%s10274_s15 + $0x498] sm:$0xff] }
 0x14a   : > { %v8413_v43 = vcombine.low %v486_v26, %v490_v27 }
 0x14b   : > { %2174 = vmatmul.mubr.bf16.gmra.mrb[12].mxu0 %v10561_v29  ;;  %2320 = vmatmul.mubr.bf16.gmra.mrb[12].mxu1 %v10561_v29 }
 0x14c   : > { %2343 = vmatpush1.bf16.msra.mxu0 %v8357_v34  ;;  %2489 = vmatpush1.bf16.msra.mxu1 %v8359_v35  ;;  %v8407_v34 = vcombine.low %v479_v20, %v483_v21  ;;  %v8414_v35 = vcombine.high %v486_v26, %v490_v27  ;;  %v531_v20 = vld [vmem:[%s10274_s15 + $0x4b8] sm:$0xff]  ;;  %v538_v26 = vld [vmem:[%s10274_s15 + $0x4f0] sm:$0xff] }
 0x14d   : > { %2344 = vmatprep.subr.bf16.mxu0 %v8366_v36  ;;  %2490 = vmatprep.subr.bf16.mxu1 %v8368_v38  ;;  %v8416_v36 = vcombine.high %v487_v28, %v491_v32  ;;  %v494_v38 = vld [vmem:[%s10274_s15 + $0x390] sm:$0xff]  ;;  %v535_v27 = vld [vmem:[%s10274_s15 + $0x4d8] sm:$0xff] }
 0x14e   : > { %2362 = vmatprep.mubr.bf16.mxu0 %v10328_v56  ;;  %2508 = vmatprep.mubr.bf16.mxu1 %v10328_v56  ;;  %v8383_v56 = vcombine.low %v455_v52, %v459_v53  ;;  %v507_v52 = vld [vmem:[%s10274_s15 + $0x3f8] sm:$0xff]  ;;  %v8421_v53 = vcombine.low %v494_v38, %v498_v40 }
 0x150   : > { %2345 = vmatpush1.bf16.msra.mxu0 %v8365_v44  ;;  %2491 = vmatpush1.bf16.msra.mxu1 %v8367_v45  ;;  %v8415_v44 = vcombine.low %v487_v28, %v491_v32  ;;  %v8422_v45 = vcombine.high %v494_v38, %v498_v40  ;;  %v539_v28 = vld [vmem:[%s10274_s15 + $0x4f8] sm:$0xff]  ;;  %v8455_v32 = vcombine.low %v527_v18, %v531_v20 }
 0x151   : > { %2346 = vmatprep.subr.bf16.mxu0 %v8374_v46  ;;  %2492 = vmatprep.subr.bf16.mxu1 %v8376_v47  ;;  %v8424_v46 = vcombine.high %v495_v41, %v499_v42  ;;  %v502_v47 = vld [vmem:[%s10274_s15 + $0x3d0] sm:$0xff]  ;;  %v543_v38 = vld [vmem:[%s10274_s15 + $0x518] sm:$0xff] }
 0x152   : > { %v8429_v0 = vcombine.low %v502_v47, %v506_v49  ;;  %v547_v40 = vld [vmem:[%s10274_s15 + $0x538] sm:$0xff] }
 0x154   : > { %2347 = vmatpush1.bf16.msra.mxu0 %v8373_v54  ;;  %2493 = vmatpush1.bf16.msra.mxu1 %v8375_v57  ;;  %v8423_v54 = vcombine.low %v495_v41, %v499_v42  ;;  %v8430_v57 = vcombine.high %v502_v47, %v506_v49  ;;  %v8463_v41 = vcombine.low %v535_v27, %v539_v28  ;;  %v555_v47 = vld [vmem:[%s10274_s15 + $0x578] sm:$0xff] }
 0x155   : > { %2348 = vmatprep.subr.bf16.mxu0 %v8382_v58  ;;  %2494 = vmatprep.subr.bf16.mxu1 %v8384_v59  ;;  %v8432_v58 = vcombine.high %v503_v50, %v507_v52  ;;  %v510_v59 = vld [vmem:[%s10274_s15 + $0x410] sm:$0xff]  ;;  %v8471_v49 = vcombine.low %v543_v38, %v547_v40 }
 0x156   : > { %v8437_v9 = vcombine.low %v510_v59, %v514_v61 }
 0x158   : > { %2349 = vmatpush1.bf16.msra.mxu0 %v8381_v1  ;;  %2495 = vmatpush1.bf16.msra.mxu1 %v8383_v56  ;;  %v8431_v1 = vcombine.low %v503_v50, %v507_v52  ;;  %v8438_v56 = vcombine.high %v510_v59, %v514_v61 }
 0x159   : > { %2350 = vmatprep.subr.bf16.mxu0 %v8390_v2  ;;  %2496 = vmatprep.subr.bf16.mxu1 %v8392_v4  ;;  %v8440_v2 = vcombine.high %v511_v62, %v515_v63  ;;  %v518_v4 = vld [vmem:[%s10274_s15 + $0x450] sm:$0xff] }
 0x15a   : > { %v8445_v21 = vcombine.low %v518_v4, %v522_v5 }
 0x15c   : > { %2351 = vmatpush1.bf16.msra.mxu0 %v8389_v12  ;;  %2497 = vmatpush1.bf16.msra.mxu1 %v8391_v13  ;;  %v8439_v12 = vcombine.low %v511_v62, %v515_v63  ;;  %v8446_v13 = vcombine.high %v518_v4, %v522_v5  ;;  %v566_v63 = vld [vmem:[%s10274_s15 + $0x5d0] sm:$0xff] }
 0x15d   : > { %2352 = vmatprep.subr.bf16.mxu0 %v8398_v14  ;;  %2498 = vmatprep.subr.bf16.mxu1 %v8400_v15  ;;  %v8448_v14 = vcombine.high %v519_v6, %v523_v7  ;;  %v526_v15 = vld [vmem:[%s10274_s15 + $0x490] sm:$0xff] }
 0x160   : > { %2353 = vmatpush1.bf16.msra.mxu0 %v8397_v22  ;;  %2499 = vmatpush1.bf16.msra.mxu1 %v8399_v23  ;;  %v8447_v22 = vcombine.low %v519_v6, %v523_v7  ;;  %v8454_v23 = vcombine.high %v526_v15, %v530_v16  ;;  %v574_v6 = vld [vmem:[%s10274_s15 + $0x610] sm:$0xff] }
 0x161   : > { %2354 = vmatprep.subr.bf16.mxu0 %v8406_v24  ;;  %2500 = vmatprep.subr.bf16.mxu1 %v8408_v25  ;;  %v8456_v24 = vcombine.high %v527_v18, %v531_v20  ;;  %v534_v25 = vld [vmem:[%s10274_s15 + $0x4d0] sm:$0xff]  ;;  %v583_v20 = vld [vmem:[%s10274_s15 + $0x658] sm:$0xff] }
 0x162   : > { %v578_v7 = vld [vmem:[%s10274_s15 + $0x630] sm:$0xff] }
 0x163   : > { %v586_v18 = vld [vmem:[%s10274_s15 + $0x670] sm:$0xff] }
 0x164   : > { %2355 = vmatpush1.bf16.msra.mxu0 %v8405_v33  ;;  %2501 = vmatpush1.bf16.msra.mxu1 %v8407_v34  ;;  %v8462_v33 = vcombine.high %v534_v25, %v538_v26  ;;  %v8464_v34 = vcombine.high %v535_v27, %v539_v28  ;;  %v591_v27 = vld [vmem:[%s10274_s15 + $0x698] sm:$0xff] }
 0x165   : > { %2356 = vmatprep.subr.bf16.mxu0 %v8414_v35  ;;  %2502 = vmatprep.subr.bf16.mxu1 %v8416_v36  ;;  %v542_v35 = vld [vmem:[%s10274_s15 + $0x510] sm:$0xff]  ;;  %v595_v28 = vld [vmem:[%s10274_s15 + $0x6b8] sm:$0xff] }
 0x166   : > { %v546_v36 = vld [vmem:[%s10274_s15 + $0x530] sm:$0xff] }
 0x167   : > { %v8470_v42 = vcombine.high %v542_v35, %v546_v36 }
 0x168   : > { %2357 = vmatpush1.bf16.msra.mxu0 %v8413_v43  ;;  %2503 = vmatpush1.bf16.msra.mxu1 %v8415_v44  ;;  %v8472_v43 = vcombine.high %v543_v38, %v547_v40  ;;  %v550_v44 = vld [vmem:[%s10274_s15 + $0x550] sm:$0xff]  ;;  %v603_v38 = vld [vmem:[%s10274_s15 + $0x6f8] sm:$0xff] }
 0x169   : > { %2358 = vmatprep.subr.bf16.mxu0 %v8422_v45  ;;  %2504 = vmatprep.subr.bf16.mxu1 %v8424_v46  ;;  %v554_v45 = vld [vmem:[%s10274_s15 + $0x570] sm:$0xff]  ;;  %v551_v46 = vld [vmem:[%s10274_s15 + $0x558] sm:$0xff] }
 0x16a   : > { %v8478_v50 = vcombine.high %v550_v44, %v554_v45  ;;  %v8480_v52 = vcombine.high %v551_v46, %v555_v47  ;;  %v8479_v59 = vcombine.low %v551_v46, %v555_v47  ;;  %v611_v46 = vld [vmem:[%s10274_s15 + $0x738] sm:$0xff] }
 0x16c   : > { %2359 = vmatpush1.bf16.msra.mxu0 %v8421_v53  ;;  %2505 = vmatpush1.bf16.msra.mxu1 %v8423_v54  ;;  %v558_v53 = vld [vmem:[%s10274_s15 + $0x590] sm:$0xff] }
 0x16d   : > { %2360 = vmatprep.subr.bf16.mxu0 %v8430_v57  ;;  %2506 = vmatprep.subr.bf16.mxu1 %v8432_v58  ;;  %v562_v54 = vld [vmem:[%s10274_s15 + $0x5b0] sm:$0xff]  ;;  %v559_v57 = vld [vmem:[%s10274_s15 + $0x598] sm:$0xff] }
 0x16e   : > { %v563_v58 = vld [vmem:[%s10274_s15 + $0x5b8] sm:$0xff]  ;;  %v8486_v61 = vcombine.high %v558_v53, %v562_v54 }
 0x16f   : > { %v8488_v62 = vcombine.high %v559_v57, %v563_v58 }
 0x170   : > { %2361 = vmatpush1.bf16.msra.mxu0 %v8429_v0  ;;  %2507 = vmatpush1.bf16.msra.mxu1 %v8431_v1  ;;  %v570_v0 = vld [vmem:[%s10274_s15 + $0x5f0] sm:$0xff]  ;;  %v567_v1 = vld [vmem:[%s10274_s15 + $0x5d8] sm:$0xff] }
 0x171   : > { %2403 = vmatprep.subr.bf16.mxu0 %v8438_v56  ;;  %2549 = vmatprep.subr.bf16.mxu1 %v8440_v2  ;;  %v571_v56 = vld [vmem:[%s10274_s15 + $0x5f8] sm:$0xff]  ;;  %v8487_v2 = vcombine.low %v559_v57, %v563_v58  ;;  %v8494_v4 = vcombine.high %v566_v63, %v570_v0 }
 0x172   : > { %v8496_v5 = vcombine.high %v567_v1, %v571_v56  ;;  %v619_v57 = vld [vmem:[%s10274_s15 + $0x778] sm:$0xff] }
 0x173   : > { %2363 = vmatmul.mubr.bf16.vlgmr.msra.gmra.mrb[16].mxu0 %v10375_v10  ;;  %2509 = vmatmul.mubr.bf16.vlgmr.msra.gmra.mrb[16].mxu1 %v10375_v10  ;;  %v8453_v10 = vcombine.low %v526_v15, %v530_v16  ;;  %v582_v16 = vld [vmem:[%s10274_s15 + $0x650] sm:$0xff] }
 0x174   : > { %2404 = vmatpush1.bf16.msra.mxu0 %v8437_v9  ;;  %2550 = vmatpush1.bf16.msra.mxu1 %v8439_v12  ;;  %v575_v9 = vld [vmem:[%s10274_s15 + $0x618] sm:$0xff] }
 0x175   : > { %2405 = vmatprep.subr.bf16.mxu0 %v8446_v13  ;;  %2551 = vmatprep.subr.bf16.mxu1 %v8448_v14  ;;  %v579_v12 = vld [vmem:[%s10274_s15 + $0x638] sm:$0xff]  ;;  %v8495_v13 = vcombine.low %v567_v1, %v571_v56  ;;  %v8502_v14 = vcombine.high %v574_v6, %v578_v7 }
 0x176   : > { %2372 = vmatprep.mubr.bf16.mxu0 %v10384_v19  ;;  %2518 = vmatprep.mubr.bf16.mxu1 %v10384_v19  ;;  %v8461_v19 = vcombine.low %v534_v25, %v538_v26  ;;  %v8504_v15 = vcombine.high %v575_v9, %v579_v12  ;;  %v590_v25 = vld [vmem:[%s10274_s15 + $0x690] sm:$0xff]  ;;  %v627_v1 = vld [vmem:[%s10274_s15 + $0x7b8] sm:$0xff] }
 0x177   : > { %v594_v26 = vld [vmem:[%s10274_s15 + $0x6b0] sm:$0xff] }
 0x178   : > { %2406 = vmatpush1.bf16.msra.mxu0 %v8445_v21  ;;  %2552 = vmatpush1.bf16.msra.mxu1 %v8447_v22  ;;  %v587_v21 = vld [vmem:[%s10274_s15 + $0x678] sm:$0xff]  ;;  %v8503_v22 = vcombine.low %v575_v9, %v579_v12  ;;  %v8517_v40 = vcombine.low %v590_v25, %v594_v26 }
 0x179   : > { %2407 = vmatprep.subr.bf16.mxu0 %v8454_v23  ;;  %2553 = vmatprep.subr.bf16.mxu1 %v8456_v24  ;;  %v8510_v23 = vcombine.high %v582_v16, %v586_v18  ;;  %v8512_v24 = vcombine.high %v583_v20, %v587_v21  ;;  %v635_v9 = vld [vmem:[%s10274_s15 + $0x7f8] sm:$0xff] }
 0x17b   : > { %2373 = vmatmul.mubr.bf16.gmra.mrb[20].mxu0 %v10399_v30  ;;  %2519 = vmatmul.mubr.bf16.gmra.mrb[20].mxu1 %v10399_v30  ;;  %v8469_v30 = vcombine.low %v542_v35, %v546_v36  ;;  %v602_v35 = vld [vmem:[%s10274_s15 + $0x6f0] sm:$0xff]  ;;  %v599_v36 = vld [vmem:[%s10274_s15 + $0x6d8] sm:$0xff] }
 0x17c   : > { %2408 = vmatpush1.bf16.msra.mxu0 %v8453_v10  ;;  %2554 = vmatpush1.bf16.msra.mxu1 %v8455_v32  ;;  %v8509_v10 = vcombine.low %v582_v16, %v586_v18  ;;  %v8518_v32 = vcombine.high %v590_v25, %v594_v26  ;;  %v10699_v18 = vld [vmem:[%s10287_s2] sm:$0xff] }
 0x17d   : > { %2409 = vmatprep.subr.bf16.mxu0 %v8462_v33  ;;  %2555 = vmatprep.subr.bf16.mxu1 %v8464_v34  ;;  %v8520_v33 = vcombine.high %v591_v27, %v595_v28  ;;  %v598_v34 = vld [vmem:[%s10274_s15 + $0x6d0] sm:$0xff] }
 0x17e   : > { %2382 = vmatprep.mubr.bf16.mxu0 %v10406_v37  ;;  %2528 = vmatprep.mubr.bf16.mxu1 %v10406_v37  ;;  %v8477_v37 = vcombine.low %v550_v44, %v554_v45  ;;  %v610_v44 = vld [vmem:[%s10274_s15 + $0x730] sm:$0xff]  ;;  %v607_v45 = vld [vmem:[%s10274_s15 + $0x718] sm:$0xff]  ;;  %v8525_v47 = vcombine.low %v598_v34, %v602_v35 }
 0x180   : > { %2410 = vmatpush1.bf16.msra.mxu0 %v8461_v19  ;;  %2556 = vmatpush1.bf16.msra.mxu1 %v8463_v41  ;;  %v8519_v19 = vcombine.low %v591_v27, %v595_v28  ;;  %v8526_v41 = vcombine.high %v598_v34, %v602_v35 }
 0x181   : > { %2411 = vmatprep.subr.bf16.mxu0 %v8470_v42  ;;  %2557 = vmatprep.subr.bf16.mxu1 %v8472_v43  ;;  %v8528_v42 = vcombine.high %v599_v36, %v603_v38  ;;  %v606_v43 = vld [vmem:[%s10274_s15 + $0x710] sm:$0xff] }
 0x182   : > { %v8533_v58 = vcombine.low %v606_v43, %v610_v44 }
 0x183   : > { %2383 = vmatmul.mubr.bf16.gmra.mrb[24].mxu0 %v10421_v48  ;;  %2529 = vmatmul.mubr.bf16.gmra.mrb[24].mxu1 %v10421_v48  ;;  %v8485_v48 = vcombine.low %v558_v53, %v562_v54  ;;  %v618_v53 = vld [vmem:[%s10274_s15 + $0x770] sm:$0xff]  ;;  %v615_v54 = vld [vmem:[%s10274_s15 + $0x758] sm:$0xff] }
 0x184   : > { %2412 = vmatpush1.bf16.msra.mxu0 %v8469_v30  ;;  %2558 = vmatpush1.bf16.msra.mxu1 %v8471_v49  ;;  %v8527_v30 = vcombine.low %v599_v36, %v603_v38  ;;  %v8534_v49 = vcombine.high %v606_v43, %v610_v44 }
 0x185   : > { %2413 = vmatprep.subr.bf16.mxu0 %v8478_v50  ;;  %2559 = vmatprep.subr.bf16.mxu1 %v8480_v52  ;;  %v8536_v50 = vcombine.high %v607_v45, %v611_v46  ;;  %v614_v52 = vld [vmem:[%s10274_s15 + $0x750] sm:$0xff] }
 0x186   : > { %2392 = vmatprep.mubr.bf16.mxu0 %v10428_v55  ;;  %2538 = vmatprep.mubr.bf16.mxu1 %v10428_v55  ;;  %v8493_v55 = vcombine.low %v566_v63, %v570_v0  ;;  %v626_v63 = vld [vmem:[%s10274_s15 + $0x7b0] sm:$0xff]  ;;  %v623_v0 = vld [vmem:[%s10274_s15 + $0x798] sm:$0xff]  ;;  %v8541_v56 = vcombine.low %v614_v52, %v618_v53 }
 0x188   : > { %2414 = vmatpush1.bf16.msra.mxu0 %v8477_v37  ;;  %2560 = vmatpush1.bf16.msra.mxu1 %v8479_v59  ;;  %v8535_v37 = vcombine.low %v607_v45, %v611_v46  ;;  %v8542_v59 = vcombine.high %v614_v52, %v618_v53 }
 0x189   : > { %2415 = vmatprep.subr.bf16.mxu0 %v8486_v61  ;;  %2561 = vmatprep.subr.bf16.mxu1 %v8488_v62  ;;  %v8544_v61 = vcombine.high %v615_v54, %v619_v57  ;;  %v622_v62 = vld [vmem:[%s10274_s15 + $0x790] sm:$0xff] }
 0x18a   : > { %v8549_v12 = vcombine.low %v622_v62, %v626_v63 }
 0x18b   : > { %2393 = vmatmul.mubr.bf16.gmra.mrb[28].mxu0 %v10443_v3  ;;  %2539 = vmatmul.mubr.bf16.gmra.mrb[28].mxu1 %v10443_v3  ;;  %v8501_v3 = vcombine.low %v574_v6, %v578_v7  ;;  %v634_v6 = vld [vmem:[%s10274_s15 + $0x7f0] sm:$0xff]  ;;  %v631_v7 = vld [vmem:[%s10274_s15 + $0x7d8] sm:$0xff] }
 0x18c   : > { %2416 = vmatpush1.bf16.msra.mxu0 %v8485_v48  ;;  %2562 = vmatpush1.bf16.msra.mxu1 %v8487_v2  ;;  %v8543_v48 = vcombine.low %v615_v54, %v619_v57  ;;  %v8550_v2 = vcombine.high %v622_v62, %v626_v63  ;;  %v8559_v16 = vcombine.low %v631_v7, %v635_v9 }
 0x18d   : > { %2417 = vmatprep.subr.bf16.mxu0 %v8494_v4  ;;  %2563 = vmatprep.subr.bf16.mxu1 %v8496_v5  ;;  %v8552_v4 = vcombine.high %v623_v0, %v627_v1  ;;  %v630_v5 = vld [vmem:[%s10274_s15 + $0x7d0] sm:$0xff] }
 0x18e   : > { %2435 = vmatprep.mubr.bf16.mxu0 %v10450_v11  ;;  %2581 = vmatprep.mubr.bf16.mxu1 %v10450_v11  ;;  %v8511_v11 = vcombine.low %v583_v20, %v587_v21 }
 0x190   : > { %2418 = vmatpush1.bf16.msra.mxu0 %v8493_v55  ;;  %2564 = vmatpush1.bf16.msra.mxu1 %v8495_v13  ;;  %v8551_v55 = vcombine.low %v623_v0, %v627_v1  ;;  %v8558_v13 = vcombine.high %v630_v5, %v634_v6 }
 0x191   : > { %2419 = vmatprep.subr.bf16.mxu0 %v8502_v14  ;;  %2565 = vmatprep.subr.bf16.mxu1 %v8504_v15  ;;  %v8560_v14 = vcombine.high %v631_v7, %v635_v9  ;;  %v8557_v15 = vcombine.low %v630_v5, %v634_v6 }
 0x194   : > { %2420 = vmatpush1.bf16.msra.mxu0 %v8501_v3  ;;  %2566 = vmatpush1.bf16.msra.mxu1 %v8503_v22 }
 0x195   : > { %2421 = vmatprep.subr.bf16.mxu0 %v8510_v23  ;;  %2567 = vmatprep.subr.bf16.mxu1 %v8512_v24 }
 0x198   : > { %2422 = vmatpush1.bf16.msra.mxu0 %v8509_v10  ;;  %2568 = vmatpush1.bf16.msra.mxu1 %v8511_v11 }
 0x199   : > { %2423 = vmatprep.subr.bf16.mxu0 %v8518_v32  ;;  %2569 = vmatprep.subr.bf16.mxu1 %v8520_v33 }
 0x19c   : > { %2424 = vmatpush1.bf16.msra.mxu0 %v8517_v40  ;;  %2570 = vmatpush1.bf16.msra.mxu1 %v8519_v19 }
 0x19d   : > { %2425 = vmatprep.subr.bf16.mxu0 %v8526_v41  ;;  %2571 = vmatprep.subr.bf16.mxu1 %v8528_v42 }
 0x1a0   : > { %2426 = vmatpush1.bf16.msra.mxu0 %v8525_v47  ;;  %2572 = vmatpush1.bf16.msra.mxu1 %v8527_v30 }
 0x1a1   : > { %2427 = vmatprep.subr.bf16.mxu0 %v8534_v49  ;;  %2573 = vmatprep.subr.bf16.mxu1 %v8536_v50 }
 0x1a4   : > { %2428 = vmatpush1.bf16.msra.mxu0 %v8533_v58  ;;  %2574 = vmatpush1.bf16.msra.mxu1 %v8535_v37 }
 0x1a5   : > { %2429 = vmatprep.subr.bf16.mxu0 %v8542_v59  ;;  %2575 = vmatprep.subr.bf16.mxu1 %v8544_v61 }
 0x1a8   : > { %2430 = vmatpush1.bf16.msra.mxu0 %v8541_v56  ;;  %2576 = vmatpush1.bf16.msra.mxu1 %v8543_v48 }
 0x1a9   : > { %2431 = vmatprep.subr.bf16.mxu0 %v8550_v2  ;;  %2577 = vmatprep.subr.bf16.mxu1 %v8552_v4 }
 0x1ac   : > { %2432 = vmatpush1.bf16.msra.mxu0 %v8549_v12  ;;  %2578 = vmatpush1.bf16.msra.mxu1 %v8551_v55 }
 0x1ad   : > { %2433 = vmatprep.subr.bf16.mxu0 %v8558_v13  ;;  %2579 = vmatprep.subr.bf16.mxu1 %v8560_v14 }
 0x1b0   : > { %2434 = vmatpush1.bf16.msra.mxu0 %v8557_v15  ;;  %2580 = vmatpush1.bf16.msra.mxu1 %v8559_v16 }
 0x1b3   : > { %2436 = vmatmul.mubr.bf16.vlgmr.msra.gmra.mrb[16].mxu0 %v10495_v31  ;;  %2582 = vmatmul.mubr.bf16.vlgmr.msra.gmra.mrb[16].mxu1 %v10495_v31  ;;  %v638_v31 = vlaneseq }
 0x1b4   : > { %2445 = vmatprep.mubr.bf16.mxu0 %v10502_v39  ;;  %2591 = vmatprep.mubr.bf16.mxu1 %v10502_v39 }
 0x1b5   : > { %v10695_v39 = vshrl.u32 %v638_v31, 7 }
 0x1b7   : > { %v644_v20 = vsub.s32 1, %v10695_v39 }
 0x1bb   : > { %2446 = vmatmul.mubr.bf16.gmra.mrb[20].mxu0 %v10517_v51  ;;  %2592 = vmatmul.mubr.bf16.gmra.mrb[20].mxu1 %v10517_v51  ;;  %v640_v51 = vsub.s32 0, %v10695_v39 }
 0x1bc   : > { %2455 = vmatprep.mubr.bf16.mxu0 %v10524_v60  ;;  %2601 = vmatprep.mubr.bf16.mxu1 %v10524_v60  ;;  %v648_v60 = vsub.s32 2, %v10695_v39 }
 0x1bd   : > { %v10705_v21 = vrot.slane %v10699_v18, %v640_v51 }
 0x1c3   : > { %2456 = vmatmul.mubr.bf16.gmra.mrb[24].mxu0 %v10539_v8  ;;  %2602 = vmatmul.mubr.bf16.gmra.mrb[24].mxu1 %v10539_v8  ;;  %v652_v8 = vsub.s32 3, %v10695_v39 }
 0x1c4   : > { %2465 = vmatprep.mubr.bf16.mxu0 %v10546_v17  ;;  %2611 = vmatprep.mubr.bf16.mxu1 %v10546_v17  ;;  %v10708_v17 = vrot.slane %v10699_v18, %v648_v60 }
 0x1c5   : > { %v10714_v3 = vrot.slane %v10699_v18, %v652_v8 }
 0x1cb   : > { %2466 = vmatmul.mubr.bf16.gmra.mrb[28].mxu0 %v10561_v29  ;;  %2612 = vmatmul.mubr.bf16.gmra.mrb[28].mxu1 %v10561_v29  ;;  %v10711_v29 = vrot.slane %v10699_v18, %v644_v20 }
 0x206   : > { %v2145_v22 = vpop.f32.mrb[0].mxu0  ;;  %v2291_v24 = vpop.f32.mrb[0].mxu1 }
 0x207   : > { %v9145_v23 = vadd.f32 %v2145_v22, %v10705_v21  ;;  %v2147_v25 = vpop.f32.mrb[1].mxu0  ;;  %v9161_v26 = vadd.f32 %v2291_v24, %v10708_v17  ;;  %v2293_v28 = vpop.f32.mrb[1].mxu1 }
 0x208   : > { %v9146_v27 = vadd.f32 %v2147_v25, %v10711_v29  ;;  %v2149_v10 = vpop.f32.mrb[2].mxu0  ;;  %v9162_v11 = vadd.f32 %v2293_v28, %v10714_v3  ;;  %v2295_v33 = vpop.f32.mrb[2].mxu1  ;;  %v656_v28 = vsub.s32 4, %v10695_v39 }
 0x209   : > { %2622 = vst [vmem:[#allocation3] sm:$0xff] %v9145_v23  ;;  %v9147_v32 = vadd.f32 %v2149_v10, %v10705_v21  ;;  %v2151_v34 = vpop.f32.mrb[3].mxu0  ;;  %2624 = vst [vmem:[#allocation3 + $0x10] sm:$0xff] %v9161_v26  ;;  %v9163_v35 = vadd.f32 %v2295_v33, %v10708_v17  ;;  %v2297_v38 = vpop.f32.mrb[3].mxu1  ;;  %v660_v10 = vsub.s32 5, %v10695_v39 }
 0x20a   : > { %2623 = vst [vmem:[#allocation3 + $0x8] sm:$0xff] %v9146_v27  ;;  %v9148_v36 = vadd.f32 %v2151_v34, %v10711_v29  ;;  %2625 = vst [vmem:[#allocation3 + $0x18] sm:$0xff] %v9162_v11  ;;  %v9164_v40 = vadd.f32 %v2297_v38, %v10714_v3  ;;  %v668_v11 = vsub.s32 7, %v10695_v39 }
 0x20b   : > { %2630 = vst [vmem:[#allocation3 + $0x40] sm:$0xff] %v9147_v32  ;;  %2632 = vst [vmem:[#allocation3 + $0x50] sm:$0xff] %v9163_v35  ;;  %v10759_v32 = vrot.slane %v10699_v18, %v660_v10 }
 0x20c   : > { %2631 = vst [vmem:[#allocation3 + $0x48] sm:$0xff] %v9148_v36  ;;  %2633 = vst [vmem:[#allocation3 + $0x58] sm:$0xff] %v9164_v40 }
 0x20e   : > { %v2155_v19 = vpop.f32.mrb[4].mxu0  ;;  %v2301_v42 = vpop.f32.mrb[4].mxu1 }
 0x20f   : > { %v9149_v41 = vadd.f32 %v2155_v19, %v10705_v21  ;;  %v2157_v43 = vpop.f32.mrb[5].mxu0  ;;  %v9165_v44 = vadd.f32 %v2301_v42, %v10708_v17  ;;  %v2303_v46 = vpop.f32.mrb[5].mxu1 }
 0x210   : > { %v9150_v45 = vadd.f32 %v2157_v43, %v10711_v29  ;;  %v2159_v47 = vpop.f32.mrb[6].mxu0  ;;  %v9166_v30 = vadd.f32 %v2303_v46, %v10714_v3  ;;  %v2305_v50 = vpop.f32.mrb[6].mxu1 }
 0x211   : > { %2638 = vst [vmem:[#allocation3 + $0x80] sm:$0xff] %v9149_v41  ;;  %v9151_v49 = vadd.f32 %v2159_v47, %v10705_v21  ;;  %v2161_v52 = vpop.f32.mrb[7].mxu0  ;;  %2640 = vst [vmem:[#allocation3 + $0x90] sm:$0xff] %v9165_v44  ;;  %v9167_v53 = vadd.f32 %v2305_v50, %v10708_v17  ;;  %v2307_v57 = vpop.f32.mrb[7].mxu1 }
 0x212   : > { %2639 = vst [vmem:[#allocation3 + $0x88] sm:$0xff] %v9150_v45  ;;  %v9152_v54 = vadd.f32 %v2161_v52, %v10711_v29  ;;  %2641 = vst [vmem:[#allocation3 + $0x98] sm:$0xff] %v9166_v30  ;;  %v9168_v58 = vadd.f32 %v2307_v57, %v10714_v3 }
 0x213   : > { %2646 = vst [vmem:[#allocation3 + $0xc0] sm:$0xff] %v9151_v49  ;;  %2648 = vst [vmem:[#allocation3 + $0xd0] sm:$0xff] %v9167_v53 }
 0x214   : > { %2647 = vst [vmem:[#allocation3 + $0xc8] sm:$0xff] %v9152_v54  ;;  %2649 = vst [vmem:[#allocation3 + $0xd8] sm:$0xff] %v9168_v58 }
 0x216   : > { %v2165_v37 = vpop.f32.mrb[8].mxu0  ;;  %v2311_v61 = vpop.f32.mrb[8].mxu1 }
 0x217   : > { %v9153_v59 = vadd.f32 %v2165_v37, %v10705_v21  ;;  %v2167_v62 = vpop.f32.mrb[9].mxu0  ;;  %v9169_v63 = vadd.f32 %v2311_v61, %v10708_v17  ;;  %v2313_v1 = vpop.f32.mrb[9].mxu1 }
 0x218   : > { %v9154_v0 = vadd.f32 %v2167_v62, %v10711_v29  ;;  %v2169_v56 = vpop.f32.mrb[10].mxu0  ;;  %v9170_v48 = vadd.f32 %v2313_v1, %v10714_v3  ;;  %v2315_v4 = vpop.f32.mrb[10].mxu1 }
 0x219   : > { %2654 = vst [vmem:[#allocation3 + $0x100] sm:$0xff] %v9153_v59  ;;  %v9155_v2 = vadd.f32 %v2169_v56, %v10705_v21  ;;  %v2171_v5 = vpop.f32.mrb[11].mxu0  ;;  %2656 = vst [vmem:[#allocation3 + $0x110] sm:$0xff] %v9169_v63  ;;  %v9171_v6 = vadd.f32 %v2315_v4, %v10708_v17  ;;  %v2317_v9 = vpop.f32.mrb[11].mxu1 }
 0x21a   : > { %2655 = vst [vmem:[#allocation3 + $0x108] sm:$0xff] %v9154_v0  ;;  %v9156_v7 = vadd.f32 %v2171_v5, %v10711_v29  ;;  %2657 = vst [vmem:[#allocation3 + $0x118] sm:$0xff] %v9170_v48  ;;  %v9172_v12 = vadd.f32 %v2317_v9, %v10714_v3 }
 0x21b   : > { %2662 = vst [vmem:[#allocation3 + $0x140] sm:$0xff] %v9155_v2  ;;  %2664 = vst [vmem:[#allocation3 + $0x150] sm:$0xff] %v9171_v6 }
 0x21c   : > { %2663 = vst [vmem:[#allocation3 + $0x148] sm:$0xff] %v9156_v7  ;;  %2665 = vst [vmem:[#allocation3 + $0x158] sm:$0xff] %v9172_v12 }
 0x21e   : > { %v2175_v55 = vpop.f32.mrb[12].mxu0  ;;  %v2321_v14 = vpop.f32.mrb[12].mxu1 }
 0x21f   : > { %v9157_v13 = vadd.f32 %v2175_v55, %v10705_v21  ;;  %v2177_v15 = vpop.f32.mrb[13].mxu0  ;;  %v9173_v16 = vadd.f32 %v2321_v14, %v10708_v17  ;;  %v2323_v51 = vpop.f32.mrb[13].mxu1 }
 0x220   : > { %v9158_v31 = vadd.f32 %v2177_v15, %v10711_v29  ;;  %v2179_v60 = vpop.f32.mrb[14].mxu0  ;;  %v9174_v20 = vadd.f32 %v2323_v51, %v10714_v3  ;;  %v2325_v22 = vpop.f32.mrb[14].mxu1 }
 0x221   : > { %2670 = vst [vmem:[#allocation3 + $0x180] sm:$0xff] %v9157_v13  ;;  %v9159_v8 = vadd.f32 %v2179_v60, %v10705_v21  ;;  %v2181_v23 = vpop.f32.mrb[15].mxu0  ;;  %2672 = vst [vmem:[#allocation3 + $0x190] sm:$0xff] %v9173_v16  ;;  %v9175_v24 = vadd.f32 %v2325_v22, %v10708_v17  ;;  %v2327_v26 = vpop.f32.mrb[15].mxu1  ;;  %v664_v21 = vsub.s32 6, %v10695_v39  ;;  %v10753_v17 = vrot.slane %v10699_v18, %v656_v28 }
 0x222   : > { %2671 = vst [vmem:[#allocation3 + $0x188] sm:$0xff] %v9158_v31  ;;  %v9160_v25 = vadd.f32 %v2181_v23, %v10711_v29  ;;  %2673 = vst [vmem:[#allocation3 + $0x198] sm:$0xff] %v9174_v20  ;;  %v9176_v27 = vadd.f32 %v2327_v26, %v10714_v3  ;;  %v10762_v3 = vrot.slane %v10699_v18, %v668_v11 }
 0x223   : > { %2678 = vst [vmem:[#allocation3 + $0x1c0] sm:$0xff] %v9159_v8  ;;  %2680 = vst [vmem:[#allocation3 + $0x1d0] sm:$0xff] %v9175_v24  ;;  %v10756_v29 = vrot.slane %v10699_v18, %v664_v21 }
 0x224   : > { %2679 = vst [vmem:[#allocation3 + $0x1c8] sm:$0xff] %v9160_v25  ;;  %2681 = vst [vmem:[#allocation3 + $0x1d8] sm:$0xff] %v9176_v27 }
 0x286   : > { %v2437_v33 = vpop.f32.mrb[16].mxu0  ;;  %v2583_v35 = vpop.f32.mrb[16].mxu1 }
 0x287   : > { %v9177_v34 = vadd.f32 %v2437_v33, %v10753_v17  ;;  %v2439_v36 = vpop.f32.mrb[17].mxu0  ;;  %v9193_v38 = vadd.f32 %v2583_v35, %v10756_v29  ;;  %v2585_v40 = vpop.f32.mrb[17].mxu1 }
 0x288   : > { %v9178_v39 = vadd.f32 %v2439_v36, %v10759_v32  ;;  %v2441_v19 = vpop.f32.mrb[18].mxu0  ;;  %v9194_v41 = vadd.f32 %v2585_v40, %v10762_v3  ;;  %v2587_v43 = vpop.f32.mrb[18].mxu1 }
 0x289   : > { %2626 = vst [vmem:[#allocation3 + $0x20] sm:$0xff] %v9177_v34  ;;  %v9179_v42 = vadd.f32 %v2441_v19, %v10753_v17  ;;  %v2443_v44 = vpop.f32.mrb[19].mxu0  ;;  %2628 = vst [vmem:[#allocation3 + $0x30] sm:$0xff] %v9193_v38  ;;  %v9195_v18 = vadd.f32 %v2587_v43, %v10756_v29  ;;  %v2589_v46 = vpop.f32.mrb[19].mxu1 }
 0x28a   : > { %2627 = vst [vmem:[#allocation3 + $0x28] sm:$0xff] %v9178_v39  ;;  %v9180_v45 = vadd.f32 %v2443_v44, %v10759_v32  ;;  %2629 = vst [vmem:[#allocation3 + $0x38] sm:$0xff] %v9194_v41  ;;  %v9196_v47 = vadd.f32 %v2589_v46, %v10762_v3 }
 0x28b   : > { %2634 = vst [vmem:[#allocation3 + $0x60] sm:$0xff] %v9179_v42  ;;  %2636 = vst [vmem:[#allocation3 + $0x70] sm:$0xff] %v9195_v18 }
 0x28c   : > { %2635 = vst [vmem:[#allocation3 + $0x68] sm:$0xff] %v9180_v45  ;;  %2637 = vst [vmem:[#allocation3 + $0x78] sm:$0xff] %v9196_v47 }
 0x28e   : > { %v2447_v30 = vpop.f32.mrb[20].mxu0  ;;  %v2593_v50 = vpop.f32.mrb[20].mxu1 }
 0x28f   : > { %v9181_v49 = vadd.f32 %v2447_v30, %v10753_v17  ;;  %v2449_v52 = vpop.f32.mrb[21].mxu0  ;;  %v9197_v53 = vadd.f32 %v2593_v50, %v10756_v29  ;;  %v2595_v57 = vpop.f32.mrb[21].mxu1 }
 0x290   : > { %v9182_v54 = vadd.f32 %v2449_v52, %v10759_v32  ;;  %v2451_v58 = vpop.f32.mrb[22].mxu0  ;;  %v9198_v37 = vadd.f32 %v2595_v57, %v10762_v3  ;;  %v2597_v61 = vpop.f32.mrb[22].mxu1 }
 0x291   : > { %2642 = vst [vmem:[#allocation3 + $0xa0] sm:$0xff] %v9181_v49  ;;  %v9183_v59 = vadd.f32 %v2451_v58, %v10753_v17  ;;  %v2453_v62 = vpop.f32.mrb[23].mxu0  ;;  %2644 = vst [vmem:[#allocation3 + $0xb0] sm:$0xff] %v9197_v53  ;;  %v9199_v63 = vadd.f32 %v2597_v61, %v10756_v29  ;;  %v2599_v1 = vpop.f32.mrb[23].mxu1 }
 0x292   : > { %2643 = vst [vmem:[#allocation3 + $0xa8] sm:$0xff] %v9182_v54  ;;  %v9184_v0 = vadd.f32 %v2453_v62, %v10759_v32  ;;  %2645 = vst [vmem:[#allocation3 + $0xb8] sm:$0xff] %v9198_v37  ;;  %v9200_v56 = vadd.f32 %v2599_v1, %v10762_v3 }
 0x293   : > { %2650 = vst [vmem:[#allocation3 + $0xe0] sm:$0xff] %v9183_v59  ;;  %2652 = vst [vmem:[#allocation3 + $0xf0] sm:$0xff] %v9199_v63 }
 0x294   : > { %2651 = vst [vmem:[#allocation3 + $0xe8] sm:$0xff] %v9184_v0  ;;  %2653 = vst [vmem:[#allocation3 + $0xf8] sm:$0xff] %v9200_v56 }
 0x296   : > { %v2457_v48 = vpop.f32.mrb[24].mxu0  ;;  %v2603_v4 = vpop.f32.mrb[24].mxu1 }
 0x297   : > { %v9185_v2 = vadd.f32 %v2457_v48, %v10753_v17  ;;  %v2459_v5 = vpop.f32.mrb[25].mxu0  ;;  %v9201_v6 = vadd.f32 %v2603_v4, %v10756_v29  ;;  %v2605_v9 = vpop.f32.mrb[25].mxu1 }
 0x298   : > { %v9186_v7 = vadd.f32 %v2459_v5, %v10759_v32  ;;  %v2461_v12 = vpop.f32.mrb[26].mxu0  ;;  %v9202_v55 = vadd.f32 %v2605_v9, %v10762_v3  ;;  %v2607_v14 = vpop.f32.mrb[26].mxu1 }
 0x299   : > { %2658 = vst [vmem:[#allocation3 + $0x120] sm:$0xff] %v9185_v2  ;;  %v9187_v13 = vadd.f32 %v2461_v12, %v10753_v17  ;;  %v2463_v15 = vpop.f32.mrb[27].mxu0  ;;  %2660 = vst [vmem:[#allocation3 + $0x130] sm:$0xff] %v9201_v6  ;;  %v9203_v16 = vadd.f32 %v2607_v14, %v10756_v29  ;;  %v2609_v51 = vpop.f32.mrb[27].mxu1 }
 0x29a   : > { %2659 = vst [vmem:[#allocation3 + $0x128] sm:$0xff] %v9186_v7  ;;  %v9188_v31 = vadd.f32 %v2463_v15, %v10759_v32  ;;  %2661 = vst [vmem:[#allocation3 + $0x138] sm:$0xff] %v9202_v55  ;;  %v9204_v60 = vadd.f32 %v2609_v51, %v10762_v3 }
 0x29b   : > { %2666 = vst [vmem:[#allocation3 + $0x160] sm:$0xff] %v9187_v13  ;;  %2668 = vst [vmem:[#allocation3 + $0x170] sm:$0xff] %v9203_v16 }
 0x29c   : > { %2667 = vst [vmem:[#allocation3 + $0x168] sm:$0xff] %v9188_v31  ;;  %2669 = vst [vmem:[#allocation3 + $0x178] sm:$0xff] %v9204_v60 }
 0x29e   : > { %v2467_v20 = vpop.f32.mrb[28].mxu0  ;;  %v2613_v22 = vpop.f32.mrb[28].mxu1 }
 0x29f   : > { %v9189_v8 = vadd.f32 %v2467_v20, %v10753_v17  ;;  %v2469_v23 = vpop.f32.mrb[29].mxu0  ;;  %v9205_v24 = vadd.f32 %v2613_v22, %v10756_v29  ;;  %v2615_v26 = vpop.f32.mrb[29].mxu1 }
 0x2a0   : > { %v9190_v25 = vadd.f32 %v2469_v23, %v10759_v32  ;;  %v2471_v27 = vpop.f32.mrb[30].mxu0  ;;  %v9206_v28 = vadd.f32 %v2615_v26, %v10762_v3  ;;  %v2617_v10 = vpop.f32.mrb[30].mxu1 }
 0x2a1   : > { %2674 = vst [vmem:[#allocation3 + $0x1a0] sm:$0xff] %v9189_v8  ;;  %v9191_v21 = vadd.f32 %v2471_v27, %v10753_v17  ;;  %v2473_v11 = vpop.f32.mrb[31].mxu0  ;;  %2676 = vst [vmem:[#allocation3 + $0x1b0] sm:$0xff] %v9205_v24  ;;  %v9207_v33 = vadd.f32 %v2617_v10, %v10756_v29  ;;  %v2619_v35 = vpop.f32.mrb[31].mxu1 }
 0x2a2   : > { %2675 = vst [vmem:[#allocation3 + $0x1a8] sm:$0xff] %v9190_v25  ;;  %v9192_v34 = vadd.f32 %v2473_v11, %v10759_v32  ;;  %2677 = vst [vmem:[#allocation3 + $0x1b8] sm:$0xff] %v9206_v28  ;;  %v9208_v36 = vadd.f32 %v2619_v35, %v10762_v3 }
 0x2a3   : > { %2682 = vst [vmem:[#allocation3 + $0x1e0] sm:$0xff] %v9191_v21  ;;  %2684 = vst [vmem:[#allocation3 + $0x1f0] sm:$0xff] %v9207_v33 }
 0x2a4   : > { %2683 = vst [vmem:[#allocation3 + $0x1e8] sm:$0xff] %v9192_v34  ;;  %2685 = vst [vmem:[#allocation3 + $0x1f8] sm:$0xff] %v9208_v36 }
 0x2a5 PF: > { %p8561_p3 = scmp.le.s32.totalorder %s10074_s25, 0 }
 0x2a6   : > { %v2738_v17 = vld [vmem:[%s10274_s15] sm:$0xff] (!%p8561_p3)  ;;  %v2739_v32 = vld [vmem:[%s10274_s15 + $0x8] sm:$0xff] (!%p8561_p3) }
 0x2a7   : > { %2689 = sbr.rel (%p8561_p3) target bundleno = 1180 (0x49c), region = 72  ;;  %v2742_v29 = vld [vmem:[%s10274_s15 + $0x20] sm:$0xff] (!%p8561_p3)  ;;  %v2743_v38 = vld [vmem:[%s10274_s15 + $0x28] sm:$0xff] (!%p8561_p3) }
 0x2a8   : > { %v8563_v3 = vcombine.high (!%p8561_p3), %v2738_v17, %v2742_v29  ;;  %v8562_v39 = vcombine.low (!%p8561_p3), %v2738_v17, %v2742_v29  ;;  %v2746_v40 = vld [vmem:[%s10274_s15 + $0x40] sm:$0xff] (!%p8561_p3)  ;;  %v8565_v41 = vcombine.high (!%p8561_p3), %v2739_v32, %v2743_v38  ;;  %v8564_v42 = vcombine.low (!%p8561_p3), %v2739_v32, %v2743_v38  ;;  %v2747_v44 = vld [vmem:[%s10274_s15 + $0x48] sm:$0xff] (!%p8561_p3) }
 0x2a9   : > { %v2750_v19 = vld [vmem:[%s10274_s15 + $0x60] sm:$0xff] (!%p8561_p3)  ;;  %v2751_v18 = vld [vmem:[%s10274_s15 + $0x68] sm:$0xff] (!%p8561_p3) }
 0x2aa   : > { %v8571_v43 = vcombine.high (!%p8561_p3), %v2746_v40, %v2750_v19  ;;  %v2754_v45 = vld [vmem:[%s10274_s15 + $0x80] sm:$0xff] (!%p8561_p3)  ;;  %4316 = vmatprep.subr.bf16.mxu0 (!%p8561_p3), %v8563_v3  ;;  %v8573_v46 = vcombine.high (!%p8561_p3), %v2747_v44, %v2751_v18  ;;  %v2755_v30 = vld [vmem:[%s10274_s15 + $0x88] sm:$0xff] (!%p8561_p3)  ;;  %4462 = vmatprep.subr.bf16.mxu1 (!%p8561_p3), %v8565_v41  ;;  %v8570_v50 = vcombine.low (!%p8561_p3), %v2746_v40, %v2750_v19 }
 0x2ab   : > { %v2758_v47 = vld [vmem:[%s10274_s15 + $0xa0] sm:$0xff] (!%p8561_p3)  ;;  %v2759_v49 = vld [vmem:[%s10274_s15 + $0xa8] sm:$0xff] (!%p8561_p3)  ;;  %4317 = vmatpush1.bf16.msra.mxu0 (!%p8561_p3), %v8562_v39  ;;  %4463 = vmatpush1.bf16.msra.mxu1 (!%p8561_p3), %v8564_v42  ;;  %v8572_v52 = vcombine.low (!%p8561_p3), %v2747_v44, %v2751_v18 }
 0x2ac   : > { %4318 = vmatprep.subr.bf16.mxu0 (!%p8561_p3), %v8571_v43  ;;  %v8579_v53 = vcombine.high (!%p8561_p3), %v2754_v45, %v2758_v47  ;;  %4464 = vmatprep.subr.bf16.mxu1 (!%p8561_p3), %v8573_v46  ;;  %v8581_v54 = vcombine.high (!%p8561_p3), %v2755_v30, %v2759_v49  ;;  %v2762_v57 = vld [vmem:[%s10274_s15 + $0xc0] sm:$0xff] (!%p8561_p3)  ;;  %v2763_v37 = vld [vmem:[%s10274_s15 + $0xc8] sm:$0xff] (!%p8561_p3)  ;;  %v8578_v61 = vcombine.low (!%p8561_p3), %v2754_v45, %v2758_v47 }
 0x2ad   : > { %v2766_v58 = vld [vmem:[%s10274_s15 + $0xe0] sm:$0xff] (!%p8561_p3)  ;;  %v2767_v59 = vld [vmem:[%s10274_s15 + $0xe8] sm:$0xff] (!%p8561_p3)  ;;  %v8580_v62 = vcombine.low (!%p8561_p3), %v2755_v30, %v2759_v49 }
 0x2ae   : > { %v8587_v63 = vcombine.high %v2762_v57, %v2766_v58  ;;  %v8589_v0 = vcombine.high %v2763_v37, %v2767_v59  ;;  %v2770_v1 = vld [vmem:[%s10274_s15 + $0x100] sm:$0xff]  ;;  %v2771_v48 = vld [vmem:[%s10274_s15 + $0x108] sm:$0xff]  ;;  %v8586_v4 = vcombine.low %v2762_v57, %v2766_v58  ;;  %v8588_v5 = vcombine.low %v2763_v37, %v2767_v59 }
 0x2af   : > { %4319 = vmatpush1.bf16.msra.mxu0 %v8570_v50  ;;  %4465 = vmatpush1.bf16.msra.mxu1 %v8572_v52  ;;  %v2774_v56 = vld [vmem:[%s10274_s15 + $0x120] sm:$0xff]  ;;  %v2775_v2 = vld [vmem:[%s10274_s15 + $0x128] sm:$0xff] }
 0x2b0   : > { %4320 = vmatprep.subr.bf16.mxu0 %v8579_v53  ;;  %4466 = vmatprep.subr.bf16.mxu1 %v8581_v54  ;;  %v8595_v6 = vcombine.high %v2770_v1, %v2774_v56  ;;  %v8597_v7 = vcombine.high %v2771_v48, %v2775_v2  ;;  %v2778_v9 = vld [vmem:[%s10274_s15 + $0x140] sm:$0xff]  ;;  %v2779_v55 = vld [vmem:[%s10274_s15 + $0x148] sm:$0xff]  ;;  %v8594_v14 = vcombine.low %v2770_v1, %v2774_v56 }
 0x2b1   : > { %v2782_v12 = vld [vmem:[%s10274_s15 + $0x160] sm:$0xff]  ;;  %v2783_v13 = vld [vmem:[%s10274_s15 + $0x168] sm:$0xff]  ;;  %v8596_v15 = vcombine.low %v2771_v48, %v2775_v2 }
 0x2b2   : > { %v8603_v16 = vcombine.high %v2778_v9, %v2782_v12  ;;  %v8605_v31 = vcombine.high %v2779_v55, %v2783_v13  ;;  %v2786_v51 = vld [vmem:[%s10274_s15 + $0x180] sm:$0xff]  ;;  %v2787_v20 = vld [vmem:[%s10274_s15 + $0x188] sm:$0xff]  ;;  %v8602_v22 = vcombine.low %v2778_v9, %v2782_v12  ;;  %v8604_v23 = vcombine.low %v2779_v55, %v2783_v13 }
 0x2b3   : > { %4321 = vmatpush1.bf16.msra.mxu0 %v8578_v61  ;;  %4467 = vmatpush1.bf16.msra.mxu1 %v8580_v62  ;;  %v2790_v60 = vld [vmem:[%s10274_s15 + $0x1a0] sm:$0xff]  ;;  %v2791_v8 = vld [vmem:[%s10274_s15 + $0x1a8] sm:$0xff] }
 0x2b4   : > { %4322 = vmatprep.subr.bf16.mxu0 %v8587_v63  ;;  %4468 = vmatprep.subr.bf16.mxu1 %v8589_v0  ;;  %v8611_v24 = vcombine.high %v2786_v51, %v2790_v60  ;;  %v2691_v25 = vld [vmem:[#allocation2 + $0x8] sm:$0xff]  ;;  %v8613_v27 = vcombine.high %v2787_v20, %v2791_v8  ;;  %v2794_v28 = vld [vmem:[%s10274_s15 + $0x1c0] sm:$0xff]  ;;  %v8610_v34 = vcombine.low %v2786_v51, %v2790_v60 }
 0x2b5   : > { %v2695_v26 = vld [vmem:[#allocation2 + $0x28] sm:$0xff]  ;;  %v2798_v21 = vld [vmem:[%s10274_s15 + $0x1e0] sm:$0xff]  ;;  %v8612_v35 = vcombine.low %v2787_v20, %v2791_v8 }
 0x2b6   : > { %v10827_v10 = vpack.c.bf16 %v2695_v26, %v2691_v25  ;;  %v2795_v11 = vld [vmem:[%s10274_s15 + $0x1c8] sm:$0xff]  ;;  %v8619_v36 = vcombine.high %v2794_v28, %v2798_v21  ;;  %v2802_v29 = vld [vmem:[%s10274_s15 + $0x200] sm:$0xff]  ;;  %v8618_v39 = vcombine.low %v2794_v28, %v2798_v21 }
 0x2b7   : > { %4323 = vmatpush1.bf16.msra.mxu0 %v8586_v4  ;;  %4469 = vmatpush1.bf16.msra.mxu1 %v8588_v5  ;;  %v2799_v33 = vld [vmem:[%s10274_s15 + $0x1e8] sm:$0xff]  ;;  %v2806_v32 = vld [vmem:[%s10274_s15 + $0x220] sm:$0xff] }
 0x2b8   : > { %4324 = vmatprep.subr.bf16.mxu0 %v8595_v6  ;;  %4470 = vmatprep.subr.bf16.mxu1 %v8597_v7  ;;  %v8621_v17 = vcombine.high %v2795_v11, %v2799_v33  ;;  %v2803_v3 = vld [vmem:[%s10274_s15 + $0x208] sm:$0xff]  ;;  %v8620_v40 = vcombine.low %v2795_v11, %v2799_v33  ;;  %v8627_v19 = vcombine.high %v2802_v29, %v2806_v32  ;;  %v2810_v42 = vld [vmem:[%s10274_s15 + $0x240] sm:$0xff] }
 0x2b9   : > { %4348 = vmatprep.mubr.bf16.mxu0 %v10827_v10  ;;  %4494 = vmatprep.mubr.bf16.mxu1 %v10827_v10  ;;  %v2807_v38 = vld [vmem:[%s10274_s15 + $0x228] sm:$0xff]  ;;  %v2814_v43 = vld [vmem:[%s10274_s15 + $0x260] sm:$0xff]  ;;  %v8626_v45 = vcombine.low %v2802_v29, %v2806_v32 }
 0x2ba   : > { %v8629_v41 = vcombine.high %v2803_v3, %v2807_v38  ;;  %v2811_v44 = vld [vmem:[%s10274_s15 + $0x248] sm:$0xff]  ;;  %v8628_v46 = vcombine.low %v2803_v3, %v2807_v38  ;;  %v8635_v47 = vcombine.high %v2810_v42, %v2814_v43  ;;  %v2818_v49 = vld [vmem:[%s10274_s15 + $0x280] sm:$0xff]  ;;  %v8634_v54 = vcombine.low %v2810_v42, %v2814_v43 }
 0x2bb   : > { %4325 = vmatpush1.bf16.msra.mxu0 %v8594_v14  ;;  %4471 = vmatpush1.bf16.msra.mxu1 %v8596_v15  ;;  %v2815_v18 = vld [vmem:[%s10274_s15 + $0x268] sm:$0xff]  ;;  %v2822_v50 = vld [vmem:[%s10274_s15 + $0x2a0] sm:$0xff] }
 0x2bc   : > { %4326 = vmatprep.subr.bf16.mxu0 %v8603_v16  ;;  %4472 = vmatprep.subr.bf16.mxu1 %v8605_v31  ;;  %v8637_v30 = vcombine.high %v2811_v44, %v2815_v18  ;;  %v2819_v52 = vld [vmem:[%s10274_s15 + $0x288] sm:$0xff]  ;;  %v8636_v57 = vcombine.low %v2811_v44, %v2815_v18  ;;  %v8643_v58 = vcombine.high %v2818_v49, %v2822_v50  ;;  %v2826_v59 = vld [vmem:[%s10274_s15 + $0x2c0] sm:$0xff] }
 0x2bd   : > { %v2823_v53 = vld [vmem:[%s10274_s15 + $0x2a8] sm:$0xff]  ;;  %v2830_v61 = vld [vmem:[%s10274_s15 + $0x2e0] sm:$0xff]  ;;  %v8642_v0 = vcombine.low %v2818_v49, %v2822_v50 }
 0x2be   : > { %v8645_v37 = vcombine.high %v2819_v52, %v2823_v53  ;;  %v2827_v62 = vld [vmem:[%s10274_s15 + $0x2c8] sm:$0xff]  ;;  %v8644_v1 = vcombine.low %v2819_v52, %v2823_v53  ;;  %v8651_v56 = vcombine.high %v2826_v59, %v2830_v61  ;;  %v2834_v2 = vld [vmem:[%s10274_s15 + $0x300] sm:$0xff]  ;;  %v8650_v7 = vcombine.low %v2826_v59, %v2830_v61 }
 0x2bf   : > { %4327 = vmatpush1.bf16.msra.mxu0 %v8602_v22  ;;  %4473 = vmatpush1.bf16.msra.mxu1 %v8604_v23  ;;  %v2831_v63 = vld [vmem:[%s10274_s15 + $0x2e8] sm:$0xff]  ;;  %v2838_v4 = vld [vmem:[%s10274_s15 + $0x320] sm:$0xff] }
 0x2c0   : > { %4328 = vmatprep.subr.bf16.mxu0 %v8611_v24  ;;  %4474 = vmatprep.subr.bf16.mxu1 %v8613_v27  ;;  %v8653_v48 = vcombine.high %v2827_v62, %v2831_v63  ;;  %v2835_v5 = vld [vmem:[%s10274_s15 + $0x308] sm:$0xff]  ;;  %v8652_v9 = vcombine.low %v2827_v62, %v2831_v63  ;;  %v8659_v12 = vcombine.high %v2834_v2, %v2838_v4  ;;  %v2842_v13 = vld [vmem:[%s10274_s15 + $0x340] sm:$0xff] }
 0x2c1   : > { %v2839_v6 = vld [vmem:[%s10274_s15 + $0x328] sm:$0xff]  ;;  %v2846_v14 = vld [vmem:[%s10274_s15 + $0x360] sm:$0xff]  ;;  %v8658_v31 = vcombine.low %v2834_v2, %v2838_v4 }
 0x2c2   : > { %v8661_v55 = vcombine.high %v2835_v5, %v2839_v6  ;;  %v2843_v15 = vld [vmem:[%s10274_s15 + $0x348] sm:$0xff]  ;;  %v8660_v51 = vcombine.low %v2835_v5, %v2839_v6  ;;  %v8667_v60 = vcombine.high %v2842_v13, %v2846_v14  ;;  %v2850_v8 = vld [vmem:[%s10274_s15 + $0x380] sm:$0xff]  ;;  %v8666_v25 = vcombine.low %v2842_v13, %v2846_v14 }
 0x2c3   : > { %4329 = vmatpush1.bf16.msra.mxu0 %v8610_v34  ;;  %4475 = vmatpush1.bf16.msra.mxu1 %v8612_v35  ;;  %v2847_v16 = vld [vmem:[%s10274_s15 + $0x368] sm:$0xff]  ;;  %v2854_v22 = vld [vmem:[%s10274_s15 + $0x3a0] sm:$0xff] }
 0x2c4   : > { %4330 = vmatprep.subr.bf16.mxu0 %v8619_v36  ;;  %4476 = vmatprep.subr.bf16.mxu1 %v8621_v17  ;;  %v8669_v20 = vcombine.high %v2843_v15, %v2847_v16  ;;  %v2851_v23 = vld [vmem:[%s10274_s15 + $0x388] sm:$0xff]  ;;  %v8668_v26 = vcombine.low %v2843_v15, %v2847_v16  ;;  %v8675_v27 = vcombine.high %v2850_v8, %v2854_v22  ;;  %v2858_v21 = vld [vmem:[%s10274_s15 + $0x3c0] sm:$0xff] }
 0x2c5   : > { %v2855_v24 = vld [vmem:[%s10274_s15 + $0x3a8] sm:$0xff]  ;;  %v2862_v11 = vld [vmem:[%s10274_s15 + $0x3e0] sm:$0xff]  ;;  %v8674_v35 = vcombine.low %v2850_v8, %v2854_v22 }
 0x2c6   : > { %v8677_v28 = vcombine.high %v2851_v23, %v2855_v24  ;;  %v2859_v33 = vld [vmem:[%s10274_s15 + $0x3c8] sm:$0xff]  ;;  %v8676_v36 = vcombine.low %v2851_v23, %v2855_v24  ;;  %v8683_v17 = vcombine.high %v2858_v21, %v2862_v11  ;;  %v2866_v32 = vld [vmem:[%s10274_s15 + $0x400] sm:$0xff] }
 0x2c7   : > { %4331 = vmatpush1.bf16.msra.mxu0 %v8618_v39  ;;  %4477 = vmatpush1.bf16.msra.mxu1 %v8620_v40  ;;  %v2863_v34 = vld [vmem:[%s10274_s15 + $0x3e8] sm:$0xff]  ;;  %v2870_v3 = vld [vmem:[%s10274_s15 + $0x420] sm:$0xff]  ;;  %v8682_v40 = vcombine.low %v2858_v21, %v2862_v11 }
 0x2c8   : > { %4332 = vmatprep.subr.bf16.mxu0 %v8627_v19  ;;  %4478 = vmatprep.subr.bf16.mxu1 %v8629_v41  ;;  %v8685_v29 = vcombine.high %v2859_v33, %v2863_v34  ;;  %v2867_v38 = vld [vmem:[%s10274_s15 + $0x408] sm:$0xff]  ;;  %v2690_v19 = vld [vmem:[#allocation2] sm:$0xff]  ;;  %v8684_v42 = vcombine.low %v2859_v33, %v2863_v34  ;;  %v8691_v43 = vcombine.high %v2866_v32, %v2870_v3 }
 0x2c9   : > { %v2871_v39 = vld [vmem:[%s10274_s15 + $0x428] sm:$0xff]  ;;  %v2694_v41 = vld [vmem:[#allocation2 + $0x20] sm:$0xff]  ;;  %v8690_v52 = vcombine.low %v2866_v32, %v2870_v3 }
 0x2ca   : > { %v8693_v44 = vcombine.high %v2867_v38, %v2871_v39  ;;  %v2874_v18 = vld [vmem:[%s10274_s15 + $0x440] sm:$0xff]  ;;  %v2699_v49 = vld [vmem:[#allocation2 + $0x48] sm:$0xff]  ;;  %v8692_v53 = vcombine.low %v2867_v38, %v2871_v39 }
 0x2cb   : > { %4333 = vmatpush1.bf16.msra.mxu0 %v8626_v45  ;;  %4479 = vmatpush1.bf16.msra.mxu1 %v8628_v46  ;;  %v2878_v45 = vld [vmem:[%s10274_s15 + $0x460] sm:$0xff]  ;;  %v2875_v46 = vld [vmem:[%s10274_s15 + $0x448] sm:$0xff] }
 0x2cc   : > { %4334 = vmatprep.subr.bf16.mxu0 %v8635_v47  ;;  %4480 = vmatprep.subr.bf16.mxu1 %v8637_v30  ;;  %v10872_v47 = vpack.c.bf16 %v2694_v41, %v2690_v19  ;;  %v2879_v30 = vld [vmem:[%s10274_s15 + $0x468] sm:$0xff]  ;;  %v8698_v63 = vcombine.low %v2874_v18, %v2878_v45  ;;  %v2890_v4 = vld [vmem:[%s10274_s15 + $0x4c0] sm:$0xff] }
 0x2cd   : > { %v2703_v50 = vld [vmem:[#allocation2 + $0x68] sm:$0xff]  ;;  %v2894_v5 = vld [vmem:[%s10274_s15 + $0x4e0] sm:$0xff] }
 0x2ce   : > { %v10877_v59 = vpack.c.bf16 %v2703_v50, %v2699_v49  ;;  %v2883_v61 = vld [vmem:[%s10274_s15 + $0x488] sm:$0xff]  ;;  %v8715_v15 = vcombine.high %v2890_v4, %v2894_v5  ;;  %v8714_v22 = vcombine.low %v2890_v4, %v2894_v5  ;;  %v2706_v23 = vld [vmem:[#allocation2 + $0x80] sm:$0xff] }
 0x2cf   : > { %4335 = vmatpush1.bf16.msra.mxu0 %v8634_v54  ;;  %4481 = vmatpush1.bf16.msra.mxu1 %v8636_v57  ;;  %v8699_v54 = vcombine.high %v2874_v18, %v2878_v45  ;;  %v8701_v57 = vcombine.high %v2875_v46, %v2879_v30  ;;  %v2887_v62 = vld [vmem:[%s10274_s15 + $0x4a8] sm:$0xff]  ;;  %v2710_v24 = vld [vmem:[#allocation2 + $0xa0] sm:$0xff] }
 0x2d0   : > { %4336 = vmatprep.subr.bf16.mxu0 %v8643_v58  ;;  %4482 = vmatprep.subr.bf16.mxu1 %v8645_v37  ;;  %v2882_v58 = vld [vmem:[%s10274_s15 + $0x480] sm:$0xff]  ;;  %v8709_v2 = vcombine.high %v2883_v61, %v2887_v62  ;;  %v2891_v6 = vld [vmem:[%s10274_s15 + $0x4c8] sm:$0xff]  ;;  %v8708_v14 = vcombine.low %v2883_v61, %v2887_v62  ;;  %v10905_v34 = vpack.c.bf16 %v2710_v24, %v2706_v23 }
 0x2d1   : > { %v2886_v37 = vld [vmem:[%s10274_s15 + $0x4a0] sm:$0xff]  ;;  %v2903_v8 = vld [vmem:[%s10274_s15 + $0x528] sm:$0xff] }
 0x2d2   : > { %v8706_v13 = vcombine.low %v2882_v58, %v2886_v37  ;;  %v2910_v21 = vld [vmem:[%s10274_s15 + $0x560] sm:$0xff]  ;;  %v2907_v11 = vld [vmem:[%s10274_s15 + $0x548] sm:$0xff] }
 0x2d3   : > { %4337 = vmatpush1.bf16.msra.mxu0 %v8642_v0  ;;  %4483 = vmatpush1.bf16.msra.mxu1 %v8644_v1  ;;  %v2698_v0 = vld [vmem:[#allocation2 + $0x40] sm:$0xff]  ;;  %v2911_v33 = vld [vmem:[%s10274_s15 + $0x568] sm:$0xff] }
 0x2d4   : > { %4338 = vmatprep.subr.bf16.mxu0 %v8651_v56  ;;  %4484 = vmatprep.subr.bf16.mxu1 %v8653_v48  ;;  %v2702_v1 = vld [vmem:[#allocation2 + $0x60] sm:$0xff]  ;;  %v8700_v56 = vcombine.low %v2875_v46, %v2879_v30  ;;  %v8707_v48 = vcombine.high %v2882_v58, %v2886_v37  ;;  %v8733_v3 = vcombine.high %v2907_v11, %v2911_v33  ;;  %v2915_v19 = vld [vmem:[%s10274_s15 + $0x588] sm:$0xff] }
 0x2d5   : > { %v2914_v38 = vld [vmem:[%s10274_s15 + $0x580] sm:$0xff]  ;;  %v2919_v41 = vld [vmem:[%s10274_s15 + $0x5a8] sm:$0xff]  ;;  %v8732_v18 = vcombine.low %v2907_v11, %v2911_v33 }
 0x2d6   : > { %v2918_v39 = vld [vmem:[%s10274_s15 + $0x5a0] sm:$0xff]  ;;  %v8741_v46 = vcombine.high %v2915_v19, %v2919_v41  ;;  %v2923_v50 = vld [vmem:[%s10274_s15 + $0x5c8] sm:$0xff]  ;;  %v8740_v37 = vcombine.low %v2915_v19, %v2919_v41 }
 0x2d7   : > { %4339 = vmatpush1.bf16.msra.mxu0 %v8650_v7  ;;  %4485 = vmatpush1.bf16.msra.mxu1 %v8652_v9  ;;  %v2895_v7 = vld [vmem:[%s10274_s15 + $0x4e8] sm:$0xff]  ;;  %v10889_v9 = vpack.c.bf16 %v2702_v1, %v2698_v0  ;;  %v8739_v45 = vcombine.high %v2914_v38, %v2918_v39  ;;  %v2922_v30 = vld [vmem:[%s10274_s15 + $0x5c0] sm:$0xff]  ;;  %v8738_v58 = vcombine.low %v2914_v38, %v2918_v39 }
 0x2d8   : > { %4340 = vmatprep.subr.bf16.mxu0 %v8659_v12  ;;  %4486 = vmatprep.subr.bf16.mxu1 %v8661_v55  ;;  %v2707_v12 = vld [vmem:[#allocation2 + $0x88] sm:$0xff]  ;;  %v8717_v16 = vcombine.high %v2891_v6, %v2895_v7  ;;  %v2926_v49 = vld [vmem:[%s10274_s15 + $0x5e0] sm:$0xff] }
 0x2d9   : > { %v2711_v55 = vld [vmem:[#allocation2 + $0xa8] sm:$0xff]  ;;  %v8747_v61 = vcombine.high %v2922_v30, %v2926_v49  ;;  %v2934_v0 = vld [vmem:[%s10274_s15 + $0x620] sm:$0xff] }
 0x2da   : > { %v2959_v11 = vld [vmem:[%s10274_s15 + $0x6e8] sm:$0xff] }
 0x2db   : > { %4341 = vmatpush1.bf16.msra.mxu0 %v8658_v31  ;;  %4487 = vmatpush1.bf16.msra.mxu1 %v8660_v51  ;;  %v2898_v31 = vld [vmem:[%s10274_s15 + $0x500] sm:$0xff]  ;;  %v2967_v38 = vld [vmem:[%s10274_s15 + $0x728] sm:$0xff] }
 0x2dc   : > { %4342 = vmatprep.subr.bf16.mxu0 %v8667_v60  ;;  %4488 = vmatprep.subr.bf16.mxu1 %v8669_v20  ;;  %v2902_v51 = vld [vmem:[%s10274_s15 + $0x520] sm:$0xff]  ;;  %v10893_v60 = vpack.c.bf16 %v2711_v55, %v2707_v12  ;;  %v2899_v20 = vld [vmem:[%s10274_s15 + $0x508] sm:$0xff] }
 0x2dd   : > { %v2942_v12 = vld [vmem:[%s10274_s15 + $0x660] sm:$0xff]  ;;  %v2939_v55 = vld [vmem:[%s10274_s15 + $0x648] sm:$0xff] }
 0x2df   : > { %4343 = vmatpush1.bf16.msra.mxu0 %v8666_v25  ;;  %4489 = vmatpush1.bf16.msra.mxu1 %v8668_v26  ;;  %v8716_v25 = vcombine.low %v2891_v6, %v2895_v7  ;;  %v8723_v26 = vcombine.high %v2898_v31, %v2902_v51  ;;  %v2938_v7 = vld [vmem:[%s10274_s15 + $0x640] sm:$0xff] }
 0x2e0   : > { %4344 = vmatprep.subr.bf16.mxu0 %v8675_v27  ;;  %4490 = vmatprep.subr.bf16.mxu1 %v8677_v28  ;;  %v8725_v27 = vcombine.high %v2899_v20, %v2903_v8  ;;  %v2906_v28 = vld [vmem:[%s10274_s15 + $0x540] sm:$0xff]  ;;  %v8762_v23 = vcombine.low %v2938_v7, %v2942_v12 }
 0x2e1   : > { %v8731_v32 = vcombine.high %v2906_v28, %v2910_v21 }
 0x2e3   : > { %4345 = vmatpush1.bf16.msra.mxu0 %v8674_v35  ;;  %4491 = vmatpush1.bf16.msra.mxu1 %v8676_v36  ;;  %v2715_v35 = vld [vmem:[#allocation2 + $0xc8] sm:$0xff] }
 0x2e4   : > { %4346 = vmatprep.subr.bf16.mxu0 %v8683_v17  ;;  %4492 = vmatprep.subr.bf16.mxu1 %v8685_v29  ;;  %v2719_v36 = vld [vmem:[#allocation2 + $0xe8] sm:$0xff]  ;;  %v8722_v17 = vcombine.low %v2898_v31, %v2902_v51  ;;  %v8724_v29 = vcombine.low %v2899_v20, %v2903_v8  ;;  %v2946_v51 = vld [vmem:[%s10274_s15 + $0x680] sm:$0xff] }
 0x2e5   : > { %v2950_v20 = vld [vmem:[%s10274_s15 + $0x6a0] sm:$0xff]  ;;  %v2947_v8 = vld [vmem:[%s10274_s15 + $0x688] sm:$0xff] }
 0x2e6   : > { %v8770_v33 = vcombine.low %v2946_v51, %v2950_v20 }
 0x2e7   : > { %4347 = vmatpush1.bf16.msra.mxu0 %v8682_v40  ;;  %4493 = vmatpush1.bf16.msra.mxu1 %v8684_v42  ;;  %v10909_v40 = vpack.c.bf16 %v2719_v36, %v2715_v35  ;;  %v8730_v42 = vcombine.low %v2906_v28, %v2910_v21  ;;  %v2958_v28 = vld [vmem:[%s10274_s15 + $0x6e0] sm:$0xff]  ;;  %v2955_v21 = vld [vmem:[%s10274_s15 + $0x6c8] sm:$0xff] }
 0x2e8   : > { %4389 = vmatprep.subr.bf16.mxu0 %v8691_v43  ;;  %4535 = vmatprep.subr.bf16.mxu1 %v8693_v44  ;;  %v2714_v43 = vld [vmem:[#allocation2 + $0xc0] sm:$0xff]  ;;  %v8780_v19 = vcombine.low %v2955_v21, %v2959_v11 }
 0x2e9   : > { %v2718_v44 = vld [vmem:[#allocation2 + $0xe0] sm:$0xff] }
 0x2ea   : > { %4349 = vmatmul.mubr.bf16.vlgmr.msra.gmra.mrb[0].mxu0 %v10872_v47  ;;  %4495 = vmatmul.mubr.bf16.vlgmr.msra.gmra.mrb[0].mxu1 %v10872_v47 }
 0x2eb   : > { %4390 = vmatpush1.bf16.msra.mxu0 %v8690_v52  ;;  %4536 = vmatpush1.bf16.msra.mxu1 %v8692_v53  ;;  %v2927_v52 = vld [vmem:[%s10274_s15 + $0x5e8] sm:$0xff]  ;;  %v10921_v53 = vpack.c.bf16 %v2718_v44, %v2714_v43  ;;  %v2970_v43 = vld [vmem:[%s10274_s15 + $0x740] sm:$0xff] }
 0x2ec   : > { %4391 = vmatprep.subr.bf16.mxu0 %v8699_v54  ;;  %4537 = vmatprep.subr.bf16.mxu1 %v8701_v57  ;;  %v2693_v54 = vld [vmem:[#allocation2 + $0x18] sm:$0xff]  ;;  %v8749_v62 = vcombine.high %v2923_v50, %v2927_v52  ;;  %v8748_v4 = vcombine.low %v2923_v50, %v2927_v52  ;;  %v2974_v44 = vld [vmem:[%s10274_s15 + $0x760] sm:$0xff] }
 0x2ed   : > { %4358 = vmatprep.mubr.bf16.mxu0 %v10877_v59  ;;  %4504 = vmatprep.mubr.bf16.mxu1 %v10877_v59  ;;  %v2697_v57 = vld [vmem:[#allocation2 + $0x38] sm:$0xff]  ;;  %v2978_v52 = vld [vmem:[%s10274_s15 + $0x780] sm:$0xff] }
 0x2ee   : > { %v10925_v1 = vpack.c.bf16 %v2697_v57, %v2693_v54  ;;  %v2982_v54 = vld [vmem:[%s10274_s15 + $0x7a0] sm:$0xff]  ;;  %v2979_v57 = vld [vmem:[%s10274_s15 + $0x788] sm:$0xff] }
 0x2ef   : > { %4392 = vmatpush1.bf16.msra.mxu0 %v8698_v63  ;;  %4538 = vmatpush1.bf16.msra.mxu1 %v8700_v56  ;;  %v2930_v63 = vld [vmem:[%s10274_s15 + $0x600] sm:$0xff]  ;;  %v2931_v56 = vld [vmem:[%s10274_s15 + $0x608] sm:$0xff] }
 0x2f0   : > { %4393 = vmatprep.subr.bf16.mxu0 %v8707_v48  ;;  %4539 = vmatprep.subr.bf16.mxu1 %v8709_v2  ;;  %v2935_v48 = vld [vmem:[%s10274_s15 + $0x628] sm:$0xff]  ;;  %v8746_v2 = vcombine.low %v2922_v30, %v2926_v49  ;;  %v8755_v5 = vcombine.high %v2930_v63, %v2934_v0  ;;  %v8795_v49 = vcombine.high %v2970_v43, %v2974_v44 }
 0x2f1   : > { %v8757_v6 = vcombine.high %v2931_v56, %v2935_v48 }
 0x2f2   : > { %4359 = vmatmul.mubr.bf16.gmra.mrb[4].mxu0 %v10889_v9  ;;  %4505 = vmatmul.mubr.bf16.gmra.mrb[4].mxu1 %v10889_v9 }
 0x2f3   : > { %4394 = vmatpush1.bf16.msra.mxu0 %v8706_v13  ;;  %4540 = vmatpush1.bf16.msra.mxu1 %v8708_v14  ;;  %v2943_v13 = vld [vmem:[%s10274_s15 + $0x668] sm:$0xff]  ;;  %v8754_v14 = vcombine.low %v2930_v63, %v2934_v0  ;;  %v2986_v0 = vld [vmem:[%s10274_s15 + $0x7c0] sm:$0xff] }
 0x2f4   : > { %4395 = vmatprep.subr.bf16.mxu0 %v8715_v15  ;;  %4541 = vmatprep.subr.bf16.mxu1 %v8717_v16  ;;  %v8756_v15 = vcombine.low %v2931_v56, %v2935_v48  ;;  %v8763_v16 = vcombine.high %v2938_v7, %v2942_v12  ;;  %v8765_v31 = vcombine.high %v2939_v55, %v2943_v13  ;;  %v2990_v56 = vld [vmem:[%s10274_s15 + $0x7e0] sm:$0xff]  ;;  %v2987_v48 = vld [vmem:[%s10274_s15 + $0x7c8] sm:$0xff]  ;;  %v2740_v12 = vld [vmem:[%s10274_s15 + $0x10] sm:$0xff] }
 0x2f5   : > { %4368 = vmatprep.mubr.bf16.mxu0 %v10893_v60  ;;  %4514 = vmatprep.mubr.bf16.mxu1 %v10893_v60  ;;  %v8764_v24 = vcombine.low %v2939_v55, %v2943_v13  ;;  %v2744_v55 = vld [vmem:[%s10274_s15 + $0x30] sm:$0xff]  ;;  %v2741_v13 = vld [vmem:[%s10274_s15 + $0x18] sm:$0xff] }
 0x2f7   : > { %4396 = vmatpush1.bf16.msra.mxu0 %v8714_v22  ;;  %4542 = vmatpush1.bf16.msra.mxu1 %v8716_v25  ;;  %v2951_v22 = vld [vmem:[%s10274_s15 + $0x6a8] sm:$0xff]  ;;  %v8771_v25 = vcombine.high %v2946_v51, %v2950_v20  ;;  %v8567_v20 = vcombine.high %v2740_v12, %v2744_v55 }
 0x2f8   : > { %4397 = vmatprep.subr.bf16.mxu0 %v8723_v26  ;;  %4543 = vmatprep.subr.bf16.mxu1 %v8725_v27  ;;  %v8773_v26 = vcombine.high %v2947_v8, %v2951_v22  ;;  %v2954_v27 = vld [vmem:[%s10274_s15 + $0x6c0] sm:$0xff]  ;;  %v8772_v35 = vcombine.low %v2947_v8, %v2951_v22  ;;  %v2748_v22 = vld [vmem:[%s10274_s15 + $0x50] sm:$0xff] }
 0x2f9   : > { %v8779_v36 = vcombine.high %v2954_v27, %v2958_v28  ;;  %v8778_v39 = vcombine.low %v2954_v27, %v2958_v28  ;;  %v2701_v27 = vld [vmem:[#allocation2 + $0x58] sm:$0xff] }
 0x2fa   : > { %4369 = vmatmul.mubr.bf16.gmra.mrb[8].mxu0 %v10905_v34  ;;  %4515 = vmatmul.mubr.bf16.gmra.mrb[8].mxu1 %v10905_v34  ;;  %v2705_v28 = vld [vmem:[#allocation2 + $0x78] sm:$0xff] }
 0x2fb   : > { %4398 = vmatpush1.bf16.msra.mxu0 %v8722_v17  ;;  %4544 = vmatpush1.bf16.msra.mxu1 %v8724_v29  ;;  %v8781_v17 = vcombine.high %v2955_v21, %v2959_v11  ;;  %v2962_v29 = vld [vmem:[%s10274_s15 + $0x700] sm:$0xff]  ;;  %v8566_v21 = vcombine.low %v2740_v12, %v2744_v55  ;;  %v2784_v12 = vld [vmem:[%s10274_s15 + $0x170] sm:$0xff]  ;;  %v2781_v55 = vld [vmem:[%s10274_s15 + $0x158] sm:$0xff] }
 0x2fc   : > { %4399 = vmatprep.subr.bf16.mxu0 %v8731_v32  ;;  %4545 = vmatprep.subr.bf16.mxu1 %v8733_v3  ;;  %v2966_v32 = vld [vmem:[%s10274_s15 + $0x720] sm:$0xff]  ;;  %v2963_v3 = vld [vmem:[%s10274_s15 + $0x708] sm:$0xff] }
 0x2fd   : > { %4378 = vmatprep.mubr.bf16.mxu0 %v10909_v40  ;;  %4524 = vmatprep.mubr.bf16.mxu1 %v10909_v40  ;;  %v8787_v41 = vcombine.high %v2962_v29, %v2966_v32  ;;  %v8788_v30 = vcombine.low %v2963_v3, %v2967_v38 }
 0x2ff   : > { %4400 = vmatpush1.bf16.msra.mxu0 %v8730_v42  ;;  %4546 = vmatpush1.bf16.msra.mxu1 %v8732_v18  ;;  %v8789_v42 = vcombine.high %v2963_v3, %v2967_v38  ;;  %v2971_v18 = vld [vmem:[%s10274_s15 + $0x748] sm:$0xff]  ;;  %v2761_v3 = vld [vmem:[%s10274_s15 + $0xb8] sm:$0xff] }
 0x300   : > { %4401 = vmatprep.subr.bf16.mxu0 %v8739_v45  ;;  %4547 = vmatprep.subr.bf16.mxu1 %v8741_v46  ;;  %v2975_v45 = vld [vmem:[%s10274_s15 + $0x768] sm:$0xff]  ;;  %v8786_v46 = vcombine.low %v2962_v29, %v2966_v32  ;;  %v2760_v29 = vld [vmem:[%s10274_s15 + $0xb0] sm:$0xff]  ;;  %v2757_v32 = vld [vmem:[%s10274_s15 + $0x98] sm:$0xff] }
 0x301   : > { %v8797_v50 = vcombine.high %v2971_v18, %v2975_v45 }
 0x302   : > { %4379 = vmatmul.mubr.bf16.gmra.mrb[12].mxu0 %v10921_v53  ;;  %4525 = vmatmul.mubr.bf16.gmra.mrb[12].mxu1 %v10921_v53 }
 0x303   : > { %4402 = vmatpush1.bf16.msra.mxu0 %v8738_v58  ;;  %4548 = vmatpush1.bf16.msra.mxu1 %v8740_v37  ;;  %v2983_v58 = vld [vmem:[%s10274_s15 + $0x7a8] sm:$0xff]  ;;  %v8794_v37 = vcombine.low %v2970_v43, %v2974_v44  ;;  %v8585_v43 = vcombine.high %v2757_v32, %v2761_v3  ;;  %v2764_v44 = vld [vmem:[%s10274_s15 + $0xd0] sm:$0xff] }
 0x304   : > { %4403 = vmatprep.subr.bf16.mxu0 %v8747_v61  ;;  %4549 = vmatprep.subr.bf16.mxu1 %v8749_v62  ;;  %v8796_v61 = vcombine.low %v2971_v18, %v2975_v45  ;;  %v8803_v62 = vcombine.high %v2978_v52, %v2982_v54  ;;  %v8805_v63 = vcombine.high %v2979_v57, %v2983_v58  ;;  %v2768_v18 = vld [vmem:[%s10274_s15 + $0xf0] sm:$0xff]  ;;  %v2765_v45 = vld [vmem:[%s10274_s15 + $0xd8] sm:$0xff] }
 0x305   : > { %4421 = vmatprep.mubr.bf16.mxu0 %v10925_v1  ;;  %4567 = vmatprep.mubr.bf16.mxu1 %v10925_v1 }
 0x307   : > { %4404 = vmatpush1.bf16.msra.mxu0 %v8746_v2  ;;  %4550 = vmatpush1.bf16.msra.mxu1 %v8748_v4  ;;  %v2991_v2 = vld [vmem:[%s10274_s15 + $0x7e8] sm:$0xff]  ;;  %v8802_v4 = vcombine.low %v2978_v52, %v2982_v54  ;;  %v8584_v54 = vcombine.low %v2757_v32, %v2761_v3  ;;  %v2800_v32 = vld [vmem:[%s10274_s15 + $0x1f0] sm:$0xff] }
 0x308   : > { %4405 = vmatprep.subr.bf16.mxu0 %v8755_v5  ;;  %4551 = vmatprep.subr.bf16.mxu1 %v8757_v6  ;;  %v8804_v5 = vcombine.low %v2979_v57, %v2983_v58  ;;  %v8811_v6 = vcombine.high %v2986_v0, %v2990_v56  ;;  %v8813_v7 = vcombine.high %v2987_v48, %v2991_v2 }
 0x309   : > { %v8812_v51 = vcombine.low %v2987_v48, %v2991_v2  ;;  %v8591_v57 = vcombine.high %v2764_v44, %v2768_v18  ;;  %v2708_v48 = vld [vmem:[#allocation2 + $0x90] sm:$0xff] }
 0x30a   : > { %v2712_v2 = vld [vmem:[#allocation2 + $0xb0] sm:$0xff] }
 0x30b   : > { %4406 = vmatpush1.bf16.msra.mxu0 %v8754_v14  ;;  %4552 = vmatpush1.bf16.msra.mxu1 %v8756_v15  ;;  %v2745_v14 = vld [vmem:[%s10274_s15 + $0x38] sm:$0xff]  ;;  %v8810_v15 = vcombine.low %v2986_v0, %v2990_v56  ;;  %v8590_v56 = vcombine.low %v2764_v44, %v2768_v18  ;;  %v2804_v44 = vld [vmem:[%s10274_s15 + $0x210] sm:$0xff] }
 0x30c   : > { %4407 = vmatprep.subr.bf16.mxu0 %v8763_v16  ;;  %4553 = vmatprep.subr.bf16.mxu1 %v8765_v31  ;;  %v2692_v16 = vld [vmem:[#allocation2 + $0x10] sm:$0xff]  ;;  %v8569_v8 = vcombine.high %v2741_v13, %v2745_v14  ;;  %v8568_v11 = vcombine.low %v2741_v13, %v2745_v14  ;;  %v2777_v0 = vld [vmem:[%s10274_s15 + $0x138] sm:$0xff]  ;;  %v11000_v13 = vpack.c.bf16 %v2712_v2, %v2708_v48 }
 0x30d   : > { %v2696_v31 = vld [vmem:[#allocation2 + $0x30] sm:$0xff]  ;;  %v2785_v14 = vld [vmem:[%s10274_s15 + $0x178] sm:$0xff] }
 0x30e   : > { %v2808_v18 = vld [vmem:[%s10274_s15 + $0x230] sm:$0xff] }
 0x30f   : > { %4408 = vmatpush1.bf16.msra.mxu0 %v8762_v23  ;;  %4554 = vmatpush1.bf16.msra.mxu1 %v8764_v24  ;;  %v2752_v23 = vld [vmem:[%s10274_s15 + $0x70] sm:$0xff]  ;;  %v2749_v24 = vld [vmem:[%s10274_s15 + $0x58] sm:$0xff] }
 0x310   : > { %4409 = vmatprep.subr.bf16.mxu0 %v8771_v25  ;;  %4555 = vmatprep.subr.bf16.mxu1 %v8773_v26  ;;  %v10968_v25 = vpack.c.bf16 %v2696_v31, %v2692_v16  ;;  %v2753_v26 = vld [vmem:[%s10274_s15 + $0x78] sm:$0xff]  ;;  %v8574_v38 = vcombine.low %v2748_v22, %v2752_v23  ;;  %v2820_v2 = vld [vmem:[%s10274_s15 + $0x290] sm:$0xff] }
 0x311   : > { %v2721_v16 = vld [vmem:[#allocation2 + $0xf8] sm:$0xff] }
 0x313   : > { %4410 = vmatpush1.bf16.msra.mxu0 %v8770_v33  ;;  %4556 = vmatpush1.bf16.msra.mxu1 %v8772_v35  ;;  %v8575_v33 = vcombine.high %v2748_v22, %v2752_v23  ;;  %v8577_v35 = vcombine.high %v2749_v24, %v2753_v26  ;;  %v2788_v23 = vld [vmem:[%s10274_s15 + $0x190] sm:$0xff] }
 0x314   : > { %4411 = vmatprep.subr.bf16.mxu0 %v8779_v36  ;;  %4557 = vmatprep.subr.bf16.mxu1 %v8781_v17  ;;  %v10971_v36 = vpack.c.bf16 %v2705_v28, %v2701_v27  ;;  %v2756_v17 = vld [vmem:[%s10274_s15 + $0x90] sm:$0xff]  ;;  %v2793_v27 = vld [vmem:[%s10274_s15 + $0x1b8] sm:$0xff] }
 0x315   : > { %v8582_v52 = vcombine.low %v2756_v17, %v2760_v29 }
 0x317   : > { %4412 = vmatpush1.bf16.msra.mxu0 %v8778_v39  ;;  %4558 = vmatpush1.bf16.msra.mxu1 %v8780_v19  ;;  %v2700_v39 = vld [vmem:[#allocation2 + $0x50] sm:$0xff] }
 0x318   : > { %4413 = vmatprep.subr.bf16.mxu0 %v8787_v41  ;;  %4559 = vmatprep.subr.bf16.mxu1 %v8789_v42  ;;  %v2704_v19 = vld [vmem:[#allocation2 + $0x70] sm:$0xff]  ;;  %v8576_v41 = vcombine.low %v2749_v24, %v2753_v26  ;;  %v8583_v42 = vcombine.high %v2756_v17, %v2760_v29  ;;  %v2789_v26 = vld [vmem:[%s10274_s15 + $0x198] sm:$0xff] }
 0x319   : > { %v2792_v24 = vld [vmem:[%s10274_s15 + $0x1b0] sm:$0xff]  ;;  %v8617_v17 = vcombine.high %v2789_v26, %v2793_v27 }
 0x31a   : > { %v2796_v29 = vld [vmem:[%s10274_s15 + $0x1d0] sm:$0xff] }
 0x31b   : > { %4414 = vmatpush1.bf16.msra.mxu0 %v8786_v46  ;;  %4560 = vmatpush1.bf16.msra.mxu1 %v8788_v30  ;;  %v10984_v46 = vpack.c.bf16 %v2704_v19, %v2700_v39  ;;  %v2769_v30 = vld [vmem:[%s10274_s15 + $0xf8] sm:$0xff]  ;;  %v8614_v19 = vcombine.low %v2788_v23, %v2792_v24 }
 0x31c   : > { %4415 = vmatprep.subr.bf16.mxu0 %v8795_v49  ;;  %4561 = vmatprep.subr.bf16.mxu1 %v8797_v50  ;;  %v2709_v49 = vld [vmem:[#allocation2 + $0x98] sm:$0xff]  ;;  %v8593_v58 = vcombine.high %v2765_v45, %v2769_v30 }
 0x31d   : > { %v2713_v50 = vld [vmem:[#allocation2 + $0xb8] sm:$0xff] }
 0x31e   : > { %v2801_v39 = vld [vmem:[%s10274_s15 + $0x1f8] sm:$0xff] }
 0x31f   : > { %4416 = vmatpush1.bf16.msra.mxu0 %v8794_v37  ;;  %4562 = vmatpush1.bf16.msra.mxu1 %v8796_v61  ;;  %v10987_v37 = vpack.c.bf16 %v2713_v50, %v2709_v49  ;;  %v2772_v61 = vld [vmem:[%s10274_s15 + $0x110] sm:$0xff]  ;;  %v8622_v49 = vcombine.low %v2796_v29, %v2800_v32 }
 0x320   : > { %4417 = vmatprep.subr.bf16.mxu0 %v8803_v62  ;;  %4563 = vmatprep.subr.bf16.mxu1 %v8805_v63  ;;  %v2776_v62 = vld [vmem:[%s10274_s15 + $0x130] sm:$0xff]  ;;  %v2773_v63 = vld [vmem:[%s10274_s15 + $0x118] sm:$0xff] }
 0x321   : > { %v8598_v31 = vcombine.low %v2772_v61, %v2776_v62 }
 0x323   : > { %4418 = vmatpush1.bf16.msra.mxu0 %v8802_v4  ;;  %4564 = vmatpush1.bf16.msra.mxu1 %v8804_v5  ;;  %v8592_v4 = vcombine.low %v2765_v45, %v2769_v30  ;;  %v8599_v5 = vcombine.high %v2772_v61, %v2776_v62  ;;  %v2805_v45 = vld [vmem:[%s10274_s15 + $0x218] sm:$0xff] }
 0x324   : > { %4419 = vmatprep.subr.bf16.mxu0 %v8811_v6  ;;  %4565 = vmatprep.subr.bf16.mxu1 %v8813_v7  ;;  %v8601_v6 = vcombine.high %v2773_v63, %v2777_v0  ;;  %v2780_v7 = vld [vmem:[%s10274_s15 + $0x150] sm:$0xff]  ;;  %v2809_v30 = vld [vmem:[%s10274_s15 + $0x238] sm:$0xff] }
 0x325   : > { %v8606_v28 = vcombine.low %v2780_v7, %v2784_v12  ;;  %v2813_v61 = vld [vmem:[%s10274_s15 + $0x258] sm:$0xff] }
 0x326   : > { %v2817_v62 = vld [vmem:[%s10274_s15 + $0x278] sm:$0xff] }
 0x327   : > { %4420 = vmatpush1.bf16.msra.mxu0 %v8810_v15  ;;  %4566 = vmatpush1.bf16.msra.mxu1 %v8812_v51  ;;  %v2717_v15 = vld [vmem:[#allocation2 + $0xd8] sm:$0xff]  ;;  %v8600_v51 = vcombine.low %v2773_v63, %v2777_v0  ;;  %v8630_v63 = vcombine.low %v2804_v44, %v2808_v18  ;;  %v8632_v0 = vcombine.low %v2805_v45, %v2809_v30 }
 0x328   : > { %4608 = vmatprep.subr.bf16.mxu0 %v8567_v20  ;;  %4754 = vmatprep.subr.bf16.mxu1 %v8569_v8  ;;  %v8607_v20 = vcombine.high %v2780_v7, %v2784_v12  ;;  %v8609_v8 = vcombine.high %v2781_v55, %v2785_v14  ;;  %v11003_v22 = vpack.c.bf16 %v2721_v16, %v2717_v15  ;;  %v2832_v15 = vld [vmem:[%s10274_s15 + $0x2f0] sm:$0xff]  ;;  %v2829_v16 = vld [vmem:[%s10274_s15 + $0x2d8] sm:$0xff] }
 0x329   : > { %v8641_v48 = vcombine.high %v2813_v61, %v2817_v62 }
 0x32a   : > { %4422 = vmatmul.mubr.bf16.vlgmr.msra.gmra.mrb[0].mxu0 %v10968_v25  ;;  %4568 = vmatmul.mubr.bf16.vlgmr.msra.gmra.mrb[0].mxu1 %v10968_v25 }
 0x32b   : > { %4609 = vmatpush1.bf16.msra.mxu0 %v8566_v21  ;;  %4755 = vmatpush1.bf16.msra.mxu1 %v8568_v11  ;;  %v2716_v21 = vld [vmem:[#allocation2 + $0xd0] sm:$0xff] }
 0x32c   : > { %4610 = vmatprep.subr.bf16.mxu0 %v8575_v33  ;;  %4756 = vmatprep.subr.bf16.mxu1 %v8577_v35  ;;  %v2720_v11 = vld [vmem:[#allocation2 + $0xf0] sm:$0xff]  ;;  %v8608_v33 = vcombine.low %v2781_v55, %v2785_v14  ;;  %v8615_v35 = vcombine.high %v2788_v23, %v2792_v24 }
 0x32d   : > { %4431 = vmatprep.mubr.bf16.mxu0 %v10971_v36  ;;  %4577 = vmatprep.mubr.bf16.mxu1 %v10971_v36  ;;  %v11015_v3 = vpack.c.bf16 %v2720_v11, %v2716_v21  ;;  %v2828_v14 = vld [vmem:[%s10274_s15 + $0x2d0] sm:$0xff] }
 0x32e   : > { %v2836_v24 = vld [vmem:[%s10274_s15 + $0x310] sm:$0xff]  ;;  %v8654_v21 = vcombine.low %v2828_v14, %v2832_v15 }
 0x32f   : > { %4611 = vmatpush1.bf16.msra.mxu0 %v8574_v38  ;;  %4757 = vmatpush1.bf16.msra.mxu1 %v8576_v41  ;;  %v2797_v38 = vld [vmem:[%s10274_s15 + $0x1d8] sm:$0xff]  ;;  %v8616_v41 = vcombine.low %v2789_v26, %v2793_v27  ;;  %v2840_v26 = vld [vmem:[%s10274_s15 + $0x330] sm:$0xff] }
 0x330   : > { %4612 = vmatprep.subr.bf16.mxu0 %v8583_v42  ;;  %4758 = vmatprep.subr.bf16.mxu1 %v8585_v43  ;;  %v8623_v42 = vcombine.high %v2796_v29, %v2800_v32  ;;  %v8625_v43 = vcombine.high %v2797_v38, %v2801_v39  ;;  %v8624_v50 = vcombine.low %v2797_v38, %v2801_v39  ;;  %v2837_v27 = vld [vmem:[%s10274_s15 + $0x318] sm:$0xff]  ;;  %v2848_v29 = vld [vmem:[%s10274_s15 + $0x370] sm:$0xff] }
 0x331   : > { %v2845_v32 = vld [vmem:[%s10274_s15 + $0x358] sm:$0xff]  ;;  %v8662_v39 = vcombine.low %v2836_v24, %v2840_v26 }
 0x332   : > { %4432 = vmatmul.mubr.bf16.gmra.mrb[4].mxu0 %v10984_v46  ;;  %4578 = vmatmul.mubr.bf16.gmra.mrb[4].mxu1 %v10984_v46  ;;  %v2849_v38 = vld [vmem:[%s10274_s15 + $0x378] sm:$0xff] }
 0x333   : > { %4613 = vmatpush1.bf16.msra.mxu0 %v8582_v52  ;;  %4759 = vmatpush1.bf16.msra.mxu1 %v8584_v54  ;;  %v8631_v52 = vcombine.high %v2804_v44, %v2808_v18  ;;  %v8633_v54 = vcombine.high %v2805_v45, %v2809_v30  ;;  %v2856_v44 = vld [vmem:[%s10274_s15 + $0x3b0] sm:$0xff]  ;;  %v2853_v18 = vld [vmem:[%s10274_s15 + $0x398] sm:$0xff] }
 0x334   : > { %4614 = vmatprep.subr.bf16.mxu0 %v8591_v57  ;;  %4760 = vmatprep.subr.bf16.mxu1 %v8593_v58  ;;  %v2812_v57 = vld [vmem:[%s10274_s15 + $0x250] sm:$0xff]  ;;  %v2857_v45 = vld [vmem:[%s10274_s15 + $0x3b8] sm:$0xff] }
 0x335   : > { %4441 = vmatprep.mubr.bf16.mxu0 %v10987_v37  ;;  %4587 = vmatprep.mubr.bf16.mxu1 %v10987_v37  ;;  %v2816_v58 = vld [vmem:[%s10274_s15 + $0x270] sm:$0xff] }
 0x336   : > { %v8638_v7 = vcombine.low %v2812_v57, %v2816_v58 }
 0x337   : > { %4615 = vmatpush1.bf16.msra.mxu0 %v8590_v56  ;;  %4761 = vmatpush1.bf16.msra.mxu1 %v8592_v4  ;;  %v8639_v56 = vcombine.high %v2812_v57, %v2816_v58  ;;  %v2824_v4 = vld [vmem:[%s10274_s15 + $0x2b0] sm:$0xff]  ;;  %v2861_v58 = vld [vmem:[%s10274_s15 + $0x3d8] sm:$0xff] }
 0x338   : > { %4616 = vmatprep.subr.bf16.mxu0 %v8599_v5  ;;  %4762 = vmatprep.subr.bf16.mxu1 %v8601_v6  ;;  %v2821_v5 = vld [vmem:[%s10274_s15 + $0x298] sm:$0xff]  ;;  %v8647_v12 = vcombine.high %v2820_v2, %v2824_v4  ;;  %v2864_v57 = vld [vmem:[%s10274_s15 + $0x3f0] sm:$0xff] }
 0x339   : > { %v2825_v6 = vld [vmem:[%s10274_s15 + $0x2b8] sm:$0xff] }
 0x33a   : > { %4442 = vmatmul.mubr.bf16.gmra.mrb[8].mxu0 %v11000_v13  ;;  %4588 = vmatmul.mubr.bf16.gmra.mrb[8].mxu1 %v11000_v13  ;;  %v8649_v55 = vcombine.high %v2821_v5, %v2825_v6 }
 0x33b   : > { %4617 = vmatpush1.bf16.msra.mxu0 %v8598_v31  ;;  %4763 = vmatpush1.bf16.msra.mxu1 %v8600_v51  ;;  %v2833_v31 = vld [vmem:[%s10274_s15 + $0x2f8] sm:$0xff]  ;;  %v8646_v51 = vcombine.low %v2820_v2, %v2824_v4  ;;  %v2872_v2 = vld [vmem:[%s10274_s15 + $0x430] sm:$0xff] }
 0x33c   : > { %4618 = vmatprep.subr.bf16.mxu0 %v8607_v20  ;;  %4764 = vmatprep.subr.bf16.mxu1 %v8609_v8  ;;  %v8648_v20 = vcombine.low %v2821_v5, %v2825_v6  ;;  %v8655_v8 = vcombine.high %v2828_v14, %v2832_v15  ;;  %v8657_v23 = vcombine.high %v2829_v16, %v2833_v31  ;;  %v2869_v4 = vld [vmem:[%s10274_s15 + $0x418] sm:$0xff]  ;;  %v2880_v14 = vld [vmem:[%s10274_s15 + $0x470] sm:$0xff] }
 0x33d   : > { %4451 = vmatprep.mubr.bf16.mxu0 %v11003_v22  ;;  %4597 = vmatprep.mubr.bf16.mxu1 %v11003_v22  ;;  %v8656_v11 = vcombine.low %v2829_v16, %v2833_v31  ;;  %v2873_v5 = vld [vmem:[%s10274_s15 + $0x438] sm:$0xff] }
 0x33e   : > { %v2877_v15 = vld [vmem:[%s10274_s15 + $0x458] sm:$0xff] }
 0x33f   : > { %4619 = vmatpush1.bf16.msra.mxu0 %v8606_v28  ;;  %4765 = vmatpush1.bf16.msra.mxu1 %v8608_v33  ;;  %v2841_v28 = vld [vmem:[%s10274_s15 + $0x338] sm:$0xff]  ;;  %v8663_v33 = vcombine.high %v2836_v24, %v2840_v26  ;;  %v2888_v24 = vld [vmem:[%s10274_s15 + $0x4b0] sm:$0xff] }
 0x340   : > { %4620 = vmatprep.subr.bf16.mxu0 %v8615_v35  ;;  %4766 = vmatprep.subr.bf16.mxu1 %v8617_v17  ;;  %v8665_v35 = vcombine.high %v2837_v27, %v2841_v28  ;;  %v2844_v17 = vld [vmem:[%s10274_s15 + $0x350] sm:$0xff]  ;;  %v2881_v16 = vld [vmem:[%s10274_s15 + $0x478] sm:$0xff] }
 0x341   : > { %v8670_v30 = vcombine.low %v2844_v17, %v2848_v29  ;;  %v2885_v26 = vld [vmem:[%s10274_s15 + $0x498] sm:$0xff] }
 0x342   : > { %4452 = vmatmul.mubr.bf16.gmra.mrb[12].mxu0 %v11015_v3  ;;  %4598 = vmatmul.mubr.bf16.gmra.mrb[12].mxu1 %v11015_v3 }
 0x343   : > { %4621 = vmatpush1.bf16.msra.mxu0 %v8614_v19  ;;  %4767 = vmatpush1.bf16.msra.mxu1 %v8616_v41  ;;  %v8664_v19 = vcombine.low %v2837_v27, %v2841_v28  ;;  %v8671_v41 = vcombine.high %v2844_v17, %v2848_v29  ;;  %v2889_v27 = vld [vmem:[%s10274_s15 + $0x4b8] sm:$0xff]  ;;  %v2896_v17 = vld [vmem:[%s10274_s15 + $0x4f0] sm:$0xff] }
 0x344   : > { %4622 = vmatprep.subr.bf16.mxu0 %v8623_v42  ;;  %4768 = vmatprep.subr.bf16.mxu1 %v8625_v43  ;;  %v8673_v42 = vcombine.high %v2845_v32, %v2849_v38  ;;  %v2852_v43 = vld [vmem:[%s10274_s15 + $0x390] sm:$0xff]  ;;  %v2893_v29 = vld [vmem:[%s10274_s15 + $0x4d8] sm:$0xff] }
 0x345   : > { %4640 = vmatprep.mubr.bf16.mxu0 %v10827_v10  ;;  %4786 = vmatprep.mubr.bf16.mxu1 %v10827_v10  ;;  %v8640_v10 = vcombine.low %v2813_v61, %v2817_v62  ;;  %v2865_v61 = vld [vmem:[%s10274_s15 + $0x3f8] sm:$0xff]  ;;  %v8678_v62 = vcombine.low %v2852_v43, %v2856_v44 }
 0x347   : > { %4623 = vmatpush1.bf16.msra.mxu0 %v8622_v49  ;;  %4769 = vmatpush1.bf16.msra.mxu1 %v8624_v50  ;;  %v8672_v49 = vcombine.low %v2845_v32, %v2849_v38  ;;  %v8679_v50 = vcombine.high %v2852_v43, %v2856_v44  ;;  %v2897_v32 = vld [vmem:[%s10274_s15 + $0x4f8] sm:$0xff]  ;;  %v8712_v38 = vcombine.low %v2885_v26, %v2889_v27 }
 0x348   : > { %4624 = vmatprep.subr.bf16.mxu0 %v8631_v52  ;;  %4770 = vmatprep.subr.bf16.mxu1 %v8633_v54  ;;  %v8681_v52 = vcombine.high %v2853_v18, %v2857_v45  ;;  %v2860_v54 = vld [vmem:[%s10274_s15 + $0x3d0] sm:$0xff]  ;;  %v2901_v43 = vld [vmem:[%s10274_s15 + $0x518] sm:$0xff] }
 0x349   : > { %v8686_v6 = vcombine.low %v2860_v54, %v2864_v57  ;;  %v2905_v44 = vld [vmem:[%s10274_s15 + $0x538] sm:$0xff] }
 0x34b   : > { %4625 = vmatpush1.bf16.msra.mxu0 %v8630_v63  ;;  %4771 = vmatpush1.bf16.msra.mxu1 %v8632_v0  ;;  %v8680_v63 = vcombine.low %v2853_v18, %v2857_v45  ;;  %v8687_v0 = vcombine.high %v2860_v54, %v2864_v57  ;;  %v8720_v18 = vcombine.low %v2893_v29, %v2897_v32  ;;  %v2913_v54 = vld [vmem:[%s10274_s15 + $0x578] sm:$0xff] }
 0x34c   : > { %4626 = vmatprep.subr.bf16.mxu0 %v8639_v56  ;;  %4772 = vmatprep.subr.bf16.mxu1 %v8641_v48  ;;  %v8689_v56 = vcombine.high %v2861_v58, %v2865_v61  ;;  %v2868_v48 = vld [vmem:[%s10274_s15 + $0x410] sm:$0xff]  ;;  %v8728_v57 = vcombine.low %v2901_v43, %v2905_v44 }
 0x34d   : > { %v8694_v31 = vcombine.low %v2868_v48, %v2872_v2 }
 0x34f   : > { %4627 = vmatpush1.bf16.msra.mxu0 %v8638_v7  ;;  %4773 = vmatpush1.bf16.msra.mxu1 %v8640_v10  ;;  %v8688_v7 = vcombine.low %v2861_v58, %v2865_v61  ;;  %v8695_v10 = vcombine.high %v2868_v48, %v2872_v2 }
 0x350   : > { %4628 = vmatprep.subr.bf16.mxu0 %v8647_v12  ;;  %4774 = vmatprep.subr.bf16.mxu1 %v8649_v55  ;;  %v8697_v12 = vcombine.high %v2869_v4, %v2873_v5  ;;  %v2876_v55 = vld [vmem:[%s10274_s15 + $0x450] sm:$0xff] }
 0x351   : > { %v8702_v28 = vcombine.low %v2876_v55, %v2880_v14 }
 0x353   : > { %4629 = vmatpush1.bf16.msra.mxu0 %v8646_v51  ;;  %4775 = vmatpush1.bf16.msra.mxu1 %v8648_v20  ;;  %v8696_v51 = vcombine.low %v2869_v4, %v2873_v5  ;;  %v8703_v20 = vcombine.high %v2876_v55, %v2880_v14  ;;  %v2924_v5 = vld [vmem:[%s10274_s15 + $0x5d0] sm:$0xff] }
 0x354   : > { %4630 = vmatprep.subr.bf16.mxu0 %v8655_v8  ;;  %4776 = vmatprep.subr.bf16.mxu1 %v8657_v23  ;;  %v8705_v8 = vcombine.high %v2877_v15, %v2881_v16  ;;  %v2884_v23 = vld [vmem:[%s10274_s15 + $0x490] sm:$0xff] }
 0x357   : > { %4631 = vmatpush1.bf16.msra.mxu0 %v8654_v21  ;;  %4777 = vmatpush1.bf16.msra.mxu1 %v8656_v11  ;;  %v8704_v21 = vcombine.low %v2877_v15, %v2881_v16  ;;  %v8711_v11 = vcombine.high %v2884_v23, %v2888_v24  ;;  %v2932_v15 = vld [vmem:[%s10274_s15 + $0x610] sm:$0xff] }
 0x358   : > { %4632 = vmatprep.subr.bf16.mxu0 %v8663_v33  ;;  %4778 = vmatprep.subr.bf16.mxu1 %v8665_v35  ;;  %v8713_v33 = vcombine.high %v2885_v26, %v2889_v27  ;;  %v2892_v35 = vld [vmem:[%s10274_s15 + $0x4d0] sm:$0xff]  ;;  %v2941_v27 = vld [vmem:[%s10274_s15 + $0x658] sm:$0xff] }
 0x359   : > { %v2936_v16 = vld [vmem:[%s10274_s15 + $0x630] sm:$0xff] }
 0x35a   : > { %v2944_v26 = vld [vmem:[%s10274_s15 + $0x670] sm:$0xff] }
 0x35b   : > { %4633 = vmatpush1.bf16.msra.mxu0 %v8662_v39  ;;  %4779 = vmatpush1.bf16.msra.mxu1 %v8664_v19  ;;  %v8719_v39 = vcombine.high %v2892_v35, %v2896_v17  ;;  %v8721_v19 = vcombine.high %v2893_v29, %v2897_v32  ;;  %v2949_v29 = vld [vmem:[%s10274_s15 + $0x698] sm:$0xff] }
 0x35c   : > { %4634 = vmatprep.subr.bf16.mxu0 %v8671_v41  ;;  %4780 = vmatprep.subr.bf16.mxu1 %v8673_v42  ;;  %v2900_v41 = vld [vmem:[%s10274_s15 + $0x510] sm:$0xff]  ;;  %v2953_v32 = vld [vmem:[%s10274_s15 + $0x6b8] sm:$0xff] }
 0x35d   : > { %v2904_v42 = vld [vmem:[%s10274_s15 + $0x530] sm:$0xff] }
 0x35e   : > { %v8727_v45 = vcombine.high %v2900_v41, %v2904_v42 }
 0x35f   : > { %4635 = vmatpush1.bf16.msra.mxu0 %v8670_v30  ;;  %4781 = vmatpush1.bf16.msra.mxu1 %v8672_v49  ;;  %v8729_v30 = vcombine.high %v2901_v43, %v2905_v44  ;;  %v2908_v49 = vld [vmem:[%s10274_s15 + $0x550] sm:$0xff]  ;;  %v2961_v43 = vld [vmem:[%s10274_s15 + $0x6f8] sm:$0xff] }
 0x360   : > { %4636 = vmatprep.subr.bf16.mxu0 %v8679_v50  ;;  %4782 = vmatprep.subr.bf16.mxu1 %v8681_v52  ;;  %v2912_v50 = vld [vmem:[%s10274_s15 + $0x570] sm:$0xff]  ;;  %v2909_v52 = vld [vmem:[%s10274_s15 + $0x558] sm:$0xff] }
 0x361   : > { %v8735_v58 = vcombine.high %v2908_v49, %v2912_v50  ;;  %v8737_v61 = vcombine.high %v2909_v52, %v2913_v54  ;;  %v8736_v48 = vcombine.low %v2909_v52, %v2913_v54  ;;  %v2969_v52 = vld [vmem:[%s10274_s15 + $0x738] sm:$0xff] }
 0x363   : > { %4637 = vmatpush1.bf16.msra.mxu0 %v8678_v62  ;;  %4783 = vmatpush1.bf16.msra.mxu1 %v8680_v63  ;;  %v2916_v62 = vld [vmem:[%s10274_s15 + $0x590] sm:$0xff] }
 0x364   : > { %4638 = vmatprep.subr.bf16.mxu0 %v8687_v0  ;;  %4784 = vmatprep.subr.bf16.mxu1 %v8689_v56  ;;  %v2920_v63 = vld [vmem:[%s10274_s15 + $0x5b0] sm:$0xff]  ;;  %v2917_v0 = vld [vmem:[%s10274_s15 + $0x598] sm:$0xff] }
 0x365   : > { %v2921_v56 = vld [vmem:[%s10274_s15 + $0x5b8] sm:$0xff]  ;;  %v8743_v2 = vcombine.high %v2916_v62, %v2920_v63 }
 0x366   : > { %v8745_v4 = vcombine.high %v2917_v0, %v2921_v56 }
 0x367   : > { %4639 = vmatpush1.bf16.msra.mxu0 %v8686_v6  ;;  %4785 = vmatpush1.bf16.msra.mxu1 %v8688_v7  ;;  %v2928_v6 = vld [vmem:[%s10274_s15 + $0x5f0] sm:$0xff]  ;;  %v2925_v7 = vld [vmem:[%s10274_s15 + $0x5d8] sm:$0xff] }
 0x368   : > { %4681 = vmatprep.subr.bf16.mxu0 %v8695_v10  ;;  %4827 = vmatprep.subr.bf16.mxu1 %v8697_v12  ;;  %v2929_v10 = vld [vmem:[%s10274_s15 + $0x5f8] sm:$0xff]  ;;  %v8744_v12 = vcombine.low %v2917_v0, %v2921_v56  ;;  %v8751_v55 = vcombine.high %v2924_v5, %v2928_v6 }
 0x369   : > { %v8753_v14 = vcombine.high %v2925_v7, %v2929_v10  ;;  %v2977_v0 = vld [vmem:[%s10274_s15 + $0x778] sm:$0xff] }
 0x36a   : > { %4641 = vmatmul.mubr.bf16.vlgmr.msra.gmra.mrb[16].mxu0 %v10872_v47  ;;  %4787 = vmatmul.mubr.bf16.vlgmr.msra.gmra.mrb[16].mxu1 %v10872_v47  ;;  %v8710_v47 = vcombine.low %v2884_v23, %v2888_v24  ;;  %v2940_v24 = vld [vmem:[%s10274_s15 + $0x650] sm:$0xff] }
 0x36b   : > { %4682 = vmatpush1.bf16.msra.mxu0 %v8694_v31  ;;  %4828 = vmatpush1.bf16.msra.mxu1 %v8696_v51  ;;  %v2933_v31 = vld [vmem:[%s10274_s15 + $0x618] sm:$0xff] }
 0x36c   : > { %4683 = vmatprep.subr.bf16.mxu0 %v8703_v20  ;;  %4829 = vmatprep.subr.bf16.mxu1 %v8705_v8  ;;  %v2937_v51 = vld [vmem:[%s10274_s15 + $0x638] sm:$0xff]  ;;  %v8752_v20 = vcombine.low %v2925_v7, %v2929_v10  ;;  %v8759_v8 = vcombine.high %v2932_v15, %v2936_v16 }
 0x36d   : > { %4650 = vmatprep.mubr.bf16.mxu0 %v10877_v59  ;;  %4796 = vmatprep.mubr.bf16.mxu1 %v10877_v59  ;;  %v8718_v59 = vcombine.low %v2892_v35, %v2896_v17  ;;  %v8761_v23 = vcombine.high %v2933_v31, %v2937_v51  ;;  %v2948_v35 = vld [vmem:[%s10274_s15 + $0x690] sm:$0xff]  ;;  %v2985_v7 = vld [vmem:[%s10274_s15 + $0x7b8] sm:$0xff] }
 0x36e   : > { %v2952_v17 = vld [vmem:[%s10274_s15 + $0x6b0] sm:$0xff] }
 0x36f   : > { %4684 = vmatpush1.bf16.msra.mxu0 %v8702_v28  ;;  %4830 = vmatpush1.bf16.msra.mxu1 %v8704_v21  ;;  %v2945_v28 = vld [vmem:[%s10274_s15 + $0x678] sm:$0xff]  ;;  %v8760_v21 = vcombine.low %v2933_v31, %v2937_v51  ;;  %v8774_v44 = vcombine.low %v2948_v35, %v2952_v17 }
 0x370   : > { %4685 = vmatprep.subr.bf16.mxu0 %v8711_v11  ;;  %4831 = vmatprep.subr.bf16.mxu1 %v8713_v33  ;;  %v8767_v11 = vcombine.high %v2940_v24, %v2944_v26  ;;  %v8769_v33 = vcombine.high %v2941_v27, %v2945_v28  ;;  %v2993_v31 = vld [vmem:[%s10274_s15 + $0x7f8] sm:$0xff] }
 0x372   : > { %4651 = vmatmul.mubr.bf16.gmra.mrb[20].mxu0 %v10889_v9  ;;  %4797 = vmatmul.mubr.bf16.gmra.mrb[20].mxu1 %v10889_v9  ;;  %v8726_v9 = vcombine.low %v2900_v41, %v2904_v42  ;;  %v2960_v41 = vld [vmem:[%s10274_s15 + $0x6f0] sm:$0xff]  ;;  %v2957_v42 = vld [vmem:[%s10274_s15 + $0x6d8] sm:$0xff] }
 0x373   : > { %4686 = vmatpush1.bf16.msra.mxu0 %v8710_v47  ;;  %4832 = vmatpush1.bf16.msra.mxu1 %v8712_v38  ;;  %v8766_v47 = vcombine.low %v2940_v24, %v2944_v26  ;;  %v8775_v38 = vcombine.high %v2948_v35, %v2952_v17  ;;  %v11153_v26 = vld [vmem:[%s10287_s2] sm:$0xff] }
 0x374   : > { %4687 = vmatprep.subr.bf16.mxu0 %v8719_v39  ;;  %4833 = vmatprep.subr.bf16.mxu1 %v8721_v19  ;;  %v8777_v39 = vcombine.high %v2949_v29, %v2953_v32  ;;  %v2956_v19 = vld [vmem:[%s10274_s15 + $0x6d0] sm:$0xff] }
 0x375   : > { %4660 = vmatprep.mubr.bf16.mxu0 %v10893_v60  ;;  %4806 = vmatprep.mubr.bf16.mxu1 %v10893_v60  ;;  %v8734_v60 = vcombine.low %v2908_v49, %v2912_v50  ;;  %v2968_v49 = vld [vmem:[%s10274_s15 + $0x730] sm:$0xff]  ;;  %v2965_v50 = vld [vmem:[%s10274_s15 + $0x718] sm:$0xff]  ;;  %v8782_v54 = vcombine.low %v2956_v19, %v2960_v41 }
 0x377   : > { %4688 = vmatpush1.bf16.msra.mxu0 %v8718_v59  ;;  %4834 = vmatpush1.bf16.msra.mxu1 %v8720_v18  ;;  %v8776_v59 = vcombine.low %v2949_v29, %v2953_v32  ;;  %v8783_v18 = vcombine.high %v2956_v19, %v2960_v41 }
 0x378   : > { %4689 = vmatprep.subr.bf16.mxu0 %v8727_v45  ;;  %4835 = vmatprep.subr.bf16.mxu1 %v8729_v30  ;;  %v8785_v45 = vcombine.high %v2957_v42, %v2961_v43  ;;  %v2964_v30 = vld [vmem:[%s10274_s15 + $0x710] sm:$0xff] }
 0x379   : > { %v8790_v56 = vcombine.low %v2964_v30, %v2968_v49 }
 0x37a   : > { %4661 = vmatmul.mubr.bf16.gmra.mrb[24].mxu0 %v10905_v34  ;;  %4807 = vmatmul.mubr.bf16.gmra.mrb[24].mxu1 %v10905_v34  ;;  %v8742_v34 = vcombine.low %v2916_v62, %v2920_v63  ;;  %v2976_v62 = vld [vmem:[%s10274_s15 + $0x770] sm:$0xff]  ;;  %v2973_v63 = vld [vmem:[%s10274_s15 + $0x758] sm:$0xff] }
 0x37b   : > { %4690 = vmatpush1.bf16.msra.mxu0 %v8726_v9  ;;  %4836 = vmatpush1.bf16.msra.mxu1 %v8728_v57  ;;  %v8784_v9 = vcombine.low %v2957_v42, %v2961_v43  ;;  %v8791_v57 = vcombine.high %v2964_v30, %v2968_v49 }
 0x37c   : > { %4691 = vmatprep.subr.bf16.mxu0 %v8735_v58  ;;  %4837 = vmatprep.subr.bf16.mxu1 %v8737_v61  ;;  %v8793_v58 = vcombine.high %v2965_v50, %v2969_v52  ;;  %v2972_v61 = vld [vmem:[%s10274_s15 + $0x750] sm:$0xff] }
 0x37d   : > { %4670 = vmatprep.mubr.bf16.mxu0 %v10909_v40  ;;  %4816 = vmatprep.mubr.bf16.mxu1 %v10909_v40  ;;  %v8750_v40 = vcombine.low %v2924_v5, %v2928_v6  ;;  %v2984_v5 = vld [vmem:[%s10274_s15 + $0x7b0] sm:$0xff]  ;;  %v2981_v6 = vld [vmem:[%s10274_s15 + $0x798] sm:$0xff]  ;;  %v8798_v10 = vcombine.low %v2972_v61, %v2976_v62 }
 0x37f   : > { %4692 = vmatpush1.bf16.msra.mxu0 %v8734_v60  ;;  %4838 = vmatpush1.bf16.msra.mxu1 %v8736_v48  ;;  %v8792_v60 = vcombine.low %v2965_v50, %v2969_v52  ;;  %v8799_v48 = vcombine.high %v2972_v61, %v2976_v62 }
 0x380   : > { %4693 = vmatprep.subr.bf16.mxu0 %v8743_v2  ;;  %4839 = vmatprep.subr.bf16.mxu1 %v8745_v4  ;;  %v8801_v2 = vcombine.high %v2973_v63, %v2977_v0  ;;  %v2980_v4 = vld [vmem:[%s10274_s15 + $0x790] sm:$0xff] }
 0x381   : > { %v8806_v51 = vcombine.low %v2980_v4, %v2984_v5 }
 0x382   : > { %4671 = vmatmul.mubr.bf16.gmra.mrb[28].mxu0 %v10921_v53  ;;  %4817 = vmatmul.mubr.bf16.gmra.mrb[28].mxu1 %v10921_v53  ;;  %v8758_v53 = vcombine.low %v2932_v15, %v2936_v16  ;;  %v2992_v15 = vld [vmem:[%s10274_s15 + $0x7f0] sm:$0xff]  ;;  %v2989_v16 = vld [vmem:[%s10274_s15 + $0x7d8] sm:$0xff] }
 0x383   : > { %4694 = vmatpush1.bf16.msra.mxu0 %v8742_v34  ;;  %4840 = vmatpush1.bf16.msra.mxu1 %v8744_v12  ;;  %v8800_v34 = vcombine.low %v2973_v63, %v2977_v0  ;;  %v8807_v12 = vcombine.high %v2980_v4, %v2984_v5  ;;  %v8816_v24 = vcombine.low %v2989_v16, %v2993_v31 }
 0x384   : > { %4695 = vmatprep.subr.bf16.mxu0 %v8751_v55  ;;  %4841 = vmatprep.subr.bf16.mxu1 %v8753_v14  ;;  %v8809_v55 = vcombine.high %v2981_v6, %v2985_v7  ;;  %v2988_v14 = vld [vmem:[%s10274_s15 + $0x7d0] sm:$0xff] }
 0x385   : > { %4713 = vmatprep.mubr.bf16.mxu0 %v10925_v1  ;;  %4859 = vmatprep.mubr.bf16.mxu1 %v10925_v1  ;;  %v8768_v1 = vcombine.low %v2941_v27, %v2945_v28 }
 0x387   : > { %4696 = vmatpush1.bf16.msra.mxu0 %v8750_v40  ;;  %4842 = vmatpush1.bf16.msra.mxu1 %v8752_v20  ;;  %v8808_v40 = vcombine.low %v2981_v6, %v2985_v7  ;;  %v8815_v20 = vcombine.high %v2988_v14, %v2992_v15 }
 0x388   : > { %4697 = vmatprep.subr.bf16.mxu0 %v8759_v8  ;;  %4843 = vmatprep.subr.bf16.mxu1 %v8761_v23  ;;  %v8817_v8 = vcombine.high %v2989_v16, %v2993_v31  ;;  %v8814_v23 = vcombine.low %v2988_v14, %v2992_v15 }
 0x38b   : > { %4698 = vmatpush1.bf16.msra.mxu0 %v8758_v53  ;;  %4844 = vmatpush1.bf16.msra.mxu1 %v8760_v21 }
 0x38c   : > { %4699 = vmatprep.subr.bf16.mxu0 %v8767_v11  ;;  %4845 = vmatprep.subr.bf16.mxu1 %v8769_v33 }
 0x38f   : > { %4700 = vmatpush1.bf16.msra.mxu0 %v8766_v47  ;;  %4846 = vmatpush1.bf16.msra.mxu1 %v8768_v1 }
 0x390   : > { %4701 = vmatprep.subr.bf16.mxu0 %v8775_v38  ;;  %4847 = vmatprep.subr.bf16.mxu1 %v8777_v39 }
 0x393   : > { %4702 = vmatpush1.bf16.msra.mxu0 %v8774_v44  ;;  %4848 = vmatpush1.bf16.msra.mxu1 %v8776_v59 }
 0x394   : > { %4703 = vmatprep.subr.bf16.mxu0 %v8783_v18  ;;  %4849 = vmatprep.subr.bf16.mxu1 %v8785_v45 }
 0x397   : > { %4704 = vmatpush1.bf16.msra.mxu0 %v8782_v54  ;;  %4850 = vmatpush1.bf16.msra.mxu1 %v8784_v9 }
 0x398   : > { %4705 = vmatprep.subr.bf16.mxu0 %v8791_v57  ;;  %4851 = vmatprep.subr.bf16.mxu1 %v8793_v58 }
 0x39b   : > { %4706 = vmatpush1.bf16.msra.mxu0 %v8790_v56  ;;  %4852 = vmatpush1.bf16.msra.mxu1 %v8792_v60 }
 0x39c   : > { %4707 = vmatprep.subr.bf16.mxu0 %v8799_v48  ;;  %4853 = vmatprep.subr.bf16.mxu1 %v8801_v2 }
 0x39f   : > { %4708 = vmatpush1.bf16.msra.mxu0 %v8798_v10  ;;  %4854 = vmatpush1.bf16.msra.mxu1 %v8800_v34 }
 0x3a0   : > { %4709 = vmatprep.subr.bf16.mxu0 %v8807_v12  ;;  %4855 = vmatprep.subr.bf16.mxu1 %v8809_v55 }
 0x3a3   : > { %4710 = vmatpush1.bf16.msra.mxu0 %v8806_v51  ;;  %4856 = vmatpush1.bf16.msra.mxu1 %v8808_v40 }
 0x3a4   : > { %4711 = vmatprep.subr.bf16.mxu0 %v8815_v20  ;;  %4857 = vmatprep.subr.bf16.mxu1 %v8817_v8 }
 0x3a7   : > { %4712 = vmatpush1.bf16.msra.mxu0 %v8814_v23  ;;  %4858 = vmatpush1.bf16.msra.mxu1 %v8816_v24 }
 0x3aa   : > { %4714 = vmatmul.mubr.bf16.vlgmr.msra.gmra.mrb[16].mxu0 %v10968_v25  ;;  %4860 = vmatmul.mubr.bf16.vlgmr.msra.gmra.mrb[16].mxu1 %v10968_v25  ;;  %v2996_v25 = vlaneseq }
 0x3ab   : > { %4723 = vmatprep.mubr.bf16.mxu0 %v10971_v36  ;;  %4869 = vmatprep.mubr.bf16.mxu1 %v10971_v36 }
 0x3ac   : > { %v11149_v36 = vshrl.u32 %v2996_v25, 7 }
 0x3ae   : > { %v3002_v27 = vsub.s32 1, %v11149_v36 }
 0x3b2   : > { %4724 = vmatmul.mubr.bf16.gmra.mrb[20].mxu0 %v10984_v46  ;;  %4870 = vmatmul.mubr.bf16.gmra.mrb[20].mxu1 %v10984_v46  ;;  %v2998_v46 = vsub.s32 0, %v11149_v36 }
 0x3b3   : > { %4733 = vmatprep.mubr.bf16.mxu0 %v10987_v37  ;;  %4879 = vmatprep.mubr.bf16.mxu1 %v10987_v37  ;;  %v3006_v37 = vsub.s32 2, %v11149_v36 }
 0x3b4   : > { %v11159_v28 = vrot.slane %v11153_v26, %v2998_v46 }
 0x3ba   : > { %4734 = vmatmul.mubr.bf16.gmra.mrb[24].mxu0 %v11000_v13  ;;  %4880 = vmatmul.mubr.bf16.gmra.mrb[24].mxu1 %v11000_v13  ;;  %v3010_v13 = vsub.s32 3, %v11149_v36 }
 0x3bb   : > { %4743 = vmatprep.mubr.bf16.mxu0 %v11003_v22  ;;  %4889 = vmatprep.mubr.bf16.mxu1 %v11003_v22  ;;  %v11162_v22 = vrot.slane %v11153_v26, %v3006_v37 }
 0x3bc   : > { %v11168_v53 = vrot.slane %v11153_v26, %v3010_v13 }
 0x3c2   : > { %4744 = vmatmul.mubr.bf16.gmra.mrb[28].mxu0 %v11015_v3  ;;  %4890 = vmatmul.mubr.bf16.gmra.mrb[28].mxu1 %v11015_v3  ;;  %v11165_v3 = vrot.slane %v11153_v26, %v3002_v27 }
 0x3fd   : > { %v4423_v21 = vpop.f32.mrb[0].mxu0  ;;  %v4569_v33 = vpop.f32.mrb[0].mxu1 }
 0x3fe   : > { %v9273_v11 = vadd.f32 %v4423_v21, %v11159_v28  ;;  %v4425_v35 = vpop.f32.mrb[1].mxu0  ;;  %v9289_v17 = vadd.f32 %v4569_v33, %v11162_v22  ;;  %v4571_v32 = vpop.f32.mrb[1].mxu1 }
 0x3ff   : > { %v9274_v29 = vadd.f32 %v4425_v35, %v11165_v3  ;;  %v4427_v47 = vpop.f32.mrb[2].mxu0  ;;  %v9290_v1 = vadd.f32 %v4571_v32, %v11168_v53  ;;  %v4573_v39 = vpop.f32.mrb[2].mxu1  ;;  %v3014_v32 = vsub.s32 4, %v11149_v36 }
 0x400   : > { %4900 = vst [vmem:[#allocation3] sm:$0xff] %v9273_v11  ;;  %v9275_v38 = vadd.f32 %v4427_v47, %v11159_v28  ;;  %v4429_v19 = vpop.f32.mrb[3].mxu0  ;;  %4902 = vst [vmem:[#allocation3 + $0x10] sm:$0xff] %v9289_v17  ;;  %v9291_v41 = vadd.f32 %v4573_v39, %v11162_v22  ;;  %v4575_v43 = vpop.f32.mrb[3].mxu1  ;;  %v3018_v47 = vsub.s32 5, %v11149_v36 }
 0x401   : > { %4901 = vst [vmem:[#allocation3 + $0x8] sm:$0xff] %v9274_v29  ;;  %v9276_v42 = vadd.f32 %v4429_v19, %v11165_v3  ;;  %4903 = vst [vmem:[#allocation3 + $0x18] sm:$0xff] %v9290_v1  ;;  %v9292_v44 = vadd.f32 %v4575_v43, %v11168_v53  ;;  %v3026_v1 = vsub.s32 7, %v11149_v36 }
 0x402   : > { %4908 = vst [vmem:[#allocation3 + $0x40] sm:$0xff] %v9275_v38  ;;  %4910 = vst [vmem:[#allocation3 + $0x50] sm:$0xff] %v9291_v41  ;;  %v11213_v38 = vrot.slane %v11153_v26, %v3018_v47 }
 0x403   : > { %4909 = vst [vmem:[#allocation3 + $0x48] sm:$0xff] %v9276_v42  ;;  %4911 = vst [vmem:[#allocation3 + $0x58] sm:$0xff] %v9292_v44 }
 0x405   : > { %v4433_v59 = vpop.f32.mrb[4].mxu0  ;;  %v4579_v45 = vpop.f32.mrb[4].mxu1 }
 0x406   : > { %v9277_v18 = vadd.f32 %v4433_v59, %v11159_v28  ;;  %v4435_v30 = vpop.f32.mrb[5].mxu0  ;;  %v9293_v49 = vadd.f32 %v4579_v45, %v11162_v22  ;;  %v4581_v52 = vpop.f32.mrb[5].mxu1 }
 0x407   : > { %v9278_v50 = vadd.f32 %v4435_v30, %v11165_v3  ;;  %v4437_v54 = vpop.f32.mrb[6].mxu0  ;;  %v9294_v9 = vadd.f32 %v4581_v52, %v11168_v53  ;;  %v4583_v58 = vpop.f32.mrb[6].mxu1 }
 0x408   : > { %4916 = vst [vmem:[#allocation3 + $0x80] sm:$0xff] %v9277_v18  ;;  %v9279_v57 = vadd.f32 %v4437_v54, %v11159_v28  ;;  %v4439_v61 = vpop.f32.mrb[7].mxu0  ;;  %4918 = vst [vmem:[#allocation3 + $0x90] sm:$0xff] %v9293_v49  ;;  %v9295_v62 = vadd.f32 %v4583_v58, %v11162_v22  ;;  %v4585_v0 = vpop.f32.mrb[7].mxu1 }
 0x409   : > { %4917 = vst [vmem:[#allocation3 + $0x88] sm:$0xff] %v9278_v50  ;;  %v9280_v63 = vadd.f32 %v4439_v61, %v11165_v3  ;;  %4919 = vst [vmem:[#allocation3 + $0x98] sm:$0xff] %v9294_v9  ;;  %v9296_v56 = vadd.f32 %v4585_v0, %v11168_v53 }
 0x40a   : > { %4924 = vst [vmem:[#allocation3 + $0xc0] sm:$0xff] %v9279_v57  ;;  %4926 = vst [vmem:[#allocation3 + $0xd0] sm:$0xff] %v9295_v62 }
 0x40b   : > { %4925 = vst [vmem:[#allocation3 + $0xc8] sm:$0xff] %v9280_v63  ;;  %4927 = vst [vmem:[#allocation3 + $0xd8] sm:$0xff] %v9296_v56 }
 0x40d   : > { %v4443_v60 = vpop.f32.mrb[8].mxu0  ;;  %v4589_v2 = vpop.f32.mrb[8].mxu1 }
 0x40e   : > { %v9281_v48 = vadd.f32 %v4443_v60, %v11159_v28  ;;  %v4445_v4 = vpop.f32.mrb[9].mxu0  ;;  %v9297_v5 = vadd.f32 %v4589_v2, %v11162_v22  ;;  %v4591_v7 = vpop.f32.mrb[9].mxu1 }
 0x40f   : > { %v9282_v6 = vadd.f32 %v4445_v4, %v11165_v3  ;;  %v4447_v10 = vpop.f32.mrb[10].mxu0  ;;  %v9298_v34 = vadd.f32 %v4591_v7, %v11168_v53  ;;  %v4593_v55 = vpop.f32.mrb[10].mxu1 }
 0x410   : > { %4932 = vst [vmem:[#allocation3 + $0x100] sm:$0xff] %v9281_v48  ;;  %v9283_v12 = vadd.f32 %v4447_v10, %v11159_v28  ;;  %v4449_v14 = vpop.f32.mrb[11].mxu0  ;;  %4934 = vst [vmem:[#allocation3 + $0x110] sm:$0xff] %v9297_v5  ;;  %v9299_v15 = vadd.f32 %v4593_v55, %v11162_v22  ;;  %v4595_v31 = vpop.f32.mrb[11].mxu1 }
 0x411   : > { %4933 = vst [vmem:[#allocation3 + $0x108] sm:$0xff] %v9282_v6  ;;  %v9284_v16 = vadd.f32 %v4449_v14, %v11165_v3  ;;  %4935 = vst [vmem:[#allocation3 + $0x118] sm:$0xff] %v9298_v34  ;;  %v9300_v51 = vadd.f32 %v4595_v31, %v11168_v53 }
 0x412   : > { %4940 = vst [vmem:[#allocation3 + $0x140] sm:$0xff] %v9283_v12  ;;  %4942 = vst [vmem:[#allocation3 + $0x150] sm:$0xff] %v9299_v15 }
 0x413   : > { %4941 = vst [vmem:[#allocation3 + $0x148] sm:$0xff] %v9284_v16  ;;  %4943 = vst [vmem:[#allocation3 + $0x158] sm:$0xff] %v9300_v51 }
 0x415   : > { %v4453_v40 = vpop.f32.mrb[12].mxu0  ;;  %v4599_v8 = vpop.f32.mrb[12].mxu1 }
 0x416   : > { %v9285_v20 = vadd.f32 %v4453_v40, %v11159_v28  ;;  %v4455_v23 = vpop.f32.mrb[13].mxu0  ;;  %v9301_v24 = vadd.f32 %v4599_v8, %v11162_v22  ;;  %v4601_v46 = vpop.f32.mrb[13].mxu1 }
 0x417   : > { %v9286_v25 = vadd.f32 %v4455_v23, %v11165_v3  ;;  %v4457_v37 = vpop.f32.mrb[14].mxu0  ;;  %v9302_v27 = vadd.f32 %v4601_v46, %v11168_v53  ;;  %v4603_v21 = vpop.f32.mrb[14].mxu1 }
 0x418   : > { %4948 = vst [vmem:[#allocation3 + $0x180] sm:$0xff] %v9285_v20  ;;  %v9287_v13 = vadd.f32 %v4457_v37, %v11159_v28  ;;  %v4459_v11 = vpop.f32.mrb[15].mxu0  ;;  %4950 = vst [vmem:[#allocation3 + $0x190] sm:$0xff] %v9301_v24  ;;  %v9303_v33 = vadd.f32 %v4603_v21, %v11162_v22  ;;  %v4605_v17 = vpop.f32.mrb[15].mxu1  ;;  %v3022_v28 = vsub.s32 6, %v11149_v36  ;;  %v11207_v22 = vrot.slane %v11153_v26, %v3014_v32 }
 0x419   : > { %4949 = vst [vmem:[#allocation3 + $0x188] sm:$0xff] %v9286_v25  ;;  %v9288_v35 = vadd.f32 %v4459_v11, %v11165_v3  ;;  %4951 = vst [vmem:[#allocation3 + $0x198] sm:$0xff] %v9302_v27  ;;  %v9304_v29 = vadd.f32 %v4605_v17, %v11168_v53  ;;  %v11216_v53 = vrot.slane %v11153_v26, %v3026_v1 }
 0x41a   : > { %4956 = vst [vmem:[#allocation3 + $0x1c0] sm:$0xff] %v9287_v13  ;;  %4958 = vst [vmem:[#allocation3 + $0x1d0] sm:$0xff] %v9303_v33  ;;  %v11210_v3 = vrot.slane %v11153_v26, %v3022_v28 }
 0x41b   : > { %4957 = vst [vmem:[#allocation3 + $0x1c8] sm:$0xff] %v9288_v35  ;;  %4959 = vst [vmem:[#allocation3 + $0x1d8] sm:$0xff] %v9304_v29 }
 0x47d   : > { %v4715_v39 = vpop.f32.mrb[16].mxu0  ;;  %v4861_v41 = vpop.f32.mrb[16].mxu1 }
 0x47e   : > { %v9305_v19 = vadd.f32 %v4715_v39, %v11207_v22  ;;  %v4717_v42 = vpop.f32.mrb[17].mxu0  ;;  %v9321_v43 = vadd.f32 %v4861_v41, %v11210_v3  ;;  %v4863_v44 = vpop.f32.mrb[17].mxu1 }
 0x47f   : > { %v9306_v36 = vadd.f32 %v4717_v42, %v11213_v38  ;;  %v4719_v59 = vpop.f32.mrb[18].mxu0  ;;  %v9322_v18 = vadd.f32 %v4863_v44, %v11216_v53  ;;  %v4865_v30 = vpop.f32.mrb[18].mxu1 }
 0x480   : > { %4904 = vst [vmem:[#allocation3 + $0x20] sm:$0xff] %v9305_v19  ;;  %v9307_v45 = vadd.f32 %v4719_v59, %v11207_v22  ;;  %v4721_v49 = vpop.f32.mrb[19].mxu0  ;;  %4906 = vst [vmem:[#allocation3 + $0x30] sm:$0xff] %v9321_v43  ;;  %v9323_v26 = vadd.f32 %v4865_v30, %v11210_v3  ;;  %v4867_v52 = vpop.f32.mrb[19].mxu1 }
 0x481   : > { %4905 = vst [vmem:[#allocation3 + $0x28] sm:$0xff] %v9306_v36  ;;  %v9308_v50 = vadd.f32 %v4721_v49, %v11213_v38  ;;  %4907 = vst [vmem:[#allocation3 + $0x38] sm:$0xff] %v9322_v18  ;;  %v9324_v54 = vadd.f32 %v4867_v52, %v11216_v53 }
 0x482   : > { %4912 = vst [vmem:[#allocation3 + $0x60] sm:$0xff] %v9307_v45  ;;  %4914 = vst [vmem:[#allocation3 + $0x70] sm:$0xff] %v9323_v26 }
 0x483   : > { %4913 = vst [vmem:[#allocation3 + $0x68] sm:$0xff] %v9308_v50  ;;  %4915 = vst [vmem:[#allocation3 + $0x78] sm:$0xff] %v9324_v54 }
 0x485   : > { %v4725_v9 = vpop.f32.mrb[20].mxu0  ;;  %v4871_v58 = vpop.f32.mrb[20].mxu1 }
 0x486   : > { %v9309_v57 = vadd.f32 %v4725_v9, %v11207_v22  ;;  %v4727_v61 = vpop.f32.mrb[21].mxu0  ;;  %v9325_v62 = vadd.f32 %v4871_v58, %v11210_v3  ;;  %v4873_v0 = vpop.f32.mrb[21].mxu1 }
 0x487   : > { %v9310_v63 = vadd.f32 %v4727_v61, %v11213_v38  ;;  %v4729_v56 = vpop.f32.mrb[22].mxu0  ;;  %v9326_v60 = vadd.f32 %v4873_v0, %v11216_v53  ;;  %v4875_v2 = vpop.f32.mrb[22].mxu1 }
 0x488   : > { %4920 = vst [vmem:[#allocation3 + $0xa0] sm:$0xff] %v9309_v57  ;;  %v9311_v48 = vadd.f32 %v4729_v56, %v11207_v22  ;;  %v4731_v4 = vpop.f32.mrb[23].mxu0  ;;  %4922 = vst [vmem:[#allocation3 + $0xb0] sm:$0xff] %v9325_v62  ;;  %v9327_v5 = vadd.f32 %v4875_v2, %v11210_v3  ;;  %v4877_v7 = vpop.f32.mrb[23].mxu1 }
 0x489   : > { %4921 = vst [vmem:[#allocation3 + $0xa8] sm:$0xff] %v9310_v63  ;;  %v9312_v6 = vadd.f32 %v4731_v4, %v11213_v38  ;;  %4923 = vst [vmem:[#allocation3 + $0xb8] sm:$0xff] %v9326_v60  ;;  %v9328_v10 = vadd.f32 %v4877_v7, %v11216_v53 }
 0x48a   : > { %4928 = vst [vmem:[#allocation3 + $0xe0] sm:$0xff] %v9311_v48  ;;  %4930 = vst [vmem:[#allocation3 + $0xf0] sm:$0xff] %v9327_v5 }
 0x48b   : > { %4929 = vst [vmem:[#allocation3 + $0xe8] sm:$0xff] %v9312_v6  ;;  %4931 = vst [vmem:[#allocation3 + $0xf8] sm:$0xff] %v9328_v10 }
 0x48d   : > { %v4735_v34 = vpop.f32.mrb[24].mxu0  ;;  %v4881_v55 = vpop.f32.mrb[24].mxu1 }
 0x48e   : > { %v9313_v12 = vadd.f32 %v4735_v34, %v11207_v22  ;;  %v4737_v14 = vpop.f32.mrb[25].mxu0  ;;  %v9329_v15 = vadd.f32 %v4881_v55, %v11210_v3  ;;  %v4883_v31 = vpop.f32.mrb[25].mxu1 }
 0x48f   : > { %v9314_v16 = vadd.f32 %v4737_v14, %v11213_v38  ;;  %v4739_v51 = vpop.f32.mrb[26].mxu0  ;;  %v9330_v40 = vadd.f32 %v4883_v31, %v11216_v53  ;;  %v4885_v8 = vpop.f32.mrb[26].mxu1 }
 0x490   : > { %4936 = vst [vmem:[#allocation3 + $0x120] sm:$0xff] %v9313_v12  ;;  %v9315_v20 = vadd.f32 %v4739_v51, %v11207_v22  ;;  %v4741_v23 = vpop.f32.mrb[27].mxu0  ;;  %4938 = vst [vmem:[#allocation3 + $0x130] sm:$0xff] %v9329_v15  ;;  %v9331_v24 = vadd.f32 %v4885_v8, %v11210_v3  ;;  %v4887_v46 = vpop.f32.mrb[27].mxu1 }
 0x491   : > { %4937 = vst [vmem:[#allocation3 + $0x128] sm:$0xff] %v9314_v16  ;;  %v9316_v25 = vadd.f32 %v4741_v23, %v11213_v38  ;;  %4939 = vst [vmem:[#allocation3 + $0x138] sm:$0xff] %v9330_v40  ;;  %v9332_v37 = vadd.f32 %v4887_v46, %v11216_v53 }
 0x492   : > { %4944 = vst [vmem:[#allocation3 + $0x160] sm:$0xff] %v9315_v20  ;;  %4946 = vst [vmem:[#allocation3 + $0x170] sm:$0xff] %v9331_v24 }
 0x493   : > { %4945 = vst [vmem:[#allocation3 + $0x168] sm:$0xff] %v9316_v25  ;;  %4947 = vst [vmem:[#allocation3 + $0x178] sm:$0xff] %v9332_v37 }
 0x495   : > { %v4745_v27 = vpop.f32.mrb[28].mxu0  ;;  %v4891_v21 = vpop.f32.mrb[28].mxu1 }
 0x496   : > { %v9317_v13 = vadd.f32 %v4745_v27, %v11207_v22  ;;  %v4747_v11 = vpop.f32.mrb[29].mxu0  ;;  %v9333_v33 = vadd.f32 %v4891_v21, %v11210_v3  ;;  %v4893_v17 = vpop.f32.mrb[29].mxu1 }
 0x497   : > { %v9318_v35 = vadd.f32 %v4747_v11, %v11213_v38  ;;  %v4749_v29 = vpop.f32.mrb[30].mxu0  ;;  %v9334_v32 = vadd.f32 %v4893_v17, %v11216_v53  ;;  %v4895_v47 = vpop.f32.mrb[30].mxu1 }
 0x498   : > { %4952 = vst [vmem:[#allocation3 + $0x1a0] sm:$0xff] %v9317_v13  ;;  %v9319_v28 = vadd.f32 %v4749_v29, %v11207_v22  ;;  %v4751_v1 = vpop.f32.mrb[31].mxu0  ;;  %4954 = vst [vmem:[#allocation3 + $0x1b0] sm:$0xff] %v9333_v33  ;;  %v9335_v39 = vadd.f32 %v4895_v47, %v11210_v3  ;;  %v4897_v41 = vpop.f32.mrb[31].mxu1 }
 0x499   : > { %4953 = vst [vmem:[#allocation3 + $0x1a8] sm:$0xff] %v9318_v35  ;;  %v9320_v19 = vadd.f32 %v4751_v1, %v11213_v38  ;;  %4955 = vst [vmem:[#allocation3 + $0x1b8] sm:$0xff] %v9334_v32  ;;  %v9336_v42 = vadd.f32 %v4897_v41, %v11216_v53 }
 0x49a   : > { %4960 = vst [vmem:[#allocation3 + $0x1e0] sm:$0xff] %v9319_v28  ;;  %4962 = vst [vmem:[#allocation3 + $0x1f0] sm:$0xff] %v9335_v39 }
 0x49b   : > { %4961 = vst [vmem:[#allocation3 + $0x1e8] sm:$0xff] %v9320_v19  ;;  %4963 = vst [vmem:[#allocation3 + $0x1f8] sm:$0xff] %v9336_v42 }
 0x49c PF: > { %v4964_v22 = vld [vmem:[%s10281_s28] sm:$0xff]  ;;  %v12829_v44 = vmov 0   ;;  %v4965_v30 = vld [vmem:[%s10281_s28 + $0x8] sm:$0xff]  ;;  %p9026_p0 = scmp.ne.s32.totalorder %s10074_s25, 1 }
 0x49d   : > { %v4968_v3 = vld [vmem:[%s10281_s28 + $0x20] sm:$0xff]  ;;  %5772 = vmatprep.mubr.bf16.mxu0 %v12829_v44  ;;  %5813 = vmatprep.mubr.bf16.mxu1 %v12829_v44  ;;  %v4969_v49 = vld [vmem:[%s10281_s28 + $0x28] sm:$0xff] }
 0x49e   : > { %v4972_v38 = vld [vmem:[%s10281_s28 + $0x40] sm:$0xff]  ;;  %v11253_v43 = vcombine.high %v4964_v22, %v4968_v3  ;;  %v11255_v36 = vcombine.low %v4964_v22, %v4968_v3  ;;  %v11270_v50 = vcombine.high %v4965_v30, %v4969_v49  ;;  %v11272_v52 = vcombine.low %v4965_v30, %v4969_v49  ;;  %v4973_v54 = vld [vmem:[%s10281_s28 + $0x48] sm:$0xff] }
 0x49f   : > { %v4976_v53 = vld [vmem:[%s10281_s28 + $0x60] sm:$0xff]  ;;  %v4977_v58 = vld [vmem:[%s10281_s28 + $0x68] sm:$0xff] }
 0x4a0   : > { %13122 = vst [vmem:[#allocation16_spill] sm:$0xff] %v11253_v43  ;;  %13123 = vst [vmem:[#allocation17_spill] sm:$0xff] %v11255_v36  ;;  %v11260_v59 = vcombine.high %v4972_v38, %v4976_v53  ;;  %v4980_v18 = vld [vmem:[%s10281_s28 + $0x80] sm:$0xff]  ;;  %5740 = vmatprep.subr.bf16.mxu0 %v11253_v43  ;;  %v11268_v26 = vcombine.low %v4972_v38, %v4976_v53  ;;  %5781 = vmatprep.subr.bf16.mxu1 %v11270_v50  ;;  %v4981_v63 = vld [vmem:[%s10281_s28 + $0x88] sm:$0xff] }
 0x4a1   : > { %v4984_v45 = vld [vmem:[%s10281_s28 + $0xa0] sm:$0xff]  ;;  %5741 = vmatpush1.bf16.msra.mxu0 %v11255_v36  ;;  %13126 = vst [vmem:[#allocation20_spill] sm:$0xff] %v11270_v50  ;;  %13127 = vst [vmem:[#allocation21_spill] sm:$0xff] %v11272_v52  ;;  %v11282_v62 = vcombine.high %v4973_v54, %v4977_v58  ;;  %v4985_v0 = vld [vmem:[%s10281_s28 + $0xa8] sm:$0xff]  ;;  %5782 = vmatpush1.bf16.msra.mxu1 %v11272_v52  ;;  %v11287_v56 = vcombine.low %v4973_v54, %v4977_v58 }
 0x4a2   : > { %13124 = vst [vmem:[#allocation18_spill] sm:$0xff] %v11260_v59  ;;  %13125 = vst [vmem:[#allocation19_spill] sm:$0xff] %v11268_v26  ;;  %5742 = vmatprep.subr.bf16.mxu0 %v11260_v59  ;;  %v11276_v9 = vcombine.high %v4980_v18, %v4984_v45  ;;  %v4988_v57 = vld [vmem:[%s10281_s28 + $0xc0] sm:$0xff]  ;;  %v11290_v60 = vcombine.low %v4980_v18, %v4984_v45  ;;  %v11293_v48 = vcombine.high %v4981_v63, %v4985_v0  ;;  %v4989_v4 = vld [vmem:[%s10281_s28 + $0xc8] sm:$0xff] }
 0x4a3   : > { %v4992_v61 = vld [vmem:[%s10281_s28 + $0xe0] sm:$0xff]  ;;  %13129 = vst [vmem:[#allocation23_spill] sm:$0xff] %v11282_v62  ;;  %13130 = vst [vmem:[#allocation24_spill] sm:$0xff] %v11287_v56  ;;  %5783 = vmatprep.subr.bf16.mxu1 %v11282_v62  ;;  %v4993_v5 = vld [vmem:[%s10281_s28 + $0xe8] sm:$0xff]  ;;  %v11303_v10 = vcombine.low %v4981_v63, %v4985_v0 }
 0x4a4   : > { %13128 = vst [vmem:[#allocation22_spill] sm:$0xff] %v11276_v9  ;;  %13131 = vst [vmem:[#allocation25_spill] sm:$0xff] %v11290_v60  ;;  %v11296_v2 = vcombine.high %v4988_v57, %v4992_v61  ;;  %v4996_v6 = vld [vmem:[%s10281_s28 + $0x100] sm:$0xff]  ;;  %v11306_v34 = vcombine.low %v4988_v57, %v4992_v61  ;;  %v11309_v12 = vcombine.high %v4989_v4, %v4993_v5  ;;  %v4997_v14 = vld [vmem:[%s10281_s28 + $0x108] sm:$0xff] }
 0x4a5   : > { %5743 = vmatpush1.bf16.msra.mxu0 %v11268_v26  ;;  %13132 = vst [vmem:[#allocation26_spill] sm:$0xff] %v11293_v48  ;;  %v5000_v7 = vld [vmem:[%s10281_s28 + $0x120] sm:$0xff]  ;;  %5784 = vmatpush1.bf16.msra.mxu1 %v11287_v56  ;;  %13134 = vst [vmem:[#allocation28_spill] sm:$0xff] %v11303_v10  ;;  %v5001_v15 = vld [vmem:[%s10281_s28 + $0x128] sm:$0xff]  ;;  %v11319_v51 = vcombine.low %v4989_v4, %v4993_v5 }
 0x4a6   : > { %5744 = vmatprep.subr.bf16.mxu0 %v11276_v9  ;;  %13133 = vst [vmem:[#allocation27_spill] sm:$0xff] %v11296_v2  ;;  %13135 = vst [vmem:[#allocation29_spill] sm:$0xff] %v11306_v34  ;;  %5785 = vmatprep.subr.bf16.mxu1 %v11293_v48  ;;  %v11312_v55 = vcombine.high %v4996_v6, %v5000_v7  ;;  %v5004_v16 = vld [vmem:[%s10281_s28 + $0x140] sm:$0xff]  ;;  %v11322_v40 = vcombine.low %v4996_v6, %v5000_v7  ;;  %v5005_v23 = vld [vmem:[%s10281_s28 + $0x148] sm:$0xff] }
 0x4a7   : > { %13136 = vst [vmem:[#allocation30_spill] sm:$0xff] %v11309_v12  ;;  %v5008_v31 = vld [vmem:[%s10281_s28 + $0x160] sm:$0xff]  ;;  %13138 = vst [vmem:[#allocation32_spill] sm:$0xff] %v11319_v51  ;;  %v11325_v20 = vcombine.high %v4997_v14, %v5001_v15  ;;  %v5009_v24 = vld [vmem:[%s10281_s28 + $0x168] sm:$0xff]  ;;  %v11335_v37 = vcombine.low %v4997_v14, %v5001_v15 }
 0x4a8   : > { %13137 = vst [vmem:[#allocation31_spill] sm:$0xff] %v11312_v55  ;;  %13139 = vst [vmem:[#allocation33_spill] sm:$0xff] %v11322_v40  ;;  %v11328_v8 = vcombine.high %v5004_v16, %v5008_v31  ;;  %v5012_v25 = vld [vmem:[%s10281_s28 + $0x180] sm:$0xff]  ;;  %v11338_v27 = vcombine.low %v5004_v16, %v5008_v31  ;;  %v11341_v13 = vcombine.high %v5005_v23, %v5009_v24  ;;  %v5013_v11 = vld [vmem:[%s10281_s28 + $0x188] sm:$0xff] }
 0x4a9   : > { %5745 = vmatpush1.bf16.msra.mxu0 %v11290_v60  ;;  %5786 = vmatpush1.bf16.msra.mxu1 %v11303_v10  ;;  %13140 = vst [vmem:[#allocation34_spill] sm:$0xff] %v11325_v20  ;;  %v5016_v46 = vld [vmem:[%s10281_s28 + $0x1a0] sm:$0xff]  ;;  %13142 = vst [vmem:[#allocation36_spill] sm:$0xff] %v11335_v37  ;;  %v5017_v33 = vld [vmem:[%s10281_s28 + $0x1a8] sm:$0xff]  ;;  %v11351_v29 = vcombine.low %v5005_v23, %v5009_v24 }
 0x4aa   : > { %5746 = vmatprep.subr.bf16.mxu0 %v11296_v2  ;;  %5787 = vmatprep.subr.bf16.mxu1 %v11309_v12  ;;  %13141 = vst [vmem:[#allocation35_spill] sm:$0xff] %v11328_v8  ;;  %13143 = vst [vmem:[#allocation37_spill] sm:$0xff] %v11338_v27  ;;  %v11344_v21 = vcombine.high %v5012_v25, %v5016_v46  ;;  %v5020_v35 = vld [vmem:[%s10281_s28 + $0x1c0] sm:$0xff]  ;;  %v11354_v32 = vcombine.low %v5012_v25, %v5016_v46  ;;  %v5021_v1 = vld [vmem:[%s10281_s28 + $0x1c8] sm:$0xff] }
 0x4ab   : > { %13144 = vst [vmem:[#allocation38_spill] sm:$0xff] %v11341_v13  ;;  %v5024_v17 = vld [vmem:[%s10281_s28 + $0x1e0] sm:$0xff]  ;;  %13146 = vst [vmem:[#allocation40_spill] sm:$0xff] %v11351_v29  ;;  %v11357_v28 = vcombine.high %v5013_v11, %v5017_v33  ;;  %v5025_v39 = vld [vmem:[%s10281_s28 + $0x1e8] sm:$0xff]  ;;  %v11367_v42 = vcombine.low %v5013_v11, %v5017_v33 }
 0x4ac   : > { %13145 = vst [vmem:[#allocation39_spill] sm:$0xff] %v11344_v21  ;;  %13147 = vst [vmem:[#allocation41_spill] sm:$0xff] %v11354_v32  ;;  %v11360_v47 = vcombine.high %v5020_v35, %v5024_v17  ;;  %v5028_v19 = vld [vmem:[%s10281_s28 + $0x200] sm:$0xff]  ;;  %v11370_v22 = vcombine.low %v5020_v35, %v5024_v17  ;;  %v11373_v3 = vcombine.high %v5021_v1, %v5025_v39  ;;  %v5029_v53 = vld [vmem:[%s10281_s28 + $0x208] sm:$0xff] }
 0x4ad   : > { %5747 = vmatpush1.bf16.msra.mxu0 %v11306_v34  ;;  %5788 = vmatpush1.bf16.msra.mxu1 %v11319_v51  ;;  %13148 = vst [vmem:[#allocation42_spill] sm:$0xff] %v11357_v28  ;;  %v5032_v41 = vld [vmem:[%s10281_s28 + $0x220] sm:$0xff]  ;;  %13150 = vst [vmem:[#allocation44_spill] sm:$0xff] %v11367_v42  ;;  %v5033_v18 = vld [vmem:[%s10281_s28 + $0x228] sm:$0xff]  ;;  %v11383_v49 = vcombine.low %v5021_v1, %v5025_v39 }
 0x4ae   : > { %5748 = vmatprep.subr.bf16.mxu0 %v11312_v55  ;;  %5789 = vmatprep.subr.bf16.mxu1 %v11325_v20  ;;  %13149 = vst [vmem:[#allocation43_spill] sm:$0xff] %v11360_v47  ;;  %13151 = vst [vmem:[#allocation45_spill] sm:$0xff] %v11370_v22  ;;  %v11376_v38 = vcombine.high %v5028_v19, %v5032_v41  ;;  %v5036_v45 = vld [vmem:[%s10281_s28 + $0x240] sm:$0xff]  ;;  %v11386_v54 = vcombine.low %v5028_v19, %v5032_v41  ;;  %v5037_v61 = vld [vmem:[%s10281_s28 + $0x248] sm:$0xff] }
 0x4af   : > { %13152 = vst [vmem:[#allocation46_spill] sm:$0xff] %v11373_v3  ;;  %v5040_v30 = vld [vmem:[%s10281_s28 + $0x260] sm:$0xff]  ;;  %13154 = vst [vmem:[#allocation48_spill] sm:$0xff] %v11383_v49  ;;  %v11389_v57 = vcombine.high %v5029_v53, %v5033_v18  ;;  %v5041_v63 = vld [vmem:[%s10281_s28 + $0x268] sm:$0xff]  ;;  %v11399_v5 = vcombine.low %v5029_v53, %v5033_v18 }
 0x4b0   : > { %13153 = vst [vmem:[#allocation47_spill] sm:$0xff] %v11376_v38  ;;  %13155 = vst [vmem:[#allocation49_spill] sm:$0xff] %v11386_v54  ;;  %v11392_v58 = vcombine.high %v5036_v45, %v5040_v30  ;;  %v5044_v0 = vld [vmem:[%s10281_s28 + $0x280] sm:$0xff]  ;;  %v11402_v6 = vcombine.low %v5036_v45, %v5040_v30  ;;  %v11405_v7 = vcombine.high %v5037_v61, %v5041_v63  ;;  %v5045_v15 = vld [vmem:[%s10281_s28 + $0x288] sm:$0xff] }
 0x4b1   : > { %5749 = vmatpush1.bf16.msra.mxu0 %v11322_v40  ;;  %5790 = vmatpush1.bf16.msra.mxu1 %v11335_v37  ;;  %13156 = vst [vmem:[#allocation50_spill] sm:$0xff] %v11389_v57  ;;  %v5048_v4 = vld [vmem:[%s10281_s28 + $0x2a0] sm:$0xff]  ;;  %13158 = vst [vmem:[#allocation52_spill] sm:$0xff] %v11399_v5  ;;  %v5049_v16 = vld [vmem:[%s10281_s28 + $0x2a8] sm:$0xff]  ;;  %v11415_v24 = vcombine.low %v5037_v61, %v5041_v63 }
 0x4b2   : > { %5750 = vmatprep.subr.bf16.mxu0 %v11328_v8  ;;  %5791 = vmatprep.subr.bf16.mxu1 %v11341_v13  ;;  %13157 = vst [vmem:[#allocation51_spill] sm:$0xff] %v11392_v58  ;;  %13159 = vst [vmem:[#allocation53_spill] sm:$0xff] %v11402_v6  ;;  %v11408_v14 = vcombine.high %v5044_v0, %v5048_v4  ;;  %v5052_v31 = vld [vmem:[%s10281_s28 + $0x2c0] sm:$0xff]  ;;  %v11418_v25 = vcombine.low %v5044_v0, %v5048_v4  ;;  %v5053_v33 = vld [vmem:[%s10281_s28 + $0x2c8] sm:$0xff] }
 0x4b3   : > { %13160 = vst [vmem:[#allocation54_spill] sm:$0xff] %v11405_v7  ;;  %v5056_v23 = vld [vmem:[%s10281_s28 + $0x2e0] sm:$0xff]  ;;  %13162 = vst [vmem:[#allocation56_spill] sm:$0xff] %v11415_v24  ;;  %v11421_v46 = vcombine.high %v5045_v15, %v5049_v16  ;;  %v5057_v35 = vld [vmem:[%s10281_s28 + $0x2e8] sm:$0xff]  ;;  %v11431_v39 = vcombine.low %v5045_v15, %v5049_v16 }
 0x4b4   : > { %13161 = vst [vmem:[#allocation55_spill] sm:$0xff] %v11408_v14  ;;  %13163 = vst [vmem:[#allocation57_spill] sm:$0xff] %v11418_v25  ;;  %v11424_v11 = vcombine.high %v5052_v31, %v5056_v23  ;;  %v5060_v17 = vld [vmem:[%s10281_s28 + $0x300] sm:$0xff]  ;;  %v11434_v19 = vcombine.low %v5052_v31, %v5056_v23  ;;  %v11437_v41 = vcombine.high %v5053_v33, %v5057_v35  ;;  %v5061_v18 = vld [vmem:[%s10281_s28 + $0x308] sm:$0xff] }
 0x4b5   : > { %5751 = vmatpush1.bf16.msra.mxu0 %v11338_v27  ;;  %5792 = vmatpush1.bf16.msra.mxu1 %v11351_v29  ;;  %13164 = vst [vmem:[#allocation58_spill] sm:$0xff] %v11421_v46  ;;  %v5064_v1 = vld [vmem:[%s10281_s28 + $0x320] sm:$0xff]  ;;  %13166 = vst [vmem:[#allocation60_spill] sm:$0xff] %v11431_v39  ;;  %v5065_v45 = vld [vmem:[%s10281_s28 + $0x328] sm:$0xff]  ;;  %v11447_v63 = vcombine.low %v5053_v33, %v5057_v35 }
 0x4b6   : > { %5752 = vmatprep.subr.bf16.mxu0 %v11344_v21  ;;  %5793 = vmatprep.subr.bf16.mxu1 %v11357_v28  ;;  %13165 = vst [vmem:[#allocation59_spill] sm:$0xff] %v11424_v11  ;;  %13167 = vst [vmem:[#allocation61_spill] sm:$0xff] %v11434_v19  ;;  %v11440_v53 = vcombine.high %v5060_v17, %v5064_v1  ;;  %v5068_v30 = vld [vmem:[%s10281_s28 + $0x340] sm:$0xff]  ;;  %v11450_v0 = vcombine.low %v5060_v17, %v5064_v1  ;;  %v5069_v16 = vld [vmem:[%s10281_s28 + $0x348] sm:$0xff] }
 0x4b7   : > { %13168 = vst [vmem:[#allocation62_spill] sm:$0xff] %v11437_v41  ;;  %v5072_v61 = vld [vmem:[%s10281_s28 + $0x360] sm:$0xff]  ;;  %13170 = vst [vmem:[#allocation64_spill] sm:$0xff] %v11447_v63  ;;  %v11453_v4 = vcombine.high %v5061_v18, %v5065_v45  ;;  %v5073_v31 = vld [vmem:[%s10281_s28 + $0x368] sm:$0xff]  ;;  %v11463_v35 = vcombine.low %v5061_v18, %v5065_v45 }
 0x4b8   : > { %13169 = vst [vmem:[#allocation63_spill] sm:$0xff] %v11440_v53  ;;  %13171 = vst [vmem:[#allocation65_spill] sm:$0xff] %v11450_v0  ;;  %v11456_v15 = vcombine.high %v5068_v30, %v5072_v61  ;;  %v5076_v23 = vld [vmem:[%s10281_s28 + $0x380] sm:$0xff]  ;;  %v11466_v17 = vcombine.low %v5068_v30, %v5072_v61  ;;  %v11469_v1 = vcombine.high %v5069_v16, %v5073_v31 }
 0x4b9   : > { %5753 = vmatpush1.bf16.msra.mxu0 %v11354_v32  ;;  %5794 = vmatpush1.bf16.msra.mxu1 %v11367_v42  ;;  %13172 = vst [vmem:[#allocation66_spill] sm:$0xff] %v11453_v4  ;;  %v5080_v33 = vld [vmem:[%s10281_s28 + $0x3a0] sm:$0xff]  ;;  %13174 = vst [vmem:[#allocation68_spill] sm:$0xff] %v11463_v35  ;;  %v11479_v30 = vcombine.low %v5069_v16, %v5073_v31  ;;  %v4966_v16 = vld [vmem:[%s10281_s28 + $0x10] sm:$0xff] }
 0x4ba   : > { %5754 = vmatprep.subr.bf16.mxu0 %v11360_v47  ;;  %5795 = vmatprep.subr.bf16.mxu1 %v11373_v3  ;;  %13173 = vst [vmem:[#allocation67_spill] sm:$0xff] %v11456_v15  ;;  %13175 = vst [vmem:[#allocation69_spill] sm:$0xff] %v11466_v17  ;;  %v11472_v44 = vcombine.high %v5076_v23, %v5080_v33  ;;  %v5084_v18 = vld [vmem:[%s10281_s28 + $0x3c0] sm:$0xff]  ;;  %v11482_v61 = vcombine.low %v5076_v23, %v5080_v33  ;;  %v4970_v31 = vld [vmem:[%s10281_s28 + $0x30] sm:$0xff] }
 0x4bb   : > { %13176 = vst [vmem:[#allocation70_spill] sm:$0xff] %v11469_v1  ;;  %v5088_v45 = vld [vmem:[%s10281_s28 + $0x3e0] sm:$0xff]  ;;  %13178 = vst [vmem:[#allocation72_spill] sm:$0xff] %v11479_v30 }
 0x4bc   : > { %13177 = vst [vmem:[#allocation71_spill] sm:$0xff] %v11472_v44  ;;  %13179 = vst [vmem:[#allocation73_spill] sm:$0xff] %v11482_v61  ;;  %v11498_v33 = vcombine.low %v5084_v18, %v5088_v45 }
 0x4bd   : > { %5755 = vmatpush1.bf16.msra.mxu0 %v11370_v22  ;;  %5796 = vmatpush1.bf16.msra.mxu1 %v11383_v49 }
 0x4be   : > { %5756 = vmatprep.subr.bf16.mxu0 %v11376_v38  ;;  %5797 = vmatprep.subr.bf16.mxu1 %v11389_v57  ;;  %13183 = vst [vmem:[#allocation77_spill] sm:$0xff] %v11498_v33 }
 0x4c1   : > { %5757 = vmatpush1.bf16.msra.mxu0 %v11386_v54  ;;  %5798 = vmatpush1.bf16.msra.mxu1 %v11399_v5 }
 0x4c2   : > { %5758 = vmatprep.subr.bf16.mxu0 %v11392_v58  ;;  %5799 = vmatprep.subr.bf16.mxu1 %v11405_v7 }
 0x4c5   : > { %5759 = vmatpush1.bf16.msra.mxu0 %v11402_v6  ;;  %5800 = vmatpush1.bf16.msra.mxu1 %v11415_v24 }
 0x4c6   : > { %5760 = vmatprep.subr.bf16.mxu0 %v11408_v14  ;;  %5801 = vmatprep.subr.bf16.mxu1 %v11421_v46 }
 0x4c9   : > { %5761 = vmatpush1.bf16.msra.mxu0 %v11418_v25  ;;  %5802 = vmatpush1.bf16.msra.mxu1 %v11431_v39  ;;  %v5086_v39 = vld [vmem:[%s10281_s28 + $0x3d0] sm:$0xff] }
 0x4ca   : > { %5762 = vmatprep.subr.bf16.mxu0 %v11424_v11  ;;  %5803 = vmatprep.subr.bf16.mxu1 %v11437_v41  ;;  %v4987_v41 = vld [vmem:[%s10281_s28 + $0xb8] sm:$0xff] }
 0x4cd   : > { %5763 = vmatpush1.bf16.msra.mxu0 %v11434_v19  ;;  %5804 = vmatpush1.bf16.msra.mxu1 %v11447_v63  ;;  %v5081_v63 = vld [vmem:[%s10281_s28 + $0x3a8] sm:$0xff]  ;;  %v4979_v19 = vld [vmem:[%s10281_s28 + $0x78] sm:$0xff] }
 0x4ce   : > { %5764 = vmatprep.subr.bf16.mxu0 %v11440_v53  ;;  %5805 = vmatprep.subr.bf16.mxu1 %v11453_v4  ;;  %v5077_v53 = vld [vmem:[%s10281_s28 + $0x388] sm:$0xff] }
 0x4cf   : > { %v5085_v4 = vld [vmem:[%s10281_s28 + $0x3c8] sm:$0xff]  ;;  %v11495_v23 = vcombine.low %v5077_v53, %v5081_v63 }
 0x4d1   : > { %5765 = vmatpush1.bf16.msra.mxu0 %v11450_v0  ;;  %5806 = vmatpush1.bf16.msra.mxu1 %v11463_v35  ;;  %v11488_v0 = vcombine.high %v5084_v18, %v5088_v45  ;;  %v5089_v35 = vld [vmem:[%s10281_s28 + $0x3e8] sm:$0xff]  ;;  %13182 = vst [vmem:[#allocation76_spill] sm:$0xff] %v11495_v23  ;;  %v11514_v45 = vcombine.low %v4966_v16, %v4970_v31 }
 0x4d2   : > { %5766 = vmatprep.subr.bf16.mxu0 %v11456_v15  ;;  %5807 = vmatprep.subr.bf16.mxu1 %v11469_v1  ;;  %v11485_v15 = vcombine.high %v5077_v53, %v5081_v63  ;;  %v4967_v1 = vld [vmem:[%s10281_s28 + $0x18] sm:$0xff]  ;;  %v4974_v53 = vld [vmem:[%s10281_s28 + $0x50] sm:$0xff]  ;;  %v11511_v18 = vcombine.low %v5085_v4, %v5089_v35 }
 0x4d3   : > { %13181 = vst [vmem:[#allocation75_spill] sm:$0xff] %v11488_v0  ;;  %v4978_v63 = vld [vmem:[%s10281_s28 + $0x70] sm:$0xff]  ;;  %13187 = vst [vmem:[#allocation81_spill] sm:$0xff] %v11514_v45 }
 0x4d4   : > { %13180 = vst [vmem:[#allocation74_spill] sm:$0xff] %v11485_v15  ;;  %13186 = vst [vmem:[#allocation80_spill] sm:$0xff] %v11511_v18 }
 0x4d5   : > { %5767 = vmatpush1.bf16.msra.mxu0 %v11466_v17  ;;  %5808 = vmatpush1.bf16.msra.mxu1 %v11479_v30  ;;  %v11504_v17 = vcombine.high %v4966_v16, %v4970_v31  ;;  %v4971_v30 = vld [vmem:[%s10281_s28 + $0x38] sm:$0xff]  ;;  %v11531_v31 = vcombine.low %v4974_v53, %v4978_v63 }
 0x4d6   : > { %5768 = vmatprep.subr.bf16.mxu0 %v11472_v44  ;;  %5809 = vmatprep.subr.bf16.mxu1 %v11485_v15  ;;  %v11501_v44 = vcombine.high %v5085_v4, %v5089_v35  ;;  %v4975_v15 = vld [vmem:[%s10281_s28 + $0x58] sm:$0xff]  ;;  %v4982_v4 = vld [vmem:[%s10281_s28 + $0x90] sm:$0xff]  ;;  %v11528_v16 = vcombine.low %v4967_v1, %v4971_v30 }
 0x4d7   : > { %13185 = vst [vmem:[#allocation79_spill] sm:$0xff] %v11504_v17  ;;  %v4986_v35 = vld [vmem:[%s10281_s28 + $0xb0] sm:$0xff]  ;;  %13192 = vst [vmem:[#allocation85_spill] sm:$0xff] %v11531_v31 }
 0x4d8   : > { %13184 = vst [vmem:[#allocation78_spill] sm:$0xff] %v11501_v44  ;;  %13191 = vst [vmem:[#allocation84_spill] sm:$0xff] %v11528_v16 }
 0x4d9   : > { %5769 = vmatpush1.bf16.msra.mxu0 %v11482_v61  ;;  %5810 = vmatpush1.bf16.msra.mxu1 %v11495_v23  ;;  %v11517_v61 = vcombine.high %v4967_v1, %v4971_v30  ;;  %v13190_v23 = vmov 0   ;;  %v4990_v1 = vld [vmem:[%s10281_s28 + $0xd0] sm:$0xff] }
 0x4da   : > { %5770 = vmatprep.subr.bf16.mxu0 %v11488_v0  ;;  %5811 = vmatprep.subr.bf16.mxu1 %v11501_v44  ;;  %v11520_v0 = vcombine.high %v4974_v53, %v4978_v63  ;;  %v4983_v44 = vld [vmem:[%s10281_s28 + $0x98] sm:$0xff]  ;;  %v4994_v30 = vld [vmem:[%s10281_s28 + $0xf0] sm:$0xff]  ;;  %v11546_v53 = vcombine.low %v4975_v15, %v4979_v19  ;;  %v11550_v63 = vcombine.low %v4982_v4, %v4986_v35 }
 0x4db   : > { %13188 = vst [vmem:[#allocation82_spill] sm:$0xff] %v11517_v61 }
 0x4dc   : > { %13189 = vst [vmem:[#allocation83_spill] sm:$0xff] %v11520_v0  ;;  %13195 = vst [vmem:[#allocation88_spill] sm:$0xff] %v11546_v53 }
 0x4dd   : > { %5771 = vmatpush1.bf16.msra.mxu0 %v11498_v33  ;;  %5812 = vmatpush1.bf16.msra.mxu1 %v11511_v18  ;;  %v11537_v33 = vcombine.high %v4982_v4, %v4986_v35  ;;  %13196 = vst [vmem:[#allocation89_spill] sm:$0xff] %v11550_v63  ;;  %v11563_v4 = vcombine.low %v4983_v44, %v4987_v41  ;;  %v5083_v18 = vld [vmem:[%s10281_s28 + $0x3b8] sm:$0xff] }
 0x4de   : > { %5822 = vmatprep.subr.bf16.mxu0 %v11504_v17  ;;  %5863 = vmatprep.subr.bf16.mxu1 %v11517_v61  ;;  %v11534_v17 = vcombine.high %v4975_v15, %v4979_v19  ;;  %v4991_v19 = vld [vmem:[%s10281_s28 + $0xd8] sm:$0xff]  ;;  %v5002_v61 = vld [vmem:[%s10281_s28 + $0x130] sm:$0xff]  ;;  %v11566_v35 = vcombine.low %v4990_v1, %v4994_v30 }
 0x4df   : > { %13194 = vst [vmem:[#allocation87_spill] sm:$0xff] %v11537_v33  ;;  %v4995_v15 = vld [vmem:[%s10281_s28 + $0xf8] sm:$0xff]  ;;  %13199 = vst [vmem:[#allocation92_spill] sm:$0xff] %v11563_v4 }
 0x4e0   : > { %5773 = vmatmul.mubr.bf16.vlgmr.msra.gmra.mrb[0].mxu0 %v13190_v23  ;;  %13193 = vst [vmem:[#allocation86_spill] sm:$0xff] %v11534_v17  ;;  %5814 = vmatmul.mubr.bf16.vlgmr.msra.gmra.mrb[0].mxu1 %v13190_v23  ;;  %13200 = vst [vmem:[#allocation93_spill] sm:$0xff] %v11566_v35 }
 0x4e1   : > { %5823 = vmatpush1.bf16.msra.mxu0 %v11514_v45  ;;  %5854 = vmatprep.mubr.bf16.mxu0 %v13190_v23  ;;  %v11556_v45 = vcombine.high %v4990_v1, %v4994_v30  ;;  %v11579_v1 = vcombine.low %v4991_v19, %v4995_v15 }
 0x4e2   : > { %5824 = vmatprep.subr.bf16.mxu0 %v11520_v0  ;;  %5864 = vmatpush1.bf16.msra.mxu1 %v11528_v16  ;;  %v11553_v0 = vcombine.high %v4983_v44, %v4987_v41  ;;  %v4998_v16 = vld [vmem:[%s10281_s28 + $0x110] sm:$0xff] }
 0x4e3   : > { %5895 = vmatprep.mubr.bf16.mxu1 %v13190_v23  ;;  %5865 = vmatprep.subr.bf16.mxu1 %v11534_v17  ;;  %13198 = vst [vmem:[#allocation91_spill] sm:$0xff] %v11556_v45  ;;  %v4999_v17 = vld [vmem:[%s10281_s28 + $0x118] sm:$0xff]  ;;  %v5006_v44 = vld [vmem:[%s10281_s28 + $0x150] sm:$0xff]  ;;  %13203 = vst [vmem:[#allocation96_spill] sm:$0xff] %v11579_v1  ;;  %v11582_v30 = vcombine.low %v4998_v16, %v5002_v61 }
 0x4e4   : > { %13197 = vst [vmem:[#allocation90_spill] sm:$0xff] %v11553_v0  ;;  %v5010_v41 = vld [vmem:[%s10281_s28 + $0x170] sm:$0xff] }
 0x4e5   : > { %5825 = vmatpush1.bf16.msra.mxu0 %v11531_v31  ;;  %v11572_v31 = vcombine.high %v4998_v16, %v5002_v61  ;;  %13204 = vst [vmem:[#allocation97_spill] sm:$0xff] %v11582_v30  ;;  %v11598_v16 = vcombine.low %v5006_v44, %v5010_v41 }
 0x4e6   : > { %5826 = vmatprep.subr.bf16.mxu0 %v11537_v33  ;;  %5866 = vmatpush1.bf16.msra.mxu1 %v11546_v53  ;;  %v11569_v33 = vcombine.high %v4991_v19, %v4995_v15  ;;  %v5003_v53 = vld [vmem:[%s10281_s28 + $0x138] sm:$0xff]  ;;  %v5014_v19 = vld [vmem:[%s10281_s28 + $0x190] sm:$0xff] }
 0x4e7   : > { %5867 = vmatprep.subr.bf16.mxu1 %v11553_v0  ;;  %13202 = vst [vmem:[#allocation95_spill] sm:$0xff] %v11572_v31  ;;  %v5007_v0 = vld [vmem:[%s10281_s28 + $0x158] sm:$0xff]  ;;  %v5018_v15 = vld [vmem:[%s10281_s28 + $0x1b0] sm:$0xff]  ;;  %v11595_v61 = vcombine.low %v4999_v17, %v5003_v53  ;;  %13208 = vst [vmem:[#allocation101_spill] sm:$0xff] %v11598_v16 }
 0x4e8   : > { %13201 = vst [vmem:[#allocation94_spill] sm:$0xff] %v11569_v33 }
 0x4e9   : > { %5827 = vmatpush1.bf16.msra.mxu0 %v11550_v63  ;;  %v11588_v63 = vcombine.high %v5006_v44, %v5010_v41  ;;  %13207 = vst [vmem:[#allocation100_spill] sm:$0xff] %v11595_v61  ;;  %v11614_v41 = vcombine.low %v5014_v19, %v5018_v15 }
 0x4ea   : > { %5828 = vmatprep.subr.bf16.mxu0 %v11556_v45  ;;  %5868 = vmatpush1.bf16.msra.mxu1 %v11563_v4  ;;  %v11585_v45 = vcombine.high %v4999_v17, %v5003_v53  ;;  %v5011_v4 = vld [vmem:[%s10281_s28 + $0x178] sm:$0xff]  ;;  %v5022_v17 = vld [vmem:[%s10281_s28 + $0x1d0] sm:$0xff] }
 0x4eb   : > { %5869 = vmatprep.subr.bf16.mxu1 %v11569_v33  ;;  %13206 = vst [vmem:[#allocation99_spill] sm:$0xff] %v11588_v63  ;;  %v5015_v33 = vld [vmem:[%s10281_s28 + $0x198] sm:$0xff]  ;;  %v5026_v53 = vld [vmem:[%s10281_s28 + $0x1f0] sm:$0xff]  ;;  %v11611_v44 = vcombine.low %v5007_v0, %v5011_v4  ;;  %13212 = vst [vmem:[#allocation105_spill] sm:$0xff] %v11614_v41 }
 0x4ec   : > { %13205 = vst [vmem:[#allocation98_spill] sm:$0xff] %v11585_v45 }
 0x4ed   : > { %5829 = vmatpush1.bf16.msra.mxu0 %v11566_v35  ;;  %v11604_v35 = vcombine.high %v5014_v19, %v5018_v15  ;;  %13211 = vst [vmem:[#allocation104_spill] sm:$0xff] %v11611_v44  ;;  %v11630_v15 = vcombine.low %v5022_v17, %v5026_v53 }
 0x4ee   : > { %5830 = vmatprep.subr.bf16.mxu0 %v11572_v31  ;;  %5870 = vmatpush1.bf16.msra.mxu1 %v11579_v1  ;;  %v11601_v31 = vcombine.high %v5007_v0, %v5011_v4  ;;  %v5019_v1 = vld [vmem:[%s10281_s28 + $0x1b8] sm:$0xff]  ;;  %v5030_v0 = vld [vmem:[%s10281_s28 + $0x210] sm:$0xff] }
 0x4ef   : > { %5871 = vmatprep.subr.bf16.mxu1 %v11585_v45  ;;  %13210 = vst [vmem:[#allocation103_spill] sm:$0xff] %v11604_v35  ;;  %v5023_v45 = vld [vmem:[%s10281_s28 + $0x1d8] sm:$0xff]  ;;  %v5034_v4 = vld [vmem:[%s10281_s28 + $0x230] sm:$0xff]  ;;  %v11627_v19 = vcombine.low %v5015_v33, %v5019_v1  ;;  %13216 = vst [vmem:[#allocation109_spill] sm:$0xff] %v11630_v15 }
 0x4f0   : > { %13209 = vst [vmem:[#allocation102_spill] sm:$0xff] %v11601_v31 }
 0x4f1   : > { %5831 = vmatpush1.bf16.msra.mxu0 %v11582_v30  ;;  %v11620_v30 = vcombine.high %v5022_v17, %v5026_v53  ;;  %13215 = vst [vmem:[#allocation108_spill] sm:$0xff] %v11627_v19  ;;  %v11646_v53 = vcombine.low %v5030_v0, %v5034_v4 }
 0x4f2   : > { %5832 = vmatprep.subr.bf16.mxu0 %v11588_v63  ;;  %5872 = vmatpush1.bf16.msra.mxu1 %v11595_v61  ;;  %v11617_v63 = vcombine.high %v5015_v33, %v5019_v1  ;;  %v5027_v61 = vld [vmem:[%s10281_s28 + $0x1f8] sm:$0xff]  ;;  %v5038_v33 = vld [vmem:[%s10281_s28 + $0x250] sm:$0xff] }
 0x4f3   : > { %5873 = vmatprep.subr.bf16.mxu1 %v11601_v31  ;;  %13214 = vst [vmem:[#allocation107_spill] sm:$0xff] %v11620_v30  ;;  %v5031_v31 = vld [vmem:[%s10281_s28 + $0x218] sm:$0xff]  ;;  %v5042_v1 = vld [vmem:[%s10281_s28 + $0x270] sm:$0xff]  ;;  %v11643_v17 = vcombine.low %v5023_v45, %v5027_v61  ;;  %13220 = vst [vmem:[#allocation113_spill] sm:$0xff] %v11646_v53 }
 0x4f4   : > { %13213 = vst [vmem:[#allocation106_spill] sm:$0xff] %v11617_v63 }
 0x4f5   : > { %5833 = vmatpush1.bf16.msra.mxu0 %v11598_v16  ;;  %v11636_v16 = vcombine.high %v5030_v0, %v5034_v4  ;;  %13219 = vst [vmem:[#allocation112_spill] sm:$0xff] %v11643_v17  ;;  %v11662_v4 = vcombine.low %v5038_v33, %v5042_v1 }
 0x4f6   : > { %5834 = vmatprep.subr.bf16.mxu0 %v11604_v35  ;;  %5874 = vmatpush1.bf16.msra.mxu1 %v11611_v44  ;;  %v11633_v35 = vcombine.high %v5023_v45, %v5027_v61  ;;  %v5035_v44 = vld [vmem:[%s10281_s28 + $0x238] sm:$0xff]  ;;  %v5046_v45 = vld [vmem:[%s10281_s28 + $0x290] sm:$0xff] }
 0x4f7   : > { %5875 = vmatprep.subr.bf16.mxu1 %v11617_v63  ;;  %13218 = vst [vmem:[#allocation111_spill] sm:$0xff] %v11636_v16  ;;  %v5039_v63 = vld [vmem:[%s10281_s28 + $0x258] sm:$0xff]  ;;  %v5050_v61 = vld [vmem:[%s10281_s28 + $0x2b0] sm:$0xff]  ;;  %v11659_v0 = vcombine.low %v5031_v31, %v5035_v44  ;;  %13224 = vst [vmem:[#allocation117_spill] sm:$0xff] %v11662_v4 }
 0x4f8   : > { %13217 = vst [vmem:[#allocation110_spill] sm:$0xff] %v11633_v35 }
 0x4f9   : > { %5835 = vmatpush1.bf16.msra.mxu0 %v11614_v41  ;;  %v11652_v41 = vcombine.high %v5038_v33, %v5042_v1  ;;  %13223 = vst [vmem:[#allocation116_spill] sm:$0xff] %v11659_v0  ;;  %v11678_v1 = vcombine.low %v5046_v45, %v5050_v61 }
 0x4fa   : > { %5836 = vmatprep.subr.bf16.mxu0 %v11620_v30  ;;  %5876 = vmatpush1.bf16.msra.mxu1 %v11627_v19  ;;  %v11649_v30 = vcombine.high %v5031_v31, %v5035_v44  ;;  %v5043_v19 = vld [vmem:[%s10281_s28 + $0x278] sm:$0xff]  ;;  %v5054_v31 = vld [vmem:[%s10281_s28 + $0x2d0] sm:$0xff] }
 0x4fb   : > { %5877 = vmatprep.subr.bf16.mxu1 %v11633_v35  ;;  %13222 = vst [vmem:[#allocation115_spill] sm:$0xff] %v11652_v41  ;;  %v5047_v35 = vld [vmem:[%s10281_s28 + $0x298] sm:$0xff]  ;;  %v5058_v44 = vld [vmem:[%s10281_s28 + $0x2f0] sm:$0xff]  ;;  %v11675_v33 = vcombine.low %v5039_v63, %v5043_v19  ;;  %13228 = vst [vmem:[#allocation121_spill] sm:$0xff] %v11678_v1 }
 0x4fc   : > { %13221 = vst [vmem:[#allocation114_spill] sm:$0xff] %v11649_v30 }
 0x4fd   : > { %5837 = vmatpush1.bf16.msra.mxu0 %v11630_v15  ;;  %v11668_v15 = vcombine.high %v5046_v45, %v5050_v61  ;;  %13227 = vst [vmem:[#allocation120_spill] sm:$0xff] %v11675_v33  ;;  %v11694_v61 = vcombine.low %v5054_v31, %v5058_v44 }
 0x4fe   : > { %5838 = vmatprep.subr.bf16.mxu0 %v11636_v16  ;;  %5878 = vmatpush1.bf16.msra.mxu1 %v11643_v17  ;;  %v11665_v16 = vcombine.high %v5039_v63, %v5043_v19  ;;  %v5051_v17 = vld [vmem:[%s10281_s28 + $0x2b8] sm:$0xff]  ;;  %v5062_v63 = vld [vmem:[%s10281_s28 + $0x310] sm:$0xff] }
 0x4ff   : > { %5879 = vmatprep.subr.bf16.mxu1 %v11649_v30  ;;  %13226 = vst [vmem:[#allocation119_spill] sm:$0xff] %v11668_v15  ;;  %v5055_v30 = vld [vmem:[%s10281_s28 + $0x2d8] sm:$0xff]  ;;  %v5066_v19 = vld [vmem:[%s10281_s28 + $0x330] sm:$0xff]  ;;  %v11691_v45 = vcombine.low %v5047_v35, %v5051_v17  ;;  %13232 = vst [vmem:[#allocation125_spill] sm:$0xff] %v11694_v61 }
 0x500   : > { %13225 = vst [vmem:[#allocation118_spill] sm:$0xff] %v11665_v16 }
 0x501   : > { %5839 = vmatpush1.bf16.msra.mxu0 %v11646_v53  ;;  %v11684_v53 = vcombine.high %v5054_v31, %v5058_v44  ;;  %13231 = vst [vmem:[#allocation124_spill] sm:$0xff] %v11691_v45  ;;  %v11710_v44 = vcombine.low %v5062_v63, %v5066_v19 }
 0x502   : > { %5840 = vmatprep.subr.bf16.mxu0 %v11652_v41  ;;  %5880 = vmatpush1.bf16.msra.mxu1 %v11659_v0  ;;  %v11681_v41 = vcombine.high %v5047_v35, %v5051_v17  ;;  %v5059_v0 = vld [vmem:[%s10281_s28 + $0x2f8] sm:$0xff]  ;;  %v5070_v35 = vld [vmem:[%s10281_s28 + $0x350] sm:$0xff] }
 0x503   : > { %5881 = vmatprep.subr.bf16.mxu1 %v11665_v16  ;;  %13230 = vst [vmem:[#allocation123_spill] sm:$0xff] %v11684_v53  ;;  %v5063_v16 = vld [vmem:[%s10281_s28 + $0x318] sm:$0xff]  ;;  %v5074_v17 = vld [vmem:[%s10281_s28 + $0x370] sm:$0xff]  ;;  %v11707_v31 = vcombine.low %v5055_v30, %v5059_v0  ;;  %13236 = vst [vmem:[#allocation129_spill] sm:$0xff] %v11710_v44 }
 0x504   : > { %13229 = vst [vmem:[#allocation122_spill] sm:$0xff] %v11681_v41 }
 0x505   : > { %5841 = vmatpush1.bf16.msra.mxu0 %v11662_v4  ;;  %v11700_v4 = vcombine.high %v5062_v63, %v5066_v19  ;;  %13235 = vst [vmem:[#allocation128_spill] sm:$0xff] %v11707_v31  ;;  %v11726_v19 = vcombine.low %v5070_v35, %v5074_v17 }
 0x506   : > { %5842 = vmatprep.subr.bf16.mxu0 %v11668_v15  ;;  %5882 = vmatpush1.bf16.msra.mxu1 %v11675_v33  ;;  %v11697_v15 = vcombine.high %v5055_v30, %v5059_v0  ;;  %v5067_v33 = vld [vmem:[%s10281_s28 + $0x338] sm:$0xff]  ;;  %v5078_v30 = vld [vmem:[%s10281_s28 + $0x390] sm:$0xff] }
 0x507   : > { %5883 = vmatprep.subr.bf16.mxu1 %v11681_v41  ;;  %13234 = vst [vmem:[#allocation127_spill] sm:$0xff] %v11700_v4  ;;  %v5071_v41 = vld [vmem:[%s10281_s28 + $0x358] sm:$0xff]  ;;  %v5082_v0 = vld [vmem:[%s10281_s28 + $0x3b0] sm:$0xff]  ;;  %v11723_v63 = vcombine.low %v5063_v16, %v5067_v33  ;;  %13240 = vst [vmem:[#allocation133_spill] sm:$0xff] %v11726_v19 }
 0x508   : > { %13233 = vst [vmem:[#allocation126_spill] sm:$0xff] %v11697_v15 }
 0x509   : > { %5843 = vmatpush1.bf16.msra.mxu0 %v11678_v1  ;;  %v11716_v1 = vcombine.high %v5070_v35, %v5074_v17  ;;  %13239 = vst [vmem:[#allocation132_spill] sm:$0xff] %v11723_v63 }
 0x50a   : > { %5844 = vmatprep.subr.bf16.mxu0 %v11684_v53  ;;  %5884 = vmatpush1.bf16.msra.mxu1 %v11691_v45  ;;  %v11713_v53 = vcombine.high %v5063_v16, %v5067_v33  ;;  %v5075_v45 = vld [vmem:[%s10281_s28 + $0x378] sm:$0xff]  ;;  %v11742_v33 = vcombine.low %v5078_v30, %v5082_v0 }
 0x50b   : > { %5885 = vmatprep.subr.bf16.mxu1 %v11697_v15  ;;  %13238 = vst [vmem:[#allocation131_spill] sm:$0xff] %v11716_v1  ;;  %v5079_v15 = vld [vmem:[%s10281_s28 + $0x398] sm:$0xff]  ;;  %v11739_v16 = vcombine.low %v5071_v41, %v5075_v45 }
 0x50c   : > { %13237 = vst [vmem:[#allocation130_spill] sm:$0xff] %v11713_v53  ;;  %13244 = vst [vmem:[#allocation137_spill] sm:$0xff] %v11742_v33  ;;  %v11745_v35 = vcombine.high %v5079_v15, %v5083_v18 }
 0x50d   : > { %5845 = vmatpush1.bf16.msra.mxu0 %v11694_v61  ;;  %v11732_v61 = vcombine.high %v5078_v30, %v5082_v0  ;;  %13243 = vst [vmem:[#allocation136_spill] sm:$0xff] %v11739_v16  ;;  %v13258_v0 = vld [vmem:[#allocation67_spill] sm:$0xff] }
 0x50e   : > { %5846 = vmatprep.subr.bf16.mxu0 %v11700_v4  ;;  %5886 = vmatpush1.bf16.msra.mxu1 %v11707_v31  ;;  %v11729_v4 = vcombine.high %v5071_v41, %v5075_v45  ;;  %v5090_v31 = vld [vmem:[%s10281_s28 + $0x3f0] sm:$0xff]  ;;  %13245 = vst [vmem:[#allocation138_spill] sm:$0xff] %v11745_v35 }
 0x50f   : > { %5887 = vmatprep.subr.bf16.mxu1 %v11713_v53  ;;  %13242 = vst [vmem:[#allocation135_spill] sm:$0xff] %v11732_v61  ;;  %v11748_v17 = vcombine.high %v5086_v39, %v5090_v31  ;;  %v11753_v53 = vcombine.low %v5079_v15, %v5083_v18  ;;  %v11756_v41 = vcombine.low %v5086_v39, %v5090_v31  ;;  %v13251_v39 = vld [vmem:[#allocation60_spill] sm:$0xff]  ;;  %v13253_v18 = vld [vmem:[#allocation61_spill] sm:$0xff]  ;;  %v13254_v15 = vld [vmem:[#allocation63_spill] sm:$0xff] }
 0x510   : > { %13241 = vst [vmem:[#allocation134_spill] sm:$0xff] %v11729_v4  ;;  %v13256_v31 = vld [vmem:[#allocation66_spill] sm:$0xff] }
 0x511   : > { %5847 = vmatpush1.bf16.msra.mxu0 %v11710_v44  ;;  %13246 = vst [vmem:[#allocation139_spill] sm:$0xff] %v11748_v17  ;;  %v5091_v44 = vld [vmem:[%s10281_s28 + $0x3f8] sm:$0xff]  ;;  %13247 = vst [vmem:[#allocation140_spill] sm:$0xff] %v11753_v53 }
 0x512   : > { %5848 = vmatprep.subr.bf16.mxu0 %v11716_v1  ;;  %5888 = vmatpush1.bf16.msra.mxu1 %v11723_v63  ;;  %v5087_v1 = vld [vmem:[%s10281_s28 + $0x3d8] sm:$0xff]  ;;  %13248 = vst [vmem:[#allocation141_spill] sm:$0xff] %v11756_v41 }
 0x513   : > { %5889 = vmatprep.subr.bf16.mxu1 %v11729_v4  ;;  %v11759_v45 = vcombine.high %v5087_v1, %v5091_v44  ;;  %v11763_v30 = vcombine.low %v5087_v1, %v5091_v44  ;;  %v13255_v1 = vld [vmem:[#allocation64_spill] sm:$0xff]  ;;  %v13257_v44 = vld [vmem:[#allocation65_spill] sm:$0xff] }
 0x515   : > { %5849 = vmatpush1.bf16.msra.mxu0 %v11726_v19  ;;  %13249 = vst [vmem:[#allocation142_spill] sm:$0xff] %v11759_v45  ;;  %13250 = vst [vmem:[#allocation143_spill] sm:$0xff] %v11763_v30 }
 0x516   : > { %5850 = vmatprep.subr.bf16.mxu0 %v11732_v61  ;;  %5890 = vmatpush1.bf16.msra.mxu1 %v11739_v16 }
 0x517   : > { %5891 = vmatprep.subr.bf16.mxu1 %v11745_v35 }
 0x519   : > { %5851 = vmatpush1.bf16.msra.mxu0 %v11742_v33 }
 0x51a   : > { %5852 = vmatprep.subr.bf16.mxu0 %v11748_v17  ;;  %5892 = vmatpush1.bf16.msra.mxu1 %v11753_v53 }
 0x51b   : > { %5893 = vmatprep.subr.bf16.mxu1 %v11759_v45 }
 0x51d   : > { %5853 = vmatpush1.bf16.msra.mxu0 %v11756_v41 }
 0x51e   : > { %5988 = vmatprep.subr.bf16.mxu0 %v11253_v43  ;;  %5894 = vmatpush1.bf16.msra.mxu1 %v11763_v30 }
 0x51f   : > { %6029 = vmatprep.subr.bf16.mxu1 %v11270_v50 }
 0x520   : > { %5855 = vmatmul.mubr.bf16.vlgmr.msra.gmra.mrb[4].mxu0 %v13190_v23 }
 0x521   : > { %5989 = vmatpush1.bf16.msra.mxu0 %v11255_v36  ;;  %5896 = vmatmul.mubr.bf16.vlgmr.msra.gmra.mrb[4].mxu1 %v13190_v23  ;;  %v13252_v23 = vld [vmem:[#allocation62_spill] sm:$0xff] }
 0x522   : > { %5990 = vmatprep.subr.bf16.mxu0 %v11260_v59  ;;  %6030 = vmatpush1.bf16.msra.mxu1 %v11272_v52 }
 0x523   : > { %6031 = vmatprep.subr.bf16.mxu1 %v11282_v62 }
 0x525   : > { %5991 = vmatpush1.bf16.msra.mxu0 %v11268_v26 }
 0x526   : > { %5992 = vmatprep.subr.bf16.mxu0 %v11276_v9  ;;  %6032 = vmatpush1.bf16.msra.mxu1 %v11287_v56 }
 0x527   : > { %6033 = vmatprep.subr.bf16.mxu1 %v11293_v48 }
 0x529   : > { %5993 = vmatpush1.bf16.msra.mxu0 %v11290_v60 }
 0x52a   : > { %5994 = vmatprep.subr.bf16.mxu0 %v11296_v2  ;;  %6034 = vmatpush1.bf16.msra.mxu1 %v11303_v10 }
 0x52b   : > { %6035 = vmatprep.subr.bf16.mxu1 %v11309_v12 }
 0x52d   : > { %5995 = vmatpush1.bf16.msra.mxu0 %v11306_v34 }
 0x52e   : > { %5996 = vmatprep.subr.bf16.mxu0 %v11312_v55  ;;  %6036 = vmatpush1.bf16.msra.mxu1 %v11319_v51 }
 0x52f   : > { %6037 = vmatprep.subr.bf16.mxu1 %v11325_v20 }
 0x531   : > { %5997 = vmatpush1.bf16.msra.mxu0 %v11322_v40 }
 0x532   : > { %5998 = vmatprep.subr.bf16.mxu0 %v11328_v8  ;;  %6038 = vmatpush1.bf16.msra.mxu1 %v11335_v37 }
 0x533   : > { %6039 = vmatprep.subr.bf16.mxu1 %v11341_v13 }
 0x535   : > { %5999 = vmatpush1.bf16.msra.mxu0 %v11338_v27 }
 0x536   : > { %6000 = vmatprep.subr.bf16.mxu0 %v11344_v21  ;;  %6040 = vmatpush1.bf16.msra.mxu1 %v11351_v29 }
 0x537   : > { %6041 = vmatprep.subr.bf16.mxu1 %v11357_v28 }
 0x539   : > { %6001 = vmatpush1.bf16.msra.mxu0 %v11354_v32 }
 0x53a   : > { %6002 = vmatprep.subr.bf16.mxu0 %v11360_v47  ;;  %6042 = vmatpush1.bf16.msra.mxu1 %v11367_v42 }
 0x53b   : > { %6043 = vmatprep.subr.bf16.mxu1 %v11373_v3 }
 0x53d   : > { %6003 = vmatpush1.bf16.msra.mxu0 %v11370_v22 }
 0x53e   : > { %6004 = vmatprep.subr.bf16.mxu0 %v11376_v38  ;;  %6044 = vmatpush1.bf16.msra.mxu1 %v11383_v49  ;;  %v5096_v38 = vld [vmem:[#allocation3 + $0x20] sm:$0xff]  ;;  %v5097_v49 = vld [vmem:[#allocation3 + $0x28] sm:$0xff] }
 0x53f   : > { %6045 = vmatprep.subr.bf16.mxu1 %v11389_v57 }
 0x541   : > { %6005 = vmatpush1.bf16.msra.mxu0 %v11386_v54 }
 0x542   : > { %6006 = vmatprep.subr.bf16.mxu0 %v11392_v58  ;;  %6046 = vmatpush1.bf16.msra.mxu1 %v11399_v5  ;;  %v5094_v58 = vld [vmem:[#allocation3 + $0x10] sm:$0xff]  ;;  %v5095_v5 = vld [vmem:[#allocation3 + $0x18] sm:$0xff] }
 0x543   : > { %6047 = vmatprep.subr.bf16.mxu1 %v11405_v7  ;;  %v5092_v7 = vld [vmem:[#allocation3] sm:$0xff] }
 0x545   : > { %6007 = vmatpush1.bf16.msra.mxu0 %v11402_v6 }
 0x546   : > { %6008 = vmatprep.subr.bf16.mxu0 %v11408_v14  ;;  %6048 = vmatpush1.bf16.msra.mxu1 %v11415_v24 }
 0x547   : > { %6049 = vmatprep.subr.bf16.mxu1 %v11421_v46  ;;  %v13259_v46 = vld [vmem:[#allocation68_spill] sm:$0xff] }
 0x549   : > { %6009 = vmatpush1.bf16.msra.mxu0 %v11418_v25  ;;  %v13260_v25 = vld [vmem:[#allocation70_spill] sm:$0xff] }
 0x54a   : > { %6010 = vmatprep.subr.bf16.mxu0 %v11424_v11  ;;  %6050 = vmatpush1.bf16.msra.mxu1 %v13251_v39  ;;  %v13261_v11 = vld [vmem:[#allocation69_spill] sm:$0xff]  ;;  %v13262_v39 = vld [vmem:[#allocation71_spill] sm:$0xff] }
 0x54b   : > { %6051 = vmatprep.subr.bf16.mxu1 %v13252_v23  ;;  %v13263_v23 = vld [vmem:[#allocation72_spill] sm:$0xff] }
 0x54d   : > { %6011 = vmatpush1.bf16.msra.mxu0 %v13253_v18  ;;  %v13264_v18 = vld [vmem:[#allocation74_spill] sm:$0xff] }
 0x54e   : > { %6012 = vmatprep.subr.bf16.mxu0 %v13254_v15  ;;  %6052 = vmatpush1.bf16.msra.mxu1 %v13255_v1  ;;  %v13265_v15 = vld [vmem:[#allocation73_spill] sm:$0xff]  ;;  %v13266_v1 = vld [vmem:[#allocation75_spill] sm:$0xff] }
 0x54f   : > { %6053 = vmatprep.subr.bf16.mxu1 %v13256_v31  ;;  %v13267_v31 = vld [vmem:[#allocation76_spill] sm:$0xff] }
 0x551   : > { %6013 = vmatpush1.bf16.msra.mxu0 %v13257_v44  ;;  %v13268_v44 = vld [vmem:[#allocation78_spill] sm:$0xff] }
 0x552   : > { %6014 = vmatprep.subr.bf16.mxu0 %v13258_v0  ;;  %6054 = vmatpush1.bf16.msra.mxu1 %v13259_v46  ;;  %v13269_v0 = vld [vmem:[#allocation77_spill] sm:$0xff]  ;;  %v13270_v46 = vld [vmem:[#allocation79_spill] sm:$0xff] }
 0x553   : > { %6055 = vmatprep.subr.bf16.mxu1 %v13260_v25  ;;  %v13271_v25 = vld [vmem:[#allocation80_spill] sm:$0xff] }
 0x555   : > { %6015 = vmatpush1.bf16.msra.mxu0 %v13261_v11  ;;  %v13272_v11 = vld [vmem:[#allocation82_spill] sm:$0xff] }
 0x556   : > { %6016 = vmatprep.subr.bf16.mxu0 %v13262_v39  ;;  %6056 = vmatpush1.bf16.msra.mxu1 %v13263_v23 }
 0x557   : > { %6057 = vmatprep.subr.bf16.mxu1 %v13264_v18 }
 0x559   : > { %6017 = vmatpush1.bf16.msra.mxu0 %v13265_v15 }
 0x55a   : > { %6018 = vmatprep.subr.bf16.mxu0 %v13266_v1  ;;  %6058 = vmatpush1.bf16.msra.mxu1 %v13267_v31  ;;  %v5093_v31 = vld [vmem:[#allocation3 + $0x8] sm:$0xff] }
 0x55b   : > { %6059 = vmatprep.subr.bf16.mxu1 %v13268_v44 }
 0x55d   : > { %6019 = vmatpush1.bf16.msra.mxu0 %v13269_v0 }
 0x55e   : > { %6070 = vmatprep.subr.bf16.mxu0 %v13270_v46  ;;  %6060 = vmatpush1.bf16.msra.mxu1 %v13271_v25 }
 0x55f   : > { %6111 = vmatprep.subr.bf16.mxu1 %v13272_v11 }
 0x5b3   : > { %v5774_v39 = vpop.f32.mrb[0].mxu0  ;;  %v5815_v24 = vpop.f32.mrb[0].mxu1 }
 0x5b4   : > { %v5776_v23 = vpop.f32.mrb[1].mxu0  ;;  %v5817_v15 = vpop.f32.mrb[1].mxu1  ;;  %v5904_v44 = vadd.f32 %v5774_v39, %v5092_v7  ;;  %v5906_v54 = vadd.f32 %v5815_v24, %v5094_v58  ;;  %v5098_v24 = vld [vmem:[#allocation3 + $0x30] sm:$0xff] }
 0x5b5   : > { %v5778_v14 = vpop.f32.mrb[2].mxu0  ;;  %v5819_v6 = vpop.f32.mrb[2].mxu1  ;;  %v5905_v0 = vadd.f32 %v5776_v23, %v5093_v31  ;;  %v5907_v46 = vadd.f32 %v5817_v15, %v5095_v5 }
 0x5b6   : > { %v5779_v18 = vpop.f32.mrb[3].mxu0  ;;  %v5820_v1 = vpop.f32.mrb[3].mxu1  ;;  %v8946_v57 = vmul.f32 -1.442695, %v5904_v44  ;;  %v8948_v11 = vmul.f32 -1.442695, %v5906_v54 }
 0x5b7   : > { %v8947_v25 = vmul.f32 -1.442695, %v5905_v0  ;;  %v8949_v22 = vmul.f32 -1.442695, %v5907_v46  ;;  %v5099_v54 = vld [vmem:[#allocation3 + $0x38] sm:$0xff] }
 0x5b8   : > { %9500 = vpow2.f32 %v8946_v57 }
 0x5b9   : > { %9502 = vpow2.f32 %v8947_v25 }
 0x5ba   : > { %9504 = vpow2.f32 %v8948_v11 }
 0x5bb   : > { %9506 = vpow2.f32 %v8949_v22 }
 0x5f3   : > { %v5856_v14 = vpop.f32.mrb[4].mxu0 }
 0x5f4   : > { %v5908_v18 = vadd.f32 %v5856_v14, %v5096_v38  ;;  %v5858_v3 = vpop.f32.mrb[5].mxu0  ;;  %v5897_v39 = vpop.f32.mrb[4].mxu1 }
 0x5f5   : > { %v5909_v6 = vadd.f32 %v5858_v3, %v5097_v49  ;;  %v5860_v1 = vpop.f32.mrb[6].mxu0  ;;  %v5899_v5 = vpop.f32.mrb[5].mxu1  ;;  %v5910_v15 = vadd.f32 %v5897_v39, %v5098_v24 }
 0x5f6   : > { %v8950_v47 = vmul.f32 -1.442695, %v5908_v18  ;;  %v5861_v7 = vpop.f32.mrb[7].mxu0  ;;  %v5901_v23 = vpop.f32.mrb[6].mxu1  ;;  %v5911_v57 = vadd.f32 %v5899_v5, %v5099_v54 }
 0x5f7   : > { %v8951_v58 = vmul.f32 -1.442695, %v5909_v6  ;;  %v5902_v46 = vpop.f32.mrb[7].mxu1  ;;  %v9501_v38 = vpop.eup %9500  ;;  %v8952_v25 = vmul.f32 -1.442695, %v5910_v15 }
 0x5f8   : > { %9508 = vpow2.f32 %v8950_v47  ;;  %v9503_v31 = vpop.eup %9502  ;;  %v8953_v49 = vmul.f32 -1.442695, %v5911_v57  ;;  %v5936_v6 = vadd.f32 1.0, %v9501_v38 }
 0x5f9   : > { %9510 = vpow2.f32 %v8951_v58  ;;  %v9505_v3 = vpop.eup %9504  ;;  %v5937_v1 = vadd.f32 1.0, %v9503_v31 }
 0x5fa   : > { %v9507_v11 = vpop.eup %9506  ;;  %v5938_v14 = vadd.f32 1.0, %v9505_v3  ;;  %9512 = vpow2.f32 %v8952_v25 }
 0x5fb   : > { %v5939_v18 = vadd.f32 1.0, %v9507_v11  ;;  %9514 = vpow2.f32 %v8953_v49 }
 0x602   : > { %v9509_v44 = vpop.eup %9508 }
 0x603   : > { %v9511_v0 = vpop.eup %9510  ;;  %v5940_v22 = vadd.f32 1.0, %v9509_v44 }
 0x604   : > { %v5941_v47 = vadd.f32 1.0, %v9511_v0  ;;  %v9513_v7 = vpop.eup %9512 }
 0x605   : > { %9516 = vrcp.f32 %v5940_v22  ;;  %v9515_v39 = vpop.eup %9514  ;;  %v5942_v57 = vadd.f32 1.0, %v9513_v7 }
 0x606   : > { %9518 = vrcp.f32 %v5941_v47  ;;  %v5943_v38 = vadd.f32 1.0, %v9515_v39 }
 0x607   : > { %9520 = vrcp.f32 %v5938_v14 }
 0x608   : > { %9522 = vrcp.f32 %v5939_v18 }
 0x609   : > { %9524 = vrcp.f32 %v5936_v6 }
 0x60a   : > { %9526 = vrcp.f32 %v5937_v1 }
 0x60b   : > { %9528 = vrcp.f32 %v5942_v57  ;;  %v13278_v57 = vld [vmem:[#allocation88_spill] sm:$0xff] }
 0x60c   : > { %9530 = vrcp.f32 %v5943_v38  ;;  %v13281_v38 = vld [vmem:[#allocation89_spill] sm:$0xff] }
 0x60f   : > { %v9517_v58 = vpop.eup %9516 }
 0x610   : > { %v9519_v5 = vpop.eup %9518  ;;  %v5960_v24 = vmul.f32 2.0, %v9517_v58 }
 0x611   : > { %v9521_v23 = vpop.eup %9520  ;;  %v5961_v54 = vmul.f32 2.0, %v9519_v5 }
 0x612   : > { %v9523_v46 = vpop.eup %9522  ;;  %v8954_v15 = vadd.f32 -1.0, %v5960_v24  ;;  %v5964_v31 = vmul.f32 0.0, %v9521_v23  ;;  %v13273_v24 = vld [vmem:[#allocation81_spill] sm:$0xff]  ;;  %v13274_v23 = vld [vmem:[#allocation84_spill] sm:$0xff] }
 0x613   : > { %v9525_v25 = vpop.eup %9524  ;;  %v8955_v3 = vadd.f32 -1.0, %v5961_v54  ;;  %v5965_v44 = vmul.f32 0.0, %v9523_v46  ;;  %v13275_v54 = vld [vmem:[#allocation83_spill] sm:$0xff]  ;;  %v13276_v46 = vld [vmem:[#allocation86_spill] sm:$0xff] }
 0x614   : > { %v9527_v49 = vpop.eup %9526  ;;  %v5966_v11 = vmul.f32 %v9525_v25, %v8954_v15  ;;  %v13277_v15 = vld [vmem:[#allocation85_spill] sm:$0xff]  ;;  %v13279_v25 = vld [vmem:[#allocation87_spill] sm:$0xff] }
 0x615   : > { %v5967_v0 = vmul.f32 %v9527_v49, %v8955_v3  ;;  %v9529_v18 = vpop.eup %9528  ;;  %v13280_v3 = vld [vmem:[#allocation90_spill] sm:$0xff]  ;;  %v13282_v49 = vld [vmem:[#allocation92_spill] sm:$0xff] }
 0x616   : > { %v11836_v14 = vadd.f32 %v5966_v11, %v5964_v31  ;;  %v9531_v47 = vpop.eup %9530  ;;  %v13283_v31 = vld [vmem:[#allocation91_spill] sm:$0xff]  ;;  %v13284_v11 = vld [vmem:[#allocation94_spill] sm:$0xff] }
 0x617   : > { %v11838_v22 = vadd.f32 %v5967_v0, %v5965_v44  ;;  %v13285_v44 = vld [vmem:[#allocation93_spill] sm:$0xff]  ;;  %v13286_v0 = vld [vmem:[#allocation96_spill] sm:$0xff] }
 0x618   : > { %9532 = vtanh.f32 %v11836_v14 }
 0x619   : > { %9534 = vtanh.f32 %v11838_v22 }
 0x622   : > { %v9533_v6 = vpop.eup %9532 }
 0x623   : > { %v9535_v1 = vpop.eup %9534  ;;  %v5972_v7 = vmul.f32 %v9533_v6, %v9529_v18  ;;  %v13287_v18 = vld [vmem:[#allocation95_spill] sm:$0xff]  ;;  %v13289_v6 = vld [vmem:[#allocation97_spill] sm:$0xff] }
 0x624   : > { %v5973_v39 = vmul.f32 %v9535_v1, %v9531_v47  ;;  %v13288_v47 = vld [vmem:[#allocation98_spill] sm:$0xff]  ;;  %v13290_v1 = vld [vmem:[#allocation100_spill] sm:$0xff] }
 0x625   : > { %5974 = vst [vmem:[#allocation2] sm:$0xff] %v5972_v7  ;;  %5976 = vst [vmem:[#allocation2 + $0xf0] sm:$0xff] %v5972_v7  ;;  %v11842_v5 = vpack.c.bf16 %v5972_v7, %v5972_v7  ;;  %v13291_v7 = vld [vmem:[#allocation99_spill] sm:$0xff] }
 0x626   : > { %5975 = vst [vmem:[#allocation2 + $0x8] sm:$0xff] %v5973_v39  ;;  %5977 = vst [vmem:[#allocation2 + $0xf8] sm:$0xff] %v5973_v39  ;;  %v5987_v58 = vpack.c.bf16 %v5973_v39, %v5973_v39  ;;  %v13292_v39 = vld [vmem:[#allocation102_spill] sm:$0xff] }
 0x628   : > { %6020 = vmatprep.mubr.bf16.mxu0 %v5987_v58  ;;  %6061 = vmatprep.mubr.bf16.mxu1 %v5987_v58 }
 0x629   : > { %6021 = vmatmul.mubr.bf16.vlgmr.msra.gmra.mrb[8].mxu0 %v11842_v5  ;;  %6062 = vmatmul.mubr.bf16.vlgmr.msra.gmra.mrb[8].mxu1 %v11842_v5 }
 0x62a   : > { %6071 = vmatpush1.bf16.msra.mxu0 %v13273_v24  ;;  %6112 = vmatpush1.bf16.msra.mxu1 %v13274_v23 }
 0x62b   : > { %6102 = vmatprep.mubr.bf16.mxu0 %v5987_v58  ;;  %6143 = vmatprep.mubr.bf16.mxu1 %v5987_v58  ;;  %v13293_v58 = vld [vmem:[#allocation101_spill] sm:$0xff] }
 0x62c   : > { %6072 = vmatprep.subr.bf16.mxu0 %v13275_v54  ;;  %6113 = vmatprep.subr.bf16.mxu1 %v13276_v46 }
 0x62e   : > { %6073 = vmatpush1.bf16.msra.mxu0 %v13277_v15  ;;  %6114 = vmatpush1.bf16.msra.mxu1 %v13278_v57 }
 0x62f   : > { %6074 = vmatprep.subr.bf16.mxu0 %v13279_v25  ;;  %6115 = vmatprep.subr.bf16.mxu1 %v13280_v3 }
 0x632   : > { %6075 = vmatpush1.bf16.msra.mxu0 %v13281_v38  ;;  %6116 = vmatpush1.bf16.msra.mxu1 %v13282_v49 }
 0x633   : > { %6076 = vmatprep.subr.bf16.mxu0 %v13283_v31  ;;  %6117 = vmatprep.subr.bf16.mxu1 %v13284_v11  ;;  %v13294_v31 = vld [vmem:[#allocation104_spill] sm:$0xff]  ;;  %v13295_v11 = vld [vmem:[#allocation103_spill] sm:$0xff] }
 0x636   : > { %6077 = vmatpush1.bf16.msra.mxu0 %v13285_v44  ;;  %6118 = vmatpush1.bf16.msra.mxu1 %v13286_v0  ;;  %v13296_v44 = vld [vmem:[#allocation106_spill] sm:$0xff]  ;;  %v13297_v0 = vld [vmem:[#allocation105_spill] sm:$0xff] }
 0x637   : > { %6078 = vmatprep.subr.bf16.mxu0 %v13287_v18  ;;  %6119 = vmatprep.subr.bf16.mxu1 %v13288_v47  ;;  %v13298_v18 = vld [vmem:[#allocation108_spill] sm:$0xff]  ;;  %v13299_v47 = vld [vmem:[#allocation107_spill] sm:$0xff] }
 0x63a   : > { %6079 = vmatpush1.bf16.msra.mxu0 %v13289_v6  ;;  %6120 = vmatpush1.bf16.msra.mxu1 %v13290_v1  ;;  %v13300_v6 = vld [vmem:[#allocation110_spill] sm:$0xff]  ;;  %v13301_v1 = vld [vmem:[#allocation109_spill] sm:$0xff] }
 0x63b   : > { %6080 = vmatprep.subr.bf16.mxu0 %v13291_v7  ;;  %6121 = vmatprep.subr.bf16.mxu1 %v13292_v39  ;;  %v13302_v7 = vld [vmem:[#allocation112_spill] sm:$0xff]  ;;  %v13303_v39 = vld [vmem:[#allocation111_spill] sm:$0xff] }
 0x63e   : > { %6081 = vmatpush1.bf16.msra.mxu0 %v13293_v58  ;;  %6122 = vmatpush1.bf16.msra.mxu1 %v13294_v31  ;;  %v13304_v58 = vld [vmem:[#allocation114_spill] sm:$0xff]  ;;  %v13305_v31 = vld [vmem:[#allocation113_spill] sm:$0xff] }
 0x63f   : > { %6082 = vmatprep.subr.bf16.mxu0 %v13295_v11  ;;  %6123 = vmatprep.subr.bf16.mxu1 %v13296_v44  ;;  %v13306_v11 = vld [vmem:[#allocation116_spill] sm:$0xff]  ;;  %v13307_v44 = vld [vmem:[#allocation115_spill] sm:$0xff] }
 0x642   : > { %6083 = vmatpush1.bf16.msra.mxu0 %v13297_v0  ;;  %6124 = vmatpush1.bf16.msra.mxu1 %v13298_v18  ;;  %v13308_v0 = vld [vmem:[#allocation118_spill] sm:$0xff]  ;;  %v13309_v18 = vld [vmem:[#allocation117_spill] sm:$0xff] }
 0x643   : > { %6084 = vmatprep.subr.bf16.mxu0 %v13299_v47  ;;  %6125 = vmatprep.subr.bf16.mxu1 %v13300_v6  ;;  %v13310_v47 = vld [vmem:[#allocation120_spill] sm:$0xff]  ;;  %v13311_v6 = vld [vmem:[#allocation119_spill] sm:$0xff] }
 0x646   : > { %6085 = vmatpush1.bf16.msra.mxu0 %v13301_v1  ;;  %6126 = vmatpush1.bf16.msra.mxu1 %v13302_v7  ;;  %v13312_v1 = vld [vmem:[#allocation122_spill] sm:$0xff]  ;;  %v13313_v7 = vld [vmem:[#allocation121_spill] sm:$0xff] }
 0x647   : > { %6086 = vmatprep.subr.bf16.mxu0 %v13303_v39  ;;  %6127 = vmatprep.subr.bf16.mxu1 %v13304_v58  ;;  %v13314_v39 = vld [vmem:[#allocation124_spill] sm:$0xff]  ;;  %v13315_v58 = vld [vmem:[#allocation123_spill] sm:$0xff] }
 0x64a   : > { %6087 = vmatpush1.bf16.msra.mxu0 %v13305_v31  ;;  %6128 = vmatpush1.bf16.msra.mxu1 %v13306_v11  ;;  %v13316_v31 = vld [vmem:[#allocation126_spill] sm:$0xff]  ;;  %v13317_v11 = vld [vmem:[#allocation125_spill] sm:$0xff] }
 0x64b   : > { %6088 = vmatprep.subr.bf16.mxu0 %v13307_v44  ;;  %6129 = vmatprep.subr.bf16.mxu1 %v13308_v0  ;;  %v13318_v44 = vld [vmem:[#allocation128_spill] sm:$0xff]  ;;  %v13319_v0 = vld [vmem:[#allocation127_spill] sm:$0xff] }
 0x64e   : > { %6089 = vmatpush1.bf16.msra.mxu0 %v13309_v18  ;;  %6130 = vmatpush1.bf16.msra.mxu1 %v13310_v47  ;;  %v13320_v18 = vld [vmem:[#allocation130_spill] sm:$0xff]  ;;  %v13321_v47 = vld [vmem:[#allocation129_spill] sm:$0xff] }
 0x64f   : > { %6090 = vmatprep.subr.bf16.mxu0 %v13311_v6  ;;  %6131 = vmatprep.subr.bf16.mxu1 %v13312_v1  ;;  %v13322_v1 = vld [vmem:[#allocation131_spill] sm:$0xff] }
 0x652   : > { %6091 = vmatpush1.bf16.msra.mxu0 %v13313_v7  ;;  %6132 = vmatpush1.bf16.msra.mxu1 %v13314_v39 }
 0x653   : > { %6092 = vmatprep.subr.bf16.mxu0 %v13315_v58  ;;  %6133 = vmatprep.subr.bf16.mxu1 %v13316_v31 }
 0x656   : > { %6093 = vmatpush1.bf16.msra.mxu0 %v13317_v11  ;;  %6134 = vmatpush1.bf16.msra.mxu1 %v13318_v44 }
 0x657   : > { %6094 = vmatprep.subr.bf16.mxu0 %v13319_v0  ;;  %6135 = vmatprep.subr.bf16.mxu1 %v13320_v18 }
 0x65a   : > { %6095 = vmatpush1.bf16.msra.mxu0 %v13321_v47  ;;  %6136 = vmatpush1.bf16.msra.mxu1 %v11723_v63 }
 0x65b   : > { %6096 = vmatprep.subr.bf16.mxu0 %v13322_v1  ;;  %6137 = vmatprep.subr.bf16.mxu1 %v11729_v4 }
 0x65e   : > { %6097 = vmatpush1.bf16.msra.mxu0 %v11726_v19  ;;  %6138 = vmatpush1.bf16.msra.mxu1 %v11739_v16 }
 0x65f   : > { %6098 = vmatprep.subr.bf16.mxu0 %v11732_v61  ;;  %6139 = vmatprep.subr.bf16.mxu1 %v11745_v35 }
 0x662   : > { %6099 = vmatpush1.bf16.msra.mxu0 %v11742_v33  ;;  %6140 = vmatpush1.bf16.msra.mxu1 %v11753_v53 }
 0x663   : > { %6100 = vmatprep.subr.bf16.mxu0 %v11748_v17  ;;  %6141 = vmatprep.subr.bf16.mxu1 %v11759_v45 }
 0x666   : > { %6101 = vmatpush1.bf16.msra.mxu0 %v11756_v41  ;;  %6142 = vmatpush1.bf16.msra.mxu1 %v11763_v30 }
 0x667   : > { %6236 = vmatprep.subr.bf16.mxu0 %v11253_v43  ;;  %6277 = vmatprep.subr.bf16.mxu1 %v11270_v50 }
 0x669   : > { %6103 = vmatmul.mubr.bf16.vlgmr.msra.gmra.mrb[12].mxu0 %v11842_v5  ;;  %6144 = vmatmul.mubr.bf16.vlgmr.msra.gmra.mrb[12].mxu1 %v11842_v5  ;;  %v13323_v5 = vld [vmem:[#allocation43_spill] sm:$0xff] }
 0x66a   : > { %6237 = vmatpush1.bf16.msra.mxu0 %v11255_v36  ;;  %6278 = vmatpush1.bf16.msra.mxu1 %v11272_v52 }
 0x66b   : > { %6238 = vmatprep.subr.bf16.mxu0 %v11260_v59  ;;  %6279 = vmatprep.subr.bf16.mxu1 %v11282_v62 }
 0x66e   : > { %6239 = vmatpush1.bf16.msra.mxu0 %v11268_v26  ;;  %6280 = vmatpush1.bf16.msra.mxu1 %v11287_v56 }
 0x66f   : > { %6240 = vmatprep.subr.bf16.mxu0 %v11276_v9  ;;  %6281 = vmatprep.subr.bf16.mxu1 %v11293_v48  ;;  %v5982_v48 = vld [vmem:[#allocation3 + $0x60] sm:$0xff] }
 0x672   : > { %6241 = vmatpush1.bf16.msra.mxu0 %v11290_v60  ;;  %6282 = vmatpush1.bf16.msra.mxu1 %v11303_v10  ;;  %v5979_v10 = vld [vmem:[#allocation3 + $0x48] sm:$0xff] }
 0x673   : > { %6242 = vmatprep.subr.bf16.mxu0 %v11296_v2  ;;  %6283 = vmatprep.subr.bf16.mxu1 %v11309_v12  ;;  %v5981_v2 = vld [vmem:[#allocation3 + $0x58] sm:$0xff] }
 0x676   : > { %6243 = vmatpush1.bf16.msra.mxu0 %v11306_v34  ;;  %6284 = vmatpush1.bf16.msra.mxu1 %v11319_v51  ;;  %v5978_v34 = vld [vmem:[#allocation3 + $0x40] sm:$0xff] }
 0x677   : > { %6244 = vmatprep.subr.bf16.mxu0 %v11312_v55  ;;  %6285 = vmatprep.subr.bf16.mxu1 %v11325_v20 }
 0x67a   : > { %6245 = vmatpush1.bf16.msra.mxu0 %v11322_v40  ;;  %6286 = vmatpush1.bf16.msra.mxu1 %v11335_v37  ;;  %v13324_v40 = vld [vmem:[#allocation46_spill] sm:$0xff]  ;;  %v13325_v37 = vld [vmem:[#allocation45_spill] sm:$0xff] }
 0x67b   : > { %6246 = vmatprep.subr.bf16.mxu0 %v11328_v8  ;;  %6287 = vmatprep.subr.bf16.mxu1 %v11341_v13  ;;  %v13326_v8 = vld [vmem:[#allocation48_spill] sm:$0xff]  ;;  %v13327_v13 = vld [vmem:[#allocation47_spill] sm:$0xff] }
 0x67e   : > { %6247 = vmatpush1.bf16.msra.mxu0 %v11338_v27  ;;  %6288 = vmatpush1.bf16.msra.mxu1 %v11351_v29  ;;  %v13328_v27 = vld [vmem:[#allocation50_spill] sm:$0xff]  ;;  %v13329_v29 = vld [vmem:[#allocation49_spill] sm:$0xff] }
 0x67f   : > { %6248 = vmatprep.subr.bf16.mxu0 %v11344_v21  ;;  %6289 = vmatprep.subr.bf16.mxu1 %v11357_v28  ;;  %v13330_v21 = vld [vmem:[#allocation52_spill] sm:$0xff]  ;;  %v13331_v28 = vld [vmem:[#allocation51_spill] sm:$0xff] }
 0x682   : > { %6249 = vmatpush1.bf16.msra.mxu0 %v11354_v32  ;;  %6290 = vmatpush1.bf16.msra.mxu1 %v11367_v42  ;;  %v13332_v32 = vld [vmem:[#allocation54_spill] sm:$0xff]  ;;  %v13333_v42 = vld [vmem:[#allocation53_spill] sm:$0xff] }
 0x683   : > { %6250 = vmatprep.subr.bf16.mxu0 %v13323_v5  ;;  %6291 = vmatprep.subr.bf16.mxu1 %v13324_v40  ;;  %v13334_v5 = vld [vmem:[#allocation56_spill] sm:$0xff]  ;;  %v13335_v40 = vld [vmem:[#allocation55_spill] sm:$0xff] }
 0x686   : > { %6251 = vmatpush1.bf16.msra.mxu0 %v13325_v37  ;;  %6292 = vmatpush1.bf16.msra.mxu1 %v13326_v8  ;;  %v13336_v37 = vld [vmem:[#allocation58_spill] sm:$0xff]  ;;  %v13337_v8 = vld [vmem:[#allocation57_spill] sm:$0xff] }
 0x687   : > { %6252 = vmatprep.subr.bf16.mxu0 %v13327_v13  ;;  %6293 = vmatprep.subr.bf16.mxu1 %v13328_v27  ;;  %v13338_v13 = vld [vmem:[#allocation60_spill] sm:$0xff]  ;;  %v13339_v27 = vld [vmem:[#allocation59_spill] sm:$0xff] }
 0x68a   : > { %6253 = vmatpush1.bf16.msra.mxu0 %v13329_v29  ;;  %6294 = vmatpush1.bf16.msra.mxu1 %v13330_v21  ;;  %v13340_v29 = vld [vmem:[#allocation62_spill] sm:$0xff]  ;;  %v13341_v21 = vld [vmem:[#allocation61_spill] sm:$0xff] }
 0x68b   : > { %6254 = vmatprep.subr.bf16.mxu0 %v13331_v28  ;;  %6295 = vmatprep.subr.bf16.mxu1 %v13332_v32  ;;  %v13342_v28 = vld [vmem:[#allocation64_spill] sm:$0xff]  ;;  %v13343_v32 = vld [vmem:[#allocation63_spill] sm:$0xff] }
 0x68e   : > { %6255 = vmatpush1.bf16.msra.mxu0 %v13333_v42  ;;  %6296 = vmatpush1.bf16.msra.mxu1 %v13334_v5  ;;  %v13344_v42 = vld [vmem:[#allocation66_spill] sm:$0xff]  ;;  %v13345_v5 = vld [vmem:[#allocation65_spill] sm:$0xff] }
 0x68f   : > { %6256 = vmatprep.subr.bf16.mxu0 %v13335_v40  ;;  %6297 = vmatprep.subr.bf16.mxu1 %v13336_v37  ;;  %v13346_v40 = vld [vmem:[#allocation68_spill] sm:$0xff]  ;;  %v13347_v37 = vld [vmem:[#allocation67_spill] sm:$0xff] }
 0x692   : > { %6257 = vmatpush1.bf16.msra.mxu0 %v13337_v8  ;;  %6298 = vmatpush1.bf16.msra.mxu1 %v13338_v13  ;;  %v13348_v8 = vld [vmem:[#allocation70_spill] sm:$0xff]  ;;  %v13349_v13 = vld [vmem:[#allocation69_spill] sm:$0xff] }
 0x693   : > { %6258 = vmatprep.subr.bf16.mxu0 %v13339_v27  ;;  %6299 = vmatprep.subr.bf16.mxu1 %v13340_v29  ;;  %v13350_v27 = vld [vmem:[#allocation72_spill] sm:$0xff]  ;;  %v13351_v29 = vld [vmem:[#allocation71_spill] sm:$0xff] }
 0x696   : > { %6259 = vmatpush1.bf16.msra.mxu0 %v13341_v21  ;;  %6300 = vmatpush1.bf16.msra.mxu1 %v13342_v28  ;;  %v13352_v21 = vld [vmem:[#allocation74_spill] sm:$0xff]  ;;  %v13353_v28 = vld [vmem:[#allocation73_spill] sm:$0xff] }
 0x697   : > { %6260 = vmatprep.subr.bf16.mxu0 %v13343_v32  ;;  %6301 = vmatprep.subr.bf16.mxu1 %v13344_v42  ;;  %v13354_v32 = vld [vmem:[#allocation76_spill] sm:$0xff]  ;;  %v13355_v42 = vld [vmem:[#allocation75_spill] sm:$0xff] }
 0x69a   : > { %6261 = vmatpush1.bf16.msra.mxu0 %v13345_v5  ;;  %6302 = vmatpush1.bf16.msra.mxu1 %v13346_v40  ;;  %v13356_v5 = vld [vmem:[#allocation78_spill] sm:$0xff]  ;;  %v13357_v40 = vld [vmem:[#allocation77_spill] sm:$0xff] }
 0x69b   : > { %6262 = vmatprep.subr.bf16.mxu0 %v13347_v37  ;;  %6303 = vmatprep.subr.bf16.mxu1 %v13348_v8  ;;  %v13358_v37 = vld [vmem:[#allocation80_spill] sm:$0xff]  ;;  %v13359_v8 = vld [vmem:[#allocation79_spill] sm:$0xff] }
 0x69e   : > { %6263 = vmatpush1.bf16.msra.mxu0 %v13349_v13  ;;  %6304 = vmatpush1.bf16.msra.mxu1 %v13350_v27  ;;  %v13360_v13 = vld [vmem:[#allocation82_spill] sm:$0xff] }
 0x69f   : > { %6264 = vmatprep.subr.bf16.mxu0 %v13351_v29  ;;  %6305 = vmatprep.subr.bf16.mxu1 %v13352_v21 }
 0x6a2   : > { %6265 = vmatpush1.bf16.msra.mxu0 %v13353_v28  ;;  %6306 = vmatpush1.bf16.msra.mxu1 %v13354_v32 }
 0x6a3   : > { %6266 = vmatprep.subr.bf16.mxu0 %v13355_v42  ;;  %6307 = vmatprep.subr.bf16.mxu1 %v13356_v5  ;;  %v5980_v42 = vld [vmem:[#allocation3 + $0x50] sm:$0xff] }
 0x6a6   : > { %6267 = vmatpush1.bf16.msra.mxu0 %v13357_v40  ;;  %6308 = vmatpush1.bf16.msra.mxu1 %v13358_v37 }
 0x6a7   : > { %6318 = vmatprep.subr.bf16.mxu0 %v13359_v8  ;;  %6359 = vmatprep.subr.bf16.mxu1 %v13360_v13  ;;  %v5983_v13 = vld [vmem:[#allocation3 + $0x68] sm:$0xff] }
 0x6fc   : > { %v6022_v27 = vpop.f32.mrb[8].mxu0  ;;  %v6063_v29 = vpop.f32.mrb[8].mxu1 }
 0x6fd   : > { %v6024_v20 = vpop.f32.mrb[9].mxu0  ;;  %v6065_v21 = vpop.f32.mrb[9].mxu1  ;;  %v6152_v12 = vadd.f32 %v6022_v27, %v5978_v34  ;;  %v6154_v5 = vadd.f32 %v6063_v29, %v5980_v42 }
 0x6fe   : > { %v6026_v55 = vpop.f32.mrb[10].mxu0  ;;  %v6067_v28 = vpop.f32.mrb[10].mxu1  ;;  %v6155_v60 = vadd.f32 %v6065_v21, %v5981_v2  ;;  %v6153_v8 = vadd.f32 %v6024_v20, %v5979_v10  ;;  %v5984_v10 = vld [vmem:[#allocation3 + $0x70] sm:$0xff]  ;;  %v5985_v20 = vld [vmem:[#allocation3 + $0x78] sm:$0xff] }
 0x6ff   : > { %v6027_v51 = vpop.f32.mrb[11].mxu0  ;;  %v6068_v32 = vpop.f32.mrb[11].mxu1  ;;  %v8956_v40 = vmul.f32 -1.442695, %v6152_v12  ;;  %v8958_v37 = vmul.f32 -1.442695, %v6154_v5 }
 0x700   : > { %v8959_v9 = vmul.f32 -1.442695, %v6155_v60  ;;  %v8957_v26 = vmul.f32 -1.442695, %v6153_v8 }
 0x701   : > { %9536 = vpow2.f32 %v8956_v40 }
 0x702   : > { %9538 = vpow2.f32 %v8958_v37 }
 0x703   : > { %9540 = vpow2.f32 %v8959_v9 }
 0x70b   : > { %v9537_v40 = vpop.eup %9536 }
 0x70c   : > { %v9539_v60 = vpop.eup %9538 }
 0x70d   : > { %v9541_v8 = vpop.eup %9540 }
 0x73c   : > { %v6104_v56 = vpop.f32.mrb[12].mxu0  ;;  %v6145_v55 = vpop.f32.mrb[12].mxu1 }
 0x73d   : > { %v6156_v28 = vadd.f32 %v6104_v56, %v5982_v48  ;;  %v6106_v51 = vpop.f32.mrb[13].mxu0  ;;  %v6147_v32 = vpop.f32.mrb[13].mxu1  ;;  %v6158_v37 = vadd.f32 %v6145_v55, %v5984_v10  ;;  %v6184_v56 = vadd.f32 1.0, %v9537_v40  ;;  %v6186_v48 = vadd.f32 1.0, %v9539_v60 }
 0x73e   : > { %v6157_v62 = vadd.f32 %v6106_v51, %v5983_v13  ;;  %v6108_v34 = vpop.f32.mrb[14].mxu0  ;;  %v6149_v27 = vpop.f32.mrb[14].mxu1  ;;  %v6159_v21 = vadd.f32 %v6147_v32, %v5985_v20 }
 0x73f   : > { %v8960_v29 = vmul.f32 -1.442695, %v6156_v28  ;;  %v6109_v12 = vpop.f32.mrb[15].mxu0  ;;  %v6150_v42 = vpop.f32.mrb[15].mxu1  ;;  %v8962_v5 = vmul.f32 -1.442695, %v6158_v37 }
 0x740   : > { %v8961_v2 = vmul.f32 -1.442695, %v6157_v62  ;;  %v8963_v9 = vmul.f32 -1.442695, %v6159_v21  ;;  %v6187_v62 = vadd.f32 1.0, %v9541_v8 }
 0x741   : > { %9542 = vpow2.f32 %v8960_v29 }
 0x742   : > { %9544 = vpow2.f32 %v8957_v26 }
 0x743   : > { %9546 = vpow2.f32 %v8961_v2 }
 0x744   : > { %9548 = vrcp.f32 %v6184_v56 }
 0x745   : > { %9550 = vrcp.f32 %v6186_v48 }
 0x74b   : > { %v9543_v13 = vpop.eup %9542 }
 0x74c   : > { %v9545_v51 = vpop.eup %9544  ;;  %v6188_v28 = vadd.f32 1.0, %v9543_v13 }
 0x74d   : > { %v9547_v34 = vpop.eup %9546  ;;  %v6185_v27 = vadd.f32 1.0, %v9545_v51 }
 0x74e   : > { %9552 = vrcp.f32 %v6188_v28  ;;  %v6189_v26 = vadd.f32 1.0, %v9547_v34  ;;  %v9549_v55 = vpop.eup %9548 }
 0x74f   : > { %9554 = vpow2.f32 %v8962_v5  ;;  %v9551_v32 = vpop.eup %9550 }
 0x750   : > { %9556 = vrcp.f32 %v6189_v26  ;;  %v6212_v56 = vmul.f32 %v9551_v32, %v11836_v14 }
 0x751   : > { %9558 = vpow2.f32 %v8963_v9 }
 0x752   : > { %9560 = vrcp.f32 %v6187_v62 }
 0x753   : > { %9562 = vrcp.f32 %v6185_v27 }
 0x758   : > { %v9553_v29 = vpop.eup %9552 }
 0x759   : > { %v9555_v12 = vpop.eup %9554  ;;  %v6208_v42 = vmul.f32 2.0, %v9553_v29  ;;  %v13361_v29 = vld [vmem:[#allocation91_spill] sm:$0xff] }
 0x75a   : > { %v9557_v2 = vpop.eup %9556  ;;  %v6190_v37 = vadd.f32 1.0, %v9555_v12  ;;  %v13362_v12 = vld [vmem:[#allocation94_spill] sm:$0xff] }
 0x75b   : > { %v9559_v10 = vpop.eup %9558  ;;  %v8964_v40 = vadd.f32 -1.0, %v6208_v42  ;;  %v6209_v60 = vmul.f32 2.0, %v9557_v2  ;;  %v13363_v42 = vld [vmem:[#allocation93_spill] sm:$0xff]  ;;  %v13364_v2 = vld [vmem:[#allocation96_spill] sm:$0xff] }
 0x75c   : > { %v9561_v20 = vpop.eup %9560  ;;  %v6191_v13 = vadd.f32 1.0, %v9559_v10  ;;  %9564 = vrcp.f32 %v6190_v37  ;;  %v13365_v10 = vld [vmem:[#allocation95_spill] sm:$0xff] }
 0x75d   : > { %v6214_v48 = vmul.f32 %v9549_v55, %v8964_v40  ;;  %v8965_v21 = vadd.f32 -1.0, %v6209_v60  ;;  %v9563_v8 = vpop.eup %9562  ;;  %v6213_v51 = vmul.f32 %v9561_v20, %v11838_v22  ;;  %v13366_v40 = vld [vmem:[#allocation98_spill] sm:$0xff]  ;;  %v13367_v60 = vld [vmem:[#allocation97_spill] sm:$0xff]  ;;  %v13368_v20 = vld [vmem:[#allocation100_spill] sm:$0xff] }
 0x75e   : > { %v13369_v37 = vld [vmem:[#allocation99_spill] sm:$0xff] }
 0x75f   : > { %v11977_v5 = vadd.f32 %v6214_v48, %v6212_v56  ;;  %v6215_v28 = vmul.f32 %v9563_v8, %v8965_v21  ;;  %v13370_v56 = vld [vmem:[#allocation102_spill] sm:$0xff]  ;;  %v13371_v48 = vld [vmem:[#allocation101_spill] sm:$0xff]  ;;  %v13372_v21 = vld [vmem:[#allocation104_spill] sm:$0xff] }
 0x760   : > { %v13373_v8 = vld [vmem:[#allocation103_spill] sm:$0xff] }
 0x761   : > { %9566 = vtanh.f32 %v11977_v5  ;;  %v11981_v34 = vadd.f32 %v6215_v28, %v6213_v51  ;;  %v13375_v51 = vld [vmem:[#allocation105_spill] sm:$0xff]  ;;  %v13376_v28 = vld [vmem:[#allocation108_spill] sm:$0xff] }
 0x762   : > { %9568 = vrcp.f32 %v6191_v13  ;;  %v13374_v13 = vld [vmem:[#allocation106_spill] sm:$0xff] }
 0x763   : > { %9570 = vtanh.f32 %v11981_v34 }
 0x766   : > { %v9565_v9 = vpop.eup %9564 }
 0x76b   : > { %v9567_v62 = vpop.eup %9566 }
 0x76c   : > { %v9569_v14 = vpop.eup %9568  ;;  %v6220_v26 = vmul.f32 %v9567_v62, %v9565_v9  ;;  %v13377_v9 = vld [vmem:[#allocation107_spill] sm:$0xff]  ;;  %v13378_v62 = vld [vmem:[#allocation110_spill] sm:$0xff] }
 0x76d   : > { %v9571_v27 = vpop.eup %9570 }
 0x76e   : > { %v6221_v55 = vmul.f32 %v9571_v27, %v9569_v14  ;;  %6222 = vst [vmem:[#allocation2 + $0x20] sm:$0xff] %v6220_v26  ;;  %6224 = vst [vmem:[#allocation2 + $0xd0] sm:$0xff] %v6220_v26  ;;  %v11984_v32 = vpack.c.bf16 %v6220_v26, %v6220_v26  ;;  %v13379_v14 = vld [vmem:[#allocation109_spill] sm:$0xff]  ;;  %v13380_v26 = vld [vmem:[#allocation112_spill] sm:$0xff] }
 0x76f   : > { %v13381_v27 = vld [vmem:[#allocation111_spill] sm:$0xff] }
 0x770   : > { %6223 = vst [vmem:[#allocation2 + $0x28] sm:$0xff] %v6221_v55  ;;  %6225 = vst [vmem:[#allocation2 + $0xd8] sm:$0xff] %v6221_v55  ;;  %v6235_v22 = vpack.c.bf16 %v6221_v55, %v6221_v55  ;;  %v13382_v55 = vld [vmem:[#allocation114_spill] sm:$0xff] }
 0x772   : > { %6268 = vmatprep.mubr.bf16.mxu0 %v6235_v22  ;;  %6309 = vmatprep.mubr.bf16.mxu1 %v6235_v22 }
 0x773   : > { %6269 = vmatmul.mubr.bf16.vlgmr.msra.gmra.mrb[16].mxu0 %v11984_v32  ;;  %6310 = vmatmul.mubr.bf16.vlgmr.msra.gmra.mrb[16].mxu1 %v11984_v32 }
 0x774   : > { %6319 = vmatpush1.bf16.msra.mxu0 %v13273_v24  ;;  %6360 = vmatpush1.bf16.msra.mxu1 %v13274_v23 }
 0x775   : > { %6350 = vmatprep.mubr.bf16.mxu0 %v6235_v22  ;;  %6391 = vmatprep.mubr.bf16.mxu1 %v6235_v22  ;;  %v13383_v22 = vld [vmem:[#allocation113_spill] sm:$0xff] }
 0x776   : > { %6320 = vmatprep.subr.bf16.mxu0 %v13275_v54  ;;  %6361 = vmatprep.subr.bf16.mxu1 %v13276_v46 }
 0x778   : > { %6321 = vmatpush1.bf16.msra.mxu0 %v13277_v15  ;;  %6362 = vmatpush1.bf16.msra.mxu1 %v13278_v57 }
 0x779   : > { %6322 = vmatprep.subr.bf16.mxu0 %v13279_v25  ;;  %6363 = vmatprep.subr.bf16.mxu1 %v13280_v3 }
 0x77c   : > { %6323 = vmatpush1.bf16.msra.mxu0 %v13281_v38  ;;  %6364 = vmatpush1.bf16.msra.mxu1 %v13282_v49 }
 0x77d   : > { %6324 = vmatprep.subr.bf16.mxu0 %v13361_v29  ;;  %6365 = vmatprep.subr.bf16.mxu1 %v13362_v12 }
 0x780   : > { %6325 = vmatpush1.bf16.msra.mxu0 %v13363_v42  ;;  %6366 = vmatpush1.bf16.msra.mxu1 %v13364_v2 }
 0x781   : > { %6326 = vmatprep.subr.bf16.mxu0 %v13365_v10  ;;  %6367 = vmatprep.subr.bf16.mxu1 %v13366_v40 }
 0x784   : > { %6327 = vmatpush1.bf16.msra.mxu0 %v13367_v60  ;;  %6368 = vmatpush1.bf16.msra.mxu1 %v13368_v20 }
 0x785   : > { %6328 = vmatprep.subr.bf16.mxu0 %v13369_v37  ;;  %6369 = vmatprep.subr.bf16.mxu1 %v13370_v56 }
 0x788   : > { %6329 = vmatpush1.bf16.msra.mxu0 %v13371_v48  ;;  %6370 = vmatpush1.bf16.msra.mxu1 %v13372_v21 }
 0x789   : > { %6330 = vmatprep.subr.bf16.mxu0 %v13373_v8  ;;  %6371 = vmatprep.subr.bf16.mxu1 %v13374_v13  ;;  %v13384_v8 = vld [vmem:[#allocation116_spill] sm:$0xff]  ;;  %v13385_v13 = vld [vmem:[#allocation115_spill] sm:$0xff] }
 0x78c   : > { %6331 = vmatpush1.bf16.msra.mxu0 %v13375_v51  ;;  %6372 = vmatpush1.bf16.msra.mxu1 %v13376_v28  ;;  %v13386_v51 = vld [vmem:[#allocation118_spill] sm:$0xff]  ;;  %v13387_v28 = vld [vmem:[#allocation117_spill] sm:$0xff] }
 0x78d   : > { %6332 = vmatprep.subr.bf16.mxu0 %v13377_v9  ;;  %6373 = vmatprep.subr.bf16.mxu1 %v13378_v62  ;;  %v13388_v9 = vld [vmem:[#allocation120_spill] sm:$0xff] }
 0x790   : > { %6333 = vmatpush1.bf16.msra.mxu0 %v13379_v14  ;;  %6374 = vmatpush1.bf16.msra.mxu1 %v13380_v26  ;;  %v13389_v14 = vld [vmem:[#allocation122_spill] sm:$0xff] }
 0x791   : > { %6334 = vmatprep.subr.bf16.mxu0 %v13381_v27  ;;  %6375 = vmatprep.subr.bf16.mxu1 %v13382_v55 }
 0x794   : > { %6335 = vmatpush1.bf16.msra.mxu0 %v13383_v22  ;;  %6376 = vmatpush1.bf16.msra.mxu1 %v13384_v8 }
 0x795   : > { %6336 = vmatprep.subr.bf16.mxu0 %v13385_v13  ;;  %6377 = vmatprep.subr.bf16.mxu1 %v13386_v51 }
 0x798   : > { %6337 = vmatpush1.bf16.msra.mxu0 %v13387_v28  ;;  %6378 = vmatpush1.bf16.msra.mxu1 %v13388_v9 }
 0x799   : > { %6338 = vmatprep.subr.bf16.mxu0 %v13311_v6  ;;  %6379 = vmatprep.subr.bf16.mxu1 %v13389_v14 }
 0x79c   : > { %6339 = vmatpush1.bf16.msra.mxu0 %v13313_v7  ;;  %6380 = vmatpush1.bf16.msra.mxu1 %v13314_v39 }
 0x79d   : > { %6340 = vmatprep.subr.bf16.mxu0 %v13315_v58  ;;  %6381 = vmatprep.subr.bf16.mxu1 %v13316_v31 }
 0x7a0   : > { %6341 = vmatpush1.bf16.msra.mxu0 %v13317_v11  ;;  %6382 = vmatpush1.bf16.msra.mxu1 %v13318_v44 }
 0x7a1   : > { %6342 = vmatprep.subr.bf16.mxu0 %v13319_v0  ;;  %6383 = vmatprep.subr.bf16.mxu1 %v13320_v18 }
 0x7a4   : > { %6343 = vmatpush1.bf16.msra.mxu0 %v13321_v47  ;;  %6384 = vmatpush1.bf16.msra.mxu1 %v11723_v63  ;;  %v6230_v47 = vld [vmem:[#allocation3 + $0xa0] sm:$0xff] }
 0x7a5   : > { %6344 = vmatprep.subr.bf16.mxu0 %v13322_v1  ;;  %6385 = vmatprep.subr.bf16.mxu1 %v11729_v4  ;;  %v6229_v4 = vld [vmem:[#allocation3 + $0x98] sm:$0xff]  ;;  %v6227_v1 = vld [vmem:[#allocation3 + $0x88] sm:$0xff] }
 0x7a8   : > { %6345 = vmatpush1.bf16.msra.mxu0 %v11726_v19  ;;  %6386 = vmatpush1.bf16.msra.mxu1 %v11739_v16  ;;  %v6226_v16 = vld [vmem:[#allocation3 + $0x80] sm:$0xff] }
 0x7a9   : > { %6346 = vmatprep.subr.bf16.mxu0 %v11732_v61  ;;  %6387 = vmatprep.subr.bf16.mxu1 %v11745_v35 }
 0x7ac   : > { %6347 = vmatpush1.bf16.msra.mxu0 %v11742_v33  ;;  %6388 = vmatpush1.bf16.msra.mxu1 %v11753_v53  ;;  %v13396_v53 = vld [vmem:[#allocation28_spill] sm:$0xff] }
 0x7ad   : > { %6348 = vmatprep.subr.bf16.mxu0 %v11748_v17  ;;  %6389 = vmatprep.subr.bf16.mxu1 %v11759_v45  ;;  %v13390_v17 = vld [vmem:[#allocation23_spill] sm:$0xff] }
 0x7ae   : > { %v13391_v45 = vld [vmem:[#allocation19_spill] sm:$0xff] }
 0x7b0   : > { %6349 = vmatpush1.bf16.msra.mxu0 %v11756_v41  ;;  %6390 = vmatpush1.bf16.msra.mxu1 %v11763_v30  ;;  %v13392_v41 = vld [vmem:[#allocation24_spill] sm:$0xff]  ;;  %v13393_v30 = vld [vmem:[#allocation22_spill] sm:$0xff] }
 0x7b1   : > { %6484 = vmatprep.subr.bf16.mxu0 %v11253_v43  ;;  %6525 = vmatprep.subr.bf16.mxu1 %v11270_v50  ;;  %v13394_v43 = vld [vmem:[#allocation26_spill] sm:$0xff]  ;;  %v13395_v50 = vld [vmem:[#allocation25_spill] sm:$0xff] }
 0x7b3   : > { %6351 = vmatmul.mubr.bf16.vlgmr.msra.gmra.mrb[20].mxu0 %v11984_v32  ;;  %6392 = vmatmul.mubr.bf16.vlgmr.msra.gmra.mrb[20].mxu1 %v11984_v32  ;;  %v13397_v32 = vld [vmem:[#allocation27_spill] sm:$0xff] }
 0x7b4   : > { %6485 = vmatpush1.bf16.msra.mxu0 %v11255_v36  ;;  %6526 = vmatpush1.bf16.msra.mxu1 %v11272_v52  ;;  %v13398_v36 = vld [vmem:[#allocation30_spill] sm:$0xff]  ;;  %v13399_v52 = vld [vmem:[#allocation29_spill] sm:$0xff] }
 0x7b5   : > { %6486 = vmatprep.subr.bf16.mxu0 %v11260_v59  ;;  %6527 = vmatprep.subr.bf16.mxu1 %v13390_v17  ;;  %v13400_v59 = vld [vmem:[#allocation32_spill] sm:$0xff]  ;;  %v13401_v17 = vld [vmem:[#allocation31_spill] sm:$0xff] }
 0x7b8   : > { %6487 = vmatpush1.bf16.msra.mxu0 %v13391_v45  ;;  %6528 = vmatpush1.bf16.msra.mxu1 %v13392_v41  ;;  %v13402_v45 = vld [vmem:[#allocation34_spill] sm:$0xff]  ;;  %v13403_v41 = vld [vmem:[#allocation33_spill] sm:$0xff] }
 0x7b9   : > { %6488 = vmatprep.subr.bf16.mxu0 %v13393_v30  ;;  %6529 = vmatprep.subr.bf16.mxu1 %v13394_v43  ;;  %v13404_v30 = vld [vmem:[#allocation36_spill] sm:$0xff]  ;;  %v13405_v43 = vld [vmem:[#allocation35_spill] sm:$0xff] }
 0x7bc   : > { %6489 = vmatpush1.bf16.msra.mxu0 %v13395_v50  ;;  %6530 = vmatpush1.bf16.msra.mxu1 %v13396_v53  ;;  %v13406_v50 = vld [vmem:[#allocation38_spill] sm:$0xff]  ;;  %v13407_v53 = vld [vmem:[#allocation37_spill] sm:$0xff] }
 0x7bd   : > { %6490 = vmatprep.subr.bf16.mxu0 %v13397_v32  ;;  %6531 = vmatprep.subr.bf16.mxu1 %v13398_v36  ;;  %v13408_v32 = vld [vmem:[#allocation40_spill] sm:$0xff]  ;;  %v13409_v36 = vld [vmem:[#allocation39_spill] sm:$0xff] }
 0x7c0   : > { %6491 = vmatpush1.bf16.msra.mxu0 %v13399_v52  ;;  %6532 = vmatpush1.bf16.msra.mxu1 %v13400_v59  ;;  %v13410_v52 = vld [vmem:[#allocation42_spill] sm:$0xff]  ;;  %v13411_v59 = vld [vmem:[#allocation41_spill] sm:$0xff] }
 0x7c1   : > { %6492 = vmatprep.subr.bf16.mxu0 %v13401_v17  ;;  %6533 = vmatprep.subr.bf16.mxu1 %v13402_v45  ;;  %v13412_v17 = vld [vmem:[#allocation44_spill] sm:$0xff]  ;;  %v13413_v45 = vld [vmem:[#allocation43_spill] sm:$0xff] }
 0x7c4   : > { %6493 = vmatpush1.bf16.msra.mxu0 %v13403_v41  ;;  %6534 = vmatpush1.bf16.msra.mxu1 %v13404_v30  ;;  %v13414_v41 = vld [vmem:[#allocation46_spill] sm:$0xff]  ;;  %v13415_v30 = vld [vmem:[#allocation45_spill] sm:$0xff] }
 0x7c5   : > { %6494 = vmatprep.subr.bf16.mxu0 %v13405_v43  ;;  %6535 = vmatprep.subr.bf16.mxu1 %v13406_v50  ;;  %v13416_v43 = vld [vmem:[#allocation48_spill] sm:$0xff]  ;;  %v13417_v50 = vld [vmem:[#allocation47_spill] sm:$0xff] }
 0x7c8   : > { %6495 = vmatpush1.bf16.msra.mxu0 %v13407_v53  ;;  %6536 = vmatpush1.bf16.msra.mxu1 %v13408_v32  ;;  %v13418_v53 = vld [vmem:[#allocation50_spill] sm:$0xff]  ;;  %v13419_v32 = vld [vmem:[#allocation49_spill] sm:$0xff] }
 0x7c9   : > { %6496 = vmatprep.subr.bf16.mxu0 %v13409_v36  ;;  %6537 = vmatprep.subr.bf16.mxu1 %v13410_v52  ;;  %v13420_v36 = vld [vmem:[#allocation52_spill] sm:$0xff]  ;;  %v13421_v52 = vld [vmem:[#allocation51_spill] sm:$0xff] }
 0x7cc   : > { %6497 = vmatpush1.bf16.msra.mxu0 %v13411_v59  ;;  %6538 = vmatpush1.bf16.msra.mxu1 %v13412_v17  ;;  %v13422_v59 = vld [vmem:[#allocation54_spill] sm:$0xff]  ;;  %v13423_v17 = vld [vmem:[#allocation53_spill] sm:$0xff] }
 0x7cd   : > { %6498 = vmatprep.subr.bf16.mxu0 %v13413_v45  ;;  %6539 = vmatprep.subr.bf16.mxu1 %v13414_v41  ;;  %v13424_v45 = vld [vmem:[#allocation56_spill] sm:$0xff]  ;;  %v13425_v41 = vld [vmem:[#allocation55_spill] sm:$0xff] }
 0x7d0   : > { %6499 = vmatpush1.bf16.msra.mxu0 %v13415_v30  ;;  %6540 = vmatpush1.bf16.msra.mxu1 %v13416_v43  ;;  %v13426_v30 = vld [vmem:[#allocation58_spill] sm:$0xff]  ;;  %v13427_v43 = vld [vmem:[#allocation57_spill] sm:$0xff] }
 0x7d1   : > { %6500 = vmatprep.subr.bf16.mxu0 %v13417_v50  ;;  %6541 = vmatprep.subr.bf16.mxu1 %v13418_v53  ;;  %v13428_v50 = vld [vmem:[#allocation60_spill] sm:$0xff]  ;;  %v13429_v53 = vld [vmem:[#allocation59_spill] sm:$0xff] }
 0x7d4   : > { %6501 = vmatpush1.bf16.msra.mxu0 %v13419_v32  ;;  %6542 = vmatpush1.bf16.msra.mxu1 %v13420_v36  ;;  %v13430_v32 = vld [vmem:[#allocation62_spill] sm:$0xff]  ;;  %v13431_v36 = vld [vmem:[#allocation61_spill] sm:$0xff] }
 0x7d5   : > { %6502 = vmatprep.subr.bf16.mxu0 %v13421_v52  ;;  %6543 = vmatprep.subr.bf16.mxu1 %v13422_v59  ;;  %v13432_v52 = vld [vmem:[#allocation64_spill] sm:$0xff]  ;;  %v13433_v59 = vld [vmem:[#allocation63_spill] sm:$0xff] }
 0x7d8   : > { %6503 = vmatpush1.bf16.msra.mxu0 %v13423_v17  ;;  %6544 = vmatpush1.bf16.msra.mxu1 %v13424_v45  ;;  %v13434_v17 = vld [vmem:[#allocation66_spill] sm:$0xff]  ;;  %v13435_v45 = vld [vmem:[#allocation65_spill] sm:$0xff] }
 0x7d9   : > { %6504 = vmatprep.subr.bf16.mxu0 %v13425_v41  ;;  %6545 = vmatprep.subr.bf16.mxu1 %v13426_v30  ;;  %v13436_v41 = vld [vmem:[#allocation68_spill] sm:$0xff]  ;;  %v13437_v30 = vld [vmem:[#allocation67_spill] sm:$0xff] }
 0x7dc   : > { %6505 = vmatpush1.bf16.msra.mxu0 %v13427_v43  ;;  %6546 = vmatpush1.bf16.msra.mxu1 %v13428_v50  ;;  %v13438_v43 = vld [vmem:[#allocation70_spill] sm:$0xff]  ;;  %v13439_v50 = vld [vmem:[#allocation69_spill] sm:$0xff] }
 0x7dd   : > { %6506 = vmatprep.subr.bf16.mxu0 %v13429_v53  ;;  %6547 = vmatprep.subr.bf16.mxu1 %v13430_v32  ;;  %v13440_v53 = vld [vmem:[#allocation72_spill] sm:$0xff]  ;;  %v13441_v32 = vld [vmem:[#allocation71_spill] sm:$0xff] }
 0x7e0   : > { %6507 = vmatpush1.bf16.msra.mxu0 %v13431_v36  ;;  %6548 = vmatpush1.bf16.msra.mxu1 %v13432_v52  ;;  %v13442_v36 = vld [vmem:[#allocation74_spill] sm:$0xff]  ;;  %v13443_v52 = vld [vmem:[#allocation73_spill] sm:$0xff] }
 0x7e1   : > { %6508 = vmatprep.subr.bf16.mxu0 %v13433_v59  ;;  %6549 = vmatprep.subr.bf16.mxu1 %v13434_v17  ;;  %v13444_v59 = vld [vmem:[#allocation76_spill] sm:$0xff]  ;;  %v13445_v17 = vld [vmem:[#allocation75_spill] sm:$0xff] }
 0x7e4   : > { %6509 = vmatpush1.bf16.msra.mxu0 %v13435_v45  ;;  %6550 = vmatpush1.bf16.msra.mxu1 %v13436_v41  ;;  %v13446_v45 = vld [vmem:[#allocation78_spill] sm:$0xff]  ;;  %v13447_v41 = vld [vmem:[#allocation77_spill] sm:$0xff] }
 0x7e5   : > { %6510 = vmatprep.subr.bf16.mxu0 %v13437_v30  ;;  %6551 = vmatprep.subr.bf16.mxu1 %v13438_v43  ;;  %v13448_v30 = vld [vmem:[#allocation80_spill] sm:$0xff]  ;;  %v13449_v43 = vld [vmem:[#allocation79_spill] sm:$0xff] }
 0x7e8   : > { %6511 = vmatpush1.bf16.msra.mxu0 %v13439_v50  ;;  %6552 = vmatpush1.bf16.msra.mxu1 %v13440_v53  ;;  %v13450_v50 = vld [vmem:[#allocation82_spill] sm:$0xff] }
 0x7e9   : > { %6512 = vmatprep.subr.bf16.mxu0 %v13441_v32  ;;  %6553 = vmatprep.subr.bf16.mxu1 %v13442_v36 }
 0x7ec   : > { %6513 = vmatpush1.bf16.msra.mxu0 %v13443_v52  ;;  %6554 = vmatpush1.bf16.msra.mxu1 %v13444_v59 }
 0x7ed   : > { %6514 = vmatprep.subr.bf16.mxu0 %v13445_v17  ;;  %6555 = vmatprep.subr.bf16.mxu1 %v13446_v45  ;;  %v6228_v17 = vld [vmem:[#allocation3 + $0x90] sm:$0xff] }
 0x7f0   : > { %6515 = vmatpush1.bf16.msra.mxu0 %v13447_v41  ;;  %6556 = vmatpush1.bf16.msra.mxu1 %v13448_v30 }
 0x7f1   : > { %6566 = vmatprep.subr.bf16.mxu0 %v13449_v43  ;;  %6607 = vmatprep.subr.bf16.mxu1 %v13450_v50  ;;  %v6231_v50 = vld [vmem:[#allocation3 + $0xa8] sm:$0xff] }
 0x846   : > { %v6270_v53 = vpop.f32.mrb[16].mxu0  ;;  %v6311_v32 = vpop.f32.mrb[16].mxu1 }
 0x847   : > { %v6272_v33 = vpop.f32.mrb[17].mxu0  ;;  %v6313_v36 = vpop.f32.mrb[17].mxu1  ;;  %v6400_v19 = vadd.f32 %v6270_v53, %v6226_v16  ;;  %v6402_v45 = vadd.f32 %v6311_v32, %v6228_v17 }
 0x848   : > { %v6274_v35 = vpop.f32.mrb[18].mxu0  ;;  %v6315_v52 = vpop.f32.mrb[18].mxu1  ;;  %v6403_v63 = vadd.f32 %v6313_v36, %v6229_v4  ;;  %v6401_v43 = vadd.f32 %v6272_v33, %v6227_v1  ;;  %v6232_v4 = vld [vmem:[#allocation3 + $0xb0] sm:$0xff] }
 0x849   : > { %v6275_v61 = vpop.f32.mrb[19].mxu0  ;;  %v6316_v59 = vpop.f32.mrb[19].mxu1  ;;  %v8966_v41 = vmul.f32 -1.442695, %v6400_v19  ;;  %v8968_v30 = vmul.f32 -1.442695, %v6402_v45 }
 0x84a   : > { %v8969_v18 = vmul.f32 -1.442695, %v6403_v63  ;;  %v8967_v44 = vmul.f32 -1.442695, %v6401_v43 }
 0x84b   : > { %9572 = vpow2.f32 %v8966_v41  ;;  %v6233_v41 = vld [vmem:[#allocation3 + $0xb8] sm:$0xff] }
 0x84c   : > { %9574 = vpow2.f32 %v8968_v30 }
 0x84d   : > { %9576 = vpow2.f32 %v8969_v18 }
 0x855   : > { %v9573_v33 = vpop.eup %9572 }
 0x856   : > { %v9575_v63 = vpop.eup %9574  ;;  %v6432_v30 = vadd.f32 1.0, %v9573_v33 }
 0x857   : > { %v9577_v43 = vpop.eup %9576 }
 0x858   : > { %v6435_v18 = vadd.f32 1.0, %v9577_v43 }
 0x886   : > { %v6352_v0 = vpop.f32.mrb[20].mxu0  ;;  %v6393_v35 = vpop.f32.mrb[20].mxu1 }
 0x887   : > { %v6404_v52 = vadd.f32 %v6352_v0, %v6230_v47  ;;  %v6354_v61 = vpop.f32.mrb[21].mxu0  ;;  %v6395_v59 = vpop.f32.mrb[21].mxu1  ;;  %v6406_v45 = vadd.f32 %v6393_v35, %v6232_v4  ;;  %v6434_v0 = vadd.f32 1.0, %v9575_v63 }
 0x888   : > { %v6405_v11 = vadd.f32 %v6354_v61, %v6231_v50  ;;  %v6356_v53 = vpop.f32.mrb[22].mxu0  ;;  %v6397_v16 = vpop.f32.mrb[22].mxu1  ;;  %v6407_v47 = vadd.f32 %v6395_v59, %v6233_v41 }
 0x889   : > { %v8970_v17 = vmul.f32 -1.442695, %v6404_v52  ;;  %v6357_v19 = vpop.f32.mrb[23].mxu0  ;;  %v6398_v32 = vpop.f32.mrb[23].mxu1  ;;  %v8972_v1 = vmul.f32 -1.442695, %v6406_v45 }
 0x88a   : > { %v8971_v36 = vmul.f32 -1.442695, %v6405_v11  ;;  %v8973_v11 = vmul.f32 -1.442695, %v6407_v47 }
 0x88b   : > { %9578 = vpow2.f32 %v8970_v17 }
 0x88c   : > { %9580 = vpow2.f32 %v8967_v44 }
 0x88d   : > { %9582 = vpow2.f32 %v8971_v36 }
 0x88e   : > { %9584 = vrcp.f32 %v6432_v30 }
 0x88f   : > { %9586 = vrcp.f32 %v6434_v0 }
 0x895   : > { %v9579_v50 = vpop.eup %9578 }
 0x896   : > { %v9581_v61 = vpop.eup %9580  ;;  %v6436_v52 = vadd.f32 1.0, %v9579_v50 }
 0x897   : > { %v9583_v53 = vpop.eup %9582  ;;  %v6433_v16 = vadd.f32 1.0, %v9581_v61 }
 0x898   : > { %9588 = vrcp.f32 %v6436_v52  ;;  %v6437_v44 = vadd.f32 1.0, %v9583_v53  ;;  %v9585_v35 = vpop.eup %9584 }
 0x899   : > { %9590 = vpow2.f32 %v8972_v1  ;;  %v9587_v59 = vpop.eup %9586 }
 0x89a   : > { %9592 = vrcp.f32 %v6437_v44  ;;  %v6460_v30 = vmul.f32 %v9587_v59, %v11977_v5 }
 0x89b   : > { %9594 = vpow2.f32 %v8973_v11 }
 0x89c   : > { %9596 = vrcp.f32 %v6435_v18 }
 0x89d   : > { %9598 = vrcp.f32 %v6433_v16 }
 0x8a2   : > { %v9589_v17 = vpop.eup %9588 }
 0x8a3   : > { %v9591_v19 = vpop.eup %9590  ;;  %v6456_v32 = vmul.f32 2.0, %v9589_v17  ;;  %v13451_v17 = vld [vmem:[#allocation103_spill] sm:$0xff] }
 0x8a4   : > { %v9593_v36 = vpop.eup %9592  ;;  %v6438_v45 = vadd.f32 1.0, %v9591_v19  ;;  %v13452_v19 = vld [vmem:[#allocation106_spill] sm:$0xff] }
 0x8a5   : > { %v9595_v4 = vpop.eup %9594  ;;  %v8974_v33 = vadd.f32 -1.0, %v6456_v32  ;;  %v6457_v63 = vmul.f32 2.0, %v9593_v36  ;;  %v13453_v32 = vld [vmem:[#allocation105_spill] sm:$0xff]  ;;  %v13454_v36 = vld [vmem:[#allocation108_spill] sm:$0xff] }
 0x8a6   : > { %v9597_v41 = vpop.eup %9596  ;;  %v6439_v50 = vadd.f32 1.0, %v9595_v4  ;;  %9600 = vrcp.f32 %v6438_v45  ;;  %v13455_v4 = vld [vmem:[#allocation107_spill] sm:$0xff] }
 0x8a7   : > { %v6462_v0 = vmul.f32 %v9585_v35, %v8974_v33  ;;  %v8975_v47 = vadd.f32 -1.0, %v6457_v63  ;;  %v9599_v43 = vpop.eup %9598  ;;  %v6461_v61 = vmul.f32 %v9597_v41, %v11981_v34  ;;  %v13456_v33 = vld [vmem:[#allocation109_spill] sm:$0xff]  ;;  %v13458_v41 = vld [vmem:[#allocation128_spill] sm:$0xff]  ;;  %v13459_v45 = vld [vmem:[#allocation127_spill] sm:$0xff] }
 0x8a8   : > { %v13457_v63 = vld [vmem:[#allocation125_spill] sm:$0xff] }
 0x8a9   : > { %v12119_v1 = vadd.f32 %v6462_v0, %v6460_v30  ;;  %v6463_v52 = vmul.f32 %v9599_v43, %v8975_v47  ;;  %v13460_v30 = vld [vmem:[#allocation130_spill] sm:$0xff]  ;;  %v13461_v0 = vld [vmem:[#allocation129_spill] sm:$0xff]  ;;  %v13462_v47 = vld [vmem:[#allocation132_spill] sm:$0xff] }
 0x8aa   : > { %v13463_v43 = vld [vmem:[#allocation131_spill] sm:$0xff] }
 0x8ab   : > { %9602 = vtanh.f32 %v12119_v1  ;;  %v12123_v53 = vadd.f32 %v6463_v52, %v6461_v61  ;;  %v13465_v61 = vld [vmem:[#allocation133_spill] sm:$0xff]  ;;  %v13466_v52 = vld [vmem:[#allocation136_spill] sm:$0xff] }
 0x8ac   : > { %9604 = vrcp.f32 %v6439_v50  ;;  %v13464_v50 = vld [vmem:[#allocation134_spill] sm:$0xff] }
 0x8ad   : > { %9606 = vtanh.f32 %v12123_v53 }
 0x8b0   : > { %v9601_v11 = vpop.eup %9600 }
 0x8b5   : > { %v9603_v18 = vpop.eup %9602 }
 0x8b6   : > { %v9605_v5 = vpop.eup %9604  ;;  %v6468_v44 = vmul.f32 %v9603_v18, %v9601_v11  ;;  %v13467_v11 = vld [vmem:[#allocation135_spill] sm:$0xff]  ;;  %v13468_v18 = vld [vmem:[#allocation138_spill] sm:$0xff] }
 0x8b7   : > { %v9607_v16 = vpop.eup %9606 }
 0x8b8   : > { %v6469_v35 = vmul.f32 %v9607_v16, %v9605_v5  ;;  %6470 = vst [vmem:[#allocation2 + $0x40] sm:$0xff] %v6468_v44  ;;  %6472 = vst [vmem:[#allocation2 + $0xb0] sm:$0xff] %v6468_v44  ;;  %v12126_v59 = vpack.c.bf16 %v6468_v44, %v6468_v44  ;;  %v13469_v5 = vld [vmem:[#allocation137_spill] sm:$0xff]  ;;  %v13470_v44 = vld [vmem:[#allocation140_spill] sm:$0xff] }
 0x8b9   : > { %v13471_v16 = vld [vmem:[#allocation139_spill] sm:$0xff] }
 0x8ba   : > { %6471 = vst [vmem:[#allocation2 + $0x48] sm:$0xff] %v6469_v35  ;;  %6473 = vst [vmem:[#allocation2 + $0xb8] sm:$0xff] %v6469_v35  ;;  %v6483_v34 = vpack.c.bf16 %v6469_v35, %v6469_v35  ;;  %v13472_v35 = vld [vmem:[#allocation142_spill] sm:$0xff] }
 0x8bc   : > { %6516 = vmatprep.mubr.bf16.mxu0 %v6483_v34  ;;  %6557 = vmatprep.mubr.bf16.mxu1 %v6483_v34 }
 0x8bd   : > { %6517 = vmatmul.mubr.bf16.vlgmr.msra.gmra.mrb[24].mxu0 %v12126_v59  ;;  %6558 = vmatmul.mubr.bf16.vlgmr.msra.gmra.mrb[24].mxu1 %v12126_v59 }
 0x8be   : > { %6567 = vmatpush1.bf16.msra.mxu0 %v13273_v24  ;;  %6608 = vmatpush1.bf16.msra.mxu1 %v13274_v23 }
 0x8bf   : > { %6598 = vmatprep.mubr.bf16.mxu0 %v6483_v34  ;;  %6639 = vmatprep.mubr.bf16.mxu1 %v6483_v34  ;;  %v13473_v34 = vld [vmem:[#allocation141_spill] sm:$0xff] }
 0x8c0   : > { %6568 = vmatprep.subr.bf16.mxu0 %v13275_v54  ;;  %6609 = vmatprep.subr.bf16.mxu1 %v13276_v46 }
 0x8c2   : > { %6569 = vmatpush1.bf16.msra.mxu0 %v13277_v15  ;;  %6610 = vmatpush1.bf16.msra.mxu1 %v13278_v57 }
 0x8c3   : > { %6570 = vmatprep.subr.bf16.mxu0 %v13279_v25  ;;  %6611 = vmatprep.subr.bf16.mxu1 %v13280_v3 }
 0x8c6   : > { %6571 = vmatpush1.bf16.msra.mxu0 %v13281_v38  ;;  %6612 = vmatpush1.bf16.msra.mxu1 %v13282_v49 }
 0x8c7   : > { %6572 = vmatprep.subr.bf16.mxu0 %v13361_v29  ;;  %6613 = vmatprep.subr.bf16.mxu1 %v13362_v12 }
 0x8ca   : > { %6573 = vmatpush1.bf16.msra.mxu0 %v13363_v42  ;;  %6614 = vmatpush1.bf16.msra.mxu1 %v13364_v2 }
 0x8cb   : > { %6574 = vmatprep.subr.bf16.mxu0 %v13365_v10  ;;  %6615 = vmatprep.subr.bf16.mxu1 %v13366_v40 }
 0x8ce   : > { %6575 = vmatpush1.bf16.msra.mxu0 %v13367_v60  ;;  %6616 = vmatpush1.bf16.msra.mxu1 %v13368_v20 }
 0x8cf   : > { %6576 = vmatprep.subr.bf16.mxu0 %v13369_v37  ;;  %6617 = vmatprep.subr.bf16.mxu1 %v13370_v56 }
 0x8d2   : > { %6577 = vmatpush1.bf16.msra.mxu0 %v13371_v48  ;;  %6618 = vmatpush1.bf16.msra.mxu1 %v13372_v21 }
 0x8d3   : > { %6578 = vmatprep.subr.bf16.mxu0 %v13451_v17  ;;  %6619 = vmatprep.subr.bf16.mxu1 %v13452_v19 }
 0x8d6   : > { %6579 = vmatpush1.bf16.msra.mxu0 %v13453_v32  ;;  %6620 = vmatpush1.bf16.msra.mxu1 %v13454_v36 }
 0x8d7   : > { %6580 = vmatprep.subr.bf16.mxu0 %v13455_v4  ;;  %6621 = vmatprep.subr.bf16.mxu1 %v13378_v62 }
 0x8da   : > { %6581 = vmatpush1.bf16.msra.mxu0 %v13456_v33  ;;  %6622 = vmatpush1.bf16.msra.mxu1 %v13380_v26 }
 0x8db   : > { %6582 = vmatprep.subr.bf16.mxu0 %v13381_v27  ;;  %6623 = vmatprep.subr.bf16.mxu1 %v13382_v55 }
 0x8de   : > { %6583 = vmatpush1.bf16.msra.mxu0 %v13383_v22  ;;  %6624 = vmatpush1.bf16.msra.mxu1 %v13384_v8 }
 0x8df   : > { %6584 = vmatprep.subr.bf16.mxu0 %v13385_v13  ;;  %6625 = vmatprep.subr.bf16.mxu1 %v13386_v51 }
 0x8e2   : > { %6585 = vmatpush1.bf16.msra.mxu0 %v13387_v28  ;;  %6626 = vmatpush1.bf16.msra.mxu1 %v13388_v9 }
 0x8e3   : > { %6586 = vmatprep.subr.bf16.mxu0 %v13311_v6  ;;  %6627 = vmatprep.subr.bf16.mxu1 %v13389_v14 }
 0x8e6   : > { %6587 = vmatpush1.bf16.msra.mxu0 %v13313_v7  ;;  %6628 = vmatpush1.bf16.msra.mxu1 %v13314_v39 }
 0x8e7   : > { %6588 = vmatprep.subr.bf16.mxu0 %v13315_v58  ;;  %6629 = vmatprep.subr.bf16.mxu1 %v13316_v31  ;;  %v6478_v58 = vld [vmem:[#allocation3 + $0xe0] sm:$0xff] }
 0x8ea   : > { %6589 = vmatpush1.bf16.msra.mxu0 %v13457_v63  ;;  %6630 = vmatpush1.bf16.msra.mxu1 %v13458_v41  ;;  %v6477_v41 = vld [vmem:[#allocation3 + $0xd8] sm:$0xff]  ;;  %v6475_v63 = vld [vmem:[#allocation3 + $0xc8] sm:$0xff] }
 0x8eb   : > { %6590 = vmatprep.subr.bf16.mxu0 %v13459_v45  ;;  %6631 = vmatprep.subr.bf16.mxu1 %v13460_v30  ;;  %v6474_v30 = vld [vmem:[#allocation3 + $0xc0] sm:$0xff] }
 0x8ee   : > { %6591 = vmatpush1.bf16.msra.mxu0 %v13461_v0  ;;  %6632 = vmatpush1.bf16.msra.mxu1 %v13462_v47 }
 0x8ef   : > { %6592 = vmatprep.subr.bf16.mxu0 %v13463_v43  ;;  %6633 = vmatprep.subr.bf16.mxu1 %v13464_v50  ;;  %v13474_v43 = vld [vmem:[#allocation143_spill] sm:$0xff]  ;;  %v13475_v50 = vld [vmem:[#allocation16_spill] sm:$0xff] }
 0x8f2   : > { %6593 = vmatpush1.bf16.msra.mxu0 %v13465_v61  ;;  %6634 = vmatpush1.bf16.msra.mxu1 %v13466_v52  ;;  %v13476_v61 = vld [vmem:[#allocation20_spill] sm:$0xff] }
 0x8f3   : > { %6594 = vmatprep.subr.bf16.mxu0 %v13467_v11  ;;  %6635 = vmatprep.subr.bf16.mxu1 %v13468_v18  ;;  %v13477_v18 = vld [vmem:[#allocation17_spill] sm:$0xff]  ;;  %v13486_v11 = vld [vmem:[#allocation28_spill] sm:$0xff] }
 0x8f6   : > { %6595 = vmatpush1.bf16.msra.mxu0 %v13469_v5  ;;  %6636 = vmatpush1.bf16.msra.mxu1 %v13470_v44  ;;  %v13478_v5 = vld [vmem:[#allocation21_spill] sm:$0xff]  ;;  %v13479_v44 = vld [vmem:[#allocation18_spill] sm:$0xff] }
 0x8f7   : > { %6596 = vmatprep.subr.bf16.mxu0 %v13471_v16  ;;  %6637 = vmatprep.subr.bf16.mxu1 %v13472_v35  ;;  %v13480_v16 = vld [vmem:[#allocation23_spill] sm:$0xff] }
 0x8f8   : > { %v13481_v35 = vld [vmem:[#allocation19_spill] sm:$0xff] }
 0x8fa   : > { %6597 = vmatpush1.bf16.msra.mxu0 %v13473_v34  ;;  %6638 = vmatpush1.bf16.msra.mxu1 %v13474_v43  ;;  %v13482_v34 = vld [vmem:[#allocation24_spill] sm:$0xff]  ;;  %v13483_v43 = vld [vmem:[#allocation22_spill] sm:$0xff] }
 0x8fb   : > { %6732 = vmatprep.subr.bf16.mxu0 %v13475_v50  ;;  %6773 = vmatprep.subr.bf16.mxu1 %v13476_v61  ;;  %v13484_v50 = vld [vmem:[#allocation26_spill] sm:$0xff]  ;;  %v13485_v61 = vld [vmem:[#allocation25_spill] sm:$0xff] }
 0x8fd   : > { %6599 = vmatmul.mubr.bf16.vlgmr.msra.gmra.mrb[28].mxu0 %v12126_v59  ;;  %6640 = vmatmul.mubr.bf16.vlgmr.msra.gmra.mrb[28].mxu1 %v12126_v59  ;;  %v13487_v59 = vld [vmem:[#allocation27_spill] sm:$0xff] }
 0x8fe   : > { %6733 = vmatpush1.bf16.msra.mxu0 %v13477_v18  ;;  %6774 = vmatpush1.bf16.msra.mxu1 %v13478_v5  ;;  %v13488_v18 = vld [vmem:[#allocation30_spill] sm:$0xff]  ;;  %v13489_v5 = vld [vmem:[#allocation29_spill] sm:$0xff] }
 0x8ff   : > { %6734 = vmatprep.subr.bf16.mxu0 %v13479_v44  ;;  %6775 = vmatprep.subr.bf16.mxu1 %v13480_v16  ;;  %v13490_v44 = vld [vmem:[#allocation32_spill] sm:$0xff]  ;;  %v13491_v16 = vld [vmem:[#allocation31_spill] sm:$0xff] }
 0x902   : > { %6735 = vmatpush1.bf16.msra.mxu0 %v13481_v35  ;;  %6776 = vmatpush1.bf16.msra.mxu1 %v13482_v34  ;;  %v13492_v35 = vld [vmem:[#allocation34_spill] sm:$0xff]  ;;  %v13493_v34 = vld [vmem:[#allocation33_spill] sm:$0xff] }
 0x903   : > { %6736 = vmatprep.subr.bf16.mxu0 %v13483_v43  ;;  %6777 = vmatprep.subr.bf16.mxu1 %v13484_v50  ;;  %v13494_v43 = vld [vmem:[#allocation36_spill] sm:$0xff]  ;;  %v13495_v50 = vld [vmem:[#allocation35_spill] sm:$0xff] }
 0x906   : > { %6737 = vmatpush1.bf16.msra.mxu0 %v13485_v61  ;;  %6778 = vmatpush1.bf16.msra.mxu1 %v13486_v11  ;;  %v13496_v61 = vld [vmem:[#allocation38_spill] sm:$0xff]  ;;  %v13497_v11 = vld [vmem:[#allocation37_spill] sm:$0xff] }
 0x907   : > { %6738 = vmatprep.subr.bf16.mxu0 %v13487_v59  ;;  %6779 = vmatprep.subr.bf16.mxu1 %v13488_v18  ;;  %v13498_v59 = vld [vmem:[#allocation40_spill] sm:$0xff]  ;;  %v13499_v18 = vld [vmem:[#allocation39_spill] sm:$0xff] }
 0x90a   : > { %6739 = vmatpush1.bf16.msra.mxu0 %v13489_v5  ;;  %6780 = vmatpush1.bf16.msra.mxu1 %v13490_v44  ;;  %v13500_v5 = vld [vmem:[#allocation42_spill] sm:$0xff]  ;;  %v13501_v44 = vld [vmem:[#allocation41_spill] sm:$0xff] }
 0x90b   : > { %6740 = vmatprep.subr.bf16.mxu0 %v13491_v16  ;;  %6781 = vmatprep.subr.bf16.mxu1 %v13492_v35  ;;  %v13502_v16 = vld [vmem:[#allocation44_spill] sm:$0xff]  ;;  %v13503_v35 = vld [vmem:[#allocation43_spill] sm:$0xff] }
 0x90e   : > { %6741 = vmatpush1.bf16.msra.mxu0 %v13493_v34  ;;  %6782 = vmatpush1.bf16.msra.mxu1 %v13494_v43  ;;  %v13504_v34 = vld [vmem:[#allocation46_spill] sm:$0xff]  ;;  %v13505_v43 = vld [vmem:[#allocation45_spill] sm:$0xff] }
 0x90f   : > { %6742 = vmatprep.subr.bf16.mxu0 %v13495_v50  ;;  %6783 = vmatprep.subr.bf16.mxu1 %v13496_v61  ;;  %v13506_v50 = vld [vmem:[#allocation48_spill] sm:$0xff]  ;;  %v13507_v61 = vld [vmem:[#allocation47_spill] sm:$0xff] }
 0x912   : > { %6743 = vmatpush1.bf16.msra.mxu0 %v13497_v11  ;;  %6784 = vmatpush1.bf16.msra.mxu1 %v13498_v59  ;;  %v13508_v11 = vld [vmem:[#allocation50_spill] sm:$0xff]  ;;  %v13509_v59 = vld [vmem:[#allocation49_spill] sm:$0xff] }
 0x913   : > { %6744 = vmatprep.subr.bf16.mxu0 %v13499_v18  ;;  %6785 = vmatprep.subr.bf16.mxu1 %v13500_v5  ;;  %v13510_v18 = vld [vmem:[#allocation52_spill] sm:$0xff]  ;;  %v13511_v5 = vld [vmem:[#allocation51_spill] sm:$0xff] }
 0x916   : > { %6745 = vmatpush1.bf16.msra.mxu0 %v13501_v44  ;;  %6786 = vmatpush1.bf16.msra.mxu1 %v13502_v16  ;;  %v13512_v44 = vld [vmem:[#allocation54_spill] sm:$0xff]  ;;  %v13513_v16 = vld [vmem:[#allocation53_spill] sm:$0xff] }
 0x917   : > { %6746 = vmatprep.subr.bf16.mxu0 %v13503_v35  ;;  %6787 = vmatprep.subr.bf16.mxu1 %v13504_v34  ;;  %v13514_v35 = vld [vmem:[#allocation56_spill] sm:$0xff]  ;;  %v13515_v34 = vld [vmem:[#allocation55_spill] sm:$0xff] }
 0x91a   : > { %6747 = vmatpush1.bf16.msra.mxu0 %v13505_v43  ;;  %6788 = vmatpush1.bf16.msra.mxu1 %v13506_v50  ;;  %v13516_v43 = vld [vmem:[#allocation58_spill] sm:$0xff]  ;;  %v13517_v50 = vld [vmem:[#allocation57_spill] sm:$0xff] }
 0x91b   : > { %6748 = vmatprep.subr.bf16.mxu0 %v13507_v61  ;;  %6789 = vmatprep.subr.bf16.mxu1 %v13508_v11  ;;  %v13518_v61 = vld [vmem:[#allocation60_spill] sm:$0xff]  ;;  %v13519_v11 = vld [vmem:[#allocation59_spill] sm:$0xff] }
 0x91e   : > { %6749 = vmatpush1.bf16.msra.mxu0 %v13509_v59  ;;  %6790 = vmatpush1.bf16.msra.mxu1 %v13510_v18  ;;  %v13520_v59 = vld [vmem:[#allocation62_spill] sm:$0xff]  ;;  %v13521_v18 = vld [vmem:[#allocation61_spill] sm:$0xff] }
 0x91f   : > { %6750 = vmatprep.subr.bf16.mxu0 %v13511_v5  ;;  %6791 = vmatprep.subr.bf16.mxu1 %v13512_v44  ;;  %v13522_v5 = vld [vmem:[#allocation64_spill] sm:$0xff]  ;;  %v13523_v44 = vld [vmem:[#allocation63_spill] sm:$0xff] }
 0x922   : > { %6751 = vmatpush1.bf16.msra.mxu0 %v13513_v16  ;;  %6792 = vmatpush1.bf16.msra.mxu1 %v13514_v35  ;;  %v13524_v16 = vld [vmem:[#allocation66_spill] sm:$0xff]  ;;  %v13525_v35 = vld [vmem:[#allocation65_spill] sm:$0xff] }
 0x923   : > { %6752 = vmatprep.subr.bf16.mxu0 %v13515_v34  ;;  %6793 = vmatprep.subr.bf16.mxu1 %v13516_v43  ;;  %v13526_v34 = vld [vmem:[#allocation68_spill] sm:$0xff]  ;;  %v13527_v43 = vld [vmem:[#allocation67_spill] sm:$0xff] }
 0x926   : > { %6753 = vmatpush1.bf16.msra.mxu0 %v13517_v50  ;;  %6794 = vmatpush1.bf16.msra.mxu1 %v13518_v61  ;;  %v13528_v50 = vld [vmem:[#allocation70_spill] sm:$0xff]  ;;  %v13529_v61 = vld [vmem:[#allocation69_spill] sm:$0xff] }
 0x927   : > { %6754 = vmatprep.subr.bf16.mxu0 %v13519_v11  ;;  %6795 = vmatprep.subr.bf16.mxu1 %v13520_v59  ;;  %v13530_v11 = vld [vmem:[#allocation72_spill] sm:$0xff]  ;;  %v13531_v59 = vld [vmem:[#allocation71_spill] sm:$0xff] }
 0x92a   : > { %6755 = vmatpush1.bf16.msra.mxu0 %v13521_v18  ;;  %6796 = vmatpush1.bf16.msra.mxu1 %v13522_v5  ;;  %v13532_v18 = vld [vmem:[#allocation74_spill] sm:$0xff]  ;;  %v13533_v5 = vld [vmem:[#allocation73_spill] sm:$0xff] }
 0x92b   : > { %6756 = vmatprep.subr.bf16.mxu0 %v13523_v44  ;;  %6797 = vmatprep.subr.bf16.mxu1 %v13524_v16  ;;  %v13534_v44 = vld [vmem:[#allocation76_spill] sm:$0xff]  ;;  %v13535_v16 = vld [vmem:[#allocation75_spill] sm:$0xff] }
 0x92e   : > { %6757 = vmatpush1.bf16.msra.mxu0 %v13525_v35  ;;  %6798 = vmatpush1.bf16.msra.mxu1 %v13526_v34  ;;  %v13536_v35 = vld [vmem:[#allocation78_spill] sm:$0xff]  ;;  %v13537_v34 = vld [vmem:[#allocation77_spill] sm:$0xff] }
 0x92f   : > { %6758 = vmatprep.subr.bf16.mxu0 %v13527_v43  ;;  %6799 = vmatprep.subr.bf16.mxu1 %v13528_v50  ;;  %v13538_v43 = vld [vmem:[#allocation80_spill] sm:$0xff]  ;;  %v13539_v50 = vld [vmem:[#allocation79_spill] sm:$0xff] }
 0x932   : > { %6759 = vmatpush1.bf16.msra.mxu0 %v13529_v61  ;;  %6800 = vmatpush1.bf16.msra.mxu1 %v13530_v11  ;;  %v13540_v61 = vld [vmem:[#allocation82_spill] sm:$0xff] }
 0x933   : > { %6760 = vmatprep.subr.bf16.mxu0 %v13531_v59  ;;  %6801 = vmatprep.subr.bf16.mxu1 %v13532_v18 }
 0x936   : > { %6761 = vmatpush1.bf16.msra.mxu0 %v13533_v5  ;;  %6802 = vmatpush1.bf16.msra.mxu1 %v13534_v44 }
 0x937   : > { %6762 = vmatprep.subr.bf16.mxu0 %v13535_v16  ;;  %6803 = vmatprep.subr.bf16.mxu1 %v13536_v35  ;;  %v6476_v16 = vld [vmem:[#allocation3 + $0xd0] sm:$0xff] }
 0x93a   : > { %6763 = vmatpush1.bf16.msra.mxu0 %v13537_v34  ;;  %6804 = vmatpush1.bf16.msra.mxu1 %v13538_v43 }
 0x93b   : > { %6814 = vmatprep.subr.bf16.mxu0 %v13539_v50  ;;  %6855 = vmatprep.subr.bf16.mxu1 %v13540_v61  ;;  %v6479_v61 = vld [vmem:[#allocation3 + $0xe8] sm:$0xff] }
 0x990   : > { %v6518_v11 = vpop.f32.mrb[24].mxu0  ;;  %v6559_v59 = vpop.f32.mrb[24].mxu1 }
 0x991   : > { %v6520_v52 = vpop.f32.mrb[25].mxu0  ;;  %v6561_v18 = vpop.f32.mrb[25].mxu1  ;;  %v6648_v45 = vadd.f32 %v6518_v11, %v6474_v30  ;;  %v6650_v35 = vadd.f32 %v6559_v59, %v6476_v16 }
 0x992   : > { %v6522_v47 = vpop.f32.mrb[26].mxu0  ;;  %v6563_v5 = vpop.f32.mrb[26].mxu1  ;;  %v6651_v31 = vadd.f32 %v6561_v18, %v6477_v41  ;;  %v6649_v50 = vadd.f32 %v6520_v52, %v6475_v63  ;;  %v6480_v63 = vld [vmem:[#allocation3 + $0xf0] sm:$0xff]  ;;  %v6481_v52 = vld [vmem:[#allocation3 + $0xf8] sm:$0xff] }
 0x993   : > { %v6523_v0 = vpop.f32.mrb[27].mxu0  ;;  %v6564_v44 = vpop.f32.mrb[27].mxu1  ;;  %v8976_v34 = vmul.f32 -1.442695, %v6648_v45  ;;  %v8978_v43 = vmul.f32 -1.442695, %v6650_v35 }
 0x994   : > { %v8979_v39 = vmul.f32 -1.442695, %v6651_v31  ;;  %v8977_v14 = vmul.f32 -1.442695, %v6649_v50 }
 0x995   : > { %9608 = vpow2.f32 %v8976_v34 }
 0x996   : > { %9610 = vpow2.f32 %v8978_v43 }
 0x997   : > { %9612 = vpow2.f32 %v8979_v39 }
 0x99f   : > { %v9609_v43 = vpop.eup %9608 }
 0x9a0   : > { %v9611_v31 = vpop.eup %9610 }
 0x9a1   : > { %v9613_v50 = vpop.eup %9612 }
 0x9a2   : > { %v6683_v39 = vadd.f32 1.0, %v9613_v50 }
 0x9d0   : > { %v6600_v7 = vpop.f32.mrb[28].mxu0  ;;  %v6641_v47 = vpop.f32.mrb[28].mxu1 }
 0x9d1   : > { %v6652_v5 = vadd.f32 %v6600_v7, %v6478_v58  ;;  %v6602_v0 = vpop.f32.mrb[29].mxu0  ;;  %v6643_v44 = vpop.f32.mrb[29].mxu1  ;;  %v6654_v18 = vadd.f32 %v6641_v47, %v6480_v63  ;;  %v6680_v7 = vadd.f32 1.0, %v9609_v43  ;;  %v6682_v58 = vadd.f32 1.0, %v9611_v31 }
 0x9d2   : > { %v6653_v6 = vadd.f32 %v6602_v0, %v6479_v61  ;;  %v6604_v30 = vpop.f32.mrb[30].mxu0  ;;  %v6645_v11 = vpop.f32.mrb[30].mxu1  ;;  %v6655_v35 = vadd.f32 %v6643_v44, %v6481_v52 }
 0x9d3   : > { %v8980_v16 = vmul.f32 -1.442695, %v6652_v5  ;;  %v6605_v45 = vpop.f32.mrb[31].mxu0  ;;  %v6646_v59 = vpop.f32.mrb[31].mxu1  ;;  %v8982_v34 = vmul.f32 -1.442695, %v6654_v18 }
 0x9d4   : > { %v8981_v41 = vmul.f32 -1.442695, %v6653_v6  ;;  %v8983_v6 = vmul.f32 -1.442695, %v6655_v35 }
 0x9d5   : > { %9614 = vpow2.f32 %v8980_v16 }
 0x9d6   : > { %9616 = vpow2.f32 %v8977_v14 }
 0x9d7   : > { %9618 = vpow2.f32 %v8981_v41 }
 0x9d8   : > { %9620 = vrcp.f32 %v6680_v7 }
 0x9d9   : > { %9622 = vrcp.f32 %v6682_v58 }
 0x9df   : > { %v9615_v61 = vpop.eup %9614 }
 0x9e0   : > { %v9617_v0 = vpop.eup %9616  ;;  %v6684_v5 = vadd.f32 1.0, %v9615_v61 }
 0x9e1   : > { %v9619_v30 = vpop.eup %9618  ;;  %v6681_v11 = vadd.f32 1.0, %v9617_v0 }
 0x9e2   : > { %9624 = vrcp.f32 %v6684_v5  ;;  %v6685_v14 = vadd.f32 1.0, %v9619_v30  ;;  %v9621_v47 = vpop.eup %9620 }
 0x9e3   : > { %9626 = vpow2.f32 %v8982_v34  ;;  %v9623_v44 = vpop.eup %9622 }
 0x9e4   : > { %9628 = vrcp.f32 %v6685_v14  ;;  %v6708_v7 = vmul.f32 %v9623_v44, %v12119_v1 }
 0x9e5   : > { %9630 = vpow2.f32 %v8983_v6 }
 0x9e6   : > { %9632 = vrcp.f32 %v6683_v39 }
 0x9e7   : > { %9634 = vrcp.f32 %v6681_v11 }
 0x9ec   : > { %v9625_v16 = vpop.eup %9624 }
 0x9ed   : > { %v9627_v45 = vpop.eup %9626  ;;  %v6704_v59 = vmul.f32 2.0, %v9625_v16  ;;  %v13541_v16 = vld [vmem:[#allocation119_spill] sm:$0xff] }
 0x9ee   : > { %v9629_v41 = vpop.eup %9628  ;;  %v6686_v18 = vadd.f32 1.0, %v9627_v45  ;;  %v13542_v45 = vld [vmem:[#allocation122_spill] sm:$0xff] }
 0x9ef   : > { %v9631_v63 = vpop.eup %9630  ;;  %v8984_v43 = vadd.f32 -1.0, %v6704_v59  ;;  %v6705_v31 = vmul.f32 2.0, %v9629_v41  ;;  %v13543_v59 = vld [vmem:[#allocation121_spill] sm:$0xff]  ;;  %v13544_v41 = vld [vmem:[#allocation124_spill] sm:$0xff] }
 0x9f0   : > { %v9633_v52 = vpop.eup %9632  ;;  %v6687_v61 = vadd.f32 1.0, %v9631_v63  ;;  %9636 = vrcp.f32 %v6686_v18  ;;  %v13545_v63 = vld [vmem:[#allocation123_spill] sm:$0xff] }
 0x9f1   : > { %v6710_v58 = vmul.f32 %v9621_v47, %v8984_v43  ;;  %v8985_v35 = vadd.f32 -1.0, %v6705_v31  ;;  %v9635_v50 = vpop.eup %9634  ;;  %v6709_v0 = vmul.f32 %v9633_v52, %v12123_v53  ;;  %v13546_v43 = vld [vmem:[#allocation126_spill] sm:$0xff]  ;;  %v13547_v31 = vld [vmem:[#allocation125_spill] sm:$0xff]  ;;  %v13548_v52 = vld [vmem:[#allocation128_spill] sm:$0xff] }
 0x9f2   : > { %v13549_v18 = vld [vmem:[#allocation127_spill] sm:$0xff] }
 0x9f3   : > { %v12261_v34 = vadd.f32 %v6710_v58, %v6708_v7  ;;  %v6711_v5 = vmul.f32 %v9635_v50, %v8985_v35  ;;  %v13550_v7 = vld [vmem:[#allocation130_spill] sm:$0xff]  ;;  %v13551_v58 = vld [vmem:[#allocation129_spill] sm:$0xff]  ;;  %v13552_v35 = vld [vmem:[#allocation132_spill] sm:$0xff] }
 0x9f4   : > { %v13553_v50 = vld [vmem:[#allocation131_spill] sm:$0xff] }
 0x9f5   : > { %9638 = vtanh.f32 %v12261_v34  ;;  %v12265_v30 = vadd.f32 %v6711_v5, %v6709_v0  ;;  %v13555_v0 = vld [vmem:[#allocation133_spill] sm:$0xff]  ;;  %v13556_v5 = vld [vmem:[#allocation136_spill] sm:$0xff] }
 0x9f6   : > { %9640 = vrcp.f32 %v6687_v61  ;;  %v13554_v61 = vld [vmem:[#allocation134_spill] sm:$0xff] }
 0x9f7   : > { %9642 = vtanh.f32 %v12265_v30 }
 0x9fa   : > { %v9637_v6 = vpop.eup %9636 }
 0x9ff   : > { %v9639_v39 = vpop.eup %9638 }
 0xa00   : > { %v9641_v1 = vpop.eup %9640  ;;  %v6716_v14 = vmul.f32 %v9639_v39, %v9637_v6  ;;  %v13557_v6 = vld [vmem:[#allocation135_spill] sm:$0xff]  ;;  %v13558_v39 = vld [vmem:[#allocation138_spill] sm:$0xff] }
 0xa01   : > { %v9643_v11 = vpop.eup %9642 }
 0xa02   : > { %v6717_v47 = vmul.f32 %v9643_v11, %v9641_v1  ;;  %6718 = vst [vmem:[#allocation2 + $0x60] sm:$0xff] %v6716_v14  ;;  %6720 = vst [vmem:[#allocation2 + $0x90] sm:$0xff] %v6716_v14  ;;  %v12268_v44 = vpack.c.bf16 %v6716_v14, %v6716_v14  ;;  %v13559_v1 = vld [vmem:[#allocation137_spill] sm:$0xff]  ;;  %v13560_v14 = vld [vmem:[#allocation140_spill] sm:$0xff] }
 0xa03   : > { %v13561_v11 = vld [vmem:[#allocation139_spill] sm:$0xff] }
 0xa04   : > { %6719 = vst [vmem:[#allocation2 + $0x68] sm:$0xff] %v6717_v47  ;;  %6721 = vst [vmem:[#allocation2 + $0x98] sm:$0xff] %v6717_v47  ;;  %v6731_v53 = vpack.c.bf16 %v6717_v47, %v6717_v47  ;;  %v13562_v47 = vld [vmem:[#allocation142_spill] sm:$0xff] }
 0xa06   : > { %6764 = vmatprep.mubr.bf16.mxu0 %v6731_v53  ;;  %6805 = vmatprep.mubr.bf16.mxu1 %v6731_v53 }
 0xa07   : > { %6765 = vmatmul.mubr.bf16.vlgmr.msra.gmra.mrb[32].mxu0 %v12268_v44  ;;  %6806 = vmatmul.mubr.bf16.vlgmr.msra.gmra.mrb[32].mxu1 %v12268_v44 }
 0xa08   : > { %6815 = vmatpush1.bf16.msra.mxu0 %v13273_v24  ;;  %6856 = vmatpush1.bf16.msra.mxu1 %v13274_v23 }
 0xa09   : > { %6846 = vmatprep.mubr.bf16.mxu0 %v6731_v53  ;;  %6887 = vmatprep.mubr.bf16.mxu1 %v6731_v53  ;;  %v13563_v53 = vld [vmem:[#allocation141_spill] sm:$0xff] }
 0xa0a   : > { %6816 = vmatprep.subr.bf16.mxu0 %v13275_v54  ;;  %6857 = vmatprep.subr.bf16.mxu1 %v13276_v46 }
 0xa0c   : > { %6817 = vmatpush1.bf16.msra.mxu0 %v13277_v15  ;;  %6858 = vmatpush1.bf16.msra.mxu1 %v13278_v57 }
 0xa0d   : > { %6818 = vmatprep.subr.bf16.mxu0 %v13279_v25  ;;  %6859 = vmatprep.subr.bf16.mxu1 %v13280_v3 }
 0xa10   : > { %6819 = vmatpush1.bf16.msra.mxu0 %v13281_v38  ;;  %6860 = vmatpush1.bf16.msra.mxu1 %v13282_v49 }
 0xa11   : > { %6820 = vmatprep.subr.bf16.mxu0 %v13361_v29  ;;  %6861 = vmatprep.subr.bf16.mxu1 %v13362_v12 }
 0xa14   : > { %6821 = vmatpush1.bf16.msra.mxu0 %v13363_v42  ;;  %6862 = vmatpush1.bf16.msra.mxu1 %v13364_v2 }
 0xa15   : > { %6822 = vmatprep.subr.bf16.mxu0 %v13365_v10  ;;  %6863 = vmatprep.subr.bf16.mxu1 %v13366_v40 }
 0xa18   : > { %6823 = vmatpush1.bf16.msra.mxu0 %v13367_v60  ;;  %6864 = vmatpush1.bf16.msra.mxu1 %v13368_v20 }
 0xa19   : > { %6824 = vmatprep.subr.bf16.mxu0 %v13369_v37  ;;  %6865 = vmatprep.subr.bf16.mxu1 %v13370_v56 }
 0xa1c   : > { %6825 = vmatpush1.bf16.msra.mxu0 %v13371_v48  ;;  %6866 = vmatpush1.bf16.msra.mxu1 %v13372_v21 }
 0xa1d   : > { %6826 = vmatprep.subr.bf16.mxu0 %v13451_v17  ;;  %6867 = vmatprep.subr.bf16.mxu1 %v13452_v19 }
 0xa20   : > { %6827 = vmatpush1.bf16.msra.mxu0 %v13453_v32  ;;  %6868 = vmatpush1.bf16.msra.mxu1 %v13454_v36 }
 0xa21   : > { %6828 = vmatprep.subr.bf16.mxu0 %v13455_v4  ;;  %6869 = vmatprep.subr.bf16.mxu1 %v13378_v62 }
 0xa24   : > { %6829 = vmatpush1.bf16.msra.mxu0 %v13456_v33  ;;  %6870 = vmatpush1.bf16.msra.mxu1 %v13380_v26 }
 0xa25   : > { %6830 = vmatprep.subr.bf16.mxu0 %v13381_v27  ;;  %6871 = vmatprep.subr.bf16.mxu1 %v13382_v55 }
 0xa28   : > { %6831 = vmatpush1.bf16.msra.mxu0 %v13383_v22  ;;  %6872 = vmatpush1.bf16.msra.mxu1 %v13384_v8 }
 0xa29   : > { %6832 = vmatprep.subr.bf16.mxu0 %v13385_v13  ;;  %6873 = vmatprep.subr.bf16.mxu1 %v13386_v51 }
 0xa2c   : > { %6833 = vmatpush1.bf16.msra.mxu0 %v13387_v28  ;;  %6874 = vmatpush1.bf16.msra.mxu1 %v13388_v9 }
 0xa2d   : > { %6834 = vmatprep.subr.bf16.mxu0 %v13541_v16  ;;  %6875 = vmatprep.subr.bf16.mxu1 %v13542_v45 }
 0xa30   : > { %6835 = vmatpush1.bf16.msra.mxu0 %v13543_v59  ;;  %6876 = vmatpush1.bf16.msra.mxu1 %v13544_v41 }
 0xa31   : > { %6836 = vmatprep.subr.bf16.mxu0 %v13545_v63  ;;  %6877 = vmatprep.subr.bf16.mxu1 %v13546_v43  ;;  %v6726_v63 = vld [vmem:[#allocation3 + $0x120] sm:$0xff] }
 0xa34   : > { %6837 = vmatpush1.bf16.msra.mxu0 %v13547_v31  ;;  %6878 = vmatpush1.bf16.msra.mxu1 %v13548_v52  ;;  %v6725_v52 = vld [vmem:[#allocation3 + $0x118] sm:$0xff]  ;;  %v6723_v31 = vld [vmem:[#allocation3 + $0x108] sm:$0xff] }
 0xa35   : > { %6838 = vmatprep.subr.bf16.mxu0 %v13549_v18  ;;  %6879 = vmatprep.subr.bf16.mxu1 %v13550_v7  ;;  %v6722_v7 = vld [vmem:[#allocation3 + $0x100] sm:$0xff] }
 0xa38   : > { %6839 = vmatpush1.bf16.msra.mxu0 %v13551_v58  ;;  %6880 = vmatpush1.bf16.msra.mxu1 %v13552_v35 }
 0xa39   : > { %6840 = vmatprep.subr.bf16.mxu0 %v13553_v50  ;;  %6881 = vmatprep.subr.bf16.mxu1 %v13554_v61  ;;  %v13564_v50 = vld [vmem:[#allocation143_spill] sm:$0xff]  ;;  %v13565_v61 = vld [vmem:[#allocation16_spill] sm:$0xff] }
 0xa3c   : > { %6841 = vmatpush1.bf16.msra.mxu0 %v13555_v0  ;;  %6882 = vmatpush1.bf16.msra.mxu1 %v13556_v5  ;;  %v13566_v0 = vld [vmem:[#allocation20_spill] sm:$0xff] }
 0xa3d   : > { %6842 = vmatprep.subr.bf16.mxu0 %v13557_v6  ;;  %6883 = vmatprep.subr.bf16.mxu1 %v13558_v39  ;;  %v13567_v39 = vld [vmem:[#allocation17_spill] sm:$0xff]  ;;  %v13576_v6 = vld [vmem:[#allocation28_spill] sm:$0xff] }
 0xa40   : > { %6843 = vmatpush1.bf16.msra.mxu0 %v13559_v1  ;;  %6884 = vmatpush1.bf16.msra.mxu1 %v13560_v14  ;;  %v13568_v1 = vld [vmem:[#allocation21_spill] sm:$0xff]  ;;  %v13569_v14 = vld [vmem:[#allocation18_spill] sm:$0xff] }
 0xa41   : > { %6844 = vmatprep.subr.bf16.mxu0 %v13561_v11  ;;  %6885 = vmatprep.subr.bf16.mxu1 %v13562_v47  ;;  %v13570_v11 = vld [vmem:[#allocation23_spill] sm:$0xff] }
 0xa42   : > { %v13571_v47 = vld [vmem:[#allocation19_spill] sm:$0xff] }
 0xa44   : > { %6845 = vmatpush1.bf16.msra.mxu0 %v13563_v53  ;;  %6886 = vmatpush1.bf16.msra.mxu1 %v13564_v50  ;;  %v13572_v53 = vld [vmem:[#allocation24_spill] sm:$0xff]  ;;  %v13573_v50 = vld [vmem:[#allocation22_spill] sm:$0xff] }
 0xa45   : > { %6980 = vmatprep.subr.bf16.mxu0 %v13565_v61  ;;  %7021 = vmatprep.subr.bf16.mxu1 %v13566_v0  ;;  %v13574_v61 = vld [vmem:[#allocation26_spill] sm:$0xff]  ;;  %v13575_v0 = vld [vmem:[#allocation25_spill] sm:$0xff] }
 0xa47   : > { %6847 = vmatmul.mubr.bf16.vlgmr.msra.gmra.mrb[36].mxu0 %v12268_v44  ;;  %6888 = vmatmul.mubr.bf16.vlgmr.msra.gmra.mrb[36].mxu1 %v12268_v44  ;;  %v13577_v44 = vld [vmem:[#allocation27_spill] sm:$0xff] }
 0xa48   : > { %6981 = vmatpush1.bf16.msra.mxu0 %v13567_v39  ;;  %7022 = vmatpush1.bf16.msra.mxu1 %v13568_v1  ;;  %v13578_v39 = vld [vmem:[#allocation30_spill] sm:$0xff]  ;;  %v13579_v1 = vld [vmem:[#allocation29_spill] sm:$0xff] }
 0xa49   : > { %6982 = vmatprep.subr.bf16.mxu0 %v13569_v14  ;;  %7023 = vmatprep.subr.bf16.mxu1 %v13570_v11  ;;  %v13580_v14 = vld [vmem:[#allocation32_spill] sm:$0xff]  ;;  %v13581_v11 = vld [vmem:[#allocation31_spill] sm:$0xff] }
 0xa4c   : > { %6983 = vmatpush1.bf16.msra.mxu0 %v13571_v47  ;;  %7024 = vmatpush1.bf16.msra.mxu1 %v13572_v53  ;;  %v13582_v47 = vld [vmem:[#allocation34_spill] sm:$0xff]  ;;  %v13583_v53 = vld [vmem:[#allocation33_spill] sm:$0xff] }
 0xa4d   : > { %6984 = vmatprep.subr.bf16.mxu0 %v13573_v50  ;;  %7025 = vmatprep.subr.bf16.mxu1 %v13574_v61  ;;  %v13584_v50 = vld [vmem:[#allocation36_spill] sm:$0xff]  ;;  %v13585_v61 = vld [vmem:[#allocation35_spill] sm:$0xff] }
 0xa50   : > { %6985 = vmatpush1.bf16.msra.mxu0 %v13575_v0  ;;  %7026 = vmatpush1.bf16.msra.mxu1 %v13576_v6  ;;  %v13586_v0 = vld [vmem:[#allocation38_spill] sm:$0xff]  ;;  %v13587_v6 = vld [vmem:[#allocation37_spill] sm:$0xff] }
 0xa51   : > { %6986 = vmatprep.subr.bf16.mxu0 %v13577_v44  ;;  %7027 = vmatprep.subr.bf16.mxu1 %v13578_v39  ;;  %v13588_v44 = vld [vmem:[#allocation40_spill] sm:$0xff]  ;;  %v13589_v39 = vld [vmem:[#allocation39_spill] sm:$0xff] }
 0xa54   : > { %6987 = vmatpush1.bf16.msra.mxu0 %v13579_v1  ;;  %7028 = vmatpush1.bf16.msra.mxu1 %v13580_v14  ;;  %v13590_v1 = vld [vmem:[#allocation42_spill] sm:$0xff]  ;;  %v13591_v14 = vld [vmem:[#allocation41_spill] sm:$0xff] }
 0xa55   : > { %6988 = vmatprep.subr.bf16.mxu0 %v13581_v11  ;;  %7029 = vmatprep.subr.bf16.mxu1 %v13582_v47  ;;  %v13592_v11 = vld [vmem:[#allocation44_spill] sm:$0xff]  ;;  %v13593_v47 = vld [vmem:[#allocation43_spill] sm:$0xff] }
 0xa58   : > { %6989 = vmatpush1.bf16.msra.mxu0 %v13583_v53  ;;  %7030 = vmatpush1.bf16.msra.mxu1 %v13584_v50  ;;  %v13594_v53 = vld [vmem:[#allocation46_spill] sm:$0xff]  ;;  %v13595_v50 = vld [vmem:[#allocation45_spill] sm:$0xff] }
 0xa59   : > { %6990 = vmatprep.subr.bf16.mxu0 %v13585_v61  ;;  %7031 = vmatprep.subr.bf16.mxu1 %v13586_v0  ;;  %v13596_v61 = vld [vmem:[#allocation48_spill] sm:$0xff]  ;;  %v13597_v0 = vld [vmem:[#allocation47_spill] sm:$0xff] }
 0xa5c   : > { %6991 = vmatpush1.bf16.msra.mxu0 %v13587_v6  ;;  %7032 = vmatpush1.bf16.msra.mxu1 %v13588_v44  ;;  %v13598_v6 = vld [vmem:[#allocation50_spill] sm:$0xff]  ;;  %v13599_v44 = vld [vmem:[#allocation49_spill] sm:$0xff] }
 0xa5d   : > { %6992 = vmatprep.subr.bf16.mxu0 %v13589_v39  ;;  %7033 = vmatprep.subr.bf16.mxu1 %v13590_v1  ;;  %v13600_v39 = vld [vmem:[#allocation52_spill] sm:$0xff]  ;;  %v13601_v1 = vld [vmem:[#allocation51_spill] sm:$0xff] }
 0xa60   : > { %6993 = vmatpush1.bf16.msra.mxu0 %v13591_v14  ;;  %7034 = vmatpush1.bf16.msra.mxu1 %v13592_v11  ;;  %v13602_v14 = vld [vmem:[#allocation54_spill] sm:$0xff]  ;;  %v13603_v11 = vld [vmem:[#allocation53_spill] sm:$0xff] }
 0xa61   : > { %6994 = vmatprep.subr.bf16.mxu0 %v13593_v47  ;;  %7035 = vmatprep.subr.bf16.mxu1 %v13594_v53  ;;  %v13604_v47 = vld [vmem:[#allocation56_spill] sm:$0xff]  ;;  %v13605_v53 = vld [vmem:[#allocation55_spill] sm:$0xff] }
 0xa64   : > { %6995 = vmatpush1.bf16.msra.mxu0 %v13595_v50  ;;  %7036 = vmatpush1.bf16.msra.mxu1 %v13596_v61  ;;  %v13606_v50 = vld [vmem:[#allocation58_spill] sm:$0xff]  ;;  %v13607_v61 = vld [vmem:[#allocation57_spill] sm:$0xff] }
 0xa65   : > { %6996 = vmatprep.subr.bf16.mxu0 %v13597_v0  ;;  %7037 = vmatprep.subr.bf16.mxu1 %v13598_v6  ;;  %v13608_v0 = vld [vmem:[#allocation60_spill] sm:$0xff]  ;;  %v13609_v6 = vld [vmem:[#allocation59_spill] sm:$0xff] }
 0xa68   : > { %6997 = vmatpush1.bf16.msra.mxu0 %v13599_v44  ;;  %7038 = vmatpush1.bf16.msra.mxu1 %v13600_v39  ;;  %v13610_v44 = vld [vmem:[#allocation62_spill] sm:$0xff]  ;;  %v13611_v39 = vld [vmem:[#allocation61_spill] sm:$0xff] }
 0xa69   : > { %6998 = vmatprep.subr.bf16.mxu0 %v13601_v1  ;;  %7039 = vmatprep.subr.bf16.mxu1 %v13602_v14  ;;  %v13612_v1 = vld [vmem:[#allocation64_spill] sm:$0xff]  ;;  %v13613_v14 = vld [vmem:[#allocation63_spill] sm:$0xff] }
 0xa6c   : > { %6999 = vmatpush1.bf16.msra.mxu0 %v13603_v11  ;;  %7040 = vmatpush1.bf16.msra.mxu1 %v13604_v47  ;;  %v13614_v11 = vld [vmem:[#allocation66_spill] sm:$0xff]  ;;  %v13615_v47 = vld [vmem:[#allocation65_spill] sm:$0xff] }
 0xa6d   : > { %7000 = vmatprep.subr.bf16.mxu0 %v13605_v53  ;;  %7041 = vmatprep.subr.bf16.mxu1 %v13606_v50  ;;  %v13616_v53 = vld [vmem:[#allocation68_spill] sm:$0xff]  ;;  %v13617_v50 = vld [vmem:[#allocation67_spill] sm:$0xff] }
 0xa70   : > { %7001 = vmatpush1.bf16.msra.mxu0 %v13607_v61  ;;  %7042 = vmatpush1.bf16.msra.mxu1 %v13608_v0  ;;  %v13618_v61 = vld [vmem:[#allocation70_spill] sm:$0xff]  ;;  %v13619_v0 = vld [vmem:[#allocation69_spill] sm:$0xff] }
 0xa71   : > { %7002 = vmatprep.subr.bf16.mxu0 %v13609_v6  ;;  %7043 = vmatprep.subr.bf16.mxu1 %v13610_v44  ;;  %v13620_v6 = vld [vmem:[#allocation72_spill] sm:$0xff]  ;;  %v13621_v44 = vld [vmem:[#allocation71_spill] sm:$0xff] }
 0xa74   : > { %7003 = vmatpush1.bf16.msra.mxu0 %v13611_v39  ;;  %7044 = vmatpush1.bf16.msra.mxu1 %v13612_v1  ;;  %v13622_v39 = vld [vmem:[#allocation74_spill] sm:$0xff]  ;;  %v13623_v1 = vld [vmem:[#allocation73_spill] sm:$0xff] }
 0xa75   : > { %7004 = vmatprep.subr.bf16.mxu0 %v13613_v14  ;;  %7045 = vmatprep.subr.bf16.mxu1 %v13614_v11  ;;  %v13624_v14 = vld [vmem:[#allocation76_spill] sm:$0xff]  ;;  %v13625_v11 = vld [vmem:[#allocation75_spill] sm:$0xff] }
 0xa78   : > { %7005 = vmatpush1.bf16.msra.mxu0 %v13615_v47  ;;  %7046 = vmatpush1.bf16.msra.mxu1 %v13616_v53  ;;  %v13626_v47 = vld [vmem:[#allocation78_spill] sm:$0xff]  ;;  %v13627_v53 = vld [vmem:[#allocation77_spill] sm:$0xff] }
 0xa79   : > { %7006 = vmatprep.subr.bf16.mxu0 %v13617_v50  ;;  %7047 = vmatprep.subr.bf16.mxu1 %v13618_v61  ;;  %v13628_v50 = vld [vmem:[#allocation80_spill] sm:$0xff]  ;;  %v13629_v61 = vld [vmem:[#allocation79_spill] sm:$0xff] }
 0xa7c   : > { %7007 = vmatpush1.bf16.msra.mxu0 %v13619_v0  ;;  %7048 = vmatpush1.bf16.msra.mxu1 %v13620_v6  ;;  %v13630_v0 = vld [vmem:[#allocation82_spill] sm:$0xff] }
 0xa7d   : > { %7008 = vmatprep.subr.bf16.mxu0 %v13621_v44  ;;  %7049 = vmatprep.subr.bf16.mxu1 %v13622_v39 }
 0xa80   : > { %7009 = vmatpush1.bf16.msra.mxu0 %v13623_v1  ;;  %7050 = vmatpush1.bf16.msra.mxu1 %v13624_v14 }
 0xa81   : > { %7010 = vmatprep.subr.bf16.mxu0 %v13625_v11  ;;  %7051 = vmatprep.subr.bf16.mxu1 %v13626_v47  ;;  %v6724_v11 = vld [vmem:[#allocation3 + $0x110] sm:$0xff] }
 0xa84   : > { %7011 = vmatpush1.bf16.msra.mxu0 %v13627_v53  ;;  %7052 = vmatpush1.bf16.msra.mxu1 %v13628_v50 }
 0xa85   : > { %7062 = vmatprep.subr.bf16.mxu0 %v13629_v61  ;;  %7103 = vmatprep.subr.bf16.mxu1 %v13630_v0  ;;  %v6727_v0 = vld [vmem:[#allocation3 + $0x128] sm:$0xff] }
 0xada   : > { %v6766_v6 = vpop.f32.mrb[32].mxu0  ;;  %v6807_v44 = vpop.f32.mrb[32].mxu1 }
 0xadb   : > { %v6768_v5 = vpop.f32.mrb[33].mxu0  ;;  %v6809_v39 = vpop.f32.mrb[33].mxu1  ;;  %v6896_v18 = vadd.f32 %v6766_v6, %v6722_v7  ;;  %v6898_v47 = vadd.f32 %v6807_v44, %v6724_v11 }
 0xadc   : > { %v6770_v35 = vpop.f32.mrb[34].mxu0  ;;  %v6811_v1 = vpop.f32.mrb[34].mxu1  ;;  %v6899_v43 = vadd.f32 %v6809_v39, %v6725_v52  ;;  %v6897_v61 = vadd.f32 %v6768_v5, %v6723_v31  ;;  %v6728_v31 = vld [vmem:[#allocation3 + $0x130] sm:$0xff]  ;;  %v6729_v5 = vld [vmem:[#allocation3 + $0x138] sm:$0xff] }
 0xadd   : > { %v6771_v58 = vpop.f32.mrb[35].mxu0  ;;  %v6812_v14 = vpop.f32.mrb[35].mxu1  ;;  %v8986_v53 = vmul.f32 -1.442695, %v6896_v18  ;;  %v8988_v50 = vmul.f32 -1.442695, %v6898_v47 }
 0xade   : > { %v8989_v41 = vmul.f32 -1.442695, %v6899_v43  ;;  %v8987_v45 = vmul.f32 -1.442695, %v6897_v61 }
 0xadf   : > { %9644 = vpow2.f32 %v8986_v53 }
 0xae0   : > { %9646 = vpow2.f32 %v8988_v50 }
 0xae1   : > { %9648 = vpow2.f32 %v8989_v41 }
 0xae9   : > { %v9645_v50 = vpop.eup %9644 }
 0xaea   : > { %v9647_v43 = vpop.eup %9646 }
 0xaeb   : > { %v9649_v61 = vpop.eup %9648 }
 0xaec   : > { %v6931_v41 = vadd.f32 1.0, %v9649_v61 }
 0xb1a   : > { %v6848_v59 = vpop.f32.mrb[36].mxu0  ;;  %v6889_v35 = vpop.f32.mrb[36].mxu1 }
 0xb1b   : > { %v6900_v1 = vadd.f32 %v6848_v59, %v6726_v63  ;;  %v6850_v58 = vpop.f32.mrb[37].mxu0  ;;  %v6891_v14 = vpop.f32.mrb[37].mxu1  ;;  %v6902_v39 = vadd.f32 %v6889_v35, %v6728_v31  ;;  %v6928_v59 = vadd.f32 1.0, %v9645_v50  ;;  %v6930_v63 = vadd.f32 1.0, %v9647_v43 }
 0xb1c   : > { %v6901_v16 = vadd.f32 %v6850_v58, %v6727_v0  ;;  %v6852_v7 = vpop.f32.mrb[38].mxu0  ;;  %v6893_v6 = vpop.f32.mrb[38].mxu1  ;;  %v6903_v47 = vadd.f32 %v6891_v14, %v6729_v5 }
 0xb1d   : > { %v8990_v11 = vmul.f32 -1.442695, %v6900_v1  ;;  %v6853_v18 = vpop.f32.mrb[39].mxu0  ;;  %v6894_v44 = vpop.f32.mrb[39].mxu1  ;;  %v8992_v53 = vmul.f32 -1.442695, %v6902_v39 }
 0xb1e   : > { %v8991_v52 = vmul.f32 -1.442695, %v6901_v16  ;;  %v8993_v16 = vmul.f32 -1.442695, %v6903_v47 }
 0xb1f   : > { %9650 = vpow2.f32 %v8990_v11 }
 0xb20   : > { %9652 = vpow2.f32 %v8987_v45 }
 0xb21   : > { %9654 = vpow2.f32 %v8991_v52 }
 0xb22   : > { %9656 = vrcp.f32 %v6928_v59 }
 0xb23   : > { %9658 = vrcp.f32 %v6930_v63 }
 0xb29   : > { %v9651_v0 = vpop.eup %9650 }
 0xb2a   : > { %v9653_v58 = vpop.eup %9652  ;;  %v6932_v1 = vadd.f32 1.0, %v9651_v0 }
 0xb2b   : > { %v9655_v7 = vpop.eup %9654  ;;  %v6929_v6 = vadd.f32 1.0, %v9653_v58 }
 0xb2c   : > { %9660 = vrcp.f32 %v6932_v1  ;;  %v6933_v45 = vadd.f32 1.0, %v9655_v7  ;;  %v9657_v35 = vpop.eup %9656 }
 0xb2d   : > { %9662 = vpow2.f32 %v8992_v53  ;;  %v9659_v14 = vpop.eup %9658 }
 0xb2e   : > { %9664 = vrcp.f32 %v6933_v45  ;;  %v6956_v59 = vmul.f32 %v9659_v14, %v12261_v34 }
 0xb2f   : > { %9666 = vpow2.f32 %v8993_v16 }
 0xb30   : > { %9668 = vrcp.f32 %v6931_v41 }
 0xb31   : > { %9670 = vrcp.f32 %v6929_v6 }
 0xb36   : > { %v9661_v11 = vpop.eup %9660 }
 0xb37   : > { %v9663_v18 = vpop.eup %9662  ;;  %v6952_v44 = vmul.f32 2.0, %v9661_v11  ;;  %v13631_v11 = vld [vmem:[#allocation119_spill] sm:$0xff] }
 0xb38   : > { %v9665_v52 = vpop.eup %9664  ;;  %v6934_v39 = vadd.f32 1.0, %v9663_v18  ;;  %v13632_v18 = vld [vmem:[#allocation122_spill] sm:$0xff] }
 0xb39   : > { %v9667_v31 = vpop.eup %9666  ;;  %v8994_v50 = vadd.f32 -1.0, %v6952_v44  ;;  %v6953_v43 = vmul.f32 2.0, %v9665_v52  ;;  %v13633_v44 = vld [vmem:[#allocation121_spill] sm:$0xff]  ;;  %v13634_v52 = vld [vmem:[#allocation124_spill] sm:$0xff] }
 0xb3a   : > { %v9669_v5 = vpop.eup %9668  ;;  %v6935_v0 = vadd.f32 1.0, %v9667_v31  ;;  %9672 = vrcp.f32 %v6934_v39  ;;  %v13635_v31 = vld [vmem:[#allocation123_spill] sm:$0xff] }
 0xb3b   : > { %v6958_v63 = vmul.f32 %v9657_v35, %v8994_v50  ;;  %v8995_v47 = vadd.f32 -1.0, %v6953_v43  ;;  %v9671_v61 = vpop.eup %9670  ;;  %v6957_v58 = vmul.f32 %v9669_v5, %v12265_v30  ;;  %v13636_v50 = vld [vmem:[#allocation126_spill] sm:$0xff]  ;;  %v13637_v43 = vld [vmem:[#allocation125_spill] sm:$0xff]  ;;  %v13638_v5 = vld [vmem:[#allocation128_spill] sm:$0xff] }
 0xb3c   : > { %v13639_v39 = vld [vmem:[#allocation127_spill] sm:$0xff] }
 0xb3d   : > { %v12403_v53 = vadd.f32 %v6958_v63, %v6956_v59  ;;  %v6959_v1 = vmul.f32 %v9671_v61, %v8995_v47  ;;  %v13640_v59 = vld [vmem:[#allocation130_spill] sm:$0xff]  ;;  %v13641_v63 = vld [vmem:[#allocation129_spill] sm:$0xff]  ;;  %v13642_v47 = vld [vmem:[#allocation132_spill] sm:$0xff] }
 0xb3e   : > { %v13643_v61 = vld [vmem:[#allocation131_spill] sm:$0xff] }
 0xb3f   : > { %9674 = vtanh.f32 %v12403_v53  ;;  %v12407_v7 = vadd.f32 %v6959_v1, %v6957_v58  ;;  %v13645_v58 = vld [vmem:[#allocation133_spill] sm:$0xff]  ;;  %v13646_v1 = vld [vmem:[#allocation136_spill] sm:$0xff] }
 0xb40   : > { %9676 = vrcp.f32 %v6935_v0  ;;  %v13644_v0 = vld [vmem:[#allocation134_spill] sm:$0xff] }
 0xb41   : > { %9678 = vtanh.f32 %v12407_v7 }
 0xb44   : > { %v9673_v16 = vpop.eup %9672 }
 0xb49   : > { %v9675_v41 = vpop.eup %9674 }
 0xb4a   : > { %v9677_v34 = vpop.eup %9676  ;;  %v6964_v45 = vmul.f32 %v9675_v41, %v9673_v16  ;;  %v13647_v16 = vld [vmem:[#allocation135_spill] sm:$0xff]  ;;  %v13648_v41 = vld [vmem:[#allocation138_spill] sm:$0xff] }
 0xb4b   : > { %v9679_v6 = vpop.eup %9678 }
 0xb4c   : > { %v6965_v35 = vmul.f32 %v9679_v6, %v9677_v34  ;;  %6966 = vst [vmem:[#allocation2 + $0x80] sm:$0xff] %v6964_v45  ;;  %6968 = vst [vmem:[#allocation2 + $0x70] sm:$0xff] %v6964_v45  ;;  %v12410_v14 = vpack.c.bf16 %v6964_v45, %v6964_v45  ;;  %v13649_v34 = vld [vmem:[#allocation137_spill] sm:$0xff]  ;;  %v13650_v45 = vld [vmem:[#allocation140_spill] sm:$0xff] }
 0xb4d   : > { %v13651_v6 = vld [vmem:[#allocation139_spill] sm:$0xff] }
 0xb4e   : > { %6967 = vst [vmem:[#allocation2 + $0x88] sm:$0xff] %v6965_v35  ;;  %6969 = vst [vmem:[#allocation2 + $0x78] sm:$0xff] %v6965_v35  ;;  %v6979_v30 = vpack.c.bf16 %v6965_v35, %v6965_v35  ;;  %v13652_v35 = vld [vmem:[#allocation142_spill] sm:$0xff] }
 0xb50   : > { %7012 = vmatprep.mubr.bf16.mxu0 %v6979_v30  ;;  %7053 = vmatprep.mubr.bf16.mxu1 %v6979_v30 }
 0xb51   : > { %7013 = vmatmul.mubr.bf16.vlgmr.msra.gmra.mrb[40].mxu0 %v12410_v14  ;;  %7054 = vmatmul.mubr.bf16.vlgmr.msra.gmra.mrb[40].mxu1 %v12410_v14 }
 0xb52   : > { %7063 = vmatpush1.bf16.msra.mxu0 %v13273_v24  ;;  %7104 = vmatpush1.bf16.msra.mxu1 %v13274_v23 }
 0xb53   : > { %7094 = vmatprep.mubr.bf16.mxu0 %v6979_v30  ;;  %7135 = vmatprep.mubr.bf16.mxu1 %v6979_v30  ;;  %v13653_v30 = vld [vmem:[#allocation141_spill] sm:$0xff] }
 0xb54   : > { %7064 = vmatprep.subr.bf16.mxu0 %v13275_v54  ;;  %7105 = vmatprep.subr.bf16.mxu1 %v13276_v46 }
 0xb56   : > { %7065 = vmatpush1.bf16.msra.mxu0 %v13277_v15  ;;  %7106 = vmatpush1.bf16.msra.mxu1 %v13278_v57 }
 0xb57   : > { %7066 = vmatprep.subr.bf16.mxu0 %v13279_v25  ;;  %7107 = vmatprep.subr.bf16.mxu1 %v13280_v3 }
 0xb5a   : > { %7067 = vmatpush1.bf16.msra.mxu0 %v13281_v38  ;;  %7108 = vmatpush1.bf16.msra.mxu1 %v13282_v49 }
 0xb5b   : > { %7068 = vmatprep.subr.bf16.mxu0 %v13361_v29  ;;  %7109 = vmatprep.subr.bf16.mxu1 %v13362_v12 }
 0xb5e   : > { %7069 = vmatpush1.bf16.msra.mxu0 %v13363_v42  ;;  %7110 = vmatpush1.bf16.msra.mxu1 %v13364_v2 }
 0xb5f   : > { %7070 = vmatprep.subr.bf16.mxu0 %v13365_v10  ;;  %7111 = vmatprep.subr.bf16.mxu1 %v13366_v40 }
 0xb62   : > { %7071 = vmatpush1.bf16.msra.mxu0 %v13367_v60  ;;  %7112 = vmatpush1.bf16.msra.mxu1 %v13368_v20 }
 0xb63   : > { %7072 = vmatprep.subr.bf16.mxu0 %v13369_v37  ;;  %7113 = vmatprep.subr.bf16.mxu1 %v13370_v56 }
 0xb66   : > { %7073 = vmatpush1.bf16.msra.mxu0 %v13371_v48  ;;  %7114 = vmatpush1.bf16.msra.mxu1 %v13372_v21 }
 0xb67   : > { %7074 = vmatprep.subr.bf16.mxu0 %v13451_v17  ;;  %7115 = vmatprep.subr.bf16.mxu1 %v13452_v19 }
 0xb6a   : > { %7075 = vmatpush1.bf16.msra.mxu0 %v13453_v32  ;;  %7116 = vmatpush1.bf16.msra.mxu1 %v13454_v36 }
 0xb6b   : > { %7076 = vmatprep.subr.bf16.mxu0 %v13455_v4  ;;  %7117 = vmatprep.subr.bf16.mxu1 %v13378_v62 }
 0xb6e   : > { %7077 = vmatpush1.bf16.msra.mxu0 %v13456_v33  ;;  %7118 = vmatpush1.bf16.msra.mxu1 %v13380_v26 }
 0xb6f   : > { %7078 = vmatprep.subr.bf16.mxu0 %v13381_v27  ;;  %7119 = vmatprep.subr.bf16.mxu1 %v13382_v55 }
 0xb72   : > { %7079 = vmatpush1.bf16.msra.mxu0 %v13383_v22  ;;  %7120 = vmatpush1.bf16.msra.mxu1 %v13384_v8 }
 0xb73   : > { %7080 = vmatprep.subr.bf16.mxu0 %v13385_v13  ;;  %7121 = vmatprep.subr.bf16.mxu1 %v13386_v51 }
 0xb76   : > { %7081 = vmatpush1.bf16.msra.mxu0 %v13387_v28  ;;  %7122 = vmatpush1.bf16.msra.mxu1 %v13388_v9 }
 0xb77   : > { %7082 = vmatprep.subr.bf16.mxu0 %v13631_v11  ;;  %7123 = vmatprep.subr.bf16.mxu1 %v13632_v18 }
 0xb7a   : > { %7083 = vmatpush1.bf16.msra.mxu0 %v13633_v44  ;;  %7124 = vmatpush1.bf16.msra.mxu1 %v13634_v52 }
 0xb7b   : > { %7084 = vmatprep.subr.bf16.mxu0 %v13635_v31  ;;  %7125 = vmatprep.subr.bf16.mxu1 %v13636_v50  ;;  %v6974_v31 = vld [vmem:[#allocation3 + $0x160] sm:$0xff] }
 0xb7e   : > { %7085 = vmatpush1.bf16.msra.mxu0 %v13637_v43  ;;  %7126 = vmatpush1.bf16.msra.mxu1 %v13638_v5  ;;  %v6973_v5 = vld [vmem:[#allocation3 + $0x158] sm:$0xff]  ;;  %v6971_v43 = vld [vmem:[#allocation3 + $0x148] sm:$0xff] }
 0xb7f   : > { %7086 = vmatprep.subr.bf16.mxu0 %v13639_v39  ;;  %7127 = vmatprep.subr.bf16.mxu1 %v13640_v59  ;;  %v6970_v59 = vld [vmem:[#allocation3 + $0x140] sm:$0xff] }
 0xb82   : > { %7087 = vmatpush1.bf16.msra.mxu0 %v13641_v63  ;;  %7128 = vmatpush1.bf16.msra.mxu1 %v13642_v47 }
 0xb83   : > { %7088 = vmatprep.subr.bf16.mxu0 %v13643_v61  ;;  %7129 = vmatprep.subr.bf16.mxu1 %v13644_v0  ;;  %v13654_v61 = vld [vmem:[#allocation143_spill] sm:$0xff]  ;;  %v13655_v0 = vld [vmem:[#allocation16_spill] sm:$0xff] }
 0xb86   : > { %7089 = vmatpush1.bf16.msra.mxu0 %v13645_v58  ;;  %7130 = vmatpush1.bf16.msra.mxu1 %v13646_v1  ;;  %v13656_v58 = vld [vmem:[#allocation20_spill] sm:$0xff] }
 0xb87   : > { %7090 = vmatprep.subr.bf16.mxu0 %v13647_v16  ;;  %7131 = vmatprep.subr.bf16.mxu1 %v13648_v41  ;;  %v13657_v41 = vld [vmem:[#allocation17_spill] sm:$0xff]  ;;  %v13666_v16 = vld [vmem:[#allocation28_spill] sm:$0xff] }
 0xb8a   : > { %7091 = vmatpush1.bf16.msra.mxu0 %v13649_v34  ;;  %7132 = vmatpush1.bf16.msra.mxu1 %v13650_v45  ;;  %v13658_v34 = vld [vmem:[#allocation21_spill] sm:$0xff]  ;;  %v13659_v45 = vld [vmem:[#allocation18_spill] sm:$0xff] }
 0xb8b   : > { %7092 = vmatprep.subr.bf16.mxu0 %v13651_v6  ;;  %7133 = vmatprep.subr.bf16.mxu1 %v13652_v35  ;;  %v13660_v6 = vld [vmem:[#allocation23_spill] sm:$0xff] }
 0xb8c   : > { %v13661_v35 = vld [vmem:[#allocation19_spill] sm:$0xff] }
 0xb8e   : > { %7093 = vmatpush1.bf16.msra.mxu0 %v13653_v30  ;;  %7134 = vmatpush1.bf16.msra.mxu1 %v13654_v61  ;;  %v13662_v30 = vld [vmem:[#allocation24_spill] sm:$0xff]  ;;  %v13663_v61 = vld [vmem:[#allocation22_spill] sm:$0xff] }
 0xb8f   : > { %7228 = vmatprep.subr.bf16.mxu0 %v13655_v0  ;;  %7269 = vmatprep.subr.bf16.mxu1 %v13656_v58  ;;  %v13664_v0 = vld [vmem:[#allocation26_spill] sm:$0xff]  ;;  %v13665_v58 = vld [vmem:[#allocation25_spill] sm:$0xff] }
 0xb91   : > { %7095 = vmatmul.mubr.bf16.vlgmr.msra.gmra.mrb[44].mxu0 %v12410_v14  ;;  %7136 = vmatmul.mubr.bf16.vlgmr.msra.gmra.mrb[44].mxu1 %v12410_v14  ;;  %v13667_v14 = vld [vmem:[#allocation27_spill] sm:$0xff] }
 0xb92   : > { %7229 = vmatpush1.bf16.msra.mxu0 %v13657_v41  ;;  %7270 = vmatpush1.bf16.msra.mxu1 %v13658_v34  ;;  %v13668_v41 = vld [vmem:[#allocation30_spill] sm:$0xff]  ;;  %v13669_v34 = vld [vmem:[#allocation29_spill] sm:$0xff] }
 0xb93   : > { %7230 = vmatprep.subr.bf16.mxu0 %v13659_v45  ;;  %7271 = vmatprep.subr.bf16.mxu1 %v13660_v6  ;;  %v13670_v45 = vld [vmem:[#allocation32_spill] sm:$0xff]  ;;  %v13671_v6 = vld [vmem:[#allocation31_spill] sm:$0xff] }
 0xb96   : > { %7231 = vmatpush1.bf16.msra.mxu0 %v13661_v35  ;;  %7272 = vmatpush1.bf16.msra.mxu1 %v13662_v30  ;;  %v13672_v35 = vld [vmem:[#allocation34_spill] sm:$0xff]  ;;  %v13673_v30 = vld [vmem:[#allocation33_spill] sm:$0xff] }
 0xb97   : > { %7232 = vmatprep.subr.bf16.mxu0 %v13663_v61  ;;  %7273 = vmatprep.subr.bf16.mxu1 %v13664_v0  ;;  %v13674_v61 = vld [vmem:[#allocation36_spill] sm:$0xff]  ;;  %v13675_v0 = vld [vmem:[#allocation35_spill] sm:$0xff] }
 0xb9a   : > { %7233 = vmatpush1.bf16.msra.mxu0 %v13665_v58  ;;  %7274 = vmatpush1.bf16.msra.mxu1 %v13666_v16  ;;  %v13676_v58 = vld [vmem:[#allocation38_spill] sm:$0xff]  ;;  %v13677_v16 = vld [vmem:[#allocation37_spill] sm:$0xff] }
 0xb9b   : > { %7234 = vmatprep.subr.bf16.mxu0 %v13667_v14  ;;  %7275 = vmatprep.subr.bf16.mxu1 %v13668_v41  ;;  %v13678_v14 = vld [vmem:[#allocation40_spill] sm:$0xff]  ;;  %v13679_v41 = vld [vmem:[#allocation39_spill] sm:$0xff] }
 0xb9e   : > { %7235 = vmatpush1.bf16.msra.mxu0 %v13669_v34  ;;  %7276 = vmatpush1.bf16.msra.mxu1 %v13670_v45  ;;  %v13680_v34 = vld [vmem:[#allocation42_spill] sm:$0xff]  ;;  %v13681_v45 = vld [vmem:[#allocation41_spill] sm:$0xff] }
 0xb9f   : > { %7236 = vmatprep.subr.bf16.mxu0 %v13671_v6  ;;  %7277 = vmatprep.subr.bf16.mxu1 %v13672_v35  ;;  %v13682_v6 = vld [vmem:[#allocation44_spill] sm:$0xff]  ;;  %v13683_v35 = vld [vmem:[#allocation43_spill] sm:$0xff] }
 0xba2   : > { %7237 = vmatpush1.bf16.msra.mxu0 %v13673_v30  ;;  %7278 = vmatpush1.bf16.msra.mxu1 %v13674_v61  ;;  %v13684_v30 = vld [vmem:[#allocation46_spill] sm:$0xff]  ;;  %v13685_v61 = vld [vmem:[#allocation45_spill] sm:$0xff] }
 0xba3   : > { %7238 = vmatprep.subr.bf16.mxu0 %v13675_v0  ;;  %7279 = vmatprep.subr.bf16.mxu1 %v13676_v58  ;;  %v13686_v0 = vld [vmem:[#allocation48_spill] sm:$0xff]  ;;  %v13687_v58 = vld [vmem:[#allocation47_spill] sm:$0xff] }
 0xba6   : > { %7239 = vmatpush1.bf16.msra.mxu0 %v13677_v16  ;;  %7280 = vmatpush1.bf16.msra.mxu1 %v13678_v14  ;;  %v13688_v16 = vld [vmem:[#allocation50_spill] sm:$0xff]  ;;  %v13689_v14 = vld [vmem:[#allocation49_spill] sm:$0xff] }
 0xba7   : > { %7240 = vmatprep.subr.bf16.mxu0 %v13679_v41  ;;  %7281 = vmatprep.subr.bf16.mxu1 %v13680_v34  ;;  %v13690_v41 = vld [vmem:[#allocation52_spill] sm:$0xff]  ;;  %v13691_v34 = vld [vmem:[#allocation51_spill] sm:$0xff] }
 0xbaa   : > { %7241 = vmatpush1.bf16.msra.mxu0 %v13681_v45  ;;  %7282 = vmatpush1.bf16.msra.mxu1 %v13682_v6  ;;  %v13692_v45 = vld [vmem:[#allocation54_spill] sm:$0xff]  ;;  %v13693_v6 = vld [vmem:[#allocation53_spill] sm:$0xff] }
 0xbab   : > { %7242 = vmatprep.subr.bf16.mxu0 %v13683_v35  ;;  %7283 = vmatprep.subr.bf16.mxu1 %v13684_v30  ;;  %v13694_v35 = vld [vmem:[#allocation56_spill] sm:$0xff]  ;;  %v13695_v30 = vld [vmem:[#allocation55_spill] sm:$0xff] }
 0xbae   : > { %7243 = vmatpush1.bf16.msra.mxu0 %v13685_v61  ;;  %7284 = vmatpush1.bf16.msra.mxu1 %v13686_v0  ;;  %v13696_v61 = vld [vmem:[#allocation58_spill] sm:$0xff]  ;;  %v13697_v0 = vld [vmem:[#allocation57_spill] sm:$0xff] }
 0xbaf   : > { %7244 = vmatprep.subr.bf16.mxu0 %v13687_v58  ;;  %7285 = vmatprep.subr.bf16.mxu1 %v13688_v16  ;;  %v13698_v58 = vld [vmem:[#allocation60_spill] sm:$0xff]  ;;  %v13699_v16 = vld [vmem:[#allocation59_spill] sm:$0xff] }
 0xbb2   : > { %7245 = vmatpush1.bf16.msra.mxu0 %v13689_v14  ;;  %7286 = vmatpush1.bf16.msra.mxu1 %v13690_v41  ;;  %v13700_v14 = vld [vmem:[#allocation62_spill] sm:$0xff]  ;;  %v13701_v41 = vld [vmem:[#allocation61_spill] sm:$0xff] }
 0xbb3   : > { %7246 = vmatprep.subr.bf16.mxu0 %v13691_v34  ;;  %7287 = vmatprep.subr.bf16.mxu1 %v13692_v45  ;;  %v13702_v34 = vld [vmem:[#allocation64_spill] sm:$0xff]  ;;  %v13703_v45 = vld [vmem:[#allocation63_spill] sm:$0xff] }
 0xbb6   : > { %7247 = vmatpush1.bf16.msra.mxu0 %v13693_v6  ;;  %7288 = vmatpush1.bf16.msra.mxu1 %v13694_v35  ;;  %v13704_v6 = vld [vmem:[#allocation66_spill] sm:$0xff]  ;;  %v13705_v35 = vld [vmem:[#allocation65_spill] sm:$0xff] }
 0xbb7   : > { %7248 = vmatprep.subr.bf16.mxu0 %v13695_v30  ;;  %7289 = vmatprep.subr.bf16.mxu1 %v13696_v61  ;;  %v13706_v30 = vld [vmem:[#allocation68_spill] sm:$0xff]  ;;  %v13707_v61 = vld [vmem:[#allocation67_spill] sm:$0xff] }
 0xbba   : > { %7249 = vmatpush1.bf16.msra.mxu0 %v13697_v0  ;;  %7290 = vmatpush1.bf16.msra.mxu1 %v13698_v58  ;;  %v13708_v0 = vld [vmem:[#allocation70_spill] sm:$0xff]  ;;  %v13709_v58 = vld [vmem:[#allocation69_spill] sm:$0xff] }
 0xbbb   : > { %7250 = vmatprep.subr.bf16.mxu0 %v13699_v16  ;;  %7291 = vmatprep.subr.bf16.mxu1 %v13700_v14  ;;  %v13710_v16 = vld [vmem:[#allocation72_spill] sm:$0xff]  ;;  %v13711_v14 = vld [vmem:[#allocation71_spill] sm:$0xff] }
 0xbbe   : > { %7251 = vmatpush1.bf16.msra.mxu0 %v13701_v41  ;;  %7292 = vmatpush1.bf16.msra.mxu1 %v13702_v34  ;;  %v13712_v41 = vld [vmem:[#allocation74_spill] sm:$0xff]  ;;  %v13713_v34 = vld [vmem:[#allocation73_spill] sm:$0xff] }
 0xbbf   : > { %7252 = vmatprep.subr.bf16.mxu0 %v13703_v45  ;;  %7293 = vmatprep.subr.bf16.mxu1 %v13704_v6  ;;  %v13714_v45 = vld [vmem:[#allocation76_spill] sm:$0xff]  ;;  %v13715_v6 = vld [vmem:[#allocation75_spill] sm:$0xff] }
 0xbc2   : > { %7253 = vmatpush1.bf16.msra.mxu0 %v13705_v35  ;;  %7294 = vmatpush1.bf16.msra.mxu1 %v13706_v30  ;;  %v13716_v35 = vld [vmem:[#allocation78_spill] sm:$0xff]  ;;  %v13717_v30 = vld [vmem:[#allocation77_spill] sm:$0xff] }
 0xbc3   : > { %7254 = vmatprep.subr.bf16.mxu0 %v13707_v61  ;;  %7295 = vmatprep.subr.bf16.mxu1 %v13708_v0  ;;  %v13718_v61 = vld [vmem:[#allocation80_spill] sm:$0xff]  ;;  %v13719_v0 = vld [vmem:[#allocation79_spill] sm:$0xff] }
 0xbc6   : > { %7255 = vmatpush1.bf16.msra.mxu0 %v13709_v58  ;;  %7296 = vmatpush1.bf16.msra.mxu1 %v13710_v16  ;;  %v13720_v58 = vld [vmem:[#allocation82_spill] sm:$0xff] }
 0xbc7   : > { %7256 = vmatprep.subr.bf16.mxu0 %v13711_v14  ;;  %7297 = vmatprep.subr.bf16.mxu1 %v13712_v41 }
 0xbca   : > { %7257 = vmatpush1.bf16.msra.mxu0 %v13713_v34  ;;  %7298 = vmatpush1.bf16.msra.mxu1 %v13714_v45 }
 0xbcb   : > { %7258 = vmatprep.subr.bf16.mxu0 %v13715_v6  ;;  %7299 = vmatprep.subr.bf16.mxu1 %v13716_v35  ;;  %v6972_v6 = vld [vmem:[#allocation3 + $0x150] sm:$0xff] }
 0xbce   : > { %7259 = vmatpush1.bf16.msra.mxu0 %v13717_v30  ;;  %7300 = vmatpush1.bf16.msra.mxu1 %v13718_v61 }
 0xbcf   : > { %7310 = vmatprep.subr.bf16.mxu0 %v13719_v0  ;;  %7351 = vmatprep.subr.bf16.mxu1 %v13720_v58  ;;  %v6975_v58 = vld [vmem:[#allocation3 + $0x168] sm:$0xff] }
 0xc24   : > { %v7014_v16 = vpop.f32.mrb[40].mxu0  ;;  %v7055_v14 = vpop.f32.mrb[40].mxu1 }
 0xc25   : > { %v7016_v1 = vpop.f32.mrb[41].mxu0  ;;  %v7057_v41 = vpop.f32.mrb[41].mxu1  ;;  %v7144_v39 = vadd.f32 %v7014_v16, %v6970_v59  ;;  %v7146_v35 = vadd.f32 %v7055_v14, %v6972_v6 }
 0xc26   : > { %v7018_v47 = vpop.f32.mrb[42].mxu0  ;;  %v7059_v34 = vpop.f32.mrb[42].mxu1  ;;  %v7147_v50 = vadd.f32 %v7057_v41, %v6973_v5  ;;  %v7145_v0 = vadd.f32 %v7016_v1, %v6971_v43  ;;  %v6976_v43 = vld [vmem:[#allocation3 + $0x170] sm:$0xff]  ;;  %v6977_v1 = vld [vmem:[#allocation3 + $0x178] sm:$0xff] }
 0xc27   : > { %v7019_v63 = vpop.f32.mrb[43].mxu0  ;;  %v7060_v45 = vpop.f32.mrb[43].mxu1  ;;  %v8996_v30 = vmul.f32 -1.442695, %v7144_v39  ;;  %v8998_v61 = vmul.f32 -1.442695, %v7146_v35 }
 0xc28   : > { %v8999_v52 = vmul.f32 -1.442695, %v7147_v50  ;;  %v8997_v18 = vmul.f32 -1.442695, %v7145_v0 }
 0xc29   : > { %9680 = vpow2.f32 %v8996_v30 }
 0xc2a   : > { %9682 = vpow2.f32 %v8998_v61 }
 0xc2b   : > { %9684 = vpow2.f32 %v8999_v52 }
 0xc33   : > { %v9681_v61 = vpop.eup %9680 }
 0xc34   : > { %v9683_v50 = vpop.eup %9682 }
 0xc35   : > { %v9685_v0 = vpop.eup %9684 }
 0xc36   : > { %v7179_v52 = vadd.f32 1.0, %v9685_v0 }
 0xc64   : > { %v7096_v44 = vpop.f32.mrb[44].mxu0  ;;  %v7137_v47 = vpop.f32.mrb[44].mxu1 }
 0xc65   : > { %v7148_v34 = vadd.f32 %v7096_v44, %v6974_v31  ;;  %v7098_v63 = vpop.f32.mrb[45].mxu0  ;;  %v7139_v45 = vpop.f32.mrb[45].mxu1  ;;  %v7150_v41 = vadd.f32 %v7137_v47, %v6976_v43  ;;  %v7176_v44 = vadd.f32 1.0, %v9681_v61  ;;  %v7178_v31 = vadd.f32 1.0, %v9683_v50 }
 0xc66   : > { %v7149_v11 = vadd.f32 %v7098_v63, %v6975_v58  ;;  %v7100_v59 = vpop.f32.mrb[46].mxu0  ;;  %v7141_v16 = vpop.f32.mrb[46].mxu1  ;;  %v7151_v35 = vadd.f32 %v7139_v45, %v6977_v1 }
 0xc67   : > { %v9000_v6 = vmul.f32 -1.442695, %v7148_v34  ;;  %v7101_v39 = vpop.f32.mrb[47].mxu0  ;;  %v7142_v14 = vpop.f32.mrb[47].mxu1  ;;  %v9002_v30 = vmul.f32 -1.442695, %v7150_v41 }
 0xc68   : > { %v9001_v5 = vmul.f32 -1.442695, %v7149_v11  ;;  %v9003_v11 = vmul.f32 -1.442695, %v7151_v35 }
 0xc69   : > { %9686 = vpow2.f32 %v9000_v6 }
 0xc6a   : > { %9688 = vpow2.f32 %v8997_v18 }
 0xc6b   : > { %9690 = vpow2.f32 %v9001_v5 }
 0xc6c   : > { %9692 = vrcp.f32 %v7176_v44 }
 0xc6d   : > { %9694 = vrcp.f32 %v7178_v31 }
 0xc73   : > { %v9687_v58 = vpop.eup %9686 }
 0xc74   : > { %v9689_v63 = vpop.eup %9688  ;;  %v7180_v34 = vadd.f32 1.0, %v9687_v58 }
 0xc75   : > { %v9691_v59 = vpop.eup %9690  ;;  %v7177_v16 = vadd.f32 1.0, %v9689_v63 }
 0xc76   : > { %9696 = vrcp.f32 %v7180_v34  ;;  %v7181_v18 = vadd.f32 1.0, %v9691_v59  ;;  %v9693_v47 = vpop.eup %9692 }
 0xc77   : > { %9698 = vpow2.f32 %v9002_v30  ;;  %v9695_v45 = vpop.eup %9694 }
 0xc78   : > { %9700 = vrcp.f32 %v7181_v18  ;;  %v7204_v44 = vmul.f32 %v9695_v45, %v12403_v53 }
 0xc79   : > { %9702 = vpow2.f32 %v9003_v11 }
 0xc7a   : > { %9704 = vrcp.f32 %v7179_v52 }
 0xc7b   : > { %9706 = vrcp.f32 %v7177_v16 }
 0xc80   : > { %v9697_v6 = vpop.eup %9696 }
 0xc81   : > { %v9699_v39 = vpop.eup %9698  ;;  %v7200_v14 = vmul.f32 2.0, %v9697_v6  ;;  %v13721_v6 = vld [vmem:[#allocation119_spill] sm:$0xff] }
 0xc82   : > { %v9701_v5 = vpop.eup %9700  ;;  %v7182_v41 = vadd.f32 1.0, %v9699_v39  ;;  %v13722_v39 = vld [vmem:[#allocation122_spill] sm:$0xff] }
 0xc83   : > { %v9703_v43 = vpop.eup %9702  ;;  %v9004_v61 = vadd.f32 -1.0, %v7200_v14  ;;  %v7201_v50 = vmul.f32 2.0, %v9701_v5  ;;  %v13723_v14 = vld [vmem:[#allocation121_spill] sm:$0xff]  ;;  %v13724_v5 = vld [vmem:[#allocation124_spill] sm:$0xff] }
 0xc84   : > { %v9705_v1 = vpop.eup %9704  ;;  %v7183_v58 = vadd.f32 1.0, %v9703_v43  ;;  %9708 = vrcp.f32 %v7182_v41  ;;  %v13725_v43 = vld [vmem:[#allocation123_spill] sm:$0xff] }
 0xc85   : > { %v7206_v31 = vmul.f32 %v9693_v47, %v9004_v61  ;;  %v9005_v35 = vadd.f32 -1.0, %v7201_v50  ;;  %v9707_v0 = vpop.eup %9706  ;;  %v7205_v63 = vmul.f32 %v9705_v1, %v12407_v7  ;;  %v13726_v61 = vld [vmem:[#allocation126_spill] sm:$0xff]  ;;  %v13727_v50 = vld [vmem:[#allocation125_spill] sm:$0xff]  ;;  %v13728_v1 = vld [vmem:[#allocation128_spill] sm:$0xff] }
 0xc86   : > { %v13729_v41 = vld [vmem:[#allocation127_spill] sm:$0xff] }
 0xc87   : > { %v12545_v30 = vadd.f32 %v7206_v31, %v7204_v44  ;;  %v7207_v34 = vmul.f32 %v9707_v0, %v9005_v35  ;;  %v13730_v44 = vld [vmem:[#allocation130_spill] sm:$0xff]  ;;  %v13731_v31 = vld [vmem:[#allocation129_spill] sm:$0xff]  ;;  %v13732_v35 = vld [vmem:[#allocation132_spill] sm:$0xff] }
 0xc88   : > { %v13733_v0 = vld [vmem:[#allocation131_spill] sm:$0xff] }
 0xc89   : > { %9710 = vtanh.f32 %v12545_v30  ;;  %v12549_v59 = vadd.f32 %v7207_v34, %v7205_v63  ;;  %v13735_v63 = vld [vmem:[#allocation133_spill] sm:$0xff]  ;;  %v13736_v34 = vld [vmem:[#allocation136_spill] sm:$0xff] }
 0xc8a   : > { %9712 = vrcp.f32 %v7183_v58  ;;  %v13734_v58 = vld [vmem:[#allocation134_spill] sm:$0xff] }
 0xc8b   : > { %9714 = vtanh.f32 %v12549_v59 }
 0xc8e   : > { %v9709_v11 = vpop.eup %9708 }
 0xc93   : > { %v9711_v52 = vpop.eup %9710 }
 0xc94   : > { %v9713_v53 = vpop.eup %9712  ;;  %v7212_v18 = vmul.f32 %v9711_v52, %v9709_v11  ;;  %v13737_v11 = vld [vmem:[#allocation135_spill] sm:$0xff]  ;;  %v13738_v52 = vld [vmem:[#allocation138_spill] sm:$0xff] }
 0xc95   : > { %v9715_v16 = vpop.eup %9714 }
 0xc96   : > { %v7213_v47 = vmul.f32 %v9715_v16, %v9713_v53  ;;  %7214 = vst [vmem:[#allocation2 + $0xa0] sm:$0xff] %v7212_v18  ;;  %7216 = vst [vmem:[#allocation2 + $0x50] sm:$0xff] %v7212_v18  ;;  %v12552_v45 = vpack.c.bf16 %v7212_v18, %v7212_v18  ;;  %v13739_v53 = vld [vmem:[#allocation137_spill] sm:$0xff]  ;;  %v13740_v18 = vld [vmem:[#allocation140_spill] sm:$0xff] }
 0xc97   : > { %v13741_v16 = vld [vmem:[#allocation139_spill] sm:$0xff] }
 0xc98   : > { %7215 = vst [vmem:[#allocation2 + $0xa8] sm:$0xff] %v7213_v47  ;;  %7217 = vst [vmem:[#allocation2 + $0x58] sm:$0xff] %v7213_v47  ;;  %v7227_v7 = vpack.c.bf16 %v7213_v47, %v7213_v47  ;;  %v13742_v47 = vld [vmem:[#allocation142_spill] sm:$0xff] }
 0xc9a   : > { %7260 = vmatprep.mubr.bf16.mxu0 %v7227_v7  ;;  %7301 = vmatprep.mubr.bf16.mxu1 %v7227_v7 }
 0xc9b   : > { %7261 = vmatmul.mubr.bf16.vlgmr.msra.gmra.mrb[48].mxu0 %v12552_v45  ;;  %7302 = vmatmul.mubr.bf16.vlgmr.msra.gmra.mrb[48].mxu1 %v12552_v45 }
 0xc9c   : > { %7311 = vmatpush1.bf16.msra.mxu0 %v13273_v24  ;;  %7352 = vmatpush1.bf16.msra.mxu1 %v13274_v23 }
 0xc9d   : > { %7342 = vmatprep.mubr.bf16.mxu0 %v7227_v7  ;;  %7383 = vmatprep.mubr.bf16.mxu1 %v7227_v7  ;;  %v13743_v7 = vld [vmem:[#allocation141_spill] sm:$0xff] }
 0xc9e   : > { %7312 = vmatprep.subr.bf16.mxu0 %v13275_v54  ;;  %7353 = vmatprep.subr.bf16.mxu1 %v13276_v46 }
 0xca0   : > { %7313 = vmatpush1.bf16.msra.mxu0 %v13277_v15  ;;  %7354 = vmatpush1.bf16.msra.mxu1 %v13278_v57 }
 0xca1   : > { %7314 = vmatprep.subr.bf16.mxu0 %v13279_v25  ;;  %7355 = vmatprep.subr.bf16.mxu1 %v13280_v3 }
 0xca4   : > { %7315 = vmatpush1.bf16.msra.mxu0 %v13281_v38  ;;  %7356 = vmatpush1.bf16.msra.mxu1 %v13282_v49 }
 0xca5   : > { %7316 = vmatprep.subr.bf16.mxu0 %v13361_v29  ;;  %7357 = vmatprep.subr.bf16.mxu1 %v13362_v12 }
 0xca8   : > { %7317 = vmatpush1.bf16.msra.mxu0 %v13363_v42  ;;  %7358 = vmatpush1.bf16.msra.mxu1 %v13364_v2 }
 0xca9   : > { %7318 = vmatprep.subr.bf16.mxu0 %v13365_v10  ;;  %7359 = vmatprep.subr.bf16.mxu1 %v13366_v40 }
 0xcac   : > { %7319 = vmatpush1.bf16.msra.mxu0 %v13367_v60  ;;  %7360 = vmatpush1.bf16.msra.mxu1 %v13368_v20 }
 0xcad   : > { %7320 = vmatprep.subr.bf16.mxu0 %v13369_v37  ;;  %7361 = vmatprep.subr.bf16.mxu1 %v13370_v56 }
 0xcb0   : > { %7321 = vmatpush1.bf16.msra.mxu0 %v13371_v48  ;;  %7362 = vmatpush1.bf16.msra.mxu1 %v13372_v21 }
 0xcb1   : > { %7322 = vmatprep.subr.bf16.mxu0 %v13451_v17  ;;  %7363 = vmatprep.subr.bf16.mxu1 %v13452_v19 }
 0xcb4   : > { %7323 = vmatpush1.bf16.msra.mxu0 %v13453_v32  ;;  %7364 = vmatpush1.bf16.msra.mxu1 %v13454_v36 }
 0xcb5   : > { %7324 = vmatprep.subr.bf16.mxu0 %v13455_v4  ;;  %7365 = vmatprep.subr.bf16.mxu1 %v13378_v62 }
 0xcb8   : > { %7325 = vmatpush1.bf16.msra.mxu0 %v13456_v33  ;;  %7366 = vmatpush1.bf16.msra.mxu1 %v13380_v26 }
 0xcb9   : > { %7326 = vmatprep.subr.bf16.mxu0 %v13381_v27  ;;  %7367 = vmatprep.subr.bf16.mxu1 %v13382_v55 }
 0xcbc   : > { %7327 = vmatpush1.bf16.msra.mxu0 %v13383_v22  ;;  %7368 = vmatpush1.bf16.msra.mxu1 %v13384_v8 }
 0xcbd   : > { %7328 = vmatprep.subr.bf16.mxu0 %v13385_v13  ;;  %7369 = vmatprep.subr.bf16.mxu1 %v13386_v51 }
 0xcc0   : > { %7329 = vmatpush1.bf16.msra.mxu0 %v13387_v28  ;;  %7370 = vmatpush1.bf16.msra.mxu1 %v13388_v9 }
 0xcc1   : > { %7330 = vmatprep.subr.bf16.mxu0 %v13721_v6  ;;  %7371 = vmatprep.subr.bf16.mxu1 %v13722_v39 }
 0xcc4   : > { %7331 = vmatpush1.bf16.msra.mxu0 %v13723_v14  ;;  %7372 = vmatpush1.bf16.msra.mxu1 %v13724_v5 }
 0xcc5   : > { %7332 = vmatprep.subr.bf16.mxu0 %v13725_v43  ;;  %7373 = vmatprep.subr.bf16.mxu1 %v13726_v61  ;;  %v7222_v43 = vld [vmem:[#allocation3 + $0x1a0] sm:$0xff] }
 0xcc8   : > { %7333 = vmatpush1.bf16.msra.mxu0 %v13727_v50  ;;  %7374 = vmatpush1.bf16.msra.mxu1 %v13728_v1  ;;  %v7221_v1 = vld [vmem:[#allocation3 + $0x198] sm:$0xff]  ;;  %v7219_v50 = vld [vmem:[#allocation3 + $0x188] sm:$0xff] }
 0xcc9   : > { %7334 = vmatprep.subr.bf16.mxu0 %v13729_v41  ;;  %7375 = vmatprep.subr.bf16.mxu1 %v13730_v44  ;;  %v7218_v44 = vld [vmem:[#allocation3 + $0x180] sm:$0xff] }
 0xccc   : > { %7335 = vmatpush1.bf16.msra.mxu0 %v13731_v31  ;;  %7376 = vmatpush1.bf16.msra.mxu1 %v13732_v35 }
 0xccd   : > { %7336 = vmatprep.subr.bf16.mxu0 %v13733_v0  ;;  %7377 = vmatprep.subr.bf16.mxu1 %v13734_v58  ;;  %v13744_v0 = vld [vmem:[#allocation143_spill] sm:$0xff]  ;;  %v13745_v58 = vld [vmem:[#allocation16_spill] sm:$0xff] }
 0xcd0   : > { %7337 = vmatpush1.bf16.msra.mxu0 %v13735_v63  ;;  %7378 = vmatpush1.bf16.msra.mxu1 %v13736_v34  ;;  %v13746_v63 = vld [vmem:[#allocation20_spill] sm:$0xff] }
 0xcd1   : > { %7338 = vmatprep.subr.bf16.mxu0 %v13737_v11  ;;  %7379 = vmatprep.subr.bf16.mxu1 %v13738_v52  ;;  %v13747_v52 = vld [vmem:[#allocation17_spill] sm:$0xff]  ;;  %v13756_v11 = vld [vmem:[#allocation28_spill] sm:$0xff] }
 0xcd4   : > { %7339 = vmatpush1.bf16.msra.mxu0 %v13739_v53  ;;  %7380 = vmatpush1.bf16.msra.mxu1 %v13740_v18  ;;  %v13748_v53 = vld [vmem:[#allocation21_spill] sm:$0xff]  ;;  %v13749_v18 = vld [vmem:[#allocation18_spill] sm:$0xff] }
 0xcd5   : > { %7340 = vmatprep.subr.bf16.mxu0 %v13741_v16  ;;  %7381 = vmatprep.subr.bf16.mxu1 %v13742_v47  ;;  %v13750_v16 = vld [vmem:[#allocation23_spill] sm:$0xff] }
 0xcd6   : > { %v13751_v47 = vld [vmem:[#allocation19_spill] sm:$0xff] }
 0xcd8   : > { %7341 = vmatpush1.bf16.msra.mxu0 %v13743_v7  ;;  %7382 = vmatpush1.bf16.msra.mxu1 %v13744_v0  ;;  %v13752_v7 = vld [vmem:[#allocation24_spill] sm:$0xff]  ;;  %v13753_v0 = vld [vmem:[#allocation22_spill] sm:$0xff] }
 0xcd9   : > { %7476 = vmatprep.subr.bf16.mxu0 %v13745_v58  ;;  %7517 = vmatprep.subr.bf16.mxu1 %v13746_v63  ;;  %v13754_v58 = vld [vmem:[#allocation26_spill] sm:$0xff]  ;;  %v13755_v63 = vld [vmem:[#allocation25_spill] sm:$0xff] }
 0xcdb   : > { %7343 = vmatmul.mubr.bf16.vlgmr.msra.gmra.mrb[52].mxu0 %v12552_v45  ;;  %7384 = vmatmul.mubr.bf16.vlgmr.msra.gmra.mrb[52].mxu1 %v12552_v45  ;;  %v13757_v45 = vld [vmem:[#allocation27_spill] sm:$0xff] }
 0xcdc   : > { %7477 = vmatpush1.bf16.msra.mxu0 %v13747_v52  ;;  %7518 = vmatpush1.bf16.msra.mxu1 %v13748_v53  ;;  %v13758_v52 = vld [vmem:[#allocation30_spill] sm:$0xff]  ;;  %v13759_v53 = vld [vmem:[#allocation29_spill] sm:$0xff] }
 0xcdd   : > { %7478 = vmatprep.subr.bf16.mxu0 %v13749_v18  ;;  %7519 = vmatprep.subr.bf16.mxu1 %v13750_v16  ;;  %v13760_v18 = vld [vmem:[#allocation32_spill] sm:$0xff]  ;;  %v13761_v16 = vld [vmem:[#allocation31_spill] sm:$0xff] }
 0xce0   : > { %7479 = vmatpush1.bf16.msra.mxu0 %v13751_v47  ;;  %7520 = vmatpush1.bf16.msra.mxu1 %v13752_v7  ;;  %v13762_v47 = vld [vmem:[#allocation34_spill] sm:$0xff]  ;;  %v13763_v7 = vld [vmem:[#allocation33_spill] sm:$0xff] }
 0xce1   : > { %7480 = vmatprep.subr.bf16.mxu0 %v13753_v0  ;;  %7521 = vmatprep.subr.bf16.mxu1 %v13754_v58  ;;  %v13764_v0 = vld [vmem:[#allocation36_spill] sm:$0xff]  ;;  %v13765_v58 = vld [vmem:[#allocation35_spill] sm:$0xff] }
 0xce4   : > { %7481 = vmatpush1.bf16.msra.mxu0 %v13755_v63  ;;  %7522 = vmatpush1.bf16.msra.mxu1 %v13756_v11  ;;  %v13766_v63 = vld [vmem:[#allocation38_spill] sm:$0xff]  ;;  %v13767_v11 = vld [vmem:[#allocation37_spill] sm:$0xff] }
 0xce5   : > { %7482 = vmatprep.subr.bf16.mxu0 %v13757_v45  ;;  %7523 = vmatprep.subr.bf16.mxu1 %v13758_v52  ;;  %v13768_v45 = vld [vmem:[#allocation40_spill] sm:$0xff]  ;;  %v13769_v52 = vld [vmem:[#allocation39_spill] sm:$0xff] }
 0xce8   : > { %7483 = vmatpush1.bf16.msra.mxu0 %v13759_v53  ;;  %7524 = vmatpush1.bf16.msra.mxu1 %v13760_v18  ;;  %v13770_v53 = vld [vmem:[#allocation42_spill] sm:$0xff]  ;;  %v13771_v18 = vld [vmem:[#allocation41_spill] sm:$0xff] }
 0xce9   : > { %7484 = vmatprep.subr.bf16.mxu0 %v13761_v16  ;;  %7525 = vmatprep.subr.bf16.mxu1 %v13762_v47  ;;  %v13772_v16 = vld [vmem:[#allocation44_spill] sm:$0xff]  ;;  %v13773_v47 = vld [vmem:[#allocation43_spill] sm:$0xff] }
 0xcec   : > { %7485 = vmatpush1.bf16.msra.mxu0 %v13763_v7  ;;  %7526 = vmatpush1.bf16.msra.mxu1 %v13764_v0  ;;  %v13774_v7 = vld [vmem:[#allocation46_spill] sm:$0xff]  ;;  %v13775_v0 = vld [vmem:[#allocation45_spill] sm:$0xff] }
 0xced   : > { %7486 = vmatprep.subr.bf16.mxu0 %v13765_v58  ;;  %7527 = vmatprep.subr.bf16.mxu1 %v13766_v63  ;;  %v13776_v58 = vld [vmem:[#allocation48_spill] sm:$0xff]  ;;  %v13777_v63 = vld [vmem:[#allocation47_spill] sm:$0xff] }
 0xcf0   : > { %7487 = vmatpush1.bf16.msra.mxu0 %v13767_v11  ;;  %7528 = vmatpush1.bf16.msra.mxu1 %v13768_v45  ;;  %v13778_v11 = vld [vmem:[#allocation50_spill] sm:$0xff]  ;;  %v13779_v45 = vld [vmem:[#allocation49_spill] sm:$0xff] }
 0xcf1   : > { %7488 = vmatprep.subr.bf16.mxu0 %v13769_v52  ;;  %7529 = vmatprep.subr.bf16.mxu1 %v13770_v53  ;;  %v13780_v52 = vld [vmem:[#allocation52_spill] sm:$0xff]  ;;  %v13781_v53 = vld [vmem:[#allocation51_spill] sm:$0xff] }
 0xcf4   : > { %7489 = vmatpush1.bf16.msra.mxu0 %v13771_v18  ;;  %7530 = vmatpush1.bf16.msra.mxu1 %v13772_v16  ;;  %v13782_v18 = vld [vmem:[#allocation54_spill] sm:$0xff]  ;;  %v13783_v16 = vld [vmem:[#allocation53_spill] sm:$0xff] }
 0xcf5   : > { %7490 = vmatprep.subr.bf16.mxu0 %v13773_v47  ;;  %7531 = vmatprep.subr.bf16.mxu1 %v13774_v7  ;;  %v13784_v47 = vld [vmem:[#allocation56_spill] sm:$0xff]  ;;  %v13785_v7 = vld [vmem:[#allocation55_spill] sm:$0xff] }
 0xcf8   : > { %7491 = vmatpush1.bf16.msra.mxu0 %v13775_v0  ;;  %7532 = vmatpush1.bf16.msra.mxu1 %v13776_v58  ;;  %v13786_v0 = vld [vmem:[#allocation58_spill] sm:$0xff]  ;;  %v13787_v58 = vld [vmem:[#allocation57_spill] sm:$0xff] }
 0xcf9   : > { %7492 = vmatprep.subr.bf16.mxu0 %v13777_v63  ;;  %7533 = vmatprep.subr.bf16.mxu1 %v13778_v11  ;;  %v13788_v63 = vld [vmem:[#allocation60_spill] sm:$0xff]  ;;  %v13789_v11 = vld [vmem:[#allocation59_spill] sm:$0xff] }
 0xcfc   : > { %7493 = vmatpush1.bf16.msra.mxu0 %v13779_v45  ;;  %7534 = vmatpush1.bf16.msra.mxu1 %v13780_v52  ;;  %v13790_v45 = vld [vmem:[#allocation62_spill] sm:$0xff]  ;;  %v13791_v52 = vld [vmem:[#allocation61_spill] sm:$0xff] }
 0xcfd   : > { %7494 = vmatprep.subr.bf16.mxu0 %v13781_v53  ;;  %7535 = vmatprep.subr.bf16.mxu1 %v13782_v18  ;;  %v13792_v53 = vld [vmem:[#allocation64_spill] sm:$0xff]  ;;  %v13793_v18 = vld [vmem:[#allocation63_spill] sm:$0xff] }
 0xd00   : > { %7495 = vmatpush1.bf16.msra.mxu0 %v13783_v16  ;;  %7536 = vmatpush1.bf16.msra.mxu1 %v13784_v47  ;;  %v13794_v16 = vld [vmem:[#allocation66_spill] sm:$0xff]  ;;  %v13795_v47 = vld [vmem:[#allocation65_spill] sm:$0xff] }
 0xd01   : > { %7496 = vmatprep.subr.bf16.mxu0 %v13785_v7  ;;  %7537 = vmatprep.subr.bf16.mxu1 %v13786_v0  ;;  %v13796_v7 = vld [vmem:[#allocation68_spill] sm:$0xff]  ;;  %v13797_v0 = vld [vmem:[#allocation67_spill] sm:$0xff] }
 0xd04   : > { %7497 = vmatpush1.bf16.msra.mxu0 %v13787_v58  ;;  %7538 = vmatpush1.bf16.msra.mxu1 %v13788_v63  ;;  %v13798_v58 = vld [vmem:[#allocation70_spill] sm:$0xff]  ;;  %v13799_v63 = vld [vmem:[#allocation69_spill] sm:$0xff] }
 0xd05   : > { %7498 = vmatprep.subr.bf16.mxu0 %v13789_v11  ;;  %7539 = vmatprep.subr.bf16.mxu1 %v13790_v45  ;;  %v13800_v11 = vld [vmem:[#allocation72_spill] sm:$0xff]  ;;  %v13801_v45 = vld [vmem:[#allocation71_spill] sm:$0xff] }
 0xd08   : > { %7499 = vmatpush1.bf16.msra.mxu0 %v13791_v52  ;;  %7540 = vmatpush1.bf16.msra.mxu1 %v13792_v53  ;;  %v13802_v52 = vld [vmem:[#allocation74_spill] sm:$0xff]  ;;  %v13803_v53 = vld [vmem:[#allocation73_spill] sm:$0xff] }
 0xd09   : > { %7500 = vmatprep.subr.bf16.mxu0 %v13793_v18  ;;  %7541 = vmatprep.subr.bf16.mxu1 %v13794_v16  ;;  %v13804_v18 = vld [vmem:[#allocation76_spill] sm:$0xff]  ;;  %v13805_v16 = vld [vmem:[#allocation75_spill] sm:$0xff] }
 0xd0c   : > { %7501 = vmatpush1.bf16.msra.mxu0 %v13795_v47  ;;  %7542 = vmatpush1.bf16.msra.mxu1 %v13796_v7  ;;  %v13806_v47 = vld [vmem:[#allocation78_spill] sm:$0xff]  ;;  %v13807_v7 = vld [vmem:[#allocation77_spill] sm:$0xff] }
 0xd0d   : > { %7502 = vmatprep.subr.bf16.mxu0 %v13797_v0  ;;  %7543 = vmatprep.subr.bf16.mxu1 %v13798_v58  ;;  %v13808_v0 = vld [vmem:[#allocation80_spill] sm:$0xff]  ;;  %v13809_v58 = vld [vmem:[#allocation79_spill] sm:$0xff] }
 0xd10   : > { %7503 = vmatpush1.bf16.msra.mxu0 %v13799_v63  ;;  %7544 = vmatpush1.bf16.msra.mxu1 %v13800_v11  ;;  %v13810_v63 = vld [vmem:[#allocation82_spill] sm:$0xff] }
 0xd11   : > { %7504 = vmatprep.subr.bf16.mxu0 %v13801_v45  ;;  %7545 = vmatprep.subr.bf16.mxu1 %v13802_v52 }
 0xd14   : > { %7505 = vmatpush1.bf16.msra.mxu0 %v13803_v53  ;;  %7546 = vmatpush1.bf16.msra.mxu1 %v13804_v18 }
 0xd15   : > { %7506 = vmatprep.subr.bf16.mxu0 %v13805_v16  ;;  %7547 = vmatprep.subr.bf16.mxu1 %v13806_v47  ;;  %v7220_v16 = vld [vmem:[#allocation3 + $0x190] sm:$0xff] }
 0xd18   : > { %7507 = vmatpush1.bf16.msra.mxu0 %v13807_v7  ;;  %7548 = vmatpush1.bf16.msra.mxu1 %v13808_v0 }
 0xd19   : > { %7558 = vmatprep.subr.bf16.mxu0 %v13809_v58  ;;  %7599 = vmatprep.subr.bf16.mxu1 %v13810_v63  ;;  %v7223_v63 = vld [vmem:[#allocation3 + $0x1a8] sm:$0xff] }
 0xd6e   : > { %v7262_v11 = vpop.f32.mrb[48].mxu0  ;;  %v7303_v45 = vpop.f32.mrb[48].mxu1 }
 0xd6f   : > { %v7264_v34 = vpop.f32.mrb[49].mxu0  ;;  %v7305_v52 = vpop.f32.mrb[49].mxu1  ;;  %v7392_v41 = vadd.f32 %v7262_v11, %v7218_v44  ;;  %v7394_v47 = vadd.f32 %v7303_v45, %v7220_v16 }
 0xd70   : > { %v7266_v35 = vpop.f32.mrb[50].mxu0  ;;  %v7307_v53 = vpop.f32.mrb[50].mxu1  ;;  %v7395_v61 = vadd.f32 %v7305_v52, %v7221_v1  ;;  %v7393_v58 = vadd.f32 %v7264_v34, %v7219_v50  ;;  %v7224_v50 = vld [vmem:[#allocation3 + $0x1b0] sm:$0xff]  ;;  %v7225_v52 = vld [vmem:[#allocation3 + $0x1b8] sm:$0xff] }
 0xd71   : > { %v7267_v31 = vpop.f32.mrb[51].mxu0  ;;  %v7308_v18 = vpop.f32.mrb[51].mxu1  ;;  %v9006_v7 = vmul.f32 -1.442695, %v7392_v41  ;;  %v9008_v0 = vmul.f32 -1.442695, %v7394_v47 }
 0xd72   : > { %v9009_v5 = vmul.f32 -1.442695, %v7395_v61  ;;  %v9007_v39 = vmul.f32 -1.442695, %v7393_v58 }
 0xd73   : > { %9716 = vpow2.f32 %v9006_v7 }
 0xd74   : > { %9718 = vpow2.f32 %v9008_v0 }
 0xd75   : > { %9720 = vpow2.f32 %v9009_v5 }
 0xd7d   : > { %v9717_v34 = vpop.eup %9716 }
 0xd7e   : > { %v9719_v61 = vpop.eup %9718 }
 0xd7f   : > { %v9721_v0 = vpop.eup %9720 }
 0xd80   : > { %v7427_v5 = vadd.f32 1.0, %v9721_v0 }
 0xdae   : > { %v7344_v14 = vpop.f32.mrb[52].mxu0  ;;  %v7385_v35 = vpop.f32.mrb[52].mxu1 }
 0xdaf   : > { %v7396_v53 = vadd.f32 %v7344_v14, %v7222_v43  ;;  %v7346_v31 = vpop.f32.mrb[53].mxu0  ;;  %v7387_v18 = vpop.f32.mrb[53].mxu1  ;;  %v7398_v47 = vadd.f32 %v7385_v35, %v7224_v50  ;;  %v7424_v14 = vadd.f32 1.0, %v9717_v34  ;;  %v7426_v43 = vadd.f32 1.0, %v9719_v61 }
 0xdb0   : > { %v7397_v6 = vadd.f32 %v7346_v31, %v7223_v63  ;;  %v7348_v44 = vpop.f32.mrb[54].mxu0  ;;  %v7389_v11 = vpop.f32.mrb[54].mxu1  ;;  %v7399_v7 = vadd.f32 %v7387_v18, %v7225_v52 }
 0xdb1   : > { %v9010_v45 = vmul.f32 -1.442695, %v7396_v53  ;;  %v7349_v41 = vpop.f32.mrb[55].mxu0  ;;  %v7390_v16 = vpop.f32.mrb[55].mxu1  ;;  %v9012_v63 = vmul.f32 -1.442695, %v7398_v47 }
 0xdb2   : > { %v9011_v1 = vmul.f32 -1.442695, %v7397_v6  ;;  %v9013_v6 = vmul.f32 -1.442695, %v7399_v7 }
 0xdb3   : > { %9722 = vpow2.f32 %v9010_v45 }
 0xdb4   : > { %9724 = vpow2.f32 %v9007_v39 }
 0xdb5   : > { %9726 = vpow2.f32 %v9011_v1 }
 0xdb6   : > { %9728 = vrcp.f32 %v7424_v14 }
 0xdb7   : > { %9730 = vrcp.f32 %v7426_v43 }
 0xdbd   : > { %v9723_v58 = vpop.eup %9722 }
 0xdbe   : > { %v9725_v31 = vpop.eup %9724  ;;  %v7428_v53 = vadd.f32 1.0, %v9723_v58 }
 0xdbf   : > { %v9727_v44 = vpop.eup %9726  ;;  %v7425_v11 = vadd.f32 1.0, %v9725_v31 }
 0xdc0   : > { %9732 = vrcp.f32 %v7428_v53  ;;  %v7429_v39 = vadd.f32 1.0, %v9727_v44  ;;  %v9729_v35 = vpop.eup %9728 }
 0xdc1   : > { %9734 = vpow2.f32 %v9012_v63  ;;  %v9731_v18 = vpop.eup %9730 }
 0xdc2   : > { %9736 = vrcp.f32 %v7429_v39  ;;  %v7452_v14 = vmul.f32 %v9731_v18, %v12545_v30 }
 0xdc3   : > { %9738 = vpow2.f32 %v9013_v6 }
 0xdc4   : > { %9740 = vrcp.f32 %v7427_v5 }
 0xdc5   : > { %9742 = vrcp.f32 %v7425_v11 }
 0xdca   : > { %v9733_v45 = vpop.eup %9732 }
 0xdcb   : > { %v9735_v41 = vpop.eup %9734  ;;  %v7448_v16 = vmul.f32 2.0, %v9733_v45  ;;  %v7467_v45 = vld [vmem:[#allocation3 + $0x1c8] sm:$0xff] }
 0xdcc   : > { %v9737_v1 = vpop.eup %9736  ;;  %v7430_v47 = vadd.f32 1.0, %v9735_v41 }
 0xdcd   : > { %v9739_v50 = vpop.eup %9738  ;;  %v9014_v34 = vadd.f32 -1.0, %v7448_v16  ;;  %v7449_v61 = vmul.f32 2.0, %v9737_v1 }
 0xdce   : > { %v9741_v52 = vpop.eup %9740  ;;  %v7431_v58 = vadd.f32 1.0, %v9739_v50  ;;  %9744 = vrcp.f32 %v7430_v47  ;;  %v7470_v50 = vld [vmem:[#allocation3 + $0x1e0] sm:$0xff] }
 0xdcf   : > { %v7454_v43 = vmul.f32 %v9729_v35, %v9014_v34  ;;  %v9015_v7 = vadd.f32 -1.0, %v7449_v61  ;;  %v9743_v0 = vpop.eup %9742  ;;  %v7453_v31 = vmul.f32 %v9741_v52, %v12549_v59  ;;  %v7471_v34 = vld [vmem:[#allocation3 + $0x1e8] sm:$0xff] }
 0xdd1   : > { %v12687_v63 = vadd.f32 %v7454_v43, %v7452_v14  ;;  %v7455_v53 = vmul.f32 %v9743_v0, %v9015_v7 }
 0xdd3   : > { %9746 = vtanh.f32 %v12687_v63  ;;  %v12691_v44 = vadd.f32 %v7455_v53, %v7453_v31 }
 0xdd4   : > { %9748 = vrcp.f32 %v7431_v58 }
 0xdd5   : > { %9750 = vtanh.f32 %v12691_v44 }
 0xdd8   : > { %v9745_v6 = vpop.eup %9744 }
 0xddd   : > { %v9747_v5 = vpop.eup %9746 }
 0xdde   : > { %v9749_v30 = vpop.eup %9748  ;;  %v7460_v39 = vmul.f32 %v9747_v5, %v9745_v6 }
 0xddf   : > { %v9751_v11 = vpop.eup %9750 }
 0xde0   : > { %v7461_v35 = vmul.f32 %v9751_v11, %v9749_v30  ;;  %7462 = vst [vmem:[#allocation2 + $0xc0] sm:$0xff] %v7460_v39  ;;  %7464 = vst [vmem:[#allocation2 + $0x30] sm:$0xff] %v7460_v39  ;;  %v12694_v18 = vpack.c.bf16 %v7460_v39, %v7460_v39  ;;  %v7472_v11 = vld [vmem:[#allocation3 + $0x1f0] sm:$0xff] }
 0xde2   : > { %7463 = vst [vmem:[#allocation2 + $0xc8] sm:$0xff] %v7461_v35  ;;  %7465 = vst [vmem:[#allocation2 + $0x38] sm:$0xff] %v7461_v35  ;;  %v7475_v59 = vpack.c.bf16 %v7461_v35, %v7461_v35 }
 0xde4   : > { %7508 = vmatprep.mubr.bf16.mxu0 %v7475_v59  ;;  %7549 = vmatprep.mubr.bf16.mxu1 %v7475_v59 }
 0xde5   : > { %7509 = vmatmul.mubr.bf16.vlgmr.msra.gmra.mrb[56].mxu0 %v12694_v18  ;;  %7550 = vmatmul.mubr.bf16.vlgmr.msra.gmra.mrb[56].mxu1 %v12694_v18 }
 0xde6   : > { %7559 = vmatpush1.bf16.msra.mxu0 %v13273_v24  ;;  %7600 = vmatpush1.bf16.msra.mxu1 %v13274_v23  ;;  %v13811_v24 = vld [vmem:[#allocation119_spill] sm:$0xff]  ;;  %v13812_v23 = vld [vmem:[#allocation122_spill] sm:$0xff] }
 0xde7   : > { %7590 = vmatprep.mubr.bf16.mxu0 %v7475_v59  ;;  %7631 = vmatprep.mubr.bf16.mxu1 %v7475_v59 }
 0xde8   : > { %7560 = vmatprep.subr.bf16.mxu0 %v13275_v54  ;;  %7601 = vmatprep.subr.bf16.mxu1 %v13276_v46  ;;  %v13813_v54 = vld [vmem:[#allocation121_spill] sm:$0xff]  ;;  %v13814_v46 = vld [vmem:[#allocation124_spill] sm:$0xff] }
 0xdea   : > { %7561 = vmatpush1.bf16.msra.mxu0 %v13277_v15  ;;  %7602 = vmatpush1.bf16.msra.mxu1 %v13278_v57  ;;  %v13815_v15 = vld [vmem:[#allocation123_spill] sm:$0xff]  ;;  %v13816_v57 = vld [vmem:[#allocation126_spill] sm:$0xff] }
 0xdeb   : > { %7562 = vmatprep.subr.bf16.mxu0 %v13279_v25  ;;  %7603 = vmatprep.subr.bf16.mxu1 %v13280_v3  ;;  %v13817_v25 = vld [vmem:[#allocation125_spill] sm:$0xff]  ;;  %v13818_v3 = vld [vmem:[#allocation128_spill] sm:$0xff] }
 0xdee   : > { %7563 = vmatpush1.bf16.msra.mxu0 %v13281_v38  ;;  %7604 = vmatpush1.bf16.msra.mxu1 %v13282_v49  ;;  %v13819_v38 = vld [vmem:[#allocation127_spill] sm:$0xff]  ;;  %v13820_v49 = vld [vmem:[#allocation130_spill] sm:$0xff] }
 0xdef   : > { %7564 = vmatprep.subr.bf16.mxu0 %v13361_v29  ;;  %7605 = vmatprep.subr.bf16.mxu1 %v13362_v12  ;;  %v13821_v29 = vld [vmem:[#allocation129_spill] sm:$0xff]  ;;  %v13822_v12 = vld [vmem:[#allocation132_spill] sm:$0xff] }
 0xdf2   : > { %7565 = vmatpush1.bf16.msra.mxu0 %v13363_v42  ;;  %7606 = vmatpush1.bf16.msra.mxu1 %v13364_v2  ;;  %v13823_v42 = vld [vmem:[#allocation131_spill] sm:$0xff]  ;;  %v13824_v2 = vld [vmem:[#allocation134_spill] sm:$0xff] }
 0xdf3   : > { %7566 = vmatprep.subr.bf16.mxu0 %v13365_v10  ;;  %7607 = vmatprep.subr.bf16.mxu1 %v13366_v40  ;;  %v13825_v10 = vld [vmem:[#allocation133_spill] sm:$0xff]  ;;  %v13826_v40 = vld [vmem:[#allocation136_spill] sm:$0xff] }
 0xdf6   : > { %7567 = vmatpush1.bf16.msra.mxu0 %v13367_v60  ;;  %7608 = vmatpush1.bf16.msra.mxu1 %v13368_v20  ;;  %v13827_v60 = vld [vmem:[#allocation135_spill] sm:$0xff]  ;;  %v13828_v20 = vld [vmem:[#allocation138_spill] sm:$0xff] }
 0xdf7   : > { %7568 = vmatprep.subr.bf16.mxu0 %v13369_v37  ;;  %7609 = vmatprep.subr.bf16.mxu1 %v13370_v56  ;;  %v13829_v37 = vld [vmem:[#allocation137_spill] sm:$0xff]  ;;  %v13830_v56 = vld [vmem:[#allocation140_spill] sm:$0xff] }
 0xdfa   : > { %7569 = vmatpush1.bf16.msra.mxu0 %v13371_v48  ;;  %7610 = vmatpush1.bf16.msra.mxu1 %v13372_v21  ;;  %v13831_v48 = vld [vmem:[#allocation139_spill] sm:$0xff]  ;;  %v13832_v21 = vld [vmem:[#allocation142_spill] sm:$0xff] }
 0xdfb   : > { %7570 = vmatprep.subr.bf16.mxu0 %v13451_v17  ;;  %7611 = vmatprep.subr.bf16.mxu1 %v13452_v19  ;;  %v7466_v17 = vld [vmem:[#allocation3 + $0x1c0] sm:$0xff]  ;;  %v7468_v19 = vld [vmem:[#allocation3 + $0x1d0] sm:$0xff] }
 0xdfe   : > { %7571 = vmatpush1.bf16.msra.mxu0 %v13453_v32  ;;  %7612 = vmatpush1.bf16.msra.mxu1 %v13454_v36 }
 0xdff   : > { %7572 = vmatprep.subr.bf16.mxu0 %v13455_v4  ;;  %7613 = vmatprep.subr.bf16.mxu1 %v13378_v62  ;;  %v7469_v4 = vld [vmem:[#allocation3 + $0x1d8] sm:$0xff] }
 0xe02   : > { %7573 = vmatpush1.bf16.msra.mxu0 %v13456_v33  ;;  %7614 = vmatpush1.bf16.msra.mxu1 %v13380_v26 }
 0xe03   : > { %7574 = vmatprep.subr.bf16.mxu0 %v13381_v27  ;;  %7615 = vmatprep.subr.bf16.mxu1 %v13382_v55 }
 0xe06   : > { %7575 = vmatpush1.bf16.msra.mxu0 %v13383_v22  ;;  %7616 = vmatpush1.bf16.msra.mxu1 %v13384_v8  ;;  %v13833_v8 = vld [vmem:[#allocation141_spill] sm:$0xff] }
 0xe07   : > { %7576 = vmatprep.subr.bf16.mxu0 %v13385_v13  ;;  %7617 = vmatprep.subr.bf16.mxu1 %v13386_v51  ;;  %v13834_v13 = vld [vmem:[#allocation143_spill] sm:$0xff] }
 0xe0a   : > { %7577 = vmatpush1.bf16.msra.mxu0 %v13387_v28  ;;  %7618 = vmatpush1.bf16.msra.mxu1 %v13388_v9 }
 0xe0b   : > { %7578 = vmatprep.subr.bf16.mxu0 %v13811_v24  ;;  %7619 = vmatprep.subr.bf16.mxu1 %v13812_v23 }
 0xe0e   : > { %7579 = vmatpush1.bf16.msra.mxu0 %v13813_v54  ;;  %7620 = vmatpush1.bf16.msra.mxu1 %v13814_v46 }
 0xe0f   : > { %7580 = vmatprep.subr.bf16.mxu0 %v13815_v15  ;;  %7621 = vmatprep.subr.bf16.mxu1 %v13816_v57 }
 0xe12   : > { %7581 = vmatpush1.bf16.msra.mxu0 %v13817_v25  ;;  %7622 = vmatpush1.bf16.msra.mxu1 %v13818_v3 }
 0xe13   : > { %7582 = vmatprep.subr.bf16.mxu0 %v13819_v38  ;;  %7623 = vmatprep.subr.bf16.mxu1 %v13820_v49 }
 0xe16   : > { %7583 = vmatpush1.bf16.msra.mxu0 %v13821_v29  ;;  %7624 = vmatpush1.bf16.msra.mxu1 %v13822_v12 }
 0xe17   : > { %7584 = vmatprep.subr.bf16.mxu0 %v13823_v42  ;;  %7625 = vmatprep.subr.bf16.mxu1 %v13824_v2 }
 0xe1a   : > { %7585 = vmatpush1.bf16.msra.mxu0 %v13825_v10  ;;  %7626 = vmatpush1.bf16.msra.mxu1 %v13826_v40 }
 0xe1b   : > { %7586 = vmatprep.subr.bf16.mxu0 %v13827_v60  ;;  %7627 = vmatprep.subr.bf16.mxu1 %v13828_v20 }
 0xe1e   : > { %7587 = vmatpush1.bf16.msra.mxu0 %v13829_v37  ;;  %7628 = vmatpush1.bf16.msra.mxu1 %v13830_v56 }
 0xe1f   : > { %7588 = vmatprep.subr.bf16.mxu0 %v13831_v48  ;;  %7629 = vmatprep.subr.bf16.mxu1 %v13832_v21 }
 0xe22   : > { %7589 = vmatpush1.bf16.msra.mxu0 %v13833_v8  ;;  %7630 = vmatpush1.bf16.msra.mxu1 %v13834_v13 }
 0xe25   : > { %7591 = vmatmul.mubr.bf16.vlgmr.msra.gmra.mrb[60].mxu0 %v12694_v18  ;;  %7632 = vmatmul.mubr.bf16.vlgmr.msra.gmra.mrb[60].mxu1 %v12694_v18  ;;  %v7473_v18 = vld [vmem:[#allocation3 + $0x1f8] sm:$0xff] }
 0xeb8   : > { %v7510_v51 = vpop.f32.mrb[56].mxu0  ;;  %v7551_v28 = vpop.f32.mrb[56].mxu1 }
 0xeb9   : > { %v7512_v9 = vpop.f32.mrb[57].mxu0  ;;  %v7553_v62 = vpop.f32.mrb[57].mxu1  ;;  %v7640_v32 = vadd.f32 %v7510_v51, %v7466_v17  ;;  %v7642_v36 = vadd.f32 %v7551_v28, %v7468_v19 }
 0xeba   : > { %v7514_v26 = vpop.f32.mrb[58].mxu0  ;;  %v7555_v27 = vpop.f32.mrb[58].mxu1  ;;  %v7643_v16 = vadd.f32 %v7553_v62, %v7469_v4  ;;  %v7641_v1 = vadd.f32 %v7512_v9, %v7467_v45 }
 0xebb   : > { %v7515_v55 = vpop.f32.mrb[59].mxu0  ;;  %v7556_v22 = vpop.f32.mrb[59].mxu1  ;;  %v9016_v33 = vmul.f32 -1.442695, %v7640_v32  ;;  %v9018_v41 = vmul.f32 -1.442695, %v7642_v36 }
 0xebc   : > { %v9019_v61 = vmul.f32 -1.442695, %v7643_v16  ;;  %v9017_v0 = vmul.f32 -1.442695, %v7641_v1  ;;  %v9790_v16 = vld [vmem:[#allocation9] sm:$0xff] (!%p9026_p0)  }
 0xebd   : > { %9752 = vpow2.f32 %v9016_v33  ;;  %v9791_v1 = vld [vmem:[#allocation9 + $0x80] sm:$0xff] (!%p9026_p0)  }
 0xebe   : > { %9754 = vpow2.f32 %v9018_v41  ;;  %v9789_v41 = vld [vmem:[#allocation9 + $0xc0] sm:$0xff] (!%p9026_p0)  }
 0xebf   : > { %9756 = vpow2.f32 %v9019_v61  ;;  %9105 = vmatprep.subr.bf16.mxu1 (!%p9026_p0), %v9789_v41  ;;  %v9794_v61 = vld [vmem:[#allocation9 + $0x8] sm:$0xff] (!%p9026_p0)   ;;  %v7740_v41 = vld [vmem:[#allocation2 + $0xb0] sm:$0xff] (!%p9026_p0) }
 0xec0   : > { %9106 = vmatpush3.bf16.msra.mxu1 (!%p9026_p0), %v9791_v1 }
 0xec7   : > { %v9753_v35 = vpop.eup %9752 }
 0xec8   : > { %v9755_v59 = vpop.eup %9754  ;;  %v7672_v23 = vadd.f32 1.0, %v9753_v35  ;;  %v9809_v35 = vld [vmem:[#allocation9 + $0xe8] sm:$0xff] (!%p9026_p0)  }
 0xec9   : > { %v7674_v54 = vadd.f32 1.0, %v9755_v59  ;;  %v9757_v15 = vpop.eup %9756  ;;  %v9810_v59 = vld [vmem:[#allocation9 + $0x28] sm:$0xff] (!%p9026_p0)  }
 0xeca   : > { %v7675_v12 = vadd.f32 1.0, %v9757_v15  ;;  %v9816_v15 = vld [vmem:[#allocation9 + $0x78] sm:$0xff] (!%p9026_p0)  }
 0xef8   : > { %v7592_v52 = vpop.f32.mrb[60].mxu0  ;;  %v7633_v47 = vpop.f32.mrb[60].mxu1 }
 0xef9   : > { %v7644_v14 = vadd.f32 %v7592_v52, %v7470_v50  ;;  %v7594_v43 = vpop.f32.mrb[61].mxu0  ;;  %v7635_v7 = vpop.f32.mrb[61].mxu1  ;;  %v7646_v24 = vadd.f32 %v7633_v47, %v7472_v11  ;;  %v9792_v50 = vld [vmem:[#allocation9 + $0x48] sm:$0xff] (!%p9026_p0)   ;;  %v9796_v47 = vld [vmem:[#allocation9 + $0x50] sm:$0xff] (!%p9026_p0)  }
 0xefa   : > { %v7645_v58 = vadd.f32 %v7594_v43, %v7471_v34  ;;  %v7596_v31 = vpop.f32.mrb[62].mxu0  ;;  %v7637_v53 = vpop.f32.mrb[62].mxu1  ;;  %v7647_v46 = vadd.f32 %v7635_v7, %v7473_v18  ;;  %v9793_v34 = vld [vmem:[#allocation9 + $0xc8] sm:$0xff] (!%p9026_p0)   ;;  %v9798_v43 = vld [vmem:[#allocation9 + $0x10] sm:$0xff] (!%p9026_p0)  }
 0xefb   : > { %v9020_v6 = vmul.f32 -1.442695, %v7644_v14  ;;  %v7597_v5 = vpop.f32.mrb[63].mxu0  ;;  %v7638_v30 = vpop.f32.mrb[63].mxu1  ;;  %v9022_v25 = vmul.f32 -1.442695, %v7646_v24  ;;  %9107 = vmatprep.subr.bf16.mxu1 (!%p9026_p0), %v9793_v34 }
 0xefc   : > { %v9021_v39 = vmul.f32 -1.442695, %v7645_v58  ;;  %v9023_v29 = vmul.f32 -1.442695, %v7647_v46  ;;  %v9795_v52 = vld [vmem:[#allocation9 + $0x88] sm:$0xff] (!%p9026_p0)   ;;  %v9797_v14 = vld [vmem:[#allocation9 + $0xd0] sm:$0xff] (!%p9026_p0)  }
 0xefd   : > { %9758 = vpow2.f32 %v9020_v6  ;;  %9108 = vmatpush3.bf16.msra.mxu1 (!%p9026_p0), %v9795_v52  ;;  %v9799_v7 = vld [vmem:[#allocation9 + $0x90] sm:$0xff] (!%p9026_p0)   ;;  %v9801_v58 = vld [vmem:[#allocation9 + $0xd8] sm:$0xff] (!%p9026_p0)   ;;  %v9804_v6 = vld [vmem:[#allocation9 + $0x60] sm:$0xff] (!%p9026_p0)  }
 0xefe   : > { %9760 = vpow2.f32 %v9017_v0  ;;  %9109 = vmatprep.subr.bf16.mxu1 (!%p9026_p0), %v9797_v14  ;;  %v9800_v0 = vld [vmem:[#allocation9 + $0x58] sm:$0xff] (!%p9026_p0)   ;;  %v9805_v5 = vld [vmem:[#allocation9 + $0xe0] sm:$0xff] (!%p9026_p0)   ;;  %v9808_v11 = vld [vmem:[#allocation9 + $0x68] sm:$0xff] (!%p9026_p0)  }
 0xeff   : > { %9762 = vpow2.f32 %v9021_v39  ;;  %v9802_v31 = vld [vmem:[#allocation9 + $0x18] sm:$0xff] (!%p9026_p0)   ;;  %v9806_v30 = vld [vmem:[#allocation9 + $0x20] sm:$0xff] (!%p9026_p0)   ;;  %v9811_v18 = vld [vmem:[#allocation9 + $0xa8] sm:$0xff] (!%p9026_p0)  }
 0xf00   : > { %9764 = vrcp.f32 %v7672_v23  ;;  %v9803_v53 = vld [vmem:[#allocation9 + $0x98] sm:$0xff] (!%p9026_p0)   ;;  %v9807_v39 = vld [vmem:[#allocation9 + $0xa0] sm:$0xff] (!%p9026_p0)   ;;  %v9812_v24 = vld [vmem:[#allocation9 + $0x70] sm:$0xff] (!%p9026_p0)  }
 0xf01   : > { %9766 = vrcp.f32 %v7674_v54  ;;  %9110 = vmatpush3.bf16.msra.mxu1 (!%p9026_p0), %v9799_v7  ;;  %v9813_v23 = vld [vmem:[#allocation9 + $0xf0] sm:$0xff] (!%p9026_p0)   ;;  %v7749_v34 = vld [vmem:[#allocation2 + $0xf8] sm:$0xff] (!%p9026_p0) }
 0xf02   : > { %9111 = vmatprep.subr.bf16.mxu1 (!%p9026_p0), %v9801_v58  ;;  %v9814_v54 = vld [vmem:[#allocation9 + $0x30] sm:$0xff] (!%p9026_p0)   ;;  %v7748_v58 = vld [vmem:[#allocation2 + $0xf0] sm:$0xff] (!%p9026_p0) }
 0xf03   : > { %v9815_v46 = vld [vmem:[#allocation9 + $0xb0] sm:$0xff] (!%p9026_p0)  }
 0xf05   : > { %9112 = vmatpush3.bf16.msra.mxu1 (!%p9026_p0), %v9803_v53 }
 0xf06   : > { %9113 = vmatprep.subr.bf16.mxu1 (!%p9026_p0), %v9805_v5 }
 0xf07   : > { %v9759_v57 = vpop.eup %9758 }
 0xf08   : > { %v9761_v3 = vpop.eup %9760  ;;  %v7676_v38 = vadd.f32 1.0, %v9759_v57  ;;  %v9817_v57 = vld [vmem:[#allocation9 + $0xf8] sm:$0xff] (!%p9026_p0)  }
 0xf09   : > { %v9763_v49 = vpop.eup %9762  ;;  %v7673_v2 = vadd.f32 1.0, %v9761_v3  ;;  %9114 = vmatpush3.bf16.msra.mxu1 (!%p9026_p0), %v9807_v39  ;;  %v9819_v3 = vld [vmem:[#allocation9 + $0xb8] sm:$0xff] (!%p9026_p0)  }
 0xf0a   : > { %9768 = vrcp.f32 %v7676_v38  ;;  %v7677_v42 = vadd.f32 1.0, %v9763_v49  ;;  %v9765_v10 = vpop.eup %9764  ;;  %9115 = vmatprep.subr.bf16.mxu1 (!%p9026_p0), %v9809_v35  ;;  %v7719_v38 = vld [vmem:[#allocation2 + $0x8] sm:$0xff] (!%p9026_p0) }
 0xf0b   : > { %9770 = vpow2.f32 %v9022_v25  ;;  %v9767_v40 = vpop.eup %9766  ;;  %v9818_v25 = vld [vmem:[#allocation9 + $0x38] sm:$0xff] (!%p9026_p0)  }
 0xf0c   : > { %9772 = vrcp.f32 %v7677_v42  ;;  %v7700_v28 = vmul.f32 %v9767_v40, %v12687_v63  ;;  %v7723_v49 = vld [vmem:[#allocation2 + $0x28] sm:$0xff] (!%p9026_p0)  ;;  %v7725_v42 = vld [vmem:[#allocation2 + $0x38] sm:$0xff] (!%p9026_p0) }
 0xf0d   : > { %9774 = vpow2.f32 %v9023_v29  ;;  %9116 = vmatpush3.bf16.msra.mxu1 (!%p9026_p0), %v9811_v18 }
 0xf0e   : > { %9776 = vrcp.f32 %v7675_v12  ;;  %9117 = vmatprep.subr.bf16.mxu1 (!%p9026_p0), %v9813_v23  ;;  %v7751_v12 = vpack.c.bf16 (!%p9026_p0), %v7723_v49, %v7719_v38 }
 0xf0f   : > { %9778 = vrcp.f32 %v7673_v2  ;;  %v7718_v2 = vld [vmem:[#allocation2] sm:$0xff] (!%p9026_p0) }
 0xf10   : > { %8061 = vmatprep.mubr.bf16.mxu0 (!%p9026_p0), %v7751_v12 }
 0xf11   : > { %9118 = vmatpush3.bf16.msra.mxu1 (!%p9026_p0), %v9815_v46 }
 0xf12   : > { %9119 = vmatprep.subr.bf16.mxu1 (!%p9026_p0), %v9817_v57 }
 0xf14   : > { %v9769_v60 = vpop.eup %9768 }
 0xf15   : > { %v9771_v20 = vpop.eup %9770  ;;  %v7696_v37 = vmul.f32 2.0, %v9769_v60  ;;  %9120 = vmatpush3.bf16.msra.mxu1 (!%p9026_p0), %v9819_v3 }
 0xf16   : > { %v9773_v56 = vpop.eup %9772  ;;  %v7678_v51 = vadd.f32 1.0, %v9771_v20 }
 0xf17   : > { %v9775_v48 = vpop.eup %9774  ;;  %v9024_v21 = vadd.f32 -1.0, %v7696_v37  ;;  %v7697_v8 = vmul.f32 2.0, %v9773_v56  ;;  %v7724_v37 = vld [vmem:[#allocation2 + $0x30] sm:$0xff] (!%p9026_p0)  ;;  %v7727_v56 = vld [vmem:[#allocation2 + $0x48] sm:$0xff] (!%p9026_p0) }
 0xf18   : > { %v9777_v13 = vpop.eup %9776  ;;  %v7679_v27 = vadd.f32 1.0, %v9775_v48  ;;  %9780 = vrcp.f32 %v7678_v51 }
 0xf19   : > { %v7702_v9 = vmul.f32 %v9765_v10, %v9024_v21  ;;  %v9025_v62 = vadd.f32 -1.0, %v7697_v8  ;;  %v9779_v26 = vpop.eup %9778  ;;  %v7701_v22 = vmul.f32 %v9777_v13, %v12691_v44  ;;  %v9788_v44 = vld [vmem:[#allocation9 + $0x40] sm:$0xff] (!%p9026_p0)   ;;  %v7722_v10 = vld [vmem:[#allocation2 + $0x20] sm:$0xff] (!%p9026_p0)  ;;  %v7731_v21 = vld [vmem:[#allocation2 + $0x68] sm:$0xff] (!%p9026_p0) }
 0xf1a   : > { %9065 = vmatprep.subr.bf16.mxu0 (!%p9026_p0), %v9788_v44  ;;  %v7750_v60 = vpack.c.bf16 (!%p9026_p0), %v7722_v10, %v7718_v2  ;;  %v7729_v8 = vld [vmem:[#allocation2 + $0x58] sm:$0xff] (!%p9026_p0)  ;;  %v7755_v51 = vpack.c.bf16 (!%p9026_p0), %v7731_v21, %v7727_v56  ;;  %v7736_v44 = vld [vmem:[#allocation2 + $0x90] sm:$0xff] (!%p9026_p0) }
 0xf1b   : > { %v7704_v55 = vadd.f32 %v7702_v9, %v7700_v28  ;;  %v7703_v17 = vmul.f32 %v9779_v26, %v9025_v62  ;;  %9066 = vmatpush3.bf16.msra.mxu0 (!%p9026_p0), %v9790_v16  ;;  %v7733_v13 = vld [vmem:[#allocation2 + $0x78] sm:$0xff] (!%p9026_p0)  ;;  %v7726_v9 = vld [vmem:[#allocation2 + $0x40] sm:$0xff] (!%p9026_p0)  ;;  %v7728_v26 = vld [vmem:[#allocation2 + $0x50] sm:$0xff] (!%p9026_p0)  ;;  %v7760_v52 = vpack.c.bf16 (!%p9026_p0), %v7740_v41, %v7736_v44 }
 0xf1c   : > { %9067 = vmatprep.subr.bf16.mxu0 (!%p9026_p0), %v9792_v50  ;;  %v7757_v28 = vpack.c.bf16 (!%p9026_p0), %v7733_v13, %v7729_v8  ;;  %v7730_v62 = vld [vmem:[#allocation2 + $0x60] sm:$0xff] (!%p9026_p0)  ;;  %v7743_v16 = vld [vmem:[#allocation2 + $0xc8] sm:$0xff] (!%p9026_p0)  ;;  %v7745_v50 = vld [vmem:[#allocation2 + $0xd8] sm:$0xff] (!%p9026_p0) }
 0xf1d   : > { %9782 = vtanh.f32 %v7704_v55  ;;  %v7705_v19 = vadd.f32 %v7703_v17, %v7701_v22  ;;  %v7735_v55 = vld [vmem:[#allocation2 + $0x88] sm:$0xff] (!%p9026_p0)  ;;  %v7737_v17 = vld [vmem:[#allocation2 + $0x98] sm:$0xff] (!%p9026_p0)  ;;  %v7765_v14 = vpack.c.bf16 (!%p9026_p0), %v7749_v34, %v7745_v50 }
 0xf1e   : > { %9784 = vrcp.f32 %v7679_v27  ;;  %v7732_v27 = vld [vmem:[#allocation2 + $0x70] sm:$0xff] (!%p9026_p0)  ;;  %v7739_v22 = vld [vmem:[#allocation2 + $0xa8] sm:$0xff] (!%p9026_p0) }
 0xf1f   : > { %9786 = vtanh.f32 %v7705_v19  ;;  %9068 = vmatpush3.bf16.msra.mxu0 (!%p9026_p0), %v9794_v61  ;;  %v7741_v19 = vld [vmem:[#allocation2 + $0xb8] sm:$0xff] (!%p9026_p0) }
 0xf20   : > { %9069 = vmatprep.subr.bf16.mxu0 (!%p9026_p0), %v9796_v47 }
 0xf22   : > { %v9781_v32 = vpop.eup %9780 }
 0xf23   : > { %9070 = vmatpush3.bf16.msra.mxu0 (!%p9026_p0), %v9798_v43  ;;  %v7742_v43 = vld [vmem:[#allocation2 + $0xc0] sm:$0xff] (!%p9026_p0) }
 0xf24   : > { %9071 = vmatprep.subr.bf16.mxu0 (!%p9026_p0), %v9800_v0  ;;  %v7744_v0 = vld [vmem:[#allocation2 + $0xd0] sm:$0xff] (!%p9026_p0) }
 0xf25   : > { %v7764_v53 = vpack.c.bf16 (!%p9026_p0), %v7748_v58, %v7744_v0 }
 0xf26   : > { %7717 = sbr.rel (%p9026_p0) target bundleno = 4144 (0x1030), region = 76 }
 0xf27   : > { %v9783_v36 = vpop.eup %9782  ;;  %9072 = vmatpush3.bf16.msra.mxu0 (!%p9026_p0), %v9802_v31 }
 0xf28   : > { %v9785_v4 = vpop.eup %9784  ;;  %v7708_v33 = vmul.f32 %v9783_v36, %v9781_v32  ;;  %9073 = vmatprep.subr.bf16.mxu0 (!%p9026_p0), %v9804_v6  ;;  %v7754_v32 = vpack.c.bf16 (!%p9026_p0), %v7730_v62, %v7726_v9  ;;  %v7756_v36 = vpack.c.bf16 (!%p9026_p0), %v7732_v27, %v7728_v26 }
 0xf29   : > { %v9787_v45 = vpop.eup %9786 }
 0xf2a   : > { %7710 = vst [vmem:[#allocation2 + $0xe0] sm:$0xff] %v7708_v33  ;;  %7712 = vst [vmem:[#allocation2 + $0x10] sm:$0xff] %v7708_v33  ;;  %v7709_v63 = vmul.f32 %v9787_v45, %v9785_v4  ;;  %v7759_v4 = vpack.c.bf16 (!%p9026_p0), %v7739_v22, %v7735_v55  ;;  %v7761_v33 = vpack.c.bf16 (!%p9026_p0), %v7741_v19, %v7737_v17  ;;  %v7734_v45 = vld [vmem:[#allocation2 + $0x80] sm:$0xff] (!%p9026_p0) }
 0xf2b   : > { %9074 = vmatpush3.bf16.msra.mxu0 (!%p9026_p0), %v9806_v30  ;;  %v12765_v30 = vld [vmem:[#allocation11] ss:$0 sm:$0xff] (!%p9026_p0) }
 0xf2c   : > { %7711 = vst [vmem:[#allocation2 + $0xe8] sm:$0xff] %v7709_v63  ;;  %7713 = vst [vmem:[#allocation2 + $0x18] sm:$0xff] %v7709_v63  ;;  %9075 = vmatprep.subr.bf16.mxu0 (!%p9026_p0), %v9808_v11  ;;  %v7738_v63 = vld [vmem:[#allocation2 + $0xa0] sm:$0xff] (!%p9026_p0) }
 0xf2d   : > { %v7758_v61 = vpack.c.bf16 %v7738_v63, %v7734_v45 }
 0xf2f   : > { %9076 = vmatpush3.bf16.msra.mxu0 %v9810_v59 }
 0xf30   : > { %9077 = vmatprep.subr.bf16.mxu0 %v9812_v24 }
 0xf31   : > { %v7720_v20 = vld [vmem:[#allocation2 + $0x10] sm:$0xff]  ;;  %v7746_v7 = vld [vmem:[#allocation2 + $0xe0] sm:$0xff] }
 0xf32   : > { %v7752_v48 = vpack.c.bf16 %v7724_v37, %v7720_v20  ;;  %v7762_v31 = vpack.c.bf16 %v7746_v7, %v7742_v43 }
 0xf33   : > { %9078 = vmatpush3.bf16.msra.mxu0 %v9814_v54  ;;  %v7721_v29 = vld [vmem:[#allocation2 + $0x18] sm:$0xff]  ;;  %v7747_v1 = vld [vmem:[#allocation2 + $0xe8] sm:$0xff] }
 0xf34   : > { %9079 = vmatprep.subr.bf16.mxu0 %v9816_v15  ;;  %v7753_v40 = vpack.c.bf16 %v7725_v42, %v7721_v29  ;;  %v7763_v47 = vpack.c.bf16 %v7747_v1, %v7743_v16 }
 0xf36   : > { %8126 = vmatprep.mubr.bf16.mxu1 %v7753_v40 }
 0xf37   : > { %9080 = vmatpush3.bf16.msra.mxu0 %v9818_v25  ;;  %8127 = vmatmul.mubr.bf16.vlgmr.msra.gmra.mrb[0].mxu1 %v7752_v48 }
 0xf38   : > { %8134 = vmatprep.mubr.bf16.mxu1 %v7757_v28 }
 0xf3a   : > { %8062 = vmatmul.mubr.bf16.vlgmr.msra.gmra.mrb[0].mxu0 %v7750_v60 }
 0xf3b   : > { %8069 = vmatprep.mubr.bf16.mxu0 %v7755_v51 }
 0xf3f   : > { %8135 = vmatmul.mubr.bf16.gmra.mrb[4].mxu1 %v7756_v36 }
 0xf40   : > { %8142 = vmatprep.mubr.bf16.mxu1 %v7761_v33 }
 0xf42   : > { %8070 = vmatmul.mubr.bf16.gmra.mrb[4].mxu0 %v7754_v32 }
 0xf43   : > { %8077 = vmatprep.mubr.bf16.mxu0 %v7759_v4 }
 0xf47   : > { %8143 = vmatmul.mubr.bf16.gmra.mrb[8].mxu1 %v7760_v52 }
 0xf48   : > { %8150 = vmatprep.mubr.bf16.mxu1 %v7765_v14 }
 0xf4a   : > { %8078 = vmatmul.mubr.bf16.gmra.mrb[8].mxu0 %v7758_v61 }
 0xf4b   : > { %8085 = vmatprep.mubr.bf16.mxu0 %v7763_v47 }
 0xf4f   : > { %8151 = vmatmul.mubr.bf16.gmra.mrb[12].mxu1 %v7764_v53 }
 0xf52   : > { %8086 = vmatmul.mubr.bf16.gmra.mrb[12].mxu0 %v7762_v31 }
0x100a   : > { %v9121_v5 = vpop.f32.mrb[0].mxu1 }
0x100b   : > { %v9122_v35 = vpop.f32.mrb[1].mxu1 }
0x100c   : > { %v9123_v18 = vadd.f32 %v9122_v35, %v9121_v5  ;;  %v9124_v24 = vpop.f32.mrb[2].mxu1 }
0x100d   : > { %v9081_v6 = vpop.f32.mrb[0].mxu0  ;;  %v9125_v15 = vpop.f32.mrb[3].mxu1 }
0x100e   : > { %v9082_v39 = vpop.f32.mrb[1].mxu0  ;;  %v9126_v57 = vadd.f32 %v9125_v15, %v9124_v24 }
0x100f   : > { %v9083_v11 = vadd.f32 %v9082_v39, %v9081_v6  ;;  %v9084_v59 = vpop.f32.mrb[2].mxu0 }
0x1010   : > { %v9085_v23 = vpop.f32.mrb[3].mxu0 }
0x1011   : > { %v8064_v54 = vadd.f32 %v9083_v11, %v12765_v30  ;;  %v9086_v46 = vadd.f32 %v9085_v23, %v9084_v59 }
0x1012   : > { %v9127_v29 = vpop.f32.mrb[4].mxu1 }
0x1013   : > { %v8129_v25 = vadd.f32 %v9123_v18, %v8064_v54  ;;  %v8067_v3 = vadd.f32 %v9086_v46, %v12765_v30  ;;  %v9128_v2 = vpop.f32.mrb[5].mxu1 }
0x1014   : > { %v9129_v40 = vadd.f32 %v9128_v2, %v9127_v29  ;;  %v9130_v60 = vpop.f32.mrb[6].mxu1 }
0x1015   : > { %8159 = vst [vmem:[%s12818_s6] sm:$0xff] %v8129_v25  ;;  %v8132_v38 = vadd.f32 %v9126_v57, %v8067_v3  ;;  %v9087_v49 = vpop.f32.mrb[4].mxu0  ;;  %v9131_v48 = vpop.f32.mrb[7].mxu1 }
0x1016   : > { %v9088_v12 = vpop.f32.mrb[5].mxu0  ;;  %v9132_v21 = vadd.f32 %v9131_v48, %v9130_v60 }
0x1017   : > { %8160 = vst [vmem:[%s12818_s6 + $0x8] sm:$0xff] %v8132_v38  ;;  %v9089_v42 = vadd.f32 %v9088_v12, %v9087_v49  ;;  %v9090_v10 = vpop.f32.mrb[6].mxu0 }
0x1018   : > { %v9091_v20 = vpop.f32.mrb[7].mxu0 }
0x1019   : > { %v8072_v37 = vadd.f32 %v9089_v42, %v12765_v30  ;;  %v9092_v56 = vadd.f32 %v9091_v20, %v9090_v10 }
0x101a   : > { %v9133_v9 = vpop.f32.mrb[8].mxu1 }
0x101b   : > { %v8137_v8 = vadd.f32 %v9129_v40, %v8072_v37  ;;  %v8075_v13 = vadd.f32 %v9092_v56, %v12765_v30  ;;  %v9134_v27 = vpop.f32.mrb[9].mxu1 }
0x101c   : > { %v9135_v22 = vadd.f32 %v9134_v27, %v9133_v9  ;;  %v9136_v17 = vpop.f32.mrb[10].mxu1 }
0x101d   : > { %8161 = vst [vmem:[%s12818_s6 + $0x10] sm:$0xff] %v8137_v8  ;;  %v8140_v51 = vadd.f32 %v9132_v21, %v8075_v13  ;;  %v9093_v28 = vpop.f32.mrb[8].mxu0  ;;  %v9137_v4 = vpop.f32.mrb[11].mxu1 }
0x101e   : > { %v9094_v62 = vpop.f32.mrb[9].mxu0  ;;  %v9138_v33 = vadd.f32 %v9137_v4, %v9136_v17 }
0x101f   : > { %8162 = vst [vmem:[%s12818_s6 + $0x18] sm:$0xff] %v8140_v51  ;;  %v9095_v26 = vadd.f32 %v9094_v62, %v9093_v28  ;;  %v9096_v55 = vpop.f32.mrb[10].mxu0 }
0x1020   : > { %v9097_v19 = vpop.f32.mrb[11].mxu0 }
0x1021   : > { %v8080_v32 = vadd.f32 %v9095_v26, %v12765_v30  ;;  %v9098_v36 = vadd.f32 %v9097_v19, %v9096_v55 }
0x1022   : > { %v9139_v16 = vpop.f32.mrb[12].mxu1 }
0x1023   : > { %v8145_v45 = vadd.f32 %v9135_v22, %v8080_v32  ;;  %v8083_v63 = vadd.f32 %v9098_v36, %v12765_v30  ;;  %v9140_v34 = vpop.f32.mrb[13].mxu1 }
0x1024   : > { %v9141_v52 = vadd.f32 %v9140_v34, %v9139_v16  ;;  %v9142_v47 = vpop.f32.mrb[14].mxu1 }
0x1025   : > { %8163 = vst [vmem:[%s12818_s6 + $0x20] sm:$0xff] %v8145_v45  ;;  %v8148_v44 = vadd.f32 %v9138_v33, %v8083_v63  ;;  %v9099_v41 = vpop.f32.mrb[12].mxu0  ;;  %v9143_v0 = vpop.f32.mrb[15].mxu1 }
0x1026   : > { %v9100_v1 = vpop.f32.mrb[13].mxu0  ;;  %v9144_v58 = vadd.f32 %v9143_v0, %v9142_v47 }
0x1027   : > { %8164 = vst [vmem:[%s12818_s6 + $0x28] sm:$0xff] %v8148_v44  ;;  %v9101_v50 = vadd.f32 %v9100_v1, %v9099_v41  ;;  %v9102_v61 = vpop.f32.mrb[14].mxu0 }
0x1028   : > { %v9103_v14 = vpop.f32.mrb[15].mxu0 }
0x1029   : > { %v8088_v43 = vadd.f32 %v9101_v50, %v12765_v30  ;;  %v9104_v7 = vadd.f32 %v9103_v14, %v9102_v61 }
0x102b   : > { %v8153_v31 = vadd.f32 %v9141_v52, %v8088_v43  ;;  %v8091_v53 = vadd.f32 %v9104_v7, %v12765_v30 }
0x102d   : > { %8165 = vst [vmem:[%s12818_s6 + $0x30] sm:$0xff] %v8153_v31  ;;  %v8156_v6 = vadd.f32 %v9144_v58, %v8091_v53 }
0x102f   : > { %8166 = vst [vmem:[%s12818_s6 + $0x38] sm:$0xff] %v8156_v6 }
0x1030 PF: > { %s13835_s27 = sld [smem:[#allocation15_spill]]  ;;  %p20_p8 = scmp.ge.s32.totalorder %s10077_s26, 4  }
0x1031   : > { %s13836_s21 = smov %s10000_s22  ;;  %s13837_s22 = smov %s10004_s23 }
0x1032   : > { %s13839_s24 = smov %s10077_s26  ;;  %22 = sbr.rel (!%p20_p8) target bundleno = 9 (0x9), region = 124 }
0x1036   : > { %s13838_s23 = smov %s13835_s27 }
0x1039   :  { %8178 = vsyncpa [#allocation5], 1 }
0x103a   :  { %8180 = vsyncpa [#allocation5 + $0x1], 1 }
0x103b   :  { %8181 = vsyncpa [#allocation7], 1 }
0x103c   :  { %8183 = vsyncpa [#allocation7 + $0x1], 1 }
0x103d   :  { %8184 = vsyncpa [#allocation10], 1 }

</bundles_post_ra>
